<compile_context>
chip_gen: v6e
topology: v6e:2x2x1
jax: 0.10.0
libtpu: 0.0.40
codegen_flags: <defaults>
</compile_context>

<pallas_src>
import numpy as np
import jax
import jax.numpy as jnp
from jax.experimental import pallas as pl
from jax.experimental.pallas import tpu as pltpu

# ---------------------------------------------------------------------------
# Hyper-parameters mirroring CNN.py (options.X* chosen deterministically)
# ---------------------------------------------------------------------------
X1, X2 = 0, 8
X3, X4 = 10, 16
X5, X6 = 20, 26
FEATURES = list(range(X1, X2)) + list(range(X3, X4)) + list(range(X5, X6))
IN_CHANNEL = len(FEATURES)          # 20
C1 = 24                             # IN_CHANNEL zero-padded to a sublane multiple
N_HID = 56
KS = (11, 9, 7, 7, 5)               # kernel sizes of the 5 *used* conv blocks
RESIDUALS = (False, True, True, True, False)
SEQ_MHCP = 192                      # x[:, :, 0:192]
PAD_M = 160                         # ConstantPad1d(160) -> 192 + 320 = 512
PAD_T = 118                         # ConstantPad1d(118) -> 276 + 236 = 512
PAD1 = KS[0] // 2                   # conv-1 'same' padding folded into input pad
SEQ_LEN = 468                       # TCR slice is 276 long
FEAT_DIM = 30                       # raw feature axis (>= max(FEATURES)+1)
L0 = 512                            # length entering conv block 1
LPAD = 640                          # lane-aligned pre-padded input width (>= 522)
SZ0 = 16 * N_HID                    # 896 = flattened size after 5 avg-pools
BN_EPS = 1e-5

COL_ROWS = max(k * (C1 if i == 0 else N_HID) for i, k in enumerate(KS))   # 504
PAD_BUF_W = 512                     # padded-activation scratch width
PAD_OFF = 128                       # activation written at lane-aligned offset
MARGIN = 4                          # max conv half-width for blocks 2..5
VMEM_LIMIT = 32 * 1024 * 1024


# ---------------------------------------------------------------------------
# Fused conv-trunk kernel: 5 x (Conv1d + BN + ReLU [+ residual] + AvgPool2)
# for ONE branch of ONE batch element per grid step.  All activations stay in
# VMEM; each conv is a single im2col matmul.
# ---------------------------------------------------------------------------
def _trunk_kernel(x_ref, w1_ref, w2_ref, w3_ref, w4_ref, w5_ref,
                  bias_ref, pool_ref, o_ref, col_ref, pad_ref):
    w_refs = (w1_ref, w2_ref, w3_ref, w4_ref, w5_ref)

    # ----- block 1 (no residual): reads the pre-padded input directly.
    L = L0
    K = KS[0]
    for k in range(K):                                    # im2col (264, 512)
        col_ref[k * C1:(k + 1) * C1, 0:L] = x_ref[0, 0, :, k:k + L]
    y = jnp.dot(w_refs[0][0], col_ref[0:K * C1, 0:L],
                preferred_element_type=jnp.float32)
    y = jnp.maximum(y + bias_ref[0, :, 0:1], 0.0)         # folded BN + ReLU
    act = jnp.dot(y, pool_ref[0:L, 0:L // 2],             # AvgPool(2, 2)
                  preferred_element_type=jnp.float32)
    L //= 2

    # Zero only the left 'same'-padding margin once per grid step.
    pad_ref[:, PAD_OFF - MARGIN:PAD_OFF] = jnp.zeros((N_HID, MARGIN), jnp.float32)

    # ----- blocks 2..5: running activation padded inside the VMEM scratch.
    for i in range(1, 5):
        K = KS[i]
        p = K // 2
        # Zero only the right margin (stale data from the previous block/step).
        pad_ref[:, PAD_OFF + L:PAD_OFF + L + MARGIN] = (
            jnp.zeros((N_HID, MARGIN), jnp.float32))
        pad_ref[:, PAD_OFF:PAD_OFF + L] = act             # lane-aligned store
        for k in range(K):                                # im2col (K*56, L)
            col_ref[k * N_HID:(k + 1) * N_HID, 0:L] = (
                pad_ref[:, PAD_OFF - p + k:PAD_OFF - p + k + L])
        y = jnp.dot(w_refs[i][0], col_ref[0:K * N_HID, 0:L],
                    preferred_element_type=jnp.float32)
        y = jnp.maximum(y + bias_ref[0, :, i:i + 1], 0.0)
        if RESIDUALS[i]:
            y = act + y                                   # x + relu(bn(conv(x)))
        act = jnp.dot(y, pool_ref[0:L, 0:L // 2],
                      preferred_element_type=jnp.float32)
        L //= 2

    o_ref[0, 0] = act                                     # (56, 16)


def trunk_call(x_all, pp):
    """x_all: (2, B, C1, LPAD) pre-padded inputs.  Returns (2, B, 56, 16)."""
    B = x_all.shape[1]
    conv_w = pp["conv_w"]                                 # 5 arrays, (2, 56, K*C)
    args = [x_all, *conv_w, pp["conv_b"], pp["pool"]]

    in_specs = [pl.BlockSpec((1, 1, C1, LPAD), lambda br, b: (br, b, 0, 0))]
    for w in conv_w:                                      # branch-resident weights
        in_specs.append(pl.BlockSpec((1,) + w.shape[1:], lambda br, b: (br, 0, 0)))
    in_specs.append(pl.BlockSpec((1, N_HID, len(KS)), lambda br, b: (br, 0, 0)))
    in_specs.append(pl.BlockSpec((L0, L0 // 2), lambda br, b: (0, 0)))

    out_specs = pl.BlockSpec((1, 1, N_HID, 16), lambda br, b: (br, b, 0, 0))
    out_shape = jax.ShapeDtypeStruct((2, B, N_HID, 16), jnp.float32)

    return pl.pallas_call(
        _trunk_kernel,
        out_shape=out_shape,
        grid_spec=pltpu.PrefetchScalarGridSpec(
            num_scalar_prefetch=0,
            grid=(2, B),                                  # (branch, batch)
            in_specs=in_specs,
            out_specs=out_specs,
            scratch_shapes=[pltpu.VMEM((COL_ROWS, L0), jnp.float32),
                            pltpu.VMEM((N_HID, PAD_BUF_W), jnp.float32)]),
        compiler_params=pltpu.CompilerParams(
            dimension_semantics=("parallel", "parallel"),
            vmem_limit_bytes=VMEM_LIMIT),
    )(*args)


# ---------------------------------------------------------------------------
# Fused head kernel: relu(bn(Linear)) per branch -> product -> Linear(896, 2)
# (BN folded into the bf16 weights; whole batch in one invocation.)
# ---------------------------------------------------------------------------
def _head_kernel(m_ref, t_ref, wm_ref, bm_ref, wt_ref, bt_ref,
                 w2_ref, b2_ref, o_ref):
    hm = jnp.maximum(
        jnp.dot(m_ref[...].astype(jnp.bfloat16), wm_ref[...],
                preferred_element_type=jnp.float32) + bm_ref[...], 0.0)
    ht = jnp.maximum(
        jnp.dot(t_ref[...].astype(jnp.bfloat16), wt_ref[...],
                preferred_element_type=jnp.float32) + bt_ref[...], 0.0)
    prod = (hm * ht).astype(jnp.bfloat16)
    o_ref[...] = (jnp.dot(prod, w2_ref[...],
                          preferred_element_type=jnp.float32) + b2_ref[...])


def head_call(m_flat, t_flat, pp):
    B = m_flat.shape[0]
    args = (m_flat, t_flat, pp["mrp_w"], pp["mrp_b"],
            pp["trp_w"], pp["trp_b"], pp["w2"], pp["b2"])
    return pl.pallas_call(
        _head_kernel,
        out_shape=jax.ShapeDtypeStruct((B, 2), jnp.float32),
        in_specs=[pl.BlockSpec(memory_space=pltpu.MemorySpace.VMEM)] * len(args),
        out_specs=pl.BlockSpec(memory_space=pltpu.MemorySpace.VMEM),
        compiler_params=pltpu.CompilerParams(vmem_limit_bytes=VMEM_LIMIT),
    )(*args)


# ---------------------------------------------------------------------------
# Forward
# ---------------------------------------------------------------------------
def model_forward(x, pp):
    """Pallas version of Model.forward (eval mode, options.RP == False)."""
    B = x.shape[0]
    feats = jnp.asarray(FEATURES, dtype=jnp.int32)
    x = jnp.transpose(x[:, :, feats], (0, 2, 1))        # (B, 20, 468) NCL
    m = x[:, :, 0:SEQ_MHCP]                              # (B, 20, 192)
    t = x[:, :, SEQ_MHCP:]                               # (B, 20, 276)
    cpad = C1 - IN_CHANNEL
    # ConstantPad1d + conv-1 'same' pad + channel pad, widened to LPAD lanes.
    xm = jnp.pad(m, ((0, 0), (0, cpad),
                     (PAD_M + PAD1, LPAD - SEQ_MHCP - (PAD_M + PAD1))))
    xt = jnp.pad(t, ((0, 0), (0, cpad),
                     (PAD_T + PAD1, LPAD - (SEQ_LEN - SEQ_MHCP) - (PAD_T + PAD1))))
    x_all = jnp.stack([xm, xt], axis=0)                  # (2, B, 24, 640)

    acts = trunk_call(x_all, pp)                         # (2, B, 56, 16)
    # conv block 6 is computed then discarded in the reference forward -> skipped.
    m_flat = acts[0].reshape(B, SZ0)
    t_flat = acts[1].reshape(B, SZ0)
    return head_call(m_flat, t_flat, pp)


# ---------------------------------------------------------------------------
# Parameter preparation: fold BN, im2col-reshape conv weights (stacked per
# branch), bf16 head weights, constant pooling matrix.  Done ONCE, outside jit.
# ---------------------------------------------------------------------------
def prepare_params(p):
    def fold_conv(q, c_in_pad):
        w = q["w"] * q["scale"][:, None, None]           # (C_out, C_in, K)
        b = q["b"] * q["scale"] + q["shift"]
        c_out, c_in, k = w.shape
        if c_in_pad > c_in:
            w = jnp.pad(w, ((0, 0), (0, c_in_pad - c_in), (0, 0)))
        # kernel expects W'[c, k*C_in + i] = W_torch[c, i, k]
        w = jnp.transpose(w, (0, 2, 1)).reshape(c_out, k * c_in_pad)
        return w, b

    def fold_linear_bn(q):
        wt = jnp.transpose(q["w"]) * q["scale"][None, :]  # (in, out), BN folded
        b = (q["b"] * q["scale"] + q["shift"]).reshape(1, -1)
        return wt.astype(jnp.bfloat16), b.astype(jnp.float32)

    pp = {}
    conv_w, bias_m, bias_t = [], [], []
    for i in range(1, 6):
        c_in_pad = C1 if i == 1 else N_HID
        wm, bm = fold_conv(p[f"m_conv_{i}"], c_in_pad)
        wt, bt = fold_conv(p[f"t_conv_{i}"], c_in_pad)
        conv_w.append(jnp.stack([wm, wt], axis=0))        # (2, 56, K*C)
        bias_m.append(bm)
        bias_t.append(bt)
    pp["conv_w"] = conv_w
    pp["conv_b"] = jnp.stack([jnp.stack(bias_m, axis=1),
                              jnp.stack(bias_t, axis=1)], axis=0)   # (2, 56, 5)

    pp["mrp_w"], pp["mrp_b"] = fold_linear_bn(p["mrp"])
    pp["trp_w"], pp["trp_b"] = fold_linear_bn(p["trp"])
    pp["w2"] = jnp.transpose(p["a_linear2"]["w"]).astype(jnp.bfloat16)  # (896, 2)
    pp["b2"] = p["a_linear2"]["b"].reshape(1, -1).astype(jnp.float32)   # (1, 2)

    pool = np.zeros((L0, L0 // 2), np.float32)
    pool[np.arange(L0), np.arange(L0) // 2] = 0.5        # AvgPool(2,2) matrix
    pp["pool"] = jnp.asarray(pool)
    return pp


# ---------------------------------------------------------------------------
# Deterministic parameter initialization (shapes from Model.__init__)
# ---------------------------------------------------------------------------
def _bn_fold(gamma, beta, mean, var):
    scale = gamma / jnp.sqrt(var + BN_EPS)
    return scale, beta - mean * scale


def init_params(key):
    cnt = [0]

    def nk():
        cnt[0] += 1
        return jax.random.fold_in(key, cnt[0])

    def bn(n):
        gamma = 1.0 + 0.1 * jax.random.normal(nk(), (n,), jnp.float32)
        beta = 0.1 * jax.random.normal(nk(), (n,), jnp.float32)
        mean = 0.1 * jax.random.normal(nk(), (n,), jnp.float32)
        var = jax.random.uniform(nk(), (n,), jnp.float32, 0.8, 1.2)
        return _bn_fold(gamma, beta, mean, var)

    def conv_layer(c_in, c_out, k):
        w = jax.random.normal(nk(), (c_out, c_in, k), jnp.float32) / np.sqrt(c_in * k)
        b = 0.1 * jax.random.normal(nk(), (c_out,), jnp.float32)
        scale, shift = bn(c_out)
        return dict(w=w, b=b, scale=scale, shift=shift)

    def linear(d_in, d_out, with_bn):
        w = jax.random.normal(nk(), (d_out, d_in), jnp.float32) / np.sqrt(d_in)
        b = 0.1 * jax.random.normal(nk(), (d_out,), jnp.float32)
        d = dict(w=w, b=b)
        if with_bn:
            d["scale"], d["shift"] = bn(d_out)
        return d

    p = {}
    for branch in ("m", "t"):
        c_in = IN_CHANNEL
        for i, k in enumerate(KS, start=1):
            p[f"{branch}_conv_{i}"] = conv_layer(c_in, N_HID, k)
            c_in = N_HID
    p["mrp"] = linear(SZ0, SZ0, with_bn=True)
    p["trp"] = linear(SZ0, SZ0, with_bn=True)
    p["a_linear2"] = linear(SZ0, 2, with_bn=False)
    # TODO(synk): a_norm_0, a_Linear0, a_BatchNorm, *_prerpnorm, conv block 6 and
    # the RP (m1/m2) path are never used by Model.forward, so they are omitted.
    return p


# ---------------------------------------------------------------------------
# Pure-JAX reference (for numerical validation of the Pallas path)
# ---------------------------------------------------------------------------
def _conv_block_ref(x, w, b, scale, shift, residual):
    pad = w.shape[2] // 2
    y = jax.lax.conv_general_dilated(
        x, w, window_strides=(1,), padding=[(pad, pad)],
        dimension_numbers=("NCH", "OIH", "NCH"))
    y = y + b[None, :, None]
    y = y * scale[None, :, None] + shift[None, :, None]
    y = jnp.maximum(y, 0.0)
    if residual:
        y = x + y
    B, C, L = y.shape
    return y.reshape(B, C, L // 2, 2).mean(axis=-1)


def model_forward_ref(x, p):
    B = x.shape[0]
    feats = jnp.asarray(FEATURES, dtype=jnp.int32)
    x = jnp.transpose(x[:, :, feats], (0, 2, 1))
    m = jnp.pad(x[:, :, 0:SEQ_MHCP], ((0, 0), (0, 0), (PAD_M, PAD_M)))
    t = jnp.pad(x[:, :, SEQ_MHCP:], ((0, 0), (0, 0), (PAD_T, PAD_T)))
    for i, res in enumerate(RESIDUALS, start=1):
        pm, pt = p[f"m_conv_{i}"], p[f"t_conv_{i}"]
        m = _conv_block_ref(m, pm["w"], pm["b"], pm["scale"], pm["shift"], res)
        t = _conv_block_ref(t, pt["w"], pt["b"], pt["scale"], pt["shift"], res)
    m = m.reshape(B, SZ0)
    t = t.reshape(B, SZ0)

    def lin_bn_relu(v, q):
        h = v @ q["w"].T + q["b"][None, :]
        return jnp.maximum(h * q["scale"][None, :] + q["shift"][None, :], 0.0)

    allparts = lin_bn_relu(m, p["mrp"]) * lin_bn_relu(t, p["trp"])
    return allparts @ p["a_linear2"]["w"].T + p["a_linear2"]["b"][None, :]


# ---------------------------------------------------------------------------
if __name__ == "__main__":
    key = jax.random.PRNGKey(0)
    params = init_params(jax.random.fold_in(key, 1))
    pp = prepare_params(params)                     # BN fold / bf16 cast done once
    x = jax.random.normal(jax.random.fold_in(key, 2),
                          (2, SEQ_LEN, FEAT_DIM), jnp.float32)

    out = jax.jit(model_forward)(x, pp)
    out = jax.block_until_ready(out)

    ref = model_forward_ref(x, params)
    assert out.shape == (2, 2), out.shape
    np.testing.assert_allclose(np.asarray(out), np.asarray(ref), rtol=3e-2, atol=3e-2)
    print("KERNEL_OK")
</pallas_src>

<mosaic_0001>
module attributes {stable_mosaic.version = 11 : i64} {
  func.func @_trunk_kernel(%arg0: i32, %arg1: i32, %arg2: memref<1x1x24x640xf32, #tpu.memory_space<vmem>>, %arg3: memref<1x56x264xf32, #tpu.memory_space<vmem>>, %arg4: memref<1x56x504xf32, #tpu.memory_space<vmem>>, %arg5: memref<1x56x392xf32, #tpu.memory_space<vmem>>, %arg6: memref<1x56x392xf32, #tpu.memory_space<vmem>>, %arg7: memref<1x56x280xf32, #tpu.memory_space<vmem>>, %arg8: memref<1x56x5xf32, #tpu.memory_space<vmem>>, %arg9: memref<512x256xf32, #tpu.memory_space<vmem>>, %arg10: memref<1x1x56x16xf32, #tpu.memory_space<vmem>>, %arg11: memref<504x512xf32, #tpu.memory_space<vmem>>, %arg12: memref<56x512xf32, #tpu.memory_space<vmem>>) attributes {dimension_semantics = [#tpu.dimension_semantics<parallel>, #tpu.dimension_semantics<parallel>], iteration_bounds = array<i64: 2, 2>, scalar_prefetch = 0 : i64, scratch_operands = 2 : i64, tpu.core_type = #tpu.core_type<tc>, window_params = [{transform_indices = @transform_0, window_bounds = array<i64: 1, 1, 24, 640>}, {transform_indices = @transform_1, window_bounds = array<i64: 1, 56, 264>}, {transform_indices = @transform_2, window_bounds = array<i64: 1, 56, 504>}, {transform_indices = @transform_3, window_bounds = array<i64: 1, 56, 392>}, {transform_indices = @transform_4, window_bounds = array<i64: 1, 56, 392>}, {transform_indices = @transform_5, window_bounds = array<i64: 1, 56, 280>}, {transform_indices = @transform_6, window_bounds = array<i64: 1, 56, 5>}, {pipeline_mode = #tpu.pipeline_mode<synchronous>, transform_indices = @transform_7, window_bounds = array<i64: 512, 256>}, {transform_indices = @transform_8, window_bounds = array<i64: 1, 1, 56, 16>}]} {
    %c0 = arith.constant 0 : index
    %c0_0 = arith.constant 0 : index
    %c0_1 = arith.constant 0 : index
    %c0_2 = arith.constant 0 : index
    %0 = vector.load %arg2[%c0, %c0_0, %c0_1, %c0_2] : memref<1x1x24x640xf32, #tpu.memory_space<vmem>>, vector<1x1x24x512xf32>
    %1 = vector.shape_cast %0 : vector<1x1x24x512xf32> to vector<24x512xf32>
    %c0_3 = arith.constant 0 : index
    %c0_4 = arith.constant 0 : index
    %2 = vector.load %arg11[%c0_3, %c0_4] : memref<504x512xf32, #tpu.memory_space<vmem>>, vector<24x512xf32>
    tpu.vector_store %arg11[%c0_3, %c0_4], %1 {strides = array<i32>} : memref<504x512xf32, #tpu.memory_space<vmem>>, vector<24x512xf32>,
    %c0_5 = arith.constant 0 : index
    %c0_6 = arith.constant 0 : index
    %c0_7 = arith.constant 0 : index
    %c1 = arith.constant 1 : index
    %3 = vector.load %arg2[%c0_5, %c0_6, %c0_7, %c1] : memref<1x1x24x640xf32, #tpu.memory_space<vmem>>, vector<1x1x24x512xf32>
    %4 = vector.shape_cast %3 : vector<1x1x24x512xf32> to vector<24x512xf32>
    %c24 = arith.constant 24 : index
    %c0_8 = arith.constant 0 : index
    %5 = vector.load %arg11[%c24, %c0_8] : memref<504x512xf32, #tpu.memory_space<vmem>>, vector<24x512xf32>
    tpu.vector_store %arg11[%c24, %c0_8], %4 {strides = array<i32>} : memref<504x512xf32, #tpu.memory_space<vmem>>, vector<24x512xf32>,
    %c0_9 = arith.constant 0 : index
    %c0_10 = arith.constant 0 : index
    %c0_11 = arith.constant 0 : index
    %c2 = arith.constant 2 : index
    %6 = vector.load %arg2[%c0_9, %c0_10, %c0_11, %c2] : memref<1x1x24x640xf32, #tpu.memory_space<vmem>>, vector<1x1x24x512xf32>
    %7 = vector.shape_cast %6 : vector<1x1x24x512xf32> to vector<24x512xf32>
    %c48 = arith.constant 48 : index
    %c0_12 = arith.constant 0 : index
    %8 = vector.load %arg11[%c48, %c0_12] : memref<504x512xf32, #tpu.memory_space<vmem>>, vector<24x512xf32>
    tpu.vector_store %arg11[%c48, %c0_12], %7 {strides = array<i32>} : memref<504x512xf32, #tpu.memory_space<vmem>>, vector<24x512xf32>,
    %c0_13 = arith.constant 0 : index
    %c0_14 = arith.constant 0 : index
    %c0_15 = arith.constant 0 : index
    %c3 = arith.constant 3 : index
    %9 = vector.load %arg2[%c0_13, %c0_14, %c0_15, %c3] : memref<1x1x24x640xf32, #tpu.memory_space<vmem>>, vector<1x1x24x512xf32>
    %10 = vector.shape_cast %9 : vector<1x1x24x512xf32> to vector<24x512xf32>
    %c72 = arith.constant 72 : index
    %c0_16 = arith.constant 0 : index
    %11 = vector.load %arg11[%c72, %c0_16] : memref<504x512xf32, #tpu.memory_space<vmem>>, vector<24x512xf32>
    tpu.vector_store %arg11[%c72, %c0_16], %10 {strides = array<i32>} : memref<504x512xf32, #tpu.memory_space<vmem>>, vector<24x512xf32>,
    %c0_17 = arith.constant 0 : index
    %c0_18 = arith.constant 0 : index
    %c0_19 = arith.constant 0 : index
    %c4 = arith.constant 4 : index
    %12 = vector.load %arg2[%c0_17, %c0_18, %c0_19, %c4] : memref<1x1x24x640xf32, #tpu.memory_space<vmem>>, vector<1x1x24x512xf32>
    %13 = vector.shape_cast %12 : vector<1x1x24x512xf32> to vector<24x512xf32>
    %c96 = arith.constant 96 : index
    %c0_20 = arith.constant 0 : index
    %14 = vector.load %arg11[%c96, %c0_20] : memref<504x512xf32, #tpu.memory_space<vmem>>, vector<24x512xf32>
    tpu.vector_store %arg11[%c96, %c0_20], %13 {strides = array<i32>} : memref<504x512xf32, #tpu.memory_space<vmem>>, vector<24x512xf32>,
    %c0_21 = arith.constant 0 : index
    %c0_22 = arith.constant 0 : index
    %c0_23 = arith.constant 0 : index
    %c5 = arith.constant 5 : index
    %15 = vector.load %arg2[%c0_21, %c0_22, %c0_23, %c5] : memref<1x1x24x640xf32, #tpu.memory_space<vmem>>, vector<1x1x24x512xf32>
    %16 = vector.shape_cast %15 : vector<1x1x24x512xf32> to vector<24x512xf32>
    %c120 = arith.constant 120 : index
    %c0_24 = arith.constant 0 : index
    %17 = vector.load %arg11[%c120, %c0_24] : memref<504x512xf32, #tpu.memory_space<vmem>>, vector<24x512xf32>
    tpu.vector_store %arg11[%c120, %c0_24], %16 {strides = array<i32>} : memref<504x512xf32, #tpu.memory_space<vmem>>, vector<24x512xf32>,
    %c0_25 = arith.constant 0 : index
    %c0_26 = arith.constant 0 : index
    %c0_27 = arith.constant 0 : index
    %c6 = arith.constant 6 : index
    %18 = vector.load %arg2[%c0_25, %c0_26, %c0_27, %c6] : memref<1x1x24x640xf32, #tpu.memory_space<vmem>>, vector<1x1x24x512xf32>
    %19 = vector.shape_cast %18 : vector<1x1x24x512xf32> to vector<24x512xf32>
    %c144 = arith.constant 144 : index
    %c0_28 = arith.constant 0 : index
    %20 = vector.load %arg11[%c144, %c0_28] : memref<504x512xf32, #tpu.memory_space<vmem>>, vector<24x512xf32>
    tpu.vector_store %arg11[%c144, %c0_28], %19 {strides = array<i32>} : memref<504x512xf32, #tpu.memory_space<vmem>>, vector<24x512xf32>,
    %c0_29 = arith.constant 0 : index
    %c0_30 = arith.constant 0 : index
    %c0_31 = arith.constant 0 : index
    %c7 = arith.constant 7 : index
    %21 = vector.load %arg2[%c0_29, %c0_30, %c0_31, %c7] : memref<1x1x24x640xf32, #tpu.memory_space<vmem>>, vector<1x1x24x512xf32>
    %22 = vector.shape_cast %21 : vector<1x1x24x512xf32> to vector<24x512xf32>
    %c168 = arith.constant 168 : index
    %c0_32 = arith.constant 0 : index
    %23 = vector.load %arg11[%c168, %c0_32] : memref<504x512xf32, #tpu.memory_space<vmem>>, vector<24x512xf32>
    tpu.vector_store %arg11[%c168, %c0_32], %22 {strides = array<i32>} : memref<504x512xf32, #tpu.memory_space<vmem>>, vector<24x512xf32>,
    %c0_33 = arith.constant 0 : index
    %c0_34 = arith.constant 0 : index
    %c0_35 = arith.constant 0 : index
    %c8 = arith.constant 8 : index
    %24 = vector.load %arg2[%c0_33, %c0_34, %c0_35, %c8] : memref<1x1x24x640xf32, #tpu.memory_space<vmem>>, vector<1x1x24x512xf32>
    %25 = vector.shape_cast %24 : vector<1x1x24x512xf32> to vector<24x512xf32>
    %c192 = arith.constant 192 : index
    %c0_36 = arith.constant 0 : index
    %26 = vector.load %arg11[%c192, %c0_36] : memref<504x512xf32, #tpu.memory_space<vmem>>, vector<24x512xf32>
    tpu.vector_store %arg11[%c192, %c0_36], %25 {strides = array<i32>} : memref<504x512xf32, #tpu.memory_space<vmem>>, vector<24x512xf32>,
    %c0_37 = arith.constant 0 : index
    %c0_38 = arith.constant 0 : index
    %c0_39 = arith.constant 0 : index
    %c9 = arith.constant 9 : index
    %27 = vector.load %arg2[%c0_37, %c0_38, %c0_39, %c9] : memref<1x1x24x640xf32, #tpu.memory_space<vmem>>, vector<1x1x24x512xf32>
    %28 = vector.shape_cast %27 : vector<1x1x24x512xf32> to vector<24x512xf32>
    %c216 = arith.constant 216 : index
    %c0_40 = arith.constant 0 : index
    %29 = vector.load %arg11[%c216, %c0_40] : memref<504x512xf32, #tpu.memory_space<vmem>>, vector<24x512xf32>
    tpu.vector_store %arg11[%c216, %c0_40], %28 {strides = array<i32>} : memref<504x512xf32, #tpu.memory_space<vmem>>, vector<24x512xf32>,
    %c0_41 = arith.constant 0 : index
    %c0_42 = arith.constant 0 : index
    %c0_43 = arith.constant 0 : index
    %c10 = arith.constant 10 : index
    %30 = vector.load %arg2[%c0_41, %c0_42, %c0_43, %c10] : memref<1x1x24x640xf32, #tpu.memory_space<vmem>>, vector<1x1x24x512xf32>
    %31 = vector.shape_cast %30 : vector<1x1x24x512xf32> to vector<24x512xf32>
    %c240 = arith.constant 240 : index
    %c0_44 = arith.constant 0 : index
    %32 = vector.load %arg11[%c240, %c0_44] : memref<504x512xf32, #tpu.memory_space<vmem>>, vector<24x512xf32>
    tpu.vector_store %arg11[%c240, %c0_44], %31 {strides = array<i32>} : memref<504x512xf32, #tpu.memory_space<vmem>>, vector<24x512xf32>,
    %c0_45 = arith.constant 0 : index
    %c0_46 = arith.constant 0 : index
    %c0_47 = arith.constant 0 : index
    %33 = vector.load %arg3[%c0_45, %c0_46, %c0_47] : memref<1x56x264xf32, #tpu.memory_space<vmem>>, vector<1x56x264xf32>
    %34 = vector.shape_cast %33 : vector<1x56x264xf32> to vector<56x264xf32>
    %c0_48 = arith.constant 0 : index
    %c0_49 = arith.constant 0 : index
    %35 = vector.load %arg11[%c0_48, %c0_49] : memref<504x512xf32, #tpu.memory_space<vmem>>, vector<264x512xf32>
    %cst = arith.constant dense<0.000000e+00> : vector<56x512xf32>
    %36 = tpu.matmul %34, %35, %cst {dimension_numbers = #tpu.dot_dimension_numbers<[1], [0], [0], [1], [0, 0, 1, 1], [], []>} : vector<56x264xf32>, vector<264x512xf32>, vector<56x512xf32> -> vector<56x512xf32>
    %c0_50 = arith.constant 0 : index
    %c0_51 = arith.constant 0 : index
    %c0_52 = arith.constant 0 : index
    %37 = vector.load %arg8[%c0_50, %c0_51, %c0_52] : memref<1x56x5xf32, #tpu.memory_space<vmem>>, vector<1x56x1xf32>
    %38 = vector.shape_cast %37 : vector<1x56x1xf32> to vector<56x1xf32>
    %39 = vector.broadcast %38 : vector<56x1xf32> to vector<56x512xf32>
    %40 = arith.addf %36, %39 : vector<56x512xf32>
    %cst_53 = arith.constant 0.000000e+00 : f32
    %41 = vector.broadcast %cst_53 : f32 to vector<56x512xf32>
    %42 = arith.maximumf %40, %41 : vector<56x512xf32>
    %c0_54 = arith.constant 0 : index
    %c0_55 = arith.constant 0 : index
    %43 = vector.load %arg9[%c0_54, %c0_55] : memref<512x256xf32, #tpu.memory_space<vmem>>, vector<512x256xf32>
    %cst_56 = arith.constant dense<0.000000e+00> : vector<56x256xf32>
    %44 = tpu.matmul %42, %43, %cst_56 {dimension_numbers = #tpu.dot_dimension_numbers<[1], [0], [0], [1], [0, 0, 1, 1], [], []>} : vector<56x512xf32>, vector<512x256xf32>, vector<56x256xf32> -> vector<56x256xf32>
    %cst_57 = arith.constant 0.000000e+00 : f32
    %45 = vector.broadcast %cst_57 : f32 to vector<56x4xf32>
    %c0_58 = arith.constant 0 : index
    %c124 = arith.constant 124 : index
    %46 = vector.load %arg12[%c0_58, %c124] : memref<56x512xf32, #tpu.memory_space<vmem>>, vector<56x4xf32>
    tpu.vector_store %arg12[%c0_58, %c124], %45 {strides = array<i32>} : memref<56x512xf32, #tpu.memory_space<vmem>>, vector<56x4xf32>,
    %cst_59 = arith.constant 0.000000e+00 : f32
    %47 = vector.broadcast %cst_59 : f32 to vector<56x4xf32>
    %c0_60 = arith.constant 0 : index
    %c384 = arith.constant 384 : index
    %48 = vector.load %arg12[%c0_60, %c384] : memref<56x512xf32, #tpu.memory_space<vmem>>, vector<56x4xf32>
    tpu.vector_store %arg12[%c0_60, %c384], %47 {strides = array<i32>} : memref<56x512xf32, #tpu.memory_space<vmem>>, vector<56x4xf32>,
    %c0_61 = arith.constant 0 : index
    %c128 = arith.constant 128 : index
    %49 = vector.load %arg12[%c0_61, %c128] : memref<56x512xf32, #tpu.memory_space<vmem>>, vector<56x256xf32>
    tpu.vector_store %arg12[%c0_61, %c128], %44 {strides = array<i32>} : memref<56x512xf32, #tpu.memory_space<vmem>>, vector<56x256xf32>,
    %c0_62 = arith.constant 0 : index
    %c124_63 = arith.constant 124 : index
    %50 = vector.load %arg12[%c0_62, %c124_63] : memref<56x512xf32, #tpu.memory_space<vmem>>, vector<56x256xf32>
    %c0_64 = arith.constant 0 : index
    %c0_65 = arith.constant 0 : index
    %51 = vector.load %arg11[%c0_64, %c0_65] : memref<504x512xf32, #tpu.memory_space<vmem>>, vector<56x256xf32>
    tpu.vector_store %arg11[%c0_64, %c0_65], %50 {strides = array<i32>} : memref<504x512xf32, #tpu.memory_space<vmem>>, vector<56x256xf32>,
    %c0_66 = arith.constant 0 : index
    %c125 = arith.constant 125 : index
    %52 = vector.load %arg12[%c0_66, %c125] : memref<56x512xf32, #tpu.memory_space<vmem>>, vector<56x256xf32>
    %c56 = arith.constant 56 : index
    %c0_67 = arith.constant 0 : index
    %53 = vector.load %arg11[%c56, %c0_67] : memref<504x512xf32, #tpu.memory_space<vmem>>, vector<56x256xf32>
    tpu.vector_store %arg11[%c56, %c0_67], %52 {strides = array<i32>} : memref<504x512xf32, #tpu.memory_space<vmem>>, vector<56x256xf32>,
    %c0_68 = arith.constant 0 : index
    %c126 = arith.constant 126 : index
    %54 = vector.load %arg12[%c0_68, %c126] : memref<56x512xf32, #tpu.memory_space<vmem>>, vector<56x256xf32>
    %c112 = arith.constant 112 : index
    %c0_69 = arith.constant 0 : index
    %55 = vector.load %arg11[%c112, %c0_69] : memref<504x512xf32, #tpu.memory_space<vmem>>, vector<56x256xf32>
    tpu.vector_store %arg11[%c112, %c0_69], %54 {strides = array<i32>} : memref<504x512xf32, #tpu.memory_space<vmem>>, vector<56x256xf32>,
    %c0_70 = arith.constant 0 : index
    %c127 = arith.constant 127 : index
    %56 = vector.load %arg12[%c0_70, %c127] : memref<56x512xf32, #tpu.memory_space<vmem>>, vector<56x256xf32>
    %c168_71 = arith.constant 168 : index
    %c0_72 = arith.constant 0 : index
    %57 = vector.load %arg11[%c168_71, %c0_72] : memref<504x512xf32, #tpu.memory_space<vmem>>, vector<56x256xf32>
    tpu.vector_store %arg11[%c168_71, %c0_72], %56 {strides = array<i32>} : memref<504x512xf32, #tpu.memory_space<vmem>>, vector<56x256xf32>,
    %c0_73 = arith.constant 0 : index
    %c128_74 = arith.constant 128 : index
    %58 = vector.load %arg12[%c0_73, %c128_74] : memref<56x512xf32, #tpu.memory_space<vmem>>, vector<56x256xf32>
    %c224 = arith.constant 224 : index
    %c0_75 = arith.constant 0 : index
    %59 = vector.load %arg11[%c224, %c0_75] : memref<504x512xf32, #tpu.memory_space<vmem>>, vector<56x256xf32>
    tpu.vector_store %arg11[%c224, %c0_75], %58 {strides = array<i32>} : memref<504x512xf32, #tpu.memory_space<vmem>>, vector<56x256xf32>,
    %c0_76 = arith.constant 0 : index
    %c129 = arith.constant 129 : index
    %60 = vector.load %arg12[%c0_76, %c129] : memref<56x512xf32, #tpu.memory_space<vmem>>, vector<56x256xf32>
    %c280 = arith.constant 280 : index
    %c0_77 = arith.constant 0 : index
    %61 = vector.load %arg11[%c280, %c0_77] : memref<504x512xf32, #tpu.memory_space<vmem>>, vector<56x256xf32>
    tpu.vector_store %arg11[%c280, %c0_77], %60 {strides = array<i32>} : memref<504x512xf32, #tpu.memory_space<vmem>>, vector<56x256xf32>,
    %c0_78 = arith.constant 0 : index
    %c130 = arith.constant 130 : index
    %62 = vector.load %arg12[%c0_78, %c130] : memref<56x512xf32, #tpu.memory_space<vmem>>, vector<56x256xf32>
    %c336 = arith.constant 336 : index
    %c0_79 = arith.constant 0 : index
    %63 = vector.load %arg11[%c336, %c0_79] : memref<504x512xf32, #tpu.memory_space<vmem>>, vector<56x256xf32>
    tpu.vector_store %arg11[%c336, %c0_79], %62 {strides = array<i32>} : memref<504x512xf32, #tpu.memory_space<vmem>>, vector<56x256xf32>,
    %c0_80 = arith.constant 0 : index
    %c131 = arith.constant 131 : index
    %64 = vector.load %arg12[%c0_80, %c131] : memref<56x512xf32, #tpu.memory_space<vmem>>, vector<56x256xf32>
    %c392 = arith.constant 392 : index
    %c0_81 = arith.constant 0 : index
    %65 = vector.load %arg11[%c392, %c0_81] : memref<504x512xf32, #tpu.memory_space<vmem>>, vector<56x256xf32>
    tpu.vector_store %arg11[%c392, %c0_81], %64 {strides = array<i32>} : memref<504x512xf32, #tpu.memory_space<vmem>>, vector<56x256xf32>,
    %c0_82 = arith.constant 0 : index
    %c132 = arith.constant 132 : index
    %66 = vector.load %arg12[%c0_82, %c132] : memref<56x512xf32, #tpu.memory_space<vmem>>, vector<56x256xf32>
    %c448 = arith.constant 448 : index
    %c0_83 = arith.constant 0 : index
    %67 = vector.load %arg11[%c448, %c0_83] : memref<504x512xf32, #tpu.memory_space<vmem>>, vector<56x256xf32>
    tpu.vector_store %arg11[%c448, %c0_83], %66 {strides = array<i32>} : memref<504x512xf32, #tpu.memory_space<vmem>>, vector<56x256xf32>,
    %c0_84 = arith.constant 0 : index
    %c0_85 = arith.constant 0 : index
    %c0_86 = arith.constant 0 : index
    %68 = vector.load %arg4[%c0_84, %c0_85, %c0_86] : memref<1x56x504xf32, #tpu.memory_space<vmem>>, vector<1x56x504xf32>
    %69 = vector.shape_cast %68 : vector<1x56x504xf32> to vector<56x504xf32>
    %c0_87 = arith.constant 0 : index
    %c0_88 = arith.constant 0 : index
    %70 = vector.load %arg11[%c0_87, %c0_88] : memref<504x512xf32, #tpu.memory_space<vmem>>, vector<504x256xf32>
    %cst_89 = arith.constant dense<0.000000e+00> : vector<56x256xf32>
    %71 = tpu.matmul %69, %70, %cst_89 {dimension_numbers = #tpu.dot_dimension_numbers<[1], [0], [0], [1], [0, 0, 1, 1], [], []>} : vector<56x504xf32>, vector<504x256xf32>, vector<56x256xf32> -> vector<56x256xf32>
    %c0_90 = arith.constant 0 : index
    %c0_91 = arith.constant 0 : index
    %c1_92 = arith.constant 1 : index
    %72 = vector.load %arg8[%c0_90, %c0_91, %c1_92] : memref<1x56x5xf32, #tpu.memory_space<vmem>>, vector<1x56x1xf32>
    %73 = vector.shape_cast %72 : vector<1x56x1xf32> to vector<56x1xf32>
    %74 = vector.broadcast %73 : vector<56x1xf32> to vector<56x256xf32>
    %75 = arith.addf %71, %74 : vector<56x256xf32>
    %cst_93 = arith.constant 0.000000e+00 : f32
    %76 = vector.broadcast %cst_93 : f32 to vector<56x256xf32>
    %77 = arith.maximumf %75, %76 : vector<56x256xf32>
    %78 = arith.addf %44, %77 : vector<56x256xf32>
    %c0_94 = arith.constant 0 : index
    %c0_95 = arith.constant 0 : index
    %79 = vector.load %arg9[%c0_94, %c0_95] : memref<512x256xf32, #tpu.memory_space<vmem>>, vector<256x128xf32>
    %cst_96 = arith.constant dense<0.000000e+00> : vector<56x128xf32>
    %80 = tpu.matmul %78, %79, %cst_96 {dimension_numbers = #tpu.dot_dimension_numbers<[1], [0], [0], [1], [0, 0, 1, 1], [], []>} : vector<56x256xf32>, vector<256x128xf32>, vector<56x128xf32> -> vector<56x128xf32>
    %cst_97 = arith.constant 0.000000e+00 : f32
    %81 = vector.broadcast %cst_97 : f32 to vector<56x4xf32>
    %c0_98 = arith.constant 0 : index
    %c256 = arith.constant 256 : index
    %82 = vector.load %arg12[%c0_98, %c256] : memref<56x512xf32, #tpu.memory_space<vmem>>, vector<56x4xf32>
    tpu.vector_store %arg12[%c0_98, %c256], %81 {strides = array<i32>} : memref<56x512xf32, #tpu.memory_space<vmem>>, vector<56x4xf32>,
    %c0_99 = arith.constant 0 : index
    %c128_100 = arith.constant 128 : index
    %83 = vector.load %arg12[%c0_99, %c128_100] : memref<56x512xf32, #tpu.memory_space<vmem>>, vector<56x128xf32>
    tpu.vector_store %arg12[%c0_99, %c128_100], %80 {strides = array<i32>} : memref<56x512xf32, #tpu.memory_space<vmem>>, vector<56x128xf32>,
    %c0_101 = arith.constant 0 : index
    %c125_102 = arith.constant 125 : index
    %84 = vector.load %arg12[%c0_101, %c125_102] : memref<56x512xf32, #tpu.memory_space<vmem>>, vector<56x128xf32>
    %c0_103 = arith.constant 0 : index
    %c0_104 = arith.constant 0 : index
    %85 = vector.load %arg11[%c0_103, %c0_104] : memref<504x512xf32, #tpu.memory_space<vmem>>, vector<56x128xf32>
    tpu.vector_store %arg11[%c0_103, %c0_104], %84 {strides = array<i32>} : memref<504x512xf32, #tpu.memory_space<vmem>>, vector<56x128xf32>,
    %c0_105 = arith.constant 0 : index
    %c126_106 = arith.constant 126 : index
    %86 = vector.load %arg12[%c0_105, %c126_106] : memref<56x512xf32, #tpu.memory_space<vmem>>, vector<56x128xf32>
    %c56_107 = arith.constant 56 : index
    %c0_108 = arith.constant 0 : index
    %87 = vector.load %arg11[%c56_107, %c0_108] : memref<504x512xf32, #tpu.memory_space<vmem>>, vector<56x128xf32>
    tpu.vector_store %arg11[%c56_107, %c0_108], %86 {strides = array<i32>} : memref<504x512xf32, #tpu.memory_space<vmem>>, vector<56x128xf32>,
    %c0_109 = arith.constant 0 : index
    %c127_110 = arith.constant 127 : index
    %88 = vector.load %arg12[%c0_109, %c127_110] : memref<56x512xf32, #tpu.memory_space<vmem>>, vector<56x128xf32>
    %c112_111 = arith.constant 112 : index
    %c0_112 = arith.constant 0 : index
    %89 = vector.load %arg11[%c112_111, %c0_112] : memref<504x512xf32, #tpu.memory_space<vmem>>, vector<56x128xf32>
    tpu.vector_store %arg11[%c112_111, %c0_112], %88 {strides = array<i32>} : memref<504x512xf32, #tpu.memory_space<vmem>>, vector<56x128xf32>,
    %c0_113 = arith.constant 0 : index
    %c128_114 = arith.constant 128 : index
    %90 = vector.load %arg12[%c0_113, %c128_114] : memref<56x512xf32, #tpu.memory_space<vmem>>, vector<56x128xf32>
    %c168_115 = arith.constant 168 : index
    %c0_116 = arith.constant 0 : index
    %91 = vector.load %arg11[%c168_115, %c0_116] : memref<504x512xf32, #tpu.memory_space<vmem>>, vector<56x128xf32>
    tpu.vector_store %arg11[%c168_115, %c0_116], %90 {strides = array<i32>} : memref<504x512xf32, #tpu.memory_space<vmem>>, vector<56x128xf32>,
    %c0_117 = arith.constant 0 : index
    %c129_118 = arith.constant 129 : index
    %92 = vector.load %arg12[%c0_117, %c129_118] : memref<56x512xf32, #tpu.memory_space<vmem>>, vector<56x128xf32>
    %c224_119 = arith.constant 224 : index
    %c0_120 = arith.constant 0 : index
    %93 = vector.load %arg11[%c224_119, %c0_120] : memref<504x512xf32, #tpu.memory_space<vmem>>, vector<56x128xf32>
    tpu.vector_store %arg11[%c224_119, %c0_120], %92 {strides = array<i32>} : memref<504x512xf32, #tpu.memory_space<vmem>>, vector<56x128xf32>,
    %c0_121 = arith.constant 0 : index
    %c130_122 = arith.constant 130 : index
    %94 = vector.load %arg12[%c0_121, %c130_122] : memref<56x512xf32, #tpu.memory_space<vmem>>, vector<56x128xf32>
    %c280_123 = arith.constant 280 : index
    %c0_124 = arith.constant 0 : index
    %95 = vector.load %arg11[%c280_123, %c0_124] : memref<504x512xf32, #tpu.memory_space<vmem>>, vector<56x128xf32>
    tpu.vector_store %arg11[%c280_123, %c0_124], %94 {strides = array<i32>} : memref<504x512xf32, #tpu.memory_space<vmem>>, vector<56x128xf32>,
    %c0_125 = arith.constant 0 : index
    %c131_126 = arith.constant 131 : index
    %96 = vector.load %arg12[%c0_125, %c131_126] : memref<56x512xf32, #tpu.memory_space<vmem>>, vector<56x128xf32>
    %c336_127 = arith.constant 336 : index
    %c0_128 = arith.constant 0 : index
    %97 = vector.load %arg11[%c336_127, %c0_128] : memref<504x512xf32, #tpu.memory_space<vmem>>, vector<56x128xf32>
    tpu.vector_store %arg11[%c336_127, %c0_128], %96 {strides = array<i32>} : memref<504x512xf32, #tpu.memory_space<vmem>>, vector<56x128xf32>,
    %c0_129 = arith.constant 0 : index
    %c0_130 = arith.constant 0 : index
    %c0_131 = arith.constant 0 : index
    %98 = vector.load %arg5[%c0_129, %c0_130, %c0_131] : memref<1x56x392xf32, #tpu.memory_space<vmem>>, vector<1x56x392xf32>
    %99 = vector.shape_cast %98 : vector<1x56x392xf32> to vector<56x392xf32>
    %c0_132 = arith.constant 0 : index
    %c0_133 = arith.constant 0 : index
    %100 = vector.load %arg11[%c0_132, %c0_133] : memref<504x512xf32, #tpu.memory_space<vmem>>, vector<392x128xf32>
    %cst_134 = arith.constant dense<0.000000e+00> : vector<56x128xf32>
    %101 = tpu.matmul %99, %100, %cst_134 {dimension_numbers = #tpu.dot_dimension_numbers<[1], [0], [0], [1], [0, 0, 1, 1], [], []>} : vector<56x392xf32>, vector<392x128xf32>, vector<56x128xf32> -> vector<56x128xf32>
    %c0_135 = arith.constant 0 : index
    %c0_136 = arith.constant 0 : index
    %c2_137 = arith.constant 2 : index
    %102 = vector.load %arg8[%c0_135, %c0_136, %c2_137] : memref<1x56x5xf32, #tpu.memory_space<vmem>>, vector<1x56x1xf32>
    %103 = vector.shape_cast %102 : vector<1x56x1xf32> to vector<56x1xf32>
    %104 = vector.broadcast %103 : vector<56x1xf32> to vector<56x128xf32>
    %105 = arith.addf %101, %104 : vector<56x128xf32>
    %cst_138 = arith.constant 0.000000e+00 : f32
    %106 = vector.broadcast %cst_138 : f32 to vector<56x128xf32>
    %107 = arith.maximumf %105, %106 : vector<56x128xf32>
    %108 = arith.addf %80, %107 : vector<56x128xf32>
    %c0_139 = arith.constant 0 : index
    %c0_140 = arith.constant 0 : index
    %109 = vector.load %arg9[%c0_139, %c0_140] : memref<512x256xf32, #tpu.memory_space<vmem>>, vector<128x64xf32>
    %cst_141 = arith.constant dense<0.000000e+00> : vector<56x64xf32>
    %110 = tpu.matmul %108, %109, %cst_141 {dimension_numbers = #tpu.dot_dimension_numbers<[1], [0], [0], [1], [0, 0, 1, 1], [], []>} : vector<56x128xf32>, vector<128x64xf32>, vector<56x64xf32> -> vector<56x64xf32>
    %cst_142 = arith.constant 0.000000e+00 : f32
    %111 = vector.broadcast %cst_142 : f32 to vector<56x4xf32>
    %c0_143 = arith.constant 0 : index
    %c192_144 = arith.constant 192 : index
    %112 = vector.load %arg12[%c0_143, %c192_144] : memref<56x512xf32, #tpu.memory_space<vmem>>, vector<56x4xf32>
    tpu.vector_store %arg12[%c0_143, %c192_144], %111 {strides = array<i32>} : memref<56x512xf32, #tpu.memory_space<vmem>>, vector<56x4xf32>,
    %c0_145 = arith.constant 0 : index
    %c128_146 = arith.constant 128 : index
    %113 = vector.load %arg12[%c0_145, %c128_146] : memref<56x512xf32, #tpu.memory_space<vmem>>, vector<56x64xf32>
    tpu.vector_store %arg12[%c0_145, %c128_146], %110 {strides = array<i32>} : memref<56x512xf32, #tpu.memory_space<vmem>>, vector<56x64xf32>,
    %c0_147 = arith.constant 0 : index
    %c125_148 = arith.constant 125 : index
    %114 = vector.load %arg12[%c0_147, %c125_148] : memref<56x512xf32, #tpu.memory_space<vmem>>, vector<56x64xf32>
    %c0_149 = arith.constant 0 : index
    %c0_150 = arith.constant 0 : index
    %115 = vector.load %arg11[%c0_149, %c0_150] : memref<504x512xf32, #tpu.memory_space<vmem>>, vector<56x64xf32>
    tpu.vector_store %arg11[%c0_149, %c0_150], %114 {strides = array<i32>} : memref<504x512xf32, #tpu.memory_space<vmem>>, vector<56x64xf32>,
    %c0_151 = arith.constant 0 : index
    %c126_152 = arith.constant 126 : index
    %116 = vector.load %arg12[%c0_151, %c126_152] : memref<56x512xf32, #tpu.memory_space<vmem>>, vector<56x64xf32>
    %c56_153 = arith.constant 56 : index
    %c0_154 = arith.constant 0 : index
    %117 = vector.load %arg11[%c56_153, %c0_154] : memref<504x512xf32, #tpu.memory_space<vmem>>, vector<56x64xf32>
    tpu.vector_store %arg11[%c56_153, %c0_154], %116 {strides = array<i32>} : memref<504x512xf32, #tpu.memory_space<vmem>>, vector<56x64xf32>,
    %c0_155 = arith.constant 0 : index
    %c127_156 = arith.constant 127 : index
    %118 = vector.load %arg12[%c0_155, %c127_156] : memref<56x512xf32, #tpu.memory_space<vmem>>, vector<56x64xf32>
    %c112_157 = arith.constant 112 : index
    %c0_158 = arith.constant 0 : index
    %119 = vector.load %arg11[%c112_157, %c0_158] : memref<504x512xf32, #tpu.memory_space<vmem>>, vector<56x64xf32>
    tpu.vector_store %arg11[%c112_157, %c0_158], %118 {strides = array<i32>} : memref<504x512xf32, #tpu.memory_space<vmem>>, vector<56x64xf32>,
    %c0_159 = arith.constant 0 : index
    %c128_160 = arith.constant 128 : index
    %120 = vector.load %arg12[%c0_159, %c128_160] : memref<56x512xf32, #tpu.memory_space<vmem>>, vector<56x64xf32>
    %c168_161 = arith.constant 168 : index
    %c0_162 = arith.constant 0 : index
    %121 = vector.load %arg11[%c168_161, %c0_162] : memref<504x512xf32, #tpu.memory_space<vmem>>, vector<56x64xf32>
    tpu.vector_store %arg11[%c168_161, %c0_162], %120 {strides = array<i32>} : memref<504x512xf32, #tpu.memory_space<vmem>>, vector<56x64xf32>,
    %c0_163 = arith.constant 0 : index
    %c129_164 = arith.constant 129 : index
    %122 = vector.load %arg12[%c0_163, %c129_164] : memref<56x512xf32, #tpu.memory_space<vmem>>, vector<56x64xf32>
    %c224_165 = arith.constant 224 : index
    %c0_166 = arith.constant 0 : index
    %123 = vector.load %arg11[%c224_165, %c0_166] : memref<504x512xf32, #tpu.memory_space<vmem>>, vector<56x64xf32>
    tpu.vector_store %arg11[%c224_165, %c0_166], %122 {strides = array<i32>} : memref<504x512xf32, #tpu.memory_space<vmem>>, vector<56x64xf32>,
    %c0_167 = arith.constant 0 : index
    %c130_168 = arith.constant 130 : index
    %124 = vector.load %arg12[%c0_167, %c130_168] : memref<56x512xf32, #tpu.memory_space<vmem>>, vector<56x64xf32>
    %c280_169 = arith.constant 280 : index
    %c0_170 = arith.constant 0 : index
    %125 = vector.load %arg11[%c280_169, %c0_170] : memref<504x512xf32, #tpu.memory_space<vmem>>, vector<56x64xf32>
    tpu.vector_store %arg11[%c280_169, %c0_170], %124 {strides = array<i32>} : memref<504x512xf32, #tpu.memory_space<vmem>>, vector<56x64xf32>,
    %c0_171 = arith.constant 0 : index
    %c131_172 = arith.constant 131 : index
    %126 = vector.load %arg12[%c0_171, %c131_172] : memref<56x512xf32, #tpu.memory_space<vmem>>, vector<56x64xf32>
    %c336_173 = arith.constant 336 : index
    %c0_174 = arith.constant 0 : index
    %127 = vector.load %arg11[%c336_173, %c0_174] : memref<504x512xf32, #tpu.memory_space<vmem>>, vector<56x64xf32>
    tpu.vector_store %arg11[%c336_173, %c0_174], %126 {strides = array<i32>} : memref<504x512xf32, #tpu.memory_space<vmem>>, vector<56x64xf32>,
    %c0_175 = arith.constant 0 : index
    %c0_176 = arith.constant 0 : index
    %c0_177 = arith.constant 0 : index
    %128 = vector.load %arg6[%c0_175, %c0_176, %c0_177] : memref<1x56x392xf32, #tpu.memory_space<vmem>>, vector<1x56x392xf32>
    %129 = vector.shape_cast %128 : vector<1x56x392xf32> to vector<56x392xf32>
    %c0_178 = arith.constant 0 : index
    %c0_179 = arith.constant 0 : index
    %130 = vector.load %arg11[%c0_178, %c0_179] : memref<504x512xf32, #tpu.memory_space<vmem>>, vector<392x64xf32>
    %cst_180 = arith.constant dense<0.000000e+00> : vector<56x64xf32>
    %131 = tpu.matmul %129, %130, %cst_180 {dimension_numbers = #tpu.dot_dimension_numbers<[1], [0], [0], [1], [0, 0, 1, 1], [], []>} : vector<56x392xf32>, vector<392x64xf32>, vector<56x64xf32> -> vector<56x64xf32>
    %c0_181 = arith.constant 0 : index
    %c0_182 = arith.constant 0 : index
    %c3_183 = arith.constant 3 : index
    %132 = vector.load %arg8[%c0_181, %c0_182, %c3_183] : memref<1x56x5xf32, #tpu.memory_space<vmem>>, vector<1x56x1xf32>
    %133 = vector.shape_cast %132 : vector<1x56x1xf32> to vector<56x1xf32>
    %134 = vector.broadcast %133 : vector<56x1xf32> to vector<56x64xf32>
    %135 = arith.addf %131, %134 : vector<56x64xf32>
    %cst_184 = arith.constant 0.000000e+00 : f32
    %136 = vector.broadcast %cst_184 : f32 to vector<56x64xf32>
    %137 = arith.maximumf %135, %136 : vector<56x64xf32>
    %138 = arith.addf %110, %137 : vector<56x64xf32>
    %c0_185 = arith.constant 0 : index
    %c0_186 = arith.constant 0 : index
    %139 = vector.load %arg9[%c0_185, %c0_186] : memref<512x256xf32, #tpu.memory_space<vmem>>, vector<64x32xf32>
    %cst_187 = arith.constant dense<0.000000e+00> : vector<56x32xf32>
    %140 = tpu.matmul %138, %139, %cst_187 {dimension_numbers = #tpu.dot_dimension_numbers<[1], [0], [0], [1], [0, 0, 1, 1], [], []>} : vector<56x64xf32>, vector<64x32xf32>, vector<56x32xf32> -> vector<56x32xf32>
    %cst_188 = arith.constant 0.000000e+00 : f32
    %141 = vector.broadcast %cst_188 : f32 to vector<56x4xf32>
    %c0_189 = arith.constant 0 : index
    %c160 = arith.constant 160 : index
    %142 = vector.load %arg12[%c0_189, %c160] : memref<56x512xf32, #tpu.memory_space<vmem>>, vector<56x4xf32>
    tpu.vector_store %arg12[%c0_189, %c160], %141 {strides = array<i32>} : memref<56x512xf32, #tpu.memory_space<vmem>>, vector<56x4xf32>,
    %c0_190 = arith.constant 0 : index
    %c128_191 = arith.constant 128 : index
    %143 = vector.load %arg12[%c0_190, %c128_191] : memref<56x512xf32, #tpu.memory_space<vmem>>, vector<56x32xf32>
    tpu.vector_store %arg12[%c0_190, %c128_191], %140 {strides = array<i32>} : memref<56x512xf32, #tpu.memory_space<vmem>>, vector<56x32xf32>,
    %c0_192 = arith.constant 0 : index
    %c126_193 = arith.constant 126 : index
    %144 = vector.load %arg12[%c0_192, %c126_193] : memref<56x512xf32, #tpu.memory_space<vmem>>, vector<56x32xf32>
    %c0_194 = arith.constant 0 : index
    %c0_195 = arith.constant 0 : index
    %145 = vector.load %arg11[%c0_194, %c0_195] : memref<504x512xf32, #tpu.memory_space<vmem>>, vector<56x32xf32>
    tpu.vector_store %arg11[%c0_194, %c0_195], %144 {strides = array<i32>} : memref<504x512xf32, #tpu.memory_space<vmem>>, vector<56x32xf32>,
    %c0_196 = arith.constant 0 : index
    %c127_197 = arith.constant 127 : index
    %146 = vector.load %arg12[%c0_196, %c127_197] : memref<56x512xf32, #tpu.memory_space<vmem>>, vector<56x32xf32>
    %c56_198 = arith.constant 56 : index
    %c0_199 = arith.constant 0 : index
    %147 = vector.load %arg11[%c56_198, %c0_199] : memref<504x512xf32, #tpu.memory_space<vmem>>, vector<56x32xf32>
    tpu.vector_store %arg11[%c56_198, %c0_199], %146 {strides = array<i32>} : memref<504x512xf32, #tpu.memory_space<vmem>>, vector<56x32xf32>,
    %c0_200 = arith.constant 0 : index
    %c128_201 = arith.constant 128 : index
    %148 = vector.load %arg12[%c0_200, %c128_201] : memref<56x512xf32, #tpu.memory_space<vmem>>, vector<56x32xf32>
    %c112_202 = arith.constant 112 : index
    %c0_203 = arith.constant 0 : index
    %149 = vector.load %arg11[%c112_202, %c0_203] : memref<504x512xf32, #tpu.memory_space<vmem>>, vector<56x32xf32>
    tpu.vector_store %arg11[%c112_202, %c0_203], %148 {strides = array<i32>} : memref<504x512xf32, #tpu.memory_space<vmem>>, vector<56x32xf32>,
    %c0_204 = arith.constant 0 : index
    %c129_205 = arith.constant 129 : index
    %150 = vector.load %arg12[%c0_204, %c129_205] : memref<56x512xf32, #tpu.memory_space<vmem>>, vector<56x32xf32>
    %c168_206 = arith.constant 168 : index
    %c0_207 = arith.constant 0 : index
    %151 = vector.load %arg11[%c168_206, %c0_207] : memref<504x512xf32, #tpu.memory_space<vmem>>, vector<56x32xf32>
    tpu.vector_store %arg11[%c168_206, %c0_207], %150 {strides = array<i32>} : memref<504x512xf32, #tpu.memory_space<vmem>>, vector<56x32xf32>,
    %c0_208 = arith.constant 0 : index
    %c130_209 = arith.constant 130 : index
    %152 = vector.load %arg12[%c0_208, %c130_209] : memref<56x512xf32, #tpu.memory_space<vmem>>, vector<56x32xf32>
    %c224_210 = arith.constant 224 : index
    %c0_211 = arith.constant 0 : index
    %153 = vector.load %arg11[%c224_210, %c0_211] : memref<504x512xf32, #tpu.memory_space<vmem>>, vector<56x32xf32>
    tpu.vector_store %arg11[%c224_210, %c0_211], %152 {strides = array<i32>} : memref<504x512xf32, #tpu.memory_space<vmem>>, vector<56x32xf32>,
    %c0_212 = arith.constant 0 : index
    %c0_213 = arith.constant 0 : index
    %c0_214 = arith.constant 0 : index
    %154 = vector.load %arg7[%c0_212, %c0_213, %c0_214] : memref<1x56x280xf32, #tpu.memory_space<vmem>>, vector<1x56x280xf32>
    %155 = vector.shape_cast %154 : vector<1x56x280xf32> to vector<56x280xf32>
    %c0_215 = arith.constant 0 : index
    %c0_216 = arith.constant 0 : index
    %156 = vector.load %arg11[%c0_215, %c0_216] : memref<504x512xf32, #tpu.memory_space<vmem>>, vector<280x32xf32>
    %cst_217 = arith.constant dense<0.000000e+00> : vector<56x32xf32>
    %157 = tpu.matmul %155, %156, %cst_217 {dimension_numbers = #tpu.dot_dimension_numbers<[1], [0], [0], [1], [0, 0, 1, 1], [], []>} : vector<56x280xf32>, vector<280x32xf32>, vector<56x32xf32> -> vector<56x32xf32>
    %c0_218 = arith.constant 0 : index
    %c0_219 = arith.constant 0 : index
    %c4_220 = arith.constant 4 : index
    %158 = vector.load %arg8[%c0_218, %c0_219, %c4_220] : memref<1x56x5xf32, #tpu.memory_space<vmem>>, vector<1x56x1xf32>
    %159 = vector.shape_cast %158 : vector<1x56x1xf32> to vector<56x1xf32>
    %160 = vector.broadcast %159 : vector<56x1xf32> to vector<56x32xf32>
    %161 = arith.addf %157, %160 : vector<56x32xf32>
    %cst_221 = arith.constant 0.000000e+00 : f32
    %162 = vector.broadcast %cst_221 : f32 to vector<56x32xf32>
    %163 = arith.maximumf %161, %162 : vector<56x32xf32>
    %c0_222 = arith.constant 0 : index
    %c0_223 = arith.constant 0 : index
    %164 = vector.load %arg9[%c0_222, %c0_223] : memref<512x256xf32, #tpu.memory_space<vmem>>, vector<32x16xf32>
    %cst_224 = arith.constant dense<0.000000e+00> : vector<56x16xf32>
    %165 = tpu.matmul %163, %164, %cst_224 {dimension_numbers = #tpu.dot_dimension_numbers<[1], [0], [0], [1], [0, 0, 1, 1], [], []>} : vector<56x32xf32>, vector<32x16xf32>, vector<56x16xf32> -> vector<56x16xf32>
    %c0_225 = arith.constant 0 : index
    %c0_226 = arith.constant 0 : index
    %c0_227 = arith.constant 0 : index
    %c0_228 = arith.constant 0 : index
    %166 = vector.load %arg10[%c0_225, %c0_226, %c0_227, %c0_228] : memref<1x1x56x16xf32, #tpu.memory_space<vmem>>, vector<1x1x56x16xf32>
    %167 = vector.shape_cast %166 : vector<1x1x56x16xf32> to vector<56x16xf32>
    %168 = vector.shape_cast %165 : vector<56x16xf32> to vector<1x1x56x16xf32>
    tpu.vector_store %arg10[%c0_225, %c0_226, %c0_227, %c0_228], %168 {strides = array<i32>} : memref<1x1x56x16xf32, #tpu.memory_space<vmem>>, vector<1x1x56x16xf32>,
    return
  }
  func.func @transform_0(%arg0: i32, %arg1: i32) -> (i32, i32, i32, i32) {
    %c0_i32 = arith.constant 0 : i32
    %c0_i32_0 = arith.constant 0 : i32
    %c0_i32_1 = arith.constant 0 : i32
    return %arg0, %arg1, %c0_i32, %c0_i32_0 : i32, i32, i32, i32
  }
  func.func @transform_1(%arg0: i32, %arg1: i32) -> (i32, i32, i32) {
    %c0_i32 = arith.constant 0 : i32
    %c0_i32_0 = arith.constant 0 : i32
    %c0_i32_1 = arith.constant 0 : i32
    return %arg0, %c0_i32, %c0_i32_0 : i32, i32, i32
  }
  func.func @transform_2(%arg0: i32, %arg1: i32) -> (i32, i32, i32) {
    %c0_i32 = arith.constant 0 : i32
    %c0_i32_0 = arith.constant 0 : i32
    %c0_i32_1 = arith.constant 0 : i32
    return %arg0, %c0_i32, %c0_i32_0 : i32, i32, i32
  }
  func.func @transform_3(%arg0: i32, %arg1: i32) -> (i32, i32, i32) {
    %c0_i32 = arith.constant 0 : i32
    %c0_i32_0 = arith.constant 0 : i32
    %c0_i32_1 = arith.constant 0 : i32
    return %arg0, %c0_i32, %c0_i32_0 : i32, i32, i32
  }
  func.func @transform_4(%arg0: i32, %arg1: i32) -> (i32, i32, i32) {
    %c0_i32 = arith.constant 0 : i32
    %c0_i32_0 = arith.constant 0 : i32
    %c0_i32_1 = arith.constant 0 : i32
    return %arg0, %c0_i32, %c0_i32_0 : i32, i32, i32
  }
  func.func @transform_5(%arg0: i32, %arg1: i32) -> (i32, i32, i32) {
    %c0_i32 = arith.constant 0 : i32
    %c0_i32_0 = arith.constant 0 : i32
    %c0_i32_1 = arith.constant 0 : i32
    return %arg0, %c0_i32, %c0_i32_0 : i32, i32, i32
  }
  func.func @transform_6(%arg0: i32, %arg1: i32) -> (i32, i32, i32) {
    %c0_i32 = arith.constant 0 : i32
    %c0_i32_0 = arith.constant 0 : i32
    %c0_i32_1 = arith.constant 0 : i32
    return %arg0, %c0_i32, %c0_i32_0 : i32, i32, i32
  }
  func.func @transform_7(%arg0: i32, %arg1: i32) -> (i32, i32) {
    %c0_i32 = arith.constant 0 : i32
    %c0_i32_0 = arith.constant 0 : i32
    %c0_i32_1 = arith.constant 0 : i32
    return %c0_i32, %c0_i32_0 : i32, i32
  }
  func.func @transform_8(%arg0: i32, %arg1: i32) -> (i32, i32, i32, i32) {
    %c0_i32 = arith.constant 0 : i32
    %c0_i32_0 = arith.constant 0 : i32
    %c0_i32_1 = arith.constant 0 : i32
    return %arg0, %arg1, %c0_i32, %c0_i32_0 : i32, i32, i32, i32
  }
}

module attributes {stable_mosaic.version = 11 : i64} {
  func.func @_head_kernel(%arg0: memref<2x896xf32, #tpu.memory_space<vmem>>, %arg1: memref<2x896xf32, #tpu.memory_space<vmem>>, %arg2: memref<896x896xbf16, #tpu.memory_space<vmem>>, %arg3: memref<1x896xf32, #tpu.memory_space<vmem>>, %arg4: memref<896x896xbf16, #tpu.memory_space<vmem>>, %arg5: memref<1x896xf32, #tpu.memory_space<vmem>>, %arg6: memref<896x2xbf16, #tpu.memory_space<vmem>>, %arg7: memref<1x2xf32, #tpu.memory_space<vmem>>, %arg8: memref<2x2xf32, #tpu.memory_space<vmem>>) attributes {dimension_semantics = [], scalar_prefetch = 0 : i64, scratch_operands = 0 : i64, tpu.core_type = #tpu.core_type<tc>} {
    %c0 = arith.constant 0 : index
    %c0_0 = arith.constant 0 : index
    %0 = vector.load %arg0[%c0, %c0_0] : memref<2x896xf32, #tpu.memory_space<vmem>>, vector<2x896xf32>
    %1 = arith.truncf %0 : vector<2x896xf32> to vector<2x896xbf16>
    %c0_1 = arith.constant 0 : index
    %c0_2 = arith.constant 0 : index
    %2 = vector.load %arg2[%c0_1, %c0_2] : memref<896x896xbf16, #tpu.memory_space<vmem>>, vector<896x896xbf16>
    %cst = arith.constant dense<0.000000e+00> : vector<2x896xf32>
    %3 = tpu.matmul %1, %2, %cst {dimension_numbers = #tpu.dot_dimension_numbers<[1], [0], [0], [1], [0, 0, 1, 1], [], []>} : vector<2x896xbf16>, vector<896x896xbf16>, vector<2x896xf32> -> vector<2x896xf32>
    %c0_3 = arith.constant 0 : index
    %c0_4 = arith.constant 0 : index
    %4 = vector.load %arg3[%c0_3, %c0_4] : memref<1x896xf32, #tpu.memory_space<vmem>>, vector<1x896xf32>
    %5 = vector.broadcast %4 : vector<1x896xf32> to vector<2x896xf32>
    %6 = arith.addf %3, %5 : vector<2x896xf32>
    %cst_5 = arith.constant 0.000000e+00 : f32
    %7 = vector.broadcast %cst_5 : f32 to vector<2x896xf32>
    %8 = arith.maximumf %6, %7 : vector<2x896xf32>
    %c0_6 = arith.constant 0 : index
    %c0_7 = arith.constant 0 : index
    %9 = vector.load %arg1[%c0_6, %c0_7] : memref<2x896xf32, #tpu.memory_space<vmem>>, vector<2x896xf32>
    %10 = arith.truncf %9 : vector<2x896xf32> to vector<2x896xbf16>
    %c0_8 = arith.constant 0 : index
    %c0_9 = arith.constant 0 : index
    %11 = vector.load %arg4[%c0_8, %c0_9] : memref<896x896xbf16, #tpu.memory_space<vmem>>, vector<896x896xbf16>
    %cst_10 = arith.constant dense<0.000000e+00> : vector<2x896xf32>
    %12 = tpu.matmul %10, %11, %cst_10 {dimension_numbers = #tpu.dot_dimension_numbers<[1], [0], [0], [1], [0, 0, 1, 1], [], []>} : vector<2x896xbf16>, vector<896x896xbf16>, vector<2x896xf32> -> vector<2x896xf32>
    %c0_11 = arith.constant 0 : index
    %c0_12 = arith.constant 0 : index
    %13 = vector.load %arg5[%c0_11, %c0_12] : memref<1x896xf32, #tpu.memory_space<vmem>>, vector<1x896xf32>
    %14 = vector.broadcast %13 : vector<1x896xf32> to vector<2x896xf32>
    %15 = arith.addf %12, %14 : vector<2x896xf32>
    %cst_13 = arith.constant 0.000000e+00 : f32
    %16 = vector.broadcast %cst_13 : f32 to vector<2x896xf32>
    %17 = arith.maximumf %15, %16 : vector<2x896xf32>
    %18 = arith.mulf %8, %17 : vector<2x896xf32>
    %19 = arith.truncf %18 : vector<2x896xf32> to vector<2x896xbf16>
    %c0_14 = arith.constant 0 : index
    %c0_15 = arith.constant 0 : index
    %20 = vector.load %arg6[%c0_14, %c0_15] : memref<896x2xbf16, #tpu.memory_space<vmem>>, vector<896x2xbf16>
    %cst_16 = arith.constant dense<0.000000e+00> : vector<2x2xf32>
    %21 = tpu.matmul %19, %20, %cst_16 {dimension_numbers = #tpu.dot_dimension_numbers<[1], [0], [0], [1], [0, 0, 1, 1], [], []>} : vector<2x896xbf16>, vector<896x2xbf16>, vector<2x2xf32> -> vector<2x2xf32>
    %c0_17 = arith.constant 0 : index
    %c0_18 = arith.constant 0 : index
    %22 = vector.load %arg7[%c0_17, %c0_18] : memref<1x2xf32, #tpu.memory_space<vmem>>, vector<1x2xf32>
    %23 = vector.broadcast %22 : vector<1x2xf32> to vector<2x2xf32>
    %24 = arith.addf %21, %23 : vector<2x2xf32>
    %c0_19 = arith.constant 0 : index
    %c0_20 = arith.constant 0 : index
    %25 = vector.load %arg8[%c0_19, %c0_20] : memref<2x2xf32, #tpu.memory_space<vmem>>, vector<2x2xf32>
    tpu.vector_store %arg8[%c0_19, %c0_20], %24 {strides = array<i32>} : memref<2x2xf32, #tpu.memory_space<vmem>>, vector<2x2xf32>,
    return
  }
}

</mosaic_0001>

<bundles_post_ra>
// kernel: squeeze.2
= control target key start
LH: loop header
LB: loop body
LE: loop exit
PB: predicated region body
PF: predicated region fallthrough
CT: control target
= control target key end

     0   :  { %vm29_vm0 = vcmask 1043458   ;;  %s102_s6 = smov 3  ;;  %vm16_vm1 = vcmask 1045508   ;;  %s105_s9 = smov 12  ;;  %vm39_vm2 = vcmask 1047558   ;;  %vm4_vm3 = vcmask 1047556   ;;  %s744_s0 = inlined_call_operand.vmem [shape: f32[1,2,56,16], index: 0, kind: input, shape index: {}]   ;;  %s745_s1 = inlined_call_operand.vmem [shape: f32[2,896], index: 1, kind: output, shape index: {}]  }
   0x1   :  { %v440_v0 = vld [vmem:[%s744_s0 + $0x26] ss:$56 sm:%s102_s6]   ;;  %s110_s10 = smov 48  ;;  %s52_s15 = smov 3  ;;  %vm6_vm4 = vcmask 130048   ;;  %vm43_vm5 = vcmask 1048448  }
   0x2   :  { %v441_v1 = vld [vmem:[%s744_s0 - $0x42] ss:$56 sm:%s105_s9]   ;;  %v433_v4 = vld [vmem:[%s744_s0 + $0x27] ss:$56 sm:%s52_s15]   ;;  %s55_s18 = smov 12  ;;  %s60_s19 = smov 48 }
   0x3   :  { %v442_v2 = vld [vmem:[%s744_s0 - $0xaa] ss:$56 sm:%s110_s10]   ;;  %v108_v3 = vsel %vm29_vm0, %v441_v1, %v440_v0  ;;  %v434_v6 = vld [vmem:[%s744_s0 - $0x41] ss:$56 sm:%s55_s18]   ;;  %s74_s24 = smov 3  ;;  %s77_s25 = smov 12 }
   0x4   :  { %v113_v5 = vsel %vm16_vm1, %v442_v2, %v108_v3  ;;  %v435_v7 = vld [vmem:[%s744_s0 - $0xa9] ss:$56 sm:%s60_s19]   ;;  %s491_s26 = smov 96   ;;  %v58_v8 = vsel %vm29_vm0, %v434_v6, %v433_v4  ;;  %v436_v9 = vld [vmem:[%s744_s0 + $0x6] ss:$56 sm:%s74_s24]   ;;  %s82_s29 = smov 48 }
   0x5   :  { %114 = vrot.lane.b32.xlu1 %v113_v5, %s491_s26  ;;  %s87_s30 = smov 192  ;;  %v63_v10 = vsel %vm16_vm1, %v435_v7, %v58_v8  ;;  %v437_v11 = vld [vmem:[%s744_s0 - $0x62] ss:$56 sm:%s77_s25]   ;;  %s24_s6 = smov 3  ;;  %vm93_vm6 = vcmask 917248   ;;  %vm143_vm7 = vcmask 786048  }
   0x6   :  { %v438_v12 = vld [vmem:[%s744_s0 - $0xca] ss:$56 sm:%s82_s29]   ;;  %s27_s7 = smov 12  ;;  %s492_s8 = smov 112   ;;  %v80_v13 = vsel %vm29_vm0, %v437_v11, %v436_v9  ;;  %v429_v16 = vld [vmem:[%s744_s0 + $0x7] ss:$56 sm:%s24_s6]  }
   0x7   :  { %64 = vrot.lane.b32.xlu0 %v63_v10, %s492_s8  ;;  %v439_v14 = vld [vmem:[%s744_s0 - $0x132] ss:$56 sm:%s87_s30]   ;;  %s32_s11 = smov 48  ;;  %s37_s12 = smov 192  ;;  %v85_v15 = vsel %vm16_vm1, %v438_v12, %v80_v13  ;;  %vm193_vm8 = vcmask 654848   ;;  %vm243_vm9 = vcmask 523648  }
   0x8   :  { %v430_v17 = vld [vmem:[%s744_s0 - $0x61] ss:$56 sm:%s27_s7]   ;;  %s152_s17 = smov 3  ;;  %v90_v18 = vsel %vm39_vm2, %v439_v14, %v85_v15  ;;  %s155_s22 = smov 12  ;;  %vm293_vm10 = vcmask 392448   ;;  %vm343_vm11 = vcmask 261248  }
   0x9   :  { %v30_v19 = vsel %vm29_vm0, %v430_v17, %v429_v16  ;;  %v431_v20 = vld [vmem:[%s744_s0 - $0xc9] ss:$56 sm:%s32_s11]   ;;  %s160_s23 = smov 48  ;;  %91 = vrot.lane.b32.xlu1 %v90_v18, %s491_s26  ;;  %s124_s26 = smov 3 }
   0xa   :  { %v432_v21 = vld [vmem:[%s744_s0 - $0x131] ss:$56 sm:%s37_s12]   ;;  %v35_v22 = vsel %vm16_vm1, %v431_v20, %v30_v19  ;;  %v447_v23 = vld [vmem:[%s744_s0 + $0x25] ss:$56 sm:%s152_s17]   ;;  %s127_s27 = smov 12  ;;  %s132_s3 = smov 48 }
   0xb   :  { %v40_v24 = vsel %vm39_vm2, %v432_v21, %v35_v22  ;;  %v448_v25 = vld [vmem:[%s744_s0 - $0x43] ss:$56 sm:%s155_s22]   ;;  %s137_s4 = smov 192  ;;  %s202_s7 = smov 3 }
   0xc   :  { %v449_v26 = vld [vmem:[%s744_s0 - $0xab] ss:$56 sm:%s160_s23]   ;;  %41 = vrot.lane.b32.xlu0 %v40_v24, %s492_s8  ;;  %v158_v27 = vsel %vm29_vm0, %v448_v25, %v447_v23  ;;  %s205_s12 = smov 12  ;;  %s210_s13 = smov 48 }
   0xd   :  { %v443_v28 = vld [vmem:[%s744_s0 + $0x5] ss:$56 sm:%s124_s26]   ;;  %v163_v29 = vsel %vm16_vm1, %v449_v26, %v158_v27  ;;  %s493_s14 = smov 80   ;;  %s174_s17 = smov 3  ;;  %v454_v35 = vld [vmem:[%s744_s0 + $0x24] ss:$56 sm:%s202_s7]  }
   0xe   :  { %v444_v30 = vld [vmem:[%s744_s0 - $0x63] ss:$56 sm:%s127_s27]   ;;  %164 = vrot.lane.b32.xlu1 %v163_v29, %s493_s14  ;;  %s177_s18 = smov 12  ;;  %s182_s23 = smov 48 }
   0xf   :  { %v445_v31 = vld [vmem:[%s744_s0 - $0xcb] ss:$56 sm:%s132_s3]   ;;  %v130_v32 = vsel %vm29_vm0, %v444_v30, %v443_v28  ;;  %v455_v36 = vld [vmem:[%s744_s0 - $0x44] ss:$56 sm:%s205_s12]   ;;  %s187_s28 = smov 192  ;;  %s252_s29 = smov 3 }
  0x10   :  { %v446_v33 = vld [vmem:[%s744_s0 - $0x133] ss:$56 sm:%s137_s4]   ;;  %v135_v34 = vsel %vm16_vm1, %v445_v31, %v130_v32  ;;  %v208_v38 = vsel %vm29_vm0, %v455_v36, %v454_v35  ;;  %v456_v39 = vld [vmem:[%s744_s0 - $0xac] ss:$56 sm:%s210_s13]   ;;  %s255_s3 = smov 12  ;;  %s260_s4 = smov 48 }
  0x11   :  { %v140_v37 = vsel %vm39_vm2, %v446_v33, %v135_v34  ;;  %v450_v40 = vld [vmem:[%s744_s0 + $0x4] ss:$56 sm:%s174_s17]   ;;  %v213_v41 = vsel %vm16_vm1, %v456_v39, %v208_v38  ;;  %s494_s5 = smov 64   ;;  %s224_s8 = smov 3  ;;  %v461_v47 = vld [vmem:[%s744_s0 + $0x23] ss:$56 sm:%s252_s29]  }
  0x12   :  { %141 = vrot.lane.b32.xlu0 %v140_v37, %s493_s14  ;;  %v451_v42 = vld [vmem:[%s744_s0 - $0x64] ss:$56 sm:%s177_s18]   ;;  %214 = vrot.lane.b32.xlu1 %v213_v41, %s494_s5  ;;  %s227_s13 = smov 12  ;;  %s232_s14 = smov 48 }
  0x13   :  { %v180_v43 = vsel %vm29_vm0, %v451_v42, %v450_v40  ;;  %v452_v44 = vld [vmem:[%s744_s0 - $0xcc] ss:$56 sm:%s182_s23]   ;;  %v462_v49 = vld [vmem:[%s744_s0 - $0x45] ss:$56 sm:%s255_s3]   ;;  %s237_s19 = smov 192  ;;  %s302_s22 = smov 3 }
  0x14   :  { %v185_v45 = vsel %vm16_vm1, %v452_v44, %v180_v43  ;;  %v453_v46 = vld [vmem:[%s744_s0 - $0x134] ss:$56 sm:%s187_s28]   ;;  %v463_v50 = vld [vmem:[%s744_s0 - $0xad] ss:$56 sm:%s260_s4]   ;;  %v258_v51 = vsel %vm29_vm0, %v462_v49, %v461_v47  ;;  %s305_s23 = smov 12  ;;  %s310_s28 = smov 48 }
  0x15   :  { %v190_v48 = vsel %vm39_vm2, %v453_v46, %v185_v45  ;;  %v457_v52 = vld [vmem:[%s744_s0 + $0x3] ss:$56 sm:%s224_s8]   ;;  %v263_v53 = vsel %vm16_vm1, %v463_v50, %v258_v51  ;;  %s274_s29 = smov 3  ;;  %s495_s30 = smov 48   ;;  %v468_v59 = vld [vmem:[%s744_s0 + $0x22] ss:$56 sm:%s302_s22]  }
  0x16   :  { %191 = vrot.lane.b32.xlu0 %v190_v48, %s494_s5  ;;  %v458_v54 = vld [vmem:[%s744_s0 - $0x65] ss:$56 sm:%s227_s13]   ;;  %264 = vrot.lane.b32.xlu1 %v263_v53, %s495_s30  ;;  %s277_s4 = smov 12  ;;  %s282_s9 = smov 48 }
  0x17   :  { %v459_v55 = vld [vmem:[%s744_s0 - $0xcd] ss:$56 sm:%s232_s14]   ;;  %v230_v56 = vsel %vm29_vm0, %v458_v54, %v457_v52  ;;  %v469_v60 = vld [vmem:[%s744_s0 - $0x46] ss:$56 sm:%s305_s23]   ;;  %s287_s14 = smov 192  ;;  %s352_s15 = smov 3 }
  0x18   :  { %v460_v57 = vld [vmem:[%s744_s0 - $0x135] ss:$56 sm:%s237_s19]   ;;  %v235_v58 = vsel %vm16_vm1, %v459_v55, %v230_v56  ;;  %v308_v62 = vsel %vm29_vm0, %v469_v60, %v468_v59  ;;  %v470_v63 = vld [vmem:[%s744_s0 - $0xae] ss:$56 sm:%s310_s28]   ;;  %s355_s18 = smov 12  ;;  %s360_s19 = smov 48 }
  0x19   :  { %v240_v61 = vsel %vm39_vm2, %v460_v57, %v235_v58  ;;  %v464_v0 = vld [vmem:[%s744_s0 + $0x2] ss:$56 sm:%s274_s29]   ;;  %v313_v1 = vsel %vm16_vm1, %v470_v63, %v308_v62  ;;  %s496_s20 = smov 32   ;;  %s324_s23 = smov 3  ;;  %v475_v7 = vld [vmem:[%s744_s0 + $0x21] ss:$56 sm:%s352_s15]  }
  0x1a   :  { %241 = vrot.lane.b32.xlu0 %v240_v61, %s495_s30  ;;  %v465_v2 = vld [vmem:[%s744_s0 - $0x66] ss:$56 sm:%s277_s4]   ;;  %314 = vrot.lane.b32.xlu1 %v313_v1, %s496_s20  ;;  %s327_s28 = smov 12  ;;  %s332_s29 = smov 48 }
  0x1b   :  { %v280_v3 = vsel %vm29_vm0, %v465_v2, %v464_v0  ;;  %v466_v4 = vld [vmem:[%s744_s0 - $0xce] ss:$56 sm:%s282_s9]   ;;  %v476_v9 = vld [vmem:[%s744_s0 - $0x47] ss:$56 sm:%s355_s18]   ;;  %s337_s5 = smov 192  ;;  %s14_s10 = smov 48 }
  0x1c   :  { %v285_v5 = vsel %vm16_vm1, %v466_v4, %v280_v3  ;;  %v467_v6 = vld [vmem:[%s744_s0 - $0x136] ss:$56 sm:%s287_s14]   ;;  %v477_v10 = vld [vmem:[%s744_s0 - $0xaf] ss:$56 sm:%s360_s19]   ;;  %v358_v11 = vsel %vm29_vm0, %v476_v9, %v475_v7  ;;  %s497_s15 = smov 16  }
  0x1d   :  { %v290_v8 = vsel %vm39_vm2, %v467_v6, %v285_v5  ;;  %v471_v12 = vld [vmem:[%s744_s0 + $0x1] ss:$56 sm:%s324_s23]   ;;  %v2_v13 = vld [vmem:[%s744_s0] ss:$8 sm:$0xf]   ;;  %v363_v14 = vsel %vm16_vm1, %v477_v10, %v358_v11 }
  0x1e   :  { %291 = vrot.lane.b32.xlu0 %v290_v8, %s496_s20  ;;  %v472_v15 = vld [vmem:[%s744_s0 - $0x67] ss:$56 sm:%s327_s28]   ;;  %364 = vrot.lane.b32.xlu1 %v363_v14, %s497_s15 }
  0x1f   :  { %v473_v16 = vld [vmem:[%s744_s0 - $0xcf] ss:$56 sm:%s332_s29]   ;;  %v330_v17 = vsel %vm29_vm0, %v472_v15, %v471_v12  ;;  %v3_v19 = vld [vmem:[%s744_s0] ss:$8 sm:$0xf0]  }
  0x20   :  { %v474_v18 = vld [vmem:[%s744_s0 - $0x137] ss:$56 sm:%s337_s5]   ;;  %v335_v20 = vsel %vm16_vm1, %v473_v16, %v330_v17  ;;  %v5_v21 = vsel %vm4_vm3, %v3_v19, %v2_v13  ;;  %v427_v22 = vld [vmem:[%s744_s0 + $0x40] ss:$8 sm:$0xf]  }
  0x21   :  { %v428_v23 = vld [vmem:[%s744_s0 + $0x40] ss:$8 sm:%s14_s10]   ;;  %v340_v24 = vsel %vm39_vm2, %v474_v18, %v335_v20  ;;  %8 = vst.msk [vmem:[#allocation0] ss:$8 sm:$0x70] %vm6_vm4, %v5_v21  }
  0x22   :  { %v17_v25 = vsel %vm16_vm1, %v428_v23, %v427_v22  ;;  %7 = vst.msk [vmem:[#allocation0] ss:$8 sm:$0xf] %vm6_vm4, %v5_v21   ;;  %10 = vst.msk [vmem:[#allocation0 - $0x6] sm:$0x80] %vm6_vm4, %v5_v21   ;;  %341 = vrot.lane.b32.xlu0 %v340_v24, %s497_s15 }
  0x23   :  { %20 = vst.msk [vmem:[#allocation0 + $0x9] ss:$8 sm:$0xf] %vm6_vm4, %v17_v25   ;;  %22 = vst.msk [vmem:[#allocation0 + $0x9] ss:$8 sm:$0x30] %vm6_vm4, %v17_v25  }
  0x77   :  { %v115_v26 = vpop.permute.xlu1 %114  }
  0x79   :  { %v65_v27 = vpop.permute.xlu0 %64  }
  0x7a   :  { %68 = vst.msk [vmem:[#allocation0 + $0x20] sm:$0x3] %vm43_vm5, %v65_v27   ;;  %70 = vst.msk [vmem:[#allocation0 + $0x26] sm:$0xc] %vm43_vm5, %v65_v27  }
  0x7b   :  { %72 = vst.msk [vmem:[#allocation0 + $0x2c] sm:$0x30] %vm43_vm5, %v65_v27   ;;  %v92_v28 = vpop.permute.xlu1 %91  }
  0x7c   :  { %118 = vst.msk [vmem:[#allocation0 + $0x20] sm:$0x3] %vm93_vm6, %v115_v26   ;;  %120 = vst.msk [vmem:[#allocation0 + $0x26] sm:$0xc] %vm93_vm6, %v115_v26  }
  0x7d   :  { %122 = vst.msk [vmem:[#allocation0 + $0x2c] sm:$0x30] %vm93_vm6, %v115_v26  }
  0x7e   :  { %v42_v29 = vpop.permute.xlu0 %41  }
  0x7f   :  { %44 = vst.msk [vmem:[#allocation0] sm:$0x3] %vm43_vm5, %v42_v29   ;;  %46 = vst.msk [vmem:[#allocation0 + $0x6] sm:$0xc] %vm43_vm5, %v42_v29  }
  0x80   :  { %48 = vst.msk [vmem:[#allocation0 + $0xc] sm:$0x30] %vm43_vm5, %v42_v29   ;;  %50 = vst.msk [vmem:[#allocation0 + $0x12] sm:$0xc0] %vm43_vm5, %v42_v29   ;;  %v165_v30 = vpop.permute.xlu1 %164  }
  0x81   :  { %94 = vst.msk [vmem:[#allocation0] sm:$0x3] %vm93_vm6, %v92_v28   ;;  %96 = vst.msk [vmem:[#allocation0 + $0x6] sm:$0xc] %vm93_vm6, %v92_v28  }
  0x82   :  { %98 = vst.msk [vmem:[#allocation0 + $0xc] sm:$0x30] %vm93_vm6, %v92_v28   ;;  %100 = vst.msk [vmem:[#allocation0 + $0x12] sm:$0xc0] %vm93_vm6, %v92_v28  }
  0x83   :  { %168 = vst.msk [vmem:[#allocation0 + $0x20] sm:$0x3] %vm143_vm7, %v165_v30   ;;  %170 = vst.msk [vmem:[#allocation0 + $0x26] sm:$0xc] %vm143_vm7, %v165_v30  }
  0x84   :  { %172 = vst.msk [vmem:[#allocation0 + $0x2c] sm:$0x30] %vm143_vm7, %v165_v30   ;;  %v142_v31 = vpop.permute.xlu0 %141   ;;  %v215_v32 = vpop.permute.xlu1 %214  }
  0x85   :  { %144 = vst.msk [vmem:[#allocation0] sm:$0x3] %vm143_vm7, %v142_v31   ;;  %146 = vst.msk [vmem:[#allocation0 + $0x6] sm:$0xc] %vm143_vm7, %v142_v31  }
  0x86   :  { %148 = vst.msk [vmem:[#allocation0 + $0xc] sm:$0x30] %vm143_vm7, %v142_v31   ;;  %150 = vst.msk [vmem:[#allocation0 + $0x12] sm:$0xc0] %vm143_vm7, %v142_v31  }
  0x87   :  { %218 = vst.msk [vmem:[#allocation0 + $0x20] sm:$0x3] %vm193_vm8, %v215_v32   ;;  %220 = vst.msk [vmem:[#allocation0 + $0x26] sm:$0xc] %vm193_vm8, %v215_v32  }
  0x88   :  { %222 = vst.msk [vmem:[#allocation0 + $0x2c] sm:$0x30] %vm193_vm8, %v215_v32   ;;  %v192_v33 = vpop.permute.xlu0 %191   ;;  %v265_v34 = vpop.permute.xlu1 %264  }
  0x89   :  { %194 = vst.msk [vmem:[#allocation0] sm:$0x3] %vm193_vm8, %v192_v33   ;;  %196 = vst.msk [vmem:[#allocation0 + $0x6] sm:$0xc] %vm193_vm8, %v192_v33  }
  0x8a   :  { %198 = vst.msk [vmem:[#allocation0 + $0xc] sm:$0x30] %vm193_vm8, %v192_v33   ;;  %200 = vst.msk [vmem:[#allocation0 + $0x12] sm:$0xc0] %vm193_vm8, %v192_v33  }
  0x8b   :  { %268 = vst.msk [vmem:[#allocation0 + $0x20] sm:$0x3] %vm243_vm9, %v265_v34   ;;  %270 = vst.msk [vmem:[#allocation0 + $0x26] sm:$0xc] %vm243_vm9, %v265_v34  }
  0x8c   :  { %272 = vst.msk [vmem:[#allocation0 + $0x2c] sm:$0x30] %vm243_vm9, %v265_v34   ;;  %v242_v35 = vpop.permute.xlu0 %241   ;;  %v315_v36 = vpop.permute.xlu1 %314  }
  0x8d   :  { %244 = vst.msk [vmem:[#allocation0] sm:$0x3] %vm243_vm9, %v242_v35   ;;  %246 = vst.msk [vmem:[#allocation0 + $0x6] sm:$0xc] %vm243_vm9, %v242_v35  }
  0x8e   :  { %248 = vst.msk [vmem:[#allocation0 + $0xc] sm:$0x30] %vm243_vm9, %v242_v35   ;;  %250 = vst.msk [vmem:[#allocation0 + $0x12] sm:$0xc0] %vm243_vm9, %v242_v35  }
  0x8f   :  { %318 = vst.msk [vmem:[#allocation0 + $0x20] sm:$0x3] %vm293_vm10, %v315_v36   ;;  %320 = vst.msk [vmem:[#allocation0 + $0x26] sm:$0xc] %vm293_vm10, %v315_v36  }
  0x90   :  { %322 = vst.msk [vmem:[#allocation0 + $0x2c] sm:$0x30] %vm293_vm10, %v315_v36   ;;  %v292_v37 = vpop.permute.xlu0 %291   ;;  %v365_v38 = vpop.permute.xlu1 %364  }
  0x91   :  { %294 = vst.msk [vmem:[#allocation0] sm:$0x3] %vm293_vm10, %v292_v37   ;;  %296 = vst.msk [vmem:[#allocation0 + $0x6] sm:$0xc] %vm293_vm10, %v292_v37  }
  0x92   :  { %298 = vst.msk [vmem:[#allocation0 + $0xc] sm:$0x30] %vm293_vm10, %v292_v37   ;;  %300 = vst.msk [vmem:[#allocation0 + $0x12] sm:$0xc0] %vm293_vm10, %v292_v37  }
  0x93   :  { %368 = vst.msk [vmem:[#allocation0 + $0x20] sm:$0x3] %vm343_vm11, %v365_v38   ;;  %370 = vst.msk [vmem:[#allocation0 + $0x26] sm:$0xc] %vm343_vm11, %v365_v38  }
  0x94   :  { %372 = vst.msk [vmem:[#allocation0 + $0x2c] sm:$0x30] %vm343_vm11, %v365_v38   ;;  %v342_v39 = vpop.permute.xlu0 %341  }
  0x95   :  { %344 = vst.msk [vmem:[#allocation0] sm:$0x3] %vm343_vm11, %v342_v39   ;;  %346 = vst.msk [vmem:[#allocation0 + $0x6] sm:$0xc] %vm343_vm11, %v342_v39  }
  0x96   :  { %348 = vst.msk [vmem:[#allocation0 + $0xc] sm:$0x30] %vm343_vm11, %v342_v39   ;;  %350 = vst.msk [vmem:[#allocation0 + $0x12] sm:$0xc0] %vm343_vm11, %v342_v39  }
  0x9a   :  { %v402_v40 = vld [vmem:[#allocation0 + $0x20] sm:$0x3]  ;;  %v409_v41 = vld [vmem:[#allocation0 + $0x28] sm:$0x3] }
  0x9b   :  { %v416_v42 = vld [vmem:[#allocation0 + $0x30] sm:$0x3]  ;;  %481 = vst [vmem:[%s745_s1 + $0x8] sm:$0x3] %v402_v40  ;;  %482 = vst [vmem:[%s745_s1 + $0xa] sm:$0x3] %v409_v41 }
  0x9c   :  { %483 = vst [vmem:[%s745_s1 + $0xc] sm:$0x3] %v416_v42  ;;  %v377_v43 = vld [vmem:[#allocation0] sm:$0x3]  ;;  %v382_v44 = vld [vmem:[#allocation0 + $0x8] sm:$0x3] }
  0x9d   :  { %v388_v45 = vld [vmem:[#allocation0 + $0x10] sm:$0x3]  ;;  %380 = vst [vmem:[%s745_s1] sm:$0x3] %v377_v43  ;;  %478 = vst [vmem:[%s745_s1 + $0x2] sm:$0x3] %v382_v44 }
  0x9e   :  { %479 = vst [vmem:[%s745_s1 + $0x4] sm:$0x3] %v388_v45  ;;  %v395_v46 = vld [vmem:[#allocation0 + $0x18] sm:$0x3] }
  0x9f   :  { %480 = vst [vmem:[%s745_s1 + $0x6] sm:$0x3] %v395_v46 }

// kernel: model_forward.2
= control target key start
LH: loop header
LB: loop body
LE: loop exit
PB: predicated region body
PF: predicated region fallthrough
CT: control target
= control target key end

     0   :  { %s7576_s27 = smov 0   ;;  %s7578_s28 = smov 0   ;;  %s11159_s0 = inlined_call_operand.vmem [shape: f32[2,2,24,640], index: 0, kind: input, shape index: {}]   ;;  %s11160_s1 = inlined_call_operand.vmem [shape: f32[2,56,264], index: 1, kind: input, shape index: {}]   ;;  %s11161_s2 = inlined_call_operand.vmem [shape: f32[2,56,504], index: 2, kind: input, shape index: {}]   ;;  %s11162_s3 = inlined_call_operand.vmem [shape: f32[2,56,392], index: 3, kind: input, shape index: {}]   ;;  %s11163_s4 = inlined_call_operand.vmem [shape: f32[2,56,392], index: 4, kind: input, shape index: {}]   ;;  %s11164_s5 = inlined_call_operand.vmem [shape: f32[2,56,280], index: 5, kind: input, shape index: {}]   ;;  %s11165_s6 = inlined_call_operand.vmem [shape: f32[2,56,5], index: 6, kind: input, shape index: {}]   ;;  %s11166_s7 = inlined_call_operand.vmem [shape: f32[512,256], index: 7, kind: input, shape index: {}]   ;;  %s11167_s8 = inlined_call_operand.vmem [shape: f32[2,2,56,16], index: 8, kind: output, shape index: {}]  }
   0x1   :  { %s7580_s29 = smov 0   ;;  %s7582_s30 = smov 0  }
   0x2   :  { %s7584_s9 = smov 0  }
   0x3 LB: > { %s27_s10 = sadd.s32 1, %s7500_s29  ;;  %s30_s11 = sadd.s32 1, %s7504_s30  ;;  %s7508_s9 = sphi %s7584_s9, %s18_s9   ;;  %s7504_s30 = sphi %s7582_s30, %s11287_s30   ;;  %s7500_s29 = sphi %s7580_s29, %s11286_s29   ;;  %s7496_s28 = sphi %s7578_s28, %s11285_s28   ;;  %s7492_s27 = sphi %s7576_s27, %s11284_s27  }
   0x4   : > { %p28_p0 = scmp.ge.s32.totalorder %s27_s10, 2  ;;  %p6860_p1 = scmp.ge.s32.totalorder %s7508_s9, 1 }
   0x5   : > { %p342_p2 = scmp.lt.s32.totalorder %s7508_s9, 5 }
   0x6   : > { %s11289_s10 = smov (%p28_p0, %s27_s10), 0  ;;  %s11291_s11 = smov (!%p28_p0, %s30_s11), %s7504_s30 }
   0x7   : > { %p343_p3 = pnand %p6860_p1, %p342_p2  ;;  %p32_p4 = scmp.ge.s32.totalorder %s11291_s11, 2 }
   0x9   : > { %s11293_s11 = smov (%p32_p4, %s11291_s11), 0  ;;  %346 = sbr.rel (%p343_p3) target bundleno = 3437 (0xd6d), region = 52 }
   0xe   : > { %p414_p5 = scmp.lt.s32.totalorder %s7496_s28, 1  ;;  %p416_p6 = scmp.lt.s32.totalorder %s7492_s27, 1  ;;  %v11169_v9 = vmov 0.0   ;;  %vm934_vm0 = vcmask 1006592   ;;  %vm837_vm1 = vcmask 1014784   ;;  %vm740_vm2 = vcmask 1022976  }
   0xf   : > { %s7510_s19 = smov 123   ;;  %s7511_s20 = smov 124   ;;  %1844 = vmatprep.mubr.f32.mxu1 %v11169_v9  ;;  %vm643_vm3 = vcmask 1031168   ;;  %vm546_vm4 = vcmask 1039360   ;;  %vm1419_vm5 = vcmask 965632   ;;  %vm1651_vm6 = vcmask 64512  }
  0x10   : > { %s11295_s28 = smov (!%p414_p5, %s7496_s28), 1  ;;  %s11297_s27 = smov (!%p416_p6, %s7492_s27), 1  ;;  %vm1322_vm7 = vcmask 973824   ;;  %vm1225_vm8 = vcmask 982016   ;;  %vm1128_vm9 = vcmask 990208   ;;  %vm1031_vm10 = vcmask 998400  }
  0x11   : > { %s7377_s12 = smul.u32 30, %s11295_s28  ;;  %s11185_s21 = smov 125   ;;  %vm2471_vm11 = vcmask 1048544   ;;  %vm2479_vm12 = vcmask 31744   ;;  %vm2965_vm13 = vcmask 7168   ;;  %vm2838_vm14 = vcmask 15360  }
  0x12   : > { %s7376_s13 = smul.u32 15, %s11297_s27  ;;  %s11181_s22 = smov 126   ;;  %2473 = vst.msk [vmem:[#allocation3 + $0x20] sm:$0xff] %vm2471_vm11, %v11169_v9  ;;  %2472 = vst.msk [vmem:[#allocation3] sm:$0xff] %vm2471_vm11, %v11169_v9  ;;  %vm2711_vm15 = vcmask 23552  }
  0x13   : > { %s7514_s23 = smov 127   ;;  %s7516_s24 = smov 118   ;;  %2474 = vst.msk [vmem:[#allocation3 + $0x40] sm:$0xff] %vm2471_vm11, %v11169_v9  ;;  %2475 = vst.msk [vmem:[#allocation3 + $0x60] sm:$0xff] %vm2471_vm11, %v11169_v9 }
  0x14   : > { %s420_s14 = sadd.s32 %s7377_s12, %s7376_s13  ;;  %s7517_s25 = smov 119   ;;  %2476 = vst.msk [vmem:[#allocation3 + $0x80] sm:$0xff] %vm2471_vm11, %v11169_v9  ;;  %2477 = vst.msk [vmem:[#allocation3 + $0xa0] sm:$0xff] %vm2471_vm11, %v11169_v9 }
  0x15   : > { %s6861_s15 = sshll.u32 %s420_s14, 3  ;;  %s7518_s26 = smov 120   ;;  %2478 = vst.msk [vmem:[#allocation3 + $0xc0] sm:$0xff] %vm2471_vm11, %v11169_v9 }
  0x16   : > { %s7615_s18 = scalar_lea.vmem %s11159_s0, %s6861_s15  ;;  %s7519_s12 = smov 121   ;;  %2485 = vst.msk [vmem:[#allocation3 + $0xb8] sm:$0xff] %vm2479_vm12, %v11169_v9  ;;  %2480 = vst.msk [vmem:[#allocation3 + $0x18] sm:$0xff] %vm2479_vm12, %v11169_v9 }
  0x17   : > { %v7618_v0 = vld [vmem:[%s7615_s18 + $0x8] sm:$0xff]  ;;  %v7621_v1 = vld [vmem:[%s7615_s18] sm:$0xff]  ;;  %v7628_v2 = vld [vmem:[%s7615_s18 + $0x10] sm:$0xff]  ;;  %s11168_s13 = smul.u32 168, %s11295_s28  ;;  %s7520_s17 = smov 122   ;;  %2481 = vst.msk [vmem:[#allocation3 + $0x38] sm:$0xff] %vm2479_vm12, %v11169_v9 }
  0x18   : > { %906 = vrot.lane.b32.xlu0 %v7618_v0, %s7510_s19  ;;  %904 = vrot.lane.b32.xlu1 %v7621_v1, %s7510_s19  ;;  %v7631_v3 = vld [vmem:[%s7615_s18 + $0x58] sm:$0xff]  ;;  %v7638_v4 = vld [vmem:[%s7615_s18 + $0x60] sm:$0xff]  ;;  %2482 = vst.msk [vmem:[#allocation3 + $0x58] sm:$0xff] %vm2479_vm12, %v11169_v9  ;;  %2483 = vst.msk [vmem:[#allocation3 + $0x78] sm:$0xff] %vm2479_vm12, %v11169_v9  ;;  %s7522_s15 = smov 2   ;;  %s11281_s14 = smov 3  }
  0x19   : > { %v7641_v5 = vld [vmem:[%s7615_s18 + $0x50] sm:$0xff]  ;;  %v7648_v6 = vld [vmem:[%s7615_s18 + $0x38] sm:$0xff]  ;;  %v7658_v8 = vld [vmem:[%s7615_s18 + $0x28] sm:$0xff]  ;;  %s7942_s16 = scalar_lea.vmem %s11160_s1, %s11168_s13  ;;  %2484 = vst.msk [vmem:[#allocation3 + $0x98] sm:$0xff] %vm2479_vm12, %v11169_v9  ;;  %s11280_s13 = smov 125  }
  0x1a   : > { %v7651_v7 = vld [vmem:[%s7615_s18 + $0x30] sm:$0xff]  ;;  %v7730_v10 = vld [vmem:[%s7615_s18 + $0x20] sm:$0xff]  ;;  %v7733_v11 = vld [vmem:[%s7615_s18 + $0x18] sm:$0xff]  ;;  %2486 = vst.msk [vmem:[#allocation3 + $0xd8] sm:$0xff] %vm2479_vm12, %v11169_v9 }
  0x1b   : > { %v7740_v12 = vld [vmem:[%s7615_s18 + $0x70] sm:$0xff]  ;;  %v7743_v13 = vld [vmem:[%s7615_s18 + $0x68] sm:$0xff]  ;;  %v7753_v15 = vld [vmem:[%s7615_s18 + $0x40] sm:$0xff] }
  0x1c   : > { %908 = vrot.lane.b32.xlu0 %v7628_v2, %s7510_s19  ;;  %829 = vrot.lane.b32.xlu1 %v7631_v3, %s7511_s20  ;;  %v7750_v14 = vld [vmem:[%s7615_s18 + $0x48] sm:$0xff]  ;;  %v7832_v39 = vld [vmem:[%s7615_s18 + $0x40] sm:$0xff] }
  0x1d   : > { %v7840_v43 = vld [vmem:[%s7615_s18 + $0x18] sm:$0xff]  ;;  %v7852_v48 = vld [vmem:[%s7615_s18 + $0x68] sm:$0xff] }
  0x20   : > { %831 = vrot.lane.b32.xlu0 %v7638_v4, %s7511_s20  ;;  %827 = vrot.lane.b32.xlu1 %v7641_v5, %s7511_s20 }
  0x24   : > { %821 = vrot.lane.b32.xlu1 %v7648_v6, %s7511_s20  ;;  %819 = vrot.lane.b32.xlu0 %v7651_v7, %s7511_s20 }
  0x28   : > { %817 = vrot.lane.b32.xlu0 %v7658_v8, %s7511_s20  ;;  %809 = vrot.lane.b32.xlu1 %v7618_v0, %s7511_s20 }
  0x2c   : > { %811 = vrot.lane.b32.xlu0 %v7628_v2, %s7511_s20  ;;  %807 = vrot.lane.b32.xlu1 %v7621_v1, %s7511_s20 }
  0x30   : > { %734 = vrot.lane.b32.xlu1 %v7638_v4, %s11185_s21  ;;  %732 = vrot.lane.b32.xlu0 %v7631_v3, %s11185_s21 }
  0x34   : > { %730 = vrot.lane.b32.xlu0 %v7641_v5, %s11185_s21  ;;  %722 = vrot.lane.b32.xlu1 %v7651_v7, %s11185_s21 }
  0x38   : > { %724 = vrot.lane.b32.xlu0 %v7648_v6, %s11185_s21  ;;  %720 = vrot.lane.b32.xlu1 %v7658_v8, %s11185_s21 }
  0x3c   : > { %714 = vrot.lane.b32.xlu1 %v7628_v2, %s11185_s21  ;;  %712 = vrot.lane.b32.xlu0 %v7618_v0, %s11185_s21 }
  0x40   : > { %710 = vrot.lane.b32.xlu0 %v7621_v1, %s11185_s21  ;;  %635 = vrot.lane.b32.xlu1 %v7631_v3, %s11181_s22 }
  0x44   : > { %637 = vrot.lane.b32.xlu0 %v7638_v4, %s11181_s22  ;;  %633 = vrot.lane.b32.xlu1 %v7641_v5, %s11181_s22 }
  0x48   : > { %627 = vrot.lane.b32.xlu1 %v7648_v6, %s11181_s22  ;;  %625 = vrot.lane.b32.xlu0 %v7651_v7, %s11181_s22 }
  0x4c   : > { %623 = vrot.lane.b32.xlu0 %v7658_v8, %s11181_s22  ;;  %615 = vrot.lane.b32.xlu1 %v7618_v0, %s11181_s22 }
  0x50   : > { %617 = vrot.lane.b32.xlu0 %v7628_v2, %s11181_s22  ;;  %613 = vrot.lane.b32.xlu1 %v7621_v1, %s11181_s22 }
  0x54   : > { %540 = vrot.lane.b32.xlu1 %v7638_v4, %s7514_s23  ;;  %538 = vrot.lane.b32.xlu0 %v7631_v3, %s7514_s23 }
  0x58   : > { %536 = vrot.lane.b32.xlu0 %v7641_v5, %s7514_s23  ;;  %528 = vrot.lane.b32.xlu1 %v7651_v7, %s7514_s23 }
  0x5c   : > { %530 = vrot.lane.b32.xlu0 %v7648_v6, %s7514_s23  ;;  %526 = vrot.lane.b32.xlu1 %v7658_v8, %s7514_s23 }
  0x60   : > { %520 = vrot.lane.b32.xlu1 %v7628_v2, %s7514_s23  ;;  %518 = vrot.lane.b32.xlu0 %v7618_v0, %s7514_s23 }
  0x64   : > { %1413 = vrot.lane.b32.xlu1 %v7638_v4, %s7516_s24  ;;  %1411 = vrot.lane.b32.xlu0 %v7631_v3, %s7516_s24 }
  0x68   : > { %1409 = vrot.lane.b32.xlu1 %v7641_v5, %s7516_s24  ;;  %516 = vrot.lane.b32.xlu0 %v7621_v1, %s7514_s23 }
  0x6c   : > { %912 = vrot.lane.b32.xlu1 %v7730_v10, %s7510_s19  ;;  %910 = vrot.lane.b32.xlu0 %v7733_v11, %s7510_s19 }
  0x70   : > { %835 = vrot.lane.b32.xlu1 %v7740_v12, %s7511_s20  ;;  %833 = vrot.lane.b32.xlu0 %v7743_v13, %s7511_s20 }
  0x74   : > { %825 = vrot.lane.b32.xlu1 %v7750_v14, %s7511_s20  ;;  %823 = vrot.lane.b32.xlu0 %v7753_v15, %s7511_s20 }
  0x78   : > { %815 = vrot.lane.b32.xlu1 %v7730_v10, %s7511_s20  ;;  %813 = vrot.lane.b32.xlu0 %v7733_v11, %s7511_s20 }
  0x7c   : > { %1403 = vrot.lane.b32.xlu1 %v7648_v6, %s7516_s24  ;;  %1401 = vrot.lane.b32.xlu0 %v7651_v7, %s7516_s24 }
  0x80   : > { %736 = vrot.lane.b32.xlu1 %v7743_v13, %s11185_s21  ;;  %1399 = vrot.lane.b32.xlu0 %v7658_v8, %s7516_s24 }
  0x84   : > { %1391 = vrot.lane.b32.xlu1 %v7618_v0, %s7516_s24  ;;  %738 = vrot.lane.b32.xlu0 %v7740_v12, %s11185_s21 }
  0x88   : > { %1389 = vrot.lane.b32.xlu1 %v7621_v1, %s7516_s24  ;;  %1393 = vrot.lane.b32.xlu0 %v7628_v2, %s7516_s24 }
  0x8a   : > { %v907_v16 = vpop.permute.xlu0 %906  ;;  %v905_v17 = vpop.permute.xlu1 %904 }
  0x8b   : > { %v935_v21 = vsel %vm934_vm0, %v905_v17, %v907_v16 }
  0x8c   : > { %728 = vrot.lane.b32.xlu1 %v7750_v14, %s11185_s21  ;;  %726 = vrot.lane.b32.xlu0 %v7753_v15, %s11185_s21 }
  0x8e   : > { %v7783_v18 = vpop.permute.xlu0 %908  ;;  %v830_v19 = vpop.permute.xlu1 %829 }
  0x8f   : > { %v936_v20 = vsel %vm934_vm0, %v907_v16, %v7783_v18 }
  0x90   : > { %1316 = vrot.lane.b32.xlu1 %v7638_v4, %s7517_s25  ;;  %1314 = vrot.lane.b32.xlu0 %v7631_v3, %s7517_s25 }
  0x91   : > { %1673 = vmatprep.subr.mxu0 %v936_v20 }
  0x92   : > { %v7792_v22 = vpop.permute.xlu0 %831  ;;  %v828_v23 = vpop.permute.xlu1 %827  ;;  %1674 = vmatpush1.msra.mxu0 %v935_v21 }
  0x93   : > { %v847_v24 = vsel %vm837_vm1, %v830_v19, %v7792_v22  ;;  %v846_v25 = vsel %vm837_vm1, %v828_v23, %v830_v19 }
  0x94   : > { %716 = vrot.lane.b32.xlu1 %v7733_v11, %s11185_s21  ;;  %1312 = vrot.lane.b32.xlu0 %v7641_v5, %s7517_s25 }
  0x95   : > { %1675 = vmatprep.subr.mxu0 %v847_v24 }
  0x96   : > { %v7801_v26 = vpop.permute.xlu1 %821  ;;  %v820_v27 = vpop.permute.xlu0 %819  ;;  %1676 = vmatpush1.msra.mxu0 %v846_v25 }
  0x97   : > { %v843_v28 = vsel %vm837_vm1, %v820_v27, %v7801_v26 }
  0x98   : > { %1304 = vrot.lane.b32.xlu1 %v7651_v7, %s7517_s25  ;;  %718 = vrot.lane.b32.xlu0 %v7730_v10, %s11185_s21 }
  0x99   : > { %1677 = vmatprep.subr.mxu0 %v843_v28 }
  0x9a   : > { %v818_v29 = vpop.permute.xlu0 %817  ;;  %v810_v30 = vpop.permute.xlu1 %809 }
  0x9b   : > { %v842_v31 = vsel %vm837_vm1, %v818_v29, %v820_v27 }
  0x9c   : > { %1302 = vrot.lane.b32.xlu1 %v7658_v8, %s7517_s25  ;;  %1306 = vrot.lane.b32.xlu0 %v7648_v6, %s7517_s25 }
  0x9d   : > { %1678 = vmatpush1.msra.mxu0 %v842_v31 }
  0x9e   : > { %v7814_v32 = vpop.permute.xlu0 %811  ;;  %v808_v33 = vpop.permute.xlu1 %807 }
  0x9f   : > { %v839_v34 = vsel %vm837_vm1, %v810_v30, %v7814_v32  ;;  %v838_v35 = vsel %vm837_vm1, %v808_v33, %v810_v30 }
  0xa0   : > { %641 = vrot.lane.b32.xlu1 %v7740_v12, %s11181_s22  ;;  %639 = vrot.lane.b32.xlu0 %v7743_v13, %s11181_s22 }
  0xa1   : > { %1679 = vmatprep.subr.mxu0 %v839_v34 }
  0xa2   : > { %v7823_v36 = vpop.permute.xlu1 %734  ;;  %v733_v37 = vpop.permute.xlu0 %732  ;;  %1680 = vmatpush1.msra.mxu0 %v838_v35 }
  0xa3   : > { %v750_v38 = vsel %vm740_vm2, %v733_v37, %v7823_v36 }
  0xa4   : > { %1296 = vrot.lane.b32.xlu1 %v7628_v2, %s7517_s25  ;;  %1294 = vrot.lane.b32.xlu0 %v7618_v0, %s7517_s25 }
  0xa5   : > { %1681 = vmatprep.subr.mxu0 %v750_v38 }
  0xa6   : > { %v731_v40 = vpop.permute.xlu0 %730  ;;  %v723_v41 = vpop.permute.xlu1 %722 }
  0xa7   : > { %v749_v42 = vsel %vm740_vm2, %v731_v40, %v733_v37 }
  0xa8   : > { %629 = vrot.lane.b32.xlu1 %v7753_v15, %s11181_s22  ;;  %1292 = vrot.lane.b32.xlu0 %v7621_v1, %s7517_s25 }
  0xa9   : > { %1682 = vmatpush1.msra.mxu0 %v749_v42 }
  0xaa   : > { %v7842_v44 = vpop.permute.xlu0 %724  ;;  %v721_v45 = vpop.permute.xlu1 %720 }
  0xab   : > { %v746_v46 = vsel %vm740_vm2, %v723_v41, %v7842_v44  ;;  %v745_v47 = vsel %vm740_vm2, %v721_v45, %v723_v41 }
  0xac   : > { %1217 = vrot.lane.b32.xlu1 %v7631_v3, %s7518_s26  ;;  %631 = vrot.lane.b32.xlu0 %v7750_v14, %s11181_s22 }
  0xad   : > { %1683 = vmatprep.subr.mxu0 %v746_v46 }
  0xae   : > { %v7854_v49 = vpop.permute.xlu1 %714  ;;  %v713_v50 = vpop.permute.xlu0 %712  ;;  %1684 = vmatpush1.msra.mxu0 %v745_v47 }
  0xaf   : > { %v742_v51 = vsel %vm740_vm2, %v713_v50, %v7854_v49 }
  0xb0   : > { %1215 = vrot.lane.b32.xlu1 %v7641_v5, %s7518_s26  ;;  %1219 = vrot.lane.b32.xlu0 %v7638_v4, %s7518_s26 }
  0xb1   : > { %1685 = vmatprep.subr.mxu0 %v742_v51  ;;  %v1458_v51 = vld [vmem:[%s7942_s16 + $0x10] sm:$0xff] }
  0xb2   : > { %v711_v52 = vpop.permute.xlu0 %710  ;;  %v636_v53 = vpop.permute.xlu1 %635 }
  0xb3   : > { %v741_v54 = vsel %vm740_vm2, %v711_v52, %v713_v50 }
  0xb4   : > { %621 = vrot.lane.b32.xlu1 %v7730_v10, %s11181_s22  ;;  %619 = vrot.lane.b32.xlu0 %v7733_v11, %s11181_s22 }
  0xb5   : > { %1686 = vmatpush1.msra.mxu0 %v741_v54 }
  0xb6   : > { %v7867_v55 = vpop.permute.xlu0 %637  ;;  %v634_v56 = vpop.permute.xlu1 %633 }
  0xb7   : > { %v653_v57 = vsel %vm643_vm3, %v636_v53, %v7867_v55  ;;  %v652_v58 = vsel %vm643_vm3, %v634_v56, %v636_v53 }
  0xb8   : > { %1209 = vrot.lane.b32.xlu1 %v7648_v6, %s7518_s26  ;;  %1207 = vrot.lane.b32.xlu0 %v7651_v7, %s7518_s26 }
  0xb9   : > { %1687 = vmatprep.subr.mxu0 %v653_v57 }
  0xba   : > { %v7876_v59 = vpop.permute.xlu1 %627  ;;  %v626_v60 = vpop.permute.xlu0 %625  ;;  %1688 = vmatpush1.msra.mxu0 %v652_v58 }
  0xbb   : > { %v649_v61 = vsel %vm643_vm3, %v626_v60, %v7876_v59 }
  0xbc   : > { %542 = vrot.lane.b32.xlu1 %v7743_v13, %s7514_s23  ;;  %1205 = vrot.lane.b32.xlu0 %v7658_v8, %s7518_s26 }
  0xbd   : > { %1689 = vmatprep.subr.mxu0 %v649_v61  ;;  %v7969_v61 = vld [vmem:[%s7615_s18 + $0x60] sm:$0xff] }
  0xbe   : > { %v624_v62 = vpop.permute.xlu0 %623  ;;  %v616_v63 = vpop.permute.xlu1 %615 }
  0xbf   : > { %v648_v16 = vsel %vm643_vm3, %v624_v62, %v626_v60  ;;  %v7977_v62 = vld [vmem:[%s7615_s18 + $0x38] sm:$0xff] }
  0xc0   : > { %1197 = vrot.lane.b32.xlu1 %v7618_v0, %s7518_s26  ;;  %544 = vrot.lane.b32.xlu0 %v7740_v12, %s7514_s23 }
  0xc1   : > { %1690 = vmatpush1.msra.mxu0 %v648_v16 }
  0xc2   : > { %v7889_v17 = vpop.permute.xlu0 %617  ;;  %v614_v19 = vpop.permute.xlu1 %613 }
  0xc3   : > { %v645_v20 = vsel %vm643_vm3, %v616_v63, %v7889_v17  ;;  %v644_v21 = vsel %vm643_vm3, %v614_v19, %v616_v63 }
  0xc4   : > { %1195 = vrot.lane.b32.xlu1 %v7621_v1, %s7518_s26  ;;  %1199 = vrot.lane.b32.xlu0 %v7628_v2, %s7518_s26 }
  0xc5   : > { %1691 = vmatprep.subr.mxu0 %v645_v20  ;;  %v7983_v20 = vld [vmem:[%s7615_s18 + $0x10] sm:$0xff] }
  0xc6   : > { %v7898_v23 = vpop.permute.xlu1 %540  ;;  %v539_v24 = vpop.permute.xlu0 %538  ;;  %1692 = vmatpush1.msra.mxu0 %v644_v21 }
  0xc7   : > { %v556_v25 = vsel %vm546_vm4, %v539_v24, %v7898_v23 }
  0xc8   : > { %534 = vrot.lane.b32.xlu1 %v7750_v14, %s7514_s23  ;;  %532 = vrot.lane.b32.xlu0 %v7753_v15, %s7514_s23 }
  0xc9   : > { %1693 = vmatprep.subr.mxu0 %v556_v25 }
  0xca   : > { %v537_v27 = vpop.permute.xlu0 %536  ;;  %v529_v28 = vpop.permute.xlu1 %528 }
  0xcb   : > { %v555_v29 = vsel %vm546_vm4, %v537_v27, %v539_v24 }
  0xcc   : > { %1122 = vrot.lane.b32.xlu1 %v7638_v4, %s7519_s12  ;;  %1120 = vrot.lane.b32.xlu0 %v7631_v3, %s7519_s12 }
  0xcd   : > { %1694 = vmatpush1.msra.mxu0 %v555_v29 }
  0xce   : > { %v7911_v30 = vpop.permute.xlu0 %530  ;;  %v527_v31 = vpop.permute.xlu1 %526 }
  0xcf   : > { %v552_v33 = vsel %vm546_vm4, %v529_v28, %v7911_v30  ;;  %v551_v34 = vsel %vm546_vm4, %v527_v31, %v529_v28 }
  0xd0   : > { %522 = vrot.lane.b32.xlu1 %v7733_v11, %s7514_s23  ;;  %1118 = vrot.lane.b32.xlu0 %v7641_v5, %s7519_s12 }
  0xd1   : > { %1695 = vmatprep.subr.mxu0 %v552_v33 }
  0xd2   : > { %v7920_v35 = vpop.permute.xlu1 %520  ;;  %v519_v37 = vpop.permute.xlu0 %518  ;;  %1696 = vmatpush1.msra.mxu0 %v551_v34 }
  0xd3   : > { %v548_v38 = vsel %vm546_vm4, %v519_v37, %v7920_v35 }
  0xd4   : > { %1110 = vrot.lane.b32.xlu1 %v7651_v7, %s7519_s12  ;;  %524 = vrot.lane.b32.xlu0 %v7730_v10, %s7514_s23 }
  0xd5   : > { %1697 = vmatprep.subr.mxu0 %v548_v38 }
  0xd6   : > { %v7929_v40 = vpop.permute.xlu1 %1413  ;;  %v1412_v41 = vpop.permute.xlu0 %1411 }
  0xd7   : > { %v1429_v42 = vsel %vm1419_vm5, %v1412_v41, %v7929_v40 }
  0xd8   : > { %1108 = vrot.lane.b32.xlu1 %v7658_v8, %s7519_s12  ;;  %1112 = vrot.lane.b32.xlu0 %v7648_v6, %s7519_s12 }
  0xd9   : > { %1810 = vmatprep.subr.mxu1 %v1429_v42 }
  0xda   : > { %v1410_v45 = vpop.permute.xlu1 %1409  ;;  %v517_v46 = vpop.permute.xlu0 %516 }
  0xdb   : > { %v1428_v47 = vsel %vm1419_vm5, %v1410_v45, %v1412_v41  ;;  %v547_v50 = vsel %vm546_vm4, %v517_v46, %v519_v37 }
  0xdc   : > { %1102 = vrot.lane.b32.xlu1 %v7628_v2, %s7519_s12  ;;  %1100 = vrot.lane.b32.xlu0 %v7618_v0, %s7519_s12 }
  0xdd   : > { %1811 = vmatpush1.msra.mxu1 %v1428_v47  ;;  %1698 = vmatpush1.msra.mxu0 %v547_v50 }
  0xde   : > { %v913_v52 = vpop.permute.xlu1 %912  ;;  %v911_v53 = vpop.permute.xlu0 %910  ;;  %6869 = vmatmul.mubr.msk.f32.vlgmr.msra.gmra.mxu1 %vm1651_vm6, %v1458_v51  ;;  %1699 = vmatprep.subr.mxu0 %v7631_v3 }
  0xdf   : > { %v937_v54 = vsel %vm934_vm0, %v7783_v18, %v911_v53  ;;  %v938_v56 = vsel %vm934_vm0, %v911_v53, %v913_v52  ;;  %1700 = vmatpush1.msra.mxu0 %v7641_v5  ;;  %1850 = vmatprep.mubr.f32.mxu1 %v11169_v9 }
  0xe0   : > { %1023 = vrot.lane.b32.xlu1 %v7631_v3, %s7520_s17  ;;  %1098 = vrot.lane.b32.xlu0 %v7621_v1, %s7519_s12 }
  0xe1   : > { %1887 = vmatprep.subr.mxu1 %v938_v56  ;;  %1701 = vmatprep.subr.mxu0 %v7651_v7 }
  0xe2   : > { %v836_v57 = vpop.permute.xlu1 %835  ;;  %v834_v18 = vpop.permute.xlu0 %833  ;;  %1888 = vmatpush1.msra.mxu1 %v937_v54  ;;  %1702 = vmatpush1.msra.mxu0 %v7658_v8 }
  0xe3   : > { %v848_v58 = vsel %vm837_vm1, %v7792_v22, %v834_v18  ;;  %v849_v60 = vsel %vm837_vm1, %v834_v18, %v836_v57  ;;  %1703 = vmatprep.subr.mxu0 %v7618_v0 }
  0xe4   : > { %1021 = vrot.lane.b32.xlu1 %v7641_v5, %s7520_s17  ;;  %1025 = vrot.lane.b32.xlu0 %v7638_v4, %s7520_s17 }
  0xe5   : > { %1889 = vmatprep.subr.mxu1 %v849_v60  ;;  %1704 = vmatpush1.msra.mxu0 %v7621_v1 }
  0xe6   : > { %v826_v63 = vpop.permute.xlu1 %825  ;;  %v824_v16 = vpop.permute.xlu0 %823  ;;  %1890 = vmatpush1.msra.mxu1 %v848_v58 }
  0xe7   : > { %v844_v22 = vsel %vm837_vm1, %v7801_v26, %v824_v16  ;;  %v845_v19 = vsel %vm837_vm1, %v824_v16, %v826_v63 }
  0xe8   : > { %1015 = vrot.lane.b32.xlu1 %v7648_v6, %s7520_s17  ;;  %1013 = vrot.lane.b32.xlu0 %v7651_v7, %s7520_s17 }
  0xe9   : > { %1891 = vmatprep.subr.mxu1 %v845_v19 }
  0xea   : > { %v816_v21 = vpop.permute.xlu1 %815  ;;  %v814_v24 = vpop.permute.xlu0 %813  ;;  %1892 = vmatpush1.msra.mxu1 %v844_v22 }
  0xeb   : > { %v840_v25 = vsel %vm837_vm1, %v7814_v32, %v814_v24  ;;  %v841_v27 = vsel %vm837_vm1, %v814_v24, %v816_v21  ;;  %v8077_v21 = vld [vmem:[%s7942_s16 + $0x28] sm:$0xff] }
  0xec   : > { %1003 = vrot.lane.b32.xlu1 %v7618_v0, %s7520_s17  ;;  %1011 = vrot.lane.b32.xlu0 %v7658_v8, %s7520_s17 }
  0xed   : > { %1893 = vmatprep.subr.mxu1 %v841_v27  ;;  %6870 = vmatmul.mubr.msk.f32.gmra.mxu1 %vm1651_vm6, %v8077_v21 }
  0xee   : > { %v7996_v26 = vpop.permute.xlu1 %1403  ;;  %v1402_v28 = vpop.permute.xlu0 %1401  ;;  %1894 = vmatpush1.msra.mxu1 %v840_v25  ;;  %1856 = vmatprep.mubr.f32.mxu1 %v11169_v9 }
  0xef   : > { %v1425_v29 = vsel %vm1419_vm5, %v1402_v28, %v7996_v26 }
  0xf0   : > { %1405 = vrot.lane.b32.xlu1 %v7753_v15, %s7516_s24  ;;  %1005 = vrot.lane.b32.xlu0 %v7628_v2, %s7520_s17 }
  0xf1   : > { %1705 = vmatprep.subr.mxu0 %v1425_v29  ;;  %v8101_v29 = vld [vmem:[%s7942_s16 + $0x58] sm:$0xff] }
  0xf2   : > { %v737_v32 = vpop.permute.xlu1 %736  ;;  %v1400_v0 = vpop.permute.xlu0 %1399 }
  0xf3   : > { %v751_v31 = vsel %vm740_vm2, %v7823_v36, %v737_v32  ;;  %v1424_v33 = vsel %vm1419_vm5, %v1400_v0, %v1402_v28  ;;  %v8090_v28 = vld [vmem:[%s7942_s16 + $0x40] sm:$0xff] }
  0xf4   : > { %1001 = vrot.lane.b32.xlu1 %v7621_v1, %s7520_s17  ;;  %1407 = vrot.lane.b32.xlu0 %v7750_v14, %s7516_s24 }
  0xf5   : > { %1706 = vmatpush2.msra.mxu0 %v1424_v33  ;;  %6871 = vmatmul.mubr.msk.f32.gmra.mxu1 %vm1651_vm6, %v8090_v28 }
  0xf6   : > { %v1392_v34 = vpop.permute.xlu1 %1391  ;;  %v739_v37 = vpop.permute.xlu0 %738  ;;  %1862 = vmatprep.mubr.f32.mxu1 %v11169_v9 }
  0xf7   : > { %v752_v2 = vsel %vm740_vm2, %v737_v32, %v739_v37 }
  0xf8   : > { %928 = vrot.lane.b32.xlu1 %v7638_v4, %s7510_s19  ;;  %926 = vrot.lane.b32.xlu0 %v7631_v3, %s7510_s19  ;;  %v8026_v4 = vld [vmem:[%s7942_s16 + $0x8] sm:$0xff] }
  0xf9   : > { %1895 = vmatprep.subr.mxu1 %v752_v2  ;;  %1737 = vmatprep.mubr.f32.mxu0 %v8026_v4 }
  0xfa   : > { %v1390_v36 = vpop.permute.xlu1 %1389  ;;  %v8016_v38 = vpop.permute.xlu0 %1393  ;;  %1896 = vmatpush1.msra.mxu1 %v751_v31  ;;  %v1072_v31 = vld [vmem:[%s7615_s18 + $0x20] sm:$0xff] }
  0xfb   : > { %v1420_v1 = vsel %vm1419_vm5, %v1390_v36, %v1392_v34  ;;  %v1421_v41 = vsel %vm1419_vm5, %v1392_v34, %v8016_v38  ;;  %6872 = vmatmul.mubr.msk.f32.gmra.mxu1 %vm1651_vm6, %v8101_v29  ;;  %v8133_v36 = vld [vmem:[%s7942_s16 + $0x88] sm:$0xff] }
  0xfc   : > { %1397 = vrot.lane.b32.xlu1 %v7730_v10, %s7516_s24  ;;  %1395 = vrot.lane.b32.xlu0 %v7733_v11, %s7516_s24 }
  0xfd   : > { %1707 = vmatprep.subr.mxu0 %v1421_v41  ;;  %1868 = vmatprep.mubr.f32.mxu1 %v11169_v9 }
  0xfe   : > { %v729_v3 = vpop.permute.xlu1 %728  ;;  %v727_v42 = vpop.permute.xlu0 %726  ;;  %1708 = vmatpush2.msra.mxu0 %v1420_v1  ;;  %v985_v1 = vld [vmem:[%s7615_s18 + $0x70] sm:$0xff] }
  0xff   : > { %v747_v45 = vsel %vm740_vm2, %v7842_v44, %v727_v42  ;;  %v748_v46 = vsel %vm740_vm2, %v727_v42, %v729_v3  ;;  %v8147_v42 = vld [vmem:[%s7942_s16 + $0xa0] sm:$0xff] }
 0x100   : > { %916 = vrot.lane.b32.xlu1 %v7651_v7, %s7510_s19  ;;  %924 = vrot.lane.b32.xlu0 %v7641_v5, %s7510_s19 }
 0x101   : > { %1897 = vmatprep.subr.mxu1 %v748_v46 }
 0x102   : > { %v8036_v47 = vpop.permute.xlu1 %1316  ;;  %v1315_v50 = vpop.permute.xlu0 %1314  ;;  %1898 = vmatpush1.msra.mxu1 %v747_v45 }
 0x103   : > { %v1332_v51 = vsel %vm1322_vm7, %v1315_v50, %v8036_v47 }
 0x104   : > { %1318 = vrot.lane.b32.xlu1 %v7743_v13, %s7517_s25  ;;  %918 = vrot.lane.b32.xlu0 %v7648_v6, %s7510_s19 }
 0x105   : > { %1709 = vmatprep.subr.mxu0 %v1332_v51 }
 0x106   : > { %v717_v7 = vpop.permute.xlu1 %716  ;;  %v1313_v44 = vpop.permute.xlu0 %1312 }
 0x107   : > { %v743_v5 = vsel %vm740_vm2, %v7854_v49, %v717_v7  ;;  %v1331_v52 = vsel %vm1322_vm7, %v1313_v44, %v1315_v50 }
 0x108   : > { %914 = vrot.lane.b32.xlu1 %v7658_v8, %s7510_s19  ;;  %1320 = vrot.lane.b32.xlu0 %v7740_v12, %s7517_s25 }
 0x109   : > { %1710 = vmatpush2.msra.mxu0 %v1331_v52 }
 0x10a   : > { %v1305_v53 = vpop.permute.xlu1 %1304  ;;  %v719_v54 = vpop.permute.xlu0 %718 }
 0x10b   : > { %v744_v56 = vsel %vm740_vm2, %v717_v7, %v719_v54 }
 0x10c   : > { %1310 = vrot.lane.b32.xlu1 %v7750_v14, %s7517_s25  ;;  %1308 = vrot.lane.b32.xlu0 %v7753_v15, %s7517_s25 }
 0x10d   : > { %1899 = vmatprep.subr.mxu1 %v744_v56 }
 0x10e   : > { %v1303_v6 = vpop.permute.xlu1 %1302  ;;  %v8056_v49 = vpop.permute.xlu0 %1306  ;;  %1900 = vmatpush1.msra.mxu1 %v743_v5 }
 0x10f   : > { %v1327_v8 = vsel %vm1322_vm7, %v1303_v6, %v1305_v53  ;;  %v1328_v57 = vsel %vm1322_vm7, %v1305_v53, %v8056_v49 }
 0x110   : > { %1300 = vrot.lane.b32.xlu1 %v7730_v10, %s7517_s25  ;;  %1298 = vrot.lane.b32.xlu0 %v7733_v11, %s7517_s25  ;;  %s7525_s25 = smov 1  }
 0x111   : > { %1711 = vmatprep.subr.mxu0 %v1328_v57 }
 0x112   : > { %v642_v18 = vpop.permute.xlu1 %641  ;;  %v640_v58 = vpop.permute.xlu0 %639  ;;  %1712 = vmatpush2.msra.mxu0 %v1327_v8 }
 0x113   : > { %v654_v60 = vsel %vm643_vm3, %v7867_v55, %v640_v58  ;;  %v655_v63 = vsel %vm643_vm3, %v640_v58, %v642_v18 }
 0x114   : > { %1223 = vrot.lane.b32.xlu1 %v7740_v12, %s7518_s26  ;;  %1221 = vrot.lane.b32.xlu0 %v7743_v13, %s7518_s26 }
 0x115   : > { %1901 = vmatprep.subr.mxu1 %v655_v63  ;;  %v7521_v63 = vmov 0  }
 0x116   : > { %v8072_v16 = vpop.permute.xlu1 %1296  ;;  %v1295_v22 = vpop.permute.xlu0 %1294  ;;  %1902 = vmatpush1.msra.mxu1 %v654_v60  ;;  %7444 = vset.pattern.permute.xlu0 %v7521_v63 }
 0x117   : > { %v1324_v19 = vsel %vm1322_vm7, %v1295_v22, %v8072_v16  ;;  %7445 = vset.pattern.permute.xlu1 %v7521_v63 }
 0x118   : > { %1213 = vrot.lane.b32.xlu1 %v7750_v14, %s7518_s26  ;;  %1211 = vrot.lane.b32.xlu0 %v7753_v15, %s7518_s26 }
 0x119   : > { %1713 = vmatprep.subr.mxu0 %v1324_v19 }
 0x11a   : > { %v630_v55 = vpop.permute.xlu1 %629  ;;  %v1293_v24 = vpop.permute.xlu0 %1292 }
 0x11b   : > { %v650_v25 = vsel %vm643_vm3, %v7876_v59, %v630_v55  ;;  %v1323_v27 = vsel %vm1322_vm7, %v1293_v24, %v1295_v22 }
 0x11c   : > { %1203 = vrot.lane.b32.xlu1 %v7730_v10, %s7518_s26  ;;  %1201 = vrot.lane.b32.xlu0 %v7733_v11, %s7518_s26  ;;  %v8108_v10 = vld [vmem:[%s7615_s18 + $0x48] sm:$0xff]  ;;  %s7380_s18 = smul.u32 56, %s11295_s28 }
 0x11d   : > { %1714 = vmatpush2.msra.mxu0 %v1323_v27 }
 0x11e   : > { %v1218_v14 = vpop.permute.xlu1 %1217  ;;  %v632_v15 = vpop.permute.xlu0 %631 }
 0x11f   : > { %v651_v59 = vsel %vm643_vm3, %v630_v55, %v632_v15 }
 0x120   : > { %1126 = vrot.lane.b32.xlu1 %v7740_v12, %s7519_s12  ;;  %1124 = vrot.lane.b32.xlu0 %v7743_v13, %s7519_s12  ;;  %v8119_v13 = vld [vmem:[%s7942_s16 + $0x70] sm:$0xff] }
 0x121   : > { %1903 = vmatprep.subr.mxu1 %v651_v59  ;;  %6873 = vmatmul.mubr.msk.f32.gmra.mxu1 %vm1651_vm6, %v8119_v13 }
 0x122   : > { %v1216_v11 = vpop.permute.xlu1 %1215  ;;  %v8112_v32 = vpop.permute.xlu0 %1219  ;;  %1904 = vmatpush1.msra.mxu1 %v650_v25  ;;  %1874 = vmatprep.mubr.f32.mxu1 %v11169_v9 }
 0x123   : > { %v1234_v0 = vsel %vm1225_vm8, %v1216_v11, %v1218_v14  ;;  %v1235_v12 = vsel %vm1225_vm8, %v1218_v14, %v8112_v32 }
 0x124   : > { %1116 = vrot.lane.b32.xlu1 %v8108_v10, %s7519_s12  ;;  %1114 = vrot.lane.b32.xlu0 %v7832_v39, %s7519_s12 }
 0x125   : > { %1715 = vmatprep.subr.mxu0 %v1235_v12  ;;  %6874 = vmatmul.mubr.msk.f32.gmra.mxu1 %vm1651_vm6, %v8133_v36 }
 0x126   : > { %v622_v33 = vpop.permute.xlu1 %621  ;;  %v620_v34 = vpop.permute.xlu0 %619  ;;  %1716 = vmatpush2.msra.mxu0 %v1234_v0  ;;  %1880 = vmatprep.mubr.f32.mxu1 %v11169_v9 }
 0x127   : > { %v646_v37 = vsel %vm643_vm3, %v7889_v17, %v620_v34  ;;  %v647_v2 = vsel %vm643_vm3, %v620_v34, %v622_v33 }
 0x128   : > { %1106 = vrot.lane.b32.xlu1 %v1072_v31, %s7519_s12  ;;  %1104 = vrot.lane.b32.xlu0 %v7840_v43, %s7519_s12 }
 0x129   : > { %1905 = vmatprep.subr.mxu1 %v647_v2  ;;  %6875 = vmatmul.mubr.msk.f32.gmra.mxu1 %vm1651_vm6, %v8147_v42 }
 0x12a   : > { %v8141_v41 = vpop.permute.xlu1 %1209  ;;  %v1208_v3 = vpop.permute.xlu0 %1207  ;;  %1906 = vmatpush1.msra.mxu1 %v646_v37  ;;  %1951 = vmatprep.mubr.f32.mxu1 %v8026_v4 }
 0x12b   : > { %v1231_v17 = vsel %vm1225_vm8, %v1208_v3, %v8141_v41 }
 0x12c   : > { %1029 = vrot.lane.b32.xlu1 %v985_v1, %s7520_s17  ;;  %1027 = vrot.lane.b32.xlu0 %v7852_v48, %s7520_s17 }
 0x12d   : > { %1717 = vmatprep.subr.mxu0 %v1231_v17 }
 0x12e   : > { %v543_v45 = vpop.permute.xlu1 %542  ;;  %v1206_v46 = vpop.permute.xlu0 %1205 }
 0x12f   : > { %v557_v50 = vsel %vm546_vm4, %v7898_v23, %v543_v45  ;;  %v1230_v51 = vsel %vm1225_vm8, %v1206_v46, %v1208_v3 }
 0x130   : > { %1019 = vrot.lane.b32.xlu1 %v8108_v10, %s7520_s17  ;;  %1017 = vrot.lane.b32.xlu0 %v7832_v39, %s7520_s17 }
 0x131   : > { %1718 = vmatpush2.msra.mxu0 %v1230_v51 }
 0x132   : > { %v1198_v7 = vpop.permute.xlu1 %1197  ;;  %v545_v44 = vpop.permute.xlu0 %544 }
 0x133   : > { %v558_v5 = vsel %vm546_vm4, %v543_v45, %v545_v44 }
 0x134   : > { %1009 = vrot.lane.b32.xlu1 %v1072_v31, %s7520_s17  ;;  %1007 = vrot.lane.b32.xlu0 %v7840_v43, %s7520_s17  ;;  %s11183_s17 = smov 3  }
 0x135   : > { %1907 = vmatprep.subr.mxu1 %v558_v5 }
 0x136   : > { %v1196_v23 = vpop.permute.xlu1 %1195  ;;  %v8166_v4 = vpop.permute.xlu0 %1199  ;;  %1908 = vmatpush1.msra.mxu1 %v557_v50 }
 0x137   : > { %v1226_v52 = vsel %vm1225_vm8, %v1196_v23, %v1198_v7  ;;  %v1227_v53 = vsel %vm1225_vm8, %v1198_v7, %v8166_v4 }
 0x138   : > { %932 = vrot.lane.b32.xlu1 %v985_v1, %s7510_s19  ;;  %930 = vrot.lane.b32.xlu0 %v7852_v48, %s7510_s19 }
 0x139   : > { %1719 = vmatprep.subr.mxu0 %v1227_v53 }
 0x13a   : > { %v535_v54 = vpop.permute.xlu1 %534  ;;  %v533_v56 = vpop.permute.xlu0 %532  ;;  %1720 = vmatpush2.msra.mxu0 %v1226_v52 }
 0x13b   : > { %v553_v6 = vsel %vm546_vm4, %v7911_v30, %v533_v56  ;;  %v554_v8 = vsel %vm546_vm4, %v533_v56, %v535_v54 }
 0x13c   : > { %922 = vrot.lane.b32.xlu1 %v8108_v10, %s7510_s19  ;;  %920 = vrot.lane.b32.xlu0 %v7832_v39, %s7510_s19  ;;  %s8192_s19 = scalar_lea.vmem %s11165_s6, %s7380_s18  ;;  %s7524_s18 = smov 4  }
 0x13d   : > { %1909 = vmatprep.subr.mxu1 %v554_v8  ;;  %v1609_v22 = vld [vmem:[%s8192_s19] sm:$0xff]  ;;  %v1612_v0 = vld [vmem:[%s8192_s19 + $0x18] sm:$0xff] }
 0x13e   : > { %v8181_v57 = vpop.permute.xlu1 %1122  ;;  %v1121_v18 = vpop.permute.xlu0 %1120  ;;  %1910 = vmatpush1.msra.mxu1 %v553_v6 }
 0x13f   : > { %v1138_v58 = vsel %vm1128_vm9, %v1121_v18, %v8181_v57 }
 0x140   : > { %1417 = vrot.lane.b32.xlu1 %v985_v1, %s7516_s24  ;;  %1415 = vrot.lane.b32.xlu0 %v7852_v48, %s7516_s24  ;;  %v1615_v1 = vld [vmem:[%s8192_s19 + $0x30] sm:$0xff] }
 0x141   : > { %1721 = vmatprep.subr.mxu0 %v1138_v58 }
 0x142   : > { %v523_v30 = vpop.permute.xlu1 %522  ;;  %v1119_v60 = vpop.permute.xlu0 %1118 }
 0x143   : > { %v549_v19 = vsel %vm546_vm4, %v7920_v35, %v523_v30  ;;  %v1137_v55 = vsel %vm1128_vm9, %v1119_v60, %v1121_v18 }
 0x144   : > { %1722 = vmatpush2.msra.mxu0 %v1137_v55  ;;  %1618 = vperm.xlu0 %7444, %v1609_v22  }
 0x146   : > { %v1111_v24 = vpop.permute.xlu1 %1110  ;;  %v525_v25 = vpop.permute.xlu0 %524 }
 0x147   : > { %v550_v27 = vsel %vm546_vm4, %v523_v30, %v525_v25 }
 0x148   : > { %1911 = vmatprep.subr.mxu1 %v550_v27  ;;  %1633 = vperm.xlu0 %7444, %v1612_v0  }
 0x149   : > { %1912 = vmatpush1.msra.mxu1 %v549_v19 }
 0x14a   : > { %v1109_v14 = vpop.permute.xlu1 %1108  ;;  %v8199_v15 = vpop.permute.xlu0 %1112  ;;  %1913 = vmatprep.subr.mxu1 %v7852_v48  ;;  %v1610_v48 = vld [vmem:[%s8192_s19 + $0x8] sm:$0xff] }
 0x14b   : > { %v1133_v59 = vsel %vm1128_vm9, %v1109_v14, %v1111_v24  ;;  %v1134_v35 = vsel %vm1128_vm9, %v1111_v24, %v8199_v15  ;;  %1914 = vmatpush1.msra.mxu1 %v7969_v61  ;;  %1623 = vperm.xlu1 %7445, %v1610_v48   ;;  %v1611_v61 = vld [vmem:[%s8192_s19 + $0x10] sm:$0xff]  ;;  %v8259_v48 = vld [vmem:[%s7942_s16 + $0x20] sm:$0xff] }
 0x14c   : > { %1723 = vmatprep.subr.mxu0 %v1134_v35  ;;  %1915 = vmatprep.subr.mxu1 %v7832_v39  ;;  %v1614_v39 = vld [vmem:[%s8192_s19 + $0x28] sm:$0xff] }
 0x14d   : > { %1724 = vmatpush2.msra.mxu0 %v1133_v59  ;;  %1916 = vmatpush1.msra.mxu1 %v7977_v62  ;;  %v8254_v59 = vld [vmem:[%s7942_s16] sm:$0xff] }
 0x14e   : > { %v8208_v10 = vpop.permute.xlu1 %1102  ;;  %v1101_v11 = vpop.permute.xlu0 %1100  ;;  %1917 = vmatprep.subr.mxu1 %v7840_v43  ;;  %v1613_v43 = vld [vmem:[%s8192_s19 + $0x20] sm:$0xff]  ;;  %1643 = vperm.xlu0 %7444, %v1614_v39  }
 0x14f   : > { %v1130_v12 = vsel %vm1128_vm9, %v1101_v11, %v8208_v10  ;;  %1918 = vmatpush1.msra.mxu1 %v7983_v20  ;;  %1628 = vperm.xlu1 %7445, %v1611_v61  }
 0x150   : > { %1725 = vmatprep.subr.mxu0 %v1130_v12  ;;  %v8264_v12 = vld [vmem:[%s7942_s16 + $0x18] sm:$0xff] }
 0x152   : > { %v1024_v62 = vpop.permute.xlu1 %1023  ;;  %v1099_v31 = vpop.permute.xlu0 %1098 }
 0x153   : > { %v1129_v33 = vsel %vm1128_vm9, %v1099_v31, %v1101_v11  ;;  %1638 = vperm.xlu1 %7445, %v1613_v43   ;;  %v8275_v43 = vld [vmem:[%s7942_s16 + $0x30] sm:$0xff] }
 0x154   : > { %1726 = vmatpush2.msra.mxu0 %v1129_v33 }
 0x156   : > { %v1022_v34 = vpop.permute.xlu1 %1021  ;;  %v8220_v37 = vpop.permute.xlu0 %1025 }
 0x157   : > { %v1040_v20 = vsel %vm1031_vm10, %v1022_v34, %v1024_v62  ;;  %v1041_v2 = vsel %vm1031_vm10, %v1024_v62, %v8220_v37  ;;  %1648 = vperm.xlu1 %7445, %v1615_v1   ;;  %v8270_v62 = vld [vmem:[%s7942_s16 + $0x38] sm:$0xff] }
 0x158   : > { %1727 = vmatprep.subr.mxu0 %v1041_v2 }
 0x159   : > { %1728 = vmatpush2.msra.mxu0 %v1040_v20  ;;  %v8281_v20 = vld [vmem:[%s7942_s16 + $0x50] sm:$0xff] }
 0x15a   : > { %v8226_v3 = vpop.permute.xlu1 %1015  ;;  %v1014_v17 = vpop.permute.xlu0 %1013 }
 0x15b   : > { %v1037_v45 = vsel %vm1031_vm10, %v1014_v17, %v8226_v3 }
 0x15c   : > { %1729 = vmatprep.subr.mxu0 %v1037_v45 }
 0x15e   : > { %v1004_v46 = vpop.permute.xlu1 %1003  ;;  %v1012_v50 = vpop.permute.xlu0 %1011 }
 0x15f   : > { %v1036_v51 = vsel %vm1031_vm10, %v1012_v50, %v1014_v17  ;;  %v8286_v17 = vld [vmem:[%s7942_s16 + $0x48] sm:$0xff] }
 0x160   : > { %1730 = vmatpush2.msra.mxu0 %v1036_v51 }
 0x162   : > { %v1406_v7 = vpop.permute.xlu1 %1405  ;;  %v8231_v44 = vpop.permute.xlu0 %1005 }
 0x163   : > { %v1426_v5 = vsel %vm1419_vm5, %v7996_v26, %v1406_v7  ;;  %v1033_v23 = vsel %vm1031_vm10, %v1004_v46, %v8231_v44 }
 0x164   : > { %1731 = vmatprep.subr.mxu0 %v1033_v23  ;;  %v8303_v23 = vld [vmem:[%s7942_s16 + $0x80] sm:$0xff] }
 0x166   : > { %v1002_v52 = vpop.permute.xlu1 %1001  ;;  %v1408_v53 = vpop.permute.xlu0 %1407 }
 0x167   : > { %v1032_v54 = vsel %vm1031_vm10, %v1002_v52, %v1004_v46  ;;  %v1427_v56 = vsel %vm1419_vm5, %v1406_v7, %v1408_v53  ;;  %v8292_v46 = vld [vmem:[%s7942_s16 + $0x68] sm:$0xff]  ;;  %v8297_v7 = vld [vmem:[%s7942_s16 + $0x60] sm:$0xff] }
 0x168   : > { %1732 = vmatpush2.msra.mxu0 %v1032_v54  ;;  %1919 = vmatprep.subr.mxu1 %v1427_v56  ;;  %v8308_v54 = vld [vmem:[%s7942_s16 + $0x78] sm:$0xff] }
 0x169   : > { %1920 = vmatpush2.msra.mxu1 %v1426_v5 }
 0x16a   : > { %v8239_v6 = vpop.permute.xlu1 %928  ;;  %v927_v8 = vpop.permute.xlu0 %926 }
 0x16b   : > { %v944_v18 = vsel %vm934_vm0, %v927_v8, %v8239_v6 }
 0x16c   : > { %1733 = vmatprep.subr.mxu0 %v944_v18 }
 0x16e   : > { %v1398_v26 = vpop.permute.xlu1 %1397  ;;  %v1396_v58 = vpop.permute.xlu0 %1395 }
 0x16f   : > { %v1422_v30 = vsel %vm1419_vm5, %v8016_v38, %v1396_v58  ;;  %v1423_v60 = vsel %vm1419_vm5, %v1396_v58, %v1398_v26  ;;  %v8319_v58 = vld [vmem:[%s7942_s16 + $0x90] sm:$0xff] }
 0x170   : > { %1921 = vmatprep.subr.mxu1 %v1423_v60 }
 0x171   : > { %1922 = vmatpush2.msra.mxu1 %v1422_v30 }
 0x172   : > { %v917_v63 = vpop.permute.xlu1 %916  ;;  %v925_v22 = vpop.permute.xlu0 %924 }
 0x173   : > { %v943_v19 = vsel %vm934_vm0, %v925_v22, %v927_v8  ;;  %v8314_v8 = vld [vmem:[%s7942_s16 + $0x98] sm:$0xff] }
 0x174   : > { %1734 = vmatpush2.msra.mxu0 %v943_v19 }
 0x176   : > { %v1319_v55 = vpop.permute.xlu1 %1318  ;;  %v8247_v24 = vpop.permute.xlu0 %918 }
 0x177   : > { %v1333_v25 = vsel %vm1322_vm7, %v8036_v47, %v1319_v55  ;;  %v940_v38 = vsel %vm934_vm0, %v917_v63, %v8247_v24 }
 0x178   : > { %1735 = vmatprep.subr.mxu0 %v940_v38 }
 0x17a   : > { %v915_v27 = vpop.permute.xlu1 %914  ;;  %v1321_v14 = vpop.permute.xlu0 %1320 }
 0x17b   : > { %v939_v35 = vsel %vm934_vm0, %v915_v27, %v917_v63  ;;  %v1334_v11 = vsel %vm1322_vm7, %v1319_v55, %v1321_v14 }
 0x17c   : > { %1736 = vmatpush2.msra.mxu0 %v939_v35  ;;  %1923 = vmatprep.subr.mxu1 %v1334_v11 }
 0x17d   : > { %1924 = vmatpush2.msra.mxu1 %v1333_v25  ;;  %1738 = vmatmul.mubr.f32.vlgmr.msra.gmra.mxu0 %v8254_v59 }
 0x17e   : > { %v1311_v47 = vpop.permute.xlu1 %1310  ;;  %v1309_v0 = vpop.permute.xlu0 %1308  ;;  %1743 = vmatprep.mubr.f32.mxu0 %v8259_v48 }
 0x17f   : > { %v1329_v61 = vsel %vm1322_vm7, %v8056_v49, %v1309_v0  ;;  %v1330_v39 = vsel %vm1322_vm7, %v1309_v0, %v1311_v47 }
 0x180   : > { %1925 = vmatprep.subr.mxu1 %v1330_v39 }
 0x181   : > { %1926 = vmatpush2.msra.mxu1 %v1329_v61  ;;  %1744 = vmatmul.mubr.f32.gmra.mxu0 %v8264_v12 }
 0x182   : > { %v1301_v31 = vpop.permute.xlu1 %1300  ;;  %v1299_v33 = vpop.permute.xlu0 %1298  ;;  %1749 = vmatprep.mubr.f32.mxu0 %v8270_v62 }
 0x183   : > { %v1325_v34 = vsel %vm1322_vm7, %v8072_v16, %v1299_v33  ;;  %v1326_v49 = vsel %vm1322_vm7, %v1299_v33, %v1301_v31 }
 0x184   : > { %1927 = vmatprep.subr.mxu1 %v1326_v49 }
 0x185   : > { %1928 = vmatpush2.msra.mxu1 %v1325_v34  ;;  %1750 = vmatmul.mubr.f32.gmra.mxu0 %v8275_v43 }
 0x186   : > { %v1224_v2 = vpop.permute.xlu1 %1223  ;;  %v1222_v1 = vpop.permute.xlu0 %1221  ;;  %1755 = vmatprep.mubr.f32.mxu0 %v8281_v20 }
 0x187   : > { %v1236_v45 = vsel %vm1225_vm8, %v8112_v32, %v1222_v1  ;;  %v1237_v16 = vsel %vm1225_vm8, %v1222_v1, %v1224_v2 }
 0x188   : > { %1929 = vmatprep.subr.mxu1 %v1237_v16  ;;  %v2160_v16 = vld [vmem:[%s11166_s7 + $0xf8] sm:$0xff] }
 0x189   : > { %1930 = vmatpush2.msra.mxu1 %v1236_v45  ;;  %1756 = vmatmul.mubr.f32.gmra.mxu0 %v8286_v17 }
 0x18a   : > { %v1214_v50 = vpop.permute.xlu1 %1213  ;;  %v1212_v51 = vpop.permute.xlu0 %1211  ;;  %1761 = vmatprep.mubr.f32.mxu0 %v8292_v46 }
 0x18b   : > { %v1232_v5 = vsel %vm1225_vm8, %v8141_v41, %v1212_v51  ;;  %v1233_v32 = vsel %vm1225_vm8, %v1212_v51, %v1214_v50  ;;  %v2158_v50 = vld [vmem:[%s11166_s7 + $0xe8] sm:$0xff] }
 0x18c   : > { %1931 = vmatprep.subr.mxu1 %v1233_v32 }
 0x18d   : > { %1932 = vmatpush2.msra.mxu1 %v1232_v5  ;;  %1762 = vmatmul.mubr.f32.gmra.mxu0 %v8297_v7 }
 0x18e   : > { %v1204_v52 = vpop.permute.xlu1 %1203  ;;  %v1202_v53 = vpop.permute.xlu0 %1201  ;;  %1767 = vmatprep.mubr.f32.mxu0 %v8303_v23 }
 0x18f   : > { %v1228_v56 = vsel %vm1225_vm8, %v8166_v4, %v1202_v53  ;;  %v1229_v41 = vsel %vm1225_vm8, %v1202_v53, %v1204_v52  ;;  %v2224_v53 = vld [vmem:[%s11166_s7 + $0x2f8] sm:$0xff] }
 0x190   : > { %1933 = vmatprep.subr.mxu1 %v1229_v41  ;;  %v2154_v41 = vld [vmem:[%s11166_s7 + $0xc8] sm:$0xff] }
 0x191   : > { %1934 = vmatpush2.msra.mxu1 %v1228_v56  ;;  %1768 = vmatmul.mubr.f32.gmra.mxu0 %v8308_v54  ;;  %v7454_v56 = vld [vmem:[%s7942_s16 + $0x10] sm:$0xff] }
 0x192   : > { %v1127_v18 = vpop.permute.xlu1 %1126  ;;  %v1125_v26 = vpop.permute.xlu0 %1124  ;;  %1773 = vmatprep.mubr.f32.mxu0 %v8314_v8 }
 0x193   : > { %v1139_v30 = vsel %vm1128_vm9, %v8181_v57, %v1125_v26  ;;  %v1140_v60 = vsel %vm1128_vm9, %v1125_v26, %v1127_v18  ;;  %v2221_v18 = vld [vmem:[%s11166_s7 + $0x2e0] sm:$0xff]  ;;  %v2219_v26 = vld [vmem:[%s11166_s7 + $0x2d0] sm:$0xff] }
 0x194   : > { %1935 = vmatprep.subr.mxu1 %v1140_v60  ;;  %v2215_v60 = vld [vmem:[%s11166_s7 + $0x2b0] sm:$0xff] }
 0x195   : > { %1936 = vmatpush2.msra.mxu1 %v1139_v30  ;;  %1774 = vmatmul.mubr.f32.gmra.mxu0 %v8319_v58  ;;  %v2217_v30 = vld [vmem:[%s11166_s7 + $0x2c0] sm:$0xff] }
 0x196   : > { %v1117_v4 = vpop.permute.xlu1 %1116  ;;  %v1115_v63 = vpop.permute.xlu0 %1114  ;;  %2058 = vmatprep.mubr.f32.mxu0 %v11169_v9 }
 0x197   : > { %v1135_v22 = vsel %vm1128_vm9, %v8199_v15, %v1115_v63  ;;  %v1136_v19 = vsel %vm1128_vm9, %v1115_v63, %v1117_v4  ;;  %v2146_v4 = vld [vmem:[%s11166_s7 + $0x88] sm:$0xff]  ;;  %v2213_v63 = vld [vmem:[%s11166_s7 + $0x2a0] sm:$0xff] }
 0x198   : > { %1937 = vmatprep.subr.mxu1 %v1136_v19  ;;  %v2141_v19 = vld [vmem:[%s11166_s7 + $0x60] sm:$0xff] }
 0x199   : > { %1938 = vmatpush2.msra.mxu1 %v1135_v22  ;;  %v2143_v22 = vld [vmem:[%s11166_s7 + $0x70] sm:$0xff] }
 0x19a   : > { %v1107_v55 = vpop.permute.xlu1 %1106  ;;  %v1105_v25 = vpop.permute.xlu0 %1104 }
 0x19b   : > { %v1131_v57 = vsel %vm1128_vm9, %v8208_v10, %v1105_v25  ;;  %v1132_v38 = vsel %vm1128_vm9, %v1105_v25, %v1107_v55  ;;  %v2211_v55 = vld [vmem:[%s11166_s7 + $0x290] sm:$0xff]  ;;  %v2140_v25 = vld [vmem:[%s11166_s7 + $0x58] sm:$0xff] }
 0x19c   : > { %1939 = vmatprep.subr.mxu1 %v1132_v38  ;;  %v2139_v38 = vld [vmem:[%s11166_s7 + $0x50] sm:$0xff] }
 0x19d   : > { %1940 = vmatpush2.msra.mxu1 %v1131_v57  ;;  %v2210_v57 = vld [vmem:[%s11166_s7 + $0x288] sm:$0xff] }
 0x19e   : > { %v1030_v27 = vpop.permute.xlu1 %1029  ;;  %v1028_v14 = vpop.permute.xlu0 %1027 }
 0x19f   : > { %v1042_v35 = vsel %vm1031_vm10, %v8220_v37, %v1028_v14  ;;  %v1043_v15 = vsel %vm1031_vm10, %v1028_v14, %v1030_v27  ;;  %v2209_v27 = vld [vmem:[%s11166_s7 + $0x280] sm:$0xff]  ;;  %v2208_v14 = vld [vmem:[%s11166_s7 + $0x278] sm:$0xff] }
 0x1a0   : > { %1941 = vmatprep.subr.mxu1 %v1043_v15  ;;  %v2207_v15 = vld [vmem:[%s11166_s7 + $0x270] sm:$0xff] }
 0x1a1   : > { %1942 = vmatpush2.msra.mxu1 %v1042_v35  ;;  %v2137_v35 = vld [vmem:[%s11166_s7 + $0x40] sm:$0xff] }
 0x1a2   : > { %v1020_v11 = vpop.permute.xlu1 %1019  ;;  %v1018_v47 = vpop.permute.xlu0 %1017 }
 0x1a3   : > { %v1038_v0 = vsel %vm1031_vm10, %v8226_v3, %v1018_v47  ;;  %v1039_v10 = vsel %vm1031_vm10, %v1018_v47, %v1020_v11  ;;  %v2136_v11 = vld [vmem:[%s11166_s7 + $0x38] sm:$0xff]  ;;  %v2206_v47 = vld [vmem:[%s11166_s7 + $0x268] sm:$0xff] }
 0x1a4   : > { %1943 = vmatprep.subr.mxu1 %v1039_v10  ;;  %v2205_v10 = vld [vmem:[%s11166_s7 + $0x260] sm:$0xff] }
 0x1a5   : > { %1944 = vmatpush2.msra.mxu1 %v1038_v0  ;;  %v2135_v0 = vld [vmem:[%s11166_s7 + $0x30] sm:$0xff] }
 0x1a6   : > { %v1010_v61 = vpop.permute.xlu1 %1009  ;;  %v1008_v39 = vpop.permute.xlu0 %1007 }
 0x1a7   : > { %v1034_v31 = vsel %vm1031_vm10, %v8231_v44, %v1008_v39  ;;  %v1035_v37 = vsel %vm1031_vm10, %v1008_v39, %v1010_v61  ;;  %v2134_v61 = vld [vmem:[%s11166_s7 + $0x28] sm:$0xff]  ;;  %v2204_v39 = vld [vmem:[%s11166_s7 + $0x258] sm:$0xff] }
 0x1a8   : > { %1945 = vmatprep.subr.mxu1 %v1035_v37  ;;  %v2203_v37 = vld [vmem:[%s11166_s7 + $0x250] sm:$0xff] }
 0x1a9   : > { %1946 = vmatpush2.msra.mxu1 %v1034_v31  ;;  %v2133_v31 = vld [vmem:[%s11166_s7 + $0x20] sm:$0xff] }
 0x1aa   : > { %v933_v33 = vpop.permute.xlu1 %932  ;;  %v931_v34 = vpop.permute.xlu0 %930 }
 0x1ab   : > { %v945_v49 = vsel %vm934_vm0, %v8239_v6, %v931_v34  ;;  %v946_v3 = vsel %vm934_vm0, %v931_v34, %v933_v33  ;;  %v2159_v6 = vld [vmem:[%s11166_s7 + $0xf0] sm:$0xff]  ;;  %v2132_v33 = vld [vmem:[%s11166_s7 + $0x18] sm:$0xff]  ;;  %v2202_v34 = vld [vmem:[%s11166_s7 + $0x248] sm:$0xff] }
 0x1ac   : > { %1947 = vmatprep.subr.mxu1 %v946_v3  ;;  %v2201_v3 = vld [vmem:[%s11166_s7 + $0x240] sm:$0xff] }
 0x1ad   : > { %1948 = vmatpush2.msra.mxu1 %v945_v49  ;;  %v2131_v49 = vld [vmem:[%s11166_s7 + $0x10] sm:$0xff] }
 0x1ae   : > { %v923_v2 = vpop.permute.xlu1 %922  ;;  %v921_v1 = vpop.permute.xlu0 %920 }
 0x1af   : > { %v941_v45 = vsel %vm934_vm0, %v8247_v24, %v921_v1  ;;  %v942_v44 = vsel %vm934_vm0, %v921_v1, %v923_v2  ;;  %v2157_v24 = vld [vmem:[%s11166_s7 + $0xe0] sm:$0xff]  ;;  %v2130_v2 = vld [vmem:[%s11166_s7 + $0x8] sm:$0xff]  ;;  %v2200_v1 = vld [vmem:[%s11166_s7 + $0x238] sm:$0xff]  ;;  %vm7528_vm0 = vmmov 0  }
 0x1b0   : > { %1949 = vmatprep.subr.mxu1 %v942_v44  ;;  %v2199_v44 = vld [vmem:[%s11166_s7 + $0x230] sm:$0xff] }
 0x1b1   : > { %1950 = vmatpush2.msra.mxu1 %v941_v45  ;;  %v2129_v45 = vld [vmem:[%s11166_s7] sm:$0xff] }
 0x1b2   : > { %v1418_v51 = vpop.permute.xlu1 %1417  ;;  %v1416_v5 = vpop.permute.xlu0 %1415  ;;  %1952 = vmatmul.mubr.f32.vlgmr.msra.gmra.mxu1 %v8254_v59  ;;  %2257 = vmatprep.subr.mxu1 %v2160_v16  ;;  %v2156_v59 = vld [vmem:[%s11166_s7 + $0xd8] sm:$0xff] }
 0x1b3   : > { %v1430_v32 = vsel %vm1419_vm5, %v7929_v40, %v1416_v5  ;;  %v1431_v52 = vsel %vm1419_vm5, %v1416_v5, %v1418_v51  ;;  %1957 = vmatprep.mubr.f32.mxu1 %v8259_v48  ;;  %2258 = vmatpush1.msra.mxu1 %v2159_v6  ;;  %v2155_v40 = vld [vmem:[%s11166_s7 + $0xd0] sm:$0xff]  ;;  %v2192_v16 = vld [vmem:[%s11166_s7 + $0x1f8] sm:$0xff]  ;;  %v2198_v6 = vld [vmem:[%s11166_s7 + $0x228] sm:$0xff]  ;;  %vm6327_vm5 = vcmask 195584  }
 0x1b4   : > { %2024 = vmatprep.subr.mxu0 %v1431_v52  ;;  %2259 = vmatprep.subr.mxu1 %v2158_v50  ;;  %v2223_v48 = vld [vmem:[%s11166_s7 + $0x2f0] sm:$0xff]  ;;  %v2197_v51 = vld [vmem:[%s11166_s7 + $0x220] sm:$0xff]  ;;  %v2190_v5 = vld [vmem:[%s11166_s7 + $0x1e8] sm:$0xff] }
 0x1b5   : > { %2025 = vmatpush1.msra.mxu0 %v1430_v32  ;;  %2260 = vmatpush1.msra.mxu1 %v2157_v24  ;;  %v2191_v50 = vld [vmem:[%s11166_s7 + $0x1f0] sm:$0xff]  ;;  %v2196_v24 = vld [vmem:[%s11166_s7 + $0x218] sm:$0xff]  ;;  %v2189_v32 = vld [vmem:[%s11166_s7 + $0x1e0] sm:$0xff] }
 0x1b6   : > { %6876 = vmatmul.mubr.msk.f32.vlgmr.msra.gmra.mxu0 %vm1651_vm6, %v7454_v56  ;;  %1958 = vmatmul.mubr.f32.gmra.mxu1 %v8264_v12  ;;  %v2222_v12 = vld [vmem:[%s11166_s7 + $0x2e8] sm:$0xff]  ;;  %v2195_v52 = vld [vmem:[%s11166_s7 + $0x210] sm:$0xff] }
 0x1b7   : > { %2064 = vmatprep.mubr.f32.mxu0 %v11169_v9  ;;  %1963 = vmatprep.mubr.f32.mxu1 %v8270_v62  ;;  %v2153_v62 = vld [vmem:[%s11166_s7 + $0xc0] sm:$0xff]  ;;  %v2187_v56 = vld [vmem:[%s11166_s7 + $0x1d0] sm:$0xff] }
 0x1b8   : > { %2261 = vmatprep.subr.mxu1 %v2156_v59  ;;  %2364 = vmatprep.subr.mxu0 %v2224_v53  ;;  %v2188_v59 = vld [vmem:[%s11166_s7 + $0x1d8] sm:$0xff]  ;;  %v2194_v53 = vld [vmem:[%s11166_s7 + $0x208] sm:$0xff] }
 0x1b9   : > { %2262 = vmatpush1.msra.mxu1 %v2155_v40  ;;  %2365 = vmatpush1.msra.mxu0 %v2223_v48  ;;  %v2193_v40 = vld [vmem:[%s11166_s7 + $0x200] sm:$0xff]  ;;  %v2186_v48 = vld [vmem:[%s11166_s7 + $0x1c8] sm:$0xff] }
 0x1ba   : > { %6877 = vmatmul.mubr.msk.f32.gmra.mxu0 %vm1651_vm6, %v8077_v21  ;;  %1964 = vmatmul.mubr.f32.gmra.mxu1 %v8275_v43  ;;  %v2152_v21 = vld [vmem:[%s11166_s7 + $0xb8] sm:$0xff] }
 0x1bb   : > { %2070 = vmatprep.mubr.f32.mxu0 %v11169_v9  ;;  %1969 = vmatprep.mubr.f32.mxu1 %v8281_v20  ;;  %v2220_v43 = vld [vmem:[%s11166_s7 + $0x2d8] sm:$0xff]  ;;  %v2151_v20 = vld [vmem:[%s11166_s7 + $0xb0] sm:$0xff] }
 0x1bc   : > { %2263 = vmatprep.subr.mxu1 %v2154_v41  ;;  %2366 = vmatprep.subr.mxu0 %v2222_v12  ;;  %v2256_v41 = vld [vmem:[%s11166_s7 + $0x3f8] sm:$0xff]  ;;  %v2185_v12 = vld [vmem:[%s11166_s7 + $0x1c0] sm:$0xff] }
 0x1bd   : > { %2264 = vmatpush1.msra.mxu1 %v2153_v62  ;;  %2367 = vmatpush1.msra.mxu0 %v2221_v18  ;;  %v2255_v62 = vld [vmem:[%s11166_s7 + $0x3f0] sm:$0xff]  ;;  %v2184_v18 = vld [vmem:[%s11166_s7 + $0x1b8] sm:$0xff] }
 0x1be   : > { %6878 = vmatmul.mubr.msk.f32.gmra.mxu0 %vm1651_vm6, %v8090_v28  ;;  %1970 = vmatmul.mubr.f32.gmra.mxu1 %v8286_v17  ;;  %v2150_v28 = vld [vmem:[%s11166_s7 + $0xa8] sm:$0xff] }
 0x1bf   : > { %2076 = vmatprep.mubr.f32.mxu0 %v11169_v9  ;;  %1975 = vmatprep.mubr.f32.mxu1 %v8292_v46  ;;  %v2218_v17 = vld [vmem:[%s11166_s7 + $0x2c8] sm:$0xff]  ;;  %v2149_v46 = vld [vmem:[%s11166_s7 + $0xa0] sm:$0xff] }
 0x1c0   : > { %2265 = vmatprep.subr.mxu1 %v2152_v21  ;;  %2368 = vmatprep.subr.mxu0 %v2220_v43  ;;  %v2254_v21 = vld [vmem:[%s11166_s7 + $0x3e8] sm:$0xff]  ;;  %v2183_v43 = vld [vmem:[%s11166_s7 + $0x1b0] sm:$0xff] }
 0x1c1   : > { %2266 = vmatpush1.msra.mxu1 %v2151_v20  ;;  %2369 = vmatpush1.msra.mxu0 %v2219_v26  ;;  %v2253_v20 = vld [vmem:[%s11166_s7 + $0x3e0] sm:$0xff]  ;;  %v2182_v26 = vld [vmem:[%s11166_s7 + $0x1a8] sm:$0xff] }
 0x1c2   : > { %6879 = vmatmul.mubr.msk.f32.gmra.mxu0 %vm1651_vm6, %v8101_v29  ;;  %1976 = vmatmul.mubr.f32.gmra.mxu1 %v8297_v7  ;;  %v2148_v29 = vld [vmem:[%s11166_s7 + $0x98] sm:$0xff] }
 0x1c3   : > { %2082 = vmatprep.mubr.f32.mxu0 %v11169_v9  ;;  %1981 = vmatprep.mubr.f32.mxu1 %v8303_v23  ;;  %v2216_v7 = vld [vmem:[%s11166_s7 + $0x2b8] sm:$0xff]  ;;  %v2147_v23 = vld [vmem:[%s11166_s7 + $0x90] sm:$0xff] }
 0x1c4   : > { %2267 = vmatprep.subr.mxu1 %v2150_v28  ;;  %2370 = vmatprep.subr.mxu0 %v2218_v17  ;;  %v2252_v28 = vld [vmem:[%s11166_s7 + $0x3d8] sm:$0xff]  ;;  %v2181_v17 = vld [vmem:[%s11166_s7 + $0x1a0] sm:$0xff] }
 0x1c5   : > { %2268 = vmatpush1.msra.mxu1 %v2149_v46  ;;  %2371 = vmatpush1.msra.mxu0 %v2217_v30  ;;  %v2251_v46 = vld [vmem:[%s11166_s7 + $0x3d0] sm:$0xff]  ;;  %v2180_v30 = vld [vmem:[%s11166_s7 + $0x198] sm:$0xff] }
 0x1c6   : > { %6880 = vmatmul.mubr.msk.f32.gmra.mxu0 %vm1651_vm6, %v8119_v13  ;;  %1982 = vmatmul.mubr.f32.gmra.mxu1 %v8308_v54  ;;  %v2145_v13 = vld [vmem:[%s11166_s7 + $0x80] sm:$0xff]  ;;  %v2214_v54 = vld [vmem:[%s11166_s7 + $0x2a8] sm:$0xff] }
 0x1c7   : > { %2088 = vmatprep.mubr.f32.mxu0 %v11169_v9  ;;  %1987 = vmatprep.mubr.f32.mxu1 %v8314_v8  ;;  %v2144_v8 = vld [vmem:[%s11166_s7 + $0x78] sm:$0xff] }
 0x1c8   : > { %2269 = vmatprep.subr.mxu1 %v2148_v29  ;;  %2372 = vmatprep.subr.mxu0 %v2216_v7  ;;  %v2250_v29 = vld [vmem:[%s11166_s7 + $0x3c8] sm:$0xff]  ;;  %v2179_v7 = vld [vmem:[%s11166_s7 + $0x190] sm:$0xff] }
 0x1c9   : > { %2270 = vmatpush1.msra.mxu1 %v2147_v23  ;;  %2373 = vmatpush1.msra.mxu0 %v2215_v60  ;;  %v2249_v23 = vld [vmem:[%s11166_s7 + $0x3c0] sm:$0xff]  ;;  %v2178_v60 = vld [vmem:[%s11166_s7 + $0x188] sm:$0xff] }
 0x1ca   : > { %6881 = vmatmul.mubr.msk.f32.gmra.mxu0 %vm1651_vm6, %v8133_v36  ;;  %1988 = vmatmul.mubr.f32.gmra.mxu1 %v8319_v58  ;;  %v2142_v36 = vld [vmem:[%s11166_s7 + $0x68] sm:$0xff]  ;;  %v2212_v58 = vld [vmem:[%s11166_s7 + $0x298] sm:$0xff] }
 0x1cb   : > { %2094 = vmatprep.mubr.f32.mxu0 %v11169_v9  ;;  %2271 = vmatprep.subr.mxu1 %v2146_v4  ;;  %v2248_v4 = vld [vmem:[%s11166_s7 + $0x3b8] sm:$0xff] }
 0x1cc   : > { %2272 = vmatpush1.msra.mxu1 %v2145_v13  ;;  %2374 = vmatprep.subr.mxu0 %v2214_v54  ;;  %v2177_v13 = vld [vmem:[%s11166_s7 + $0x180] sm:$0xff]  ;;  %v2247_v54 = vld [vmem:[%s11166_s7 + $0x3b0] sm:$0xff] }
 0x1cd   : > { %2273 = vmatprep.subr.mxu1 %v2144_v8  ;;  %2375 = vmatpush1.msra.mxu0 %v2213_v63  ;;  %v2176_v8 = vld [vmem:[%s11166_s7 + $0x178] sm:$0xff]  ;;  %v2246_v63 = vld [vmem:[%s11166_s7 + $0x3a8] sm:$0xff] }
 0x1ce   : > { %6882 = vmatmul.mubr.msk.f32.gmra.mxu0 %vm1651_vm6, %v8147_v42  ;;  %2274 = vmatpush1.msra.mxu1 %v2143_v22  ;;  %v2138_v42 = vld [vmem:[%s11166_s7 + $0x48] sm:$0xff]  ;;  %v2175_v22 = vld [vmem:[%s11166_s7 + $0x170] sm:$0xff] }
 0x1cf   : > { %2275 = vmatprep.subr.mxu1 %v2142_v36  ;;  %2376 = vmatprep.subr.mxu0 %v2212_v58  ;;  %v2245_v36 = vld [vmem:[%s11166_s7 + $0x3a0] sm:$0xff]  ;;  %v2174_v58 = vld [vmem:[%s11166_s7 + $0x168] sm:$0xff] }
 0x1d0   : > { %2276 = vmatpush1.msra.mxu1 %v2141_v19  ;;  %2377 = vmatpush1.msra.mxu0 %v2211_v55  ;;  %v2244_v19 = vld [vmem:[%s11166_s7 + $0x398] sm:$0xff]  ;;  %v2173_v55 = vld [vmem:[%s11166_s7 + $0x160] sm:$0xff] }
 0x1d1   : > { %2277 = vmatprep.subr.mxu1 %v2140_v25  ;;  %2378 = vmatprep.subr.mxu0 %v2210_v57  ;;  %v2243_v25 = vld [vmem:[%s11166_s7 + $0x390] sm:$0xff]  ;;  %v2172_v57 = vld [vmem:[%s11166_s7 + $0x158] sm:$0xff] }
 0x1d2   : > { %2278 = vmatpush1.msra.mxu1 %v2139_v38  ;;  %2379 = vmatpush1.msra.mxu0 %v2209_v27  ;;  %v2242_v38 = vld [vmem:[%s11166_s7 + $0x388] sm:$0xff]  ;;  %v2171_v27 = vld [vmem:[%s11166_s7 + $0x150] sm:$0xff] }
 0x1d3   : > { %2279 = vmatprep.subr.mxu1 %v2138_v42  ;;  %2380 = vmatprep.subr.mxu0 %v2208_v14  ;;  %v2241_v42 = vld [vmem:[%s11166_s7 + $0x380] sm:$0xff]  ;;  %v2170_v14 = vld [vmem:[%s11166_s7 + $0x148] sm:$0xff] }
 0x1d4   : > { %2280 = vmatpush1.msra.mxu1 %v2137_v35  ;;  %2381 = vmatpush1.msra.mxu0 %v2207_v15  ;;  %v2240_v35 = vld [vmem:[%s11166_s7 + $0x378] sm:$0xff]  ;;  %v2169_v15 = vld [vmem:[%s11166_s7 + $0x140] sm:$0xff] }
 0x1d5   : > { %2281 = vmatprep.subr.mxu1 %v2136_v11  ;;  %2382 = vmatprep.subr.mxu0 %v2206_v47  ;;  %v2239_v11 = vld [vmem:[%s11166_s7 + $0x370] sm:$0xff]  ;;  %v2168_v47 = vld [vmem:[%s11166_s7 + $0x138] sm:$0xff] }
 0x1d6   : > { %2282 = vmatpush1.msra.mxu1 %v2135_v0  ;;  %2383 = vmatpush1.msra.mxu0 %v2205_v10  ;;  %v2238_v0 = vld [vmem:[%s11166_s7 + $0x368] sm:$0xff]  ;;  %v2167_v10 = vld [vmem:[%s11166_s7 + $0x130] sm:$0xff] }
 0x1d7   : > { %2283 = vmatprep.subr.mxu1 %v2134_v61  ;;  %2384 = vmatprep.subr.mxu0 %v2204_v39  ;;  %v2237_v61 = vld [vmem:[%s11166_s7 + $0x360] sm:$0xff]  ;;  %v2166_v39 = vld [vmem:[%s11166_s7 + $0x128] sm:$0xff] }
 0x1d8   : > { %2284 = vmatpush1.msra.mxu1 %v2133_v31  ;;  %2385 = vmatpush1.msra.mxu0 %v2203_v37  ;;  %v2236_v31 = vld [vmem:[%s11166_s7 + $0x358] sm:$0xff]  ;;  %v2165_v37 = vld [vmem:[%s11166_s7 + $0x120] sm:$0xff] }
 0x1d9   : > { %2285 = vmatprep.subr.mxu1 %v2132_v33  ;;  %2386 = vmatprep.subr.mxu0 %v2202_v34  ;;  %v2235_v33 = vld [vmem:[%s11166_s7 + $0x350] sm:$0xff]  ;;  %v2164_v34 = vld [vmem:[%s11166_s7 + $0x118] sm:$0xff] }
 0x1da   : > { %2286 = vmatpush1.msra.mxu1 %v2131_v49  ;;  %2387 = vmatpush1.msra.mxu0 %v2201_v3  ;;  %v2234_v49 = vld [vmem:[%s11166_s7 + $0x348] sm:$0xff]  ;;  %v2163_v3 = vld [vmem:[%s11166_s7 + $0x110] sm:$0xff] }
 0x1db   : > { %2287 = vmatprep.subr.mxu1 %v2130_v2  ;;  %2388 = vmatprep.subr.mxu0 %v2200_v1  ;;  %v2233_v2 = vld [vmem:[%s11166_s7 + $0x340] sm:$0xff]  ;;  %v2162_v1 = vld [vmem:[%s11166_s7 + $0x108] sm:$0xff] }
 0x1dc   : > { %2288 = vmatpush1.msra.mxu1 %v2129_v45  ;;  %2389 = vmatpush1.msra.mxu0 %v2199_v44  ;;  %v2232_v45 = vld [vmem:[%s11166_s7 + $0x338] sm:$0xff]  ;;  %v2161_v44 = vld [vmem:[%s11166_s7 + $0x100] sm:$0xff] }
 0x1dd   : > { %2289 = vmatprep.subr.mxu1 %v2192_v16  ;;  %2390 = vmatprep.subr.mxu0 %v2198_v6  ;;  %v2231_v16 = vld [vmem:[%s11166_s7 + $0x330] sm:$0xff]  ;;  %v2230_v6 = vld [vmem:[%s11166_s7 + $0x328] sm:$0xff] }
 0x1de   : > { %2290 = vmatpush2.msra.mxu1 %v2191_v50  ;;  %2391 = vmatpush1.msra.mxu0 %v2197_v51  ;;  %v2229_v50 = vld [vmem:[%s11166_s7 + $0x320] sm:$0xff]  ;;  %v2228_v51 = vld [vmem:[%s11166_s7 + $0x318] sm:$0xff] }
 0x1df   : > { %2291 = vmatprep.subr.mxu1 %v2190_v5  ;;  %2392 = vmatprep.subr.mxu0 %v2196_v24  ;;  %v2227_v5 = vld [vmem:[%s11166_s7 + $0x310] sm:$0xff]  ;;  %v2226_v24 = vld [vmem:[%s11166_s7 + $0x308] sm:$0xff] }
 0x1e0   : > { %2292 = vmatpush2.msra.mxu1 %v2189_v32  ;;  %2393 = vmatpush1.msra.mxu0 %v2195_v52  ;;  %v2225_v32 = vld [vmem:[%s11166_s7 + $0x300] sm:$0xff] }
 0x1e1   : > { %2293 = vmatprep.subr.mxu1 %v2188_v59  ;;  %2394 = vmatprep.subr.mxu0 %v2194_v53  ;;  %v8788_v52 = vld [vmem:[#allocation3 + $0x20] sm:$0xff] }
 0x1e2   : > { %2294 = vmatpush2.msra.mxu1 %v2187_v56  ;;  %2395 = vmatpush1.msra.mxu0 %v2193_v40  ;;  %v8790_v59 = vld [vmem:[#allocation3] sm:$0xff]  ;;  %v8798_v56 = vld [vmem:[#allocation3 + $0xb8] sm:$0xff] }
 0x1e3   : > { %2295 = vmatprep.subr.mxu1 %v2186_v48  ;;  %2396 = vmatprep.subr.mxu0 %v2256_v41  ;;  %v8796_v53 = vld [vmem:[#allocation3 + $0xc0] sm:$0xff]  ;;  %v8806_v48 = vld [vmem:[#allocation3 + $0x98] sm:$0xff]  ;;  %v1846_v41 = vpop.f32.mrf.mxu1 }
 0x1e4   : > { %2296 = vmatpush2.msra.mxu1 %v2185_v12  ;;  %2397 = vmatpush2.msra.mxu0 %v2255_v62  ;;  %v8804_v40 = vld [vmem:[#allocation3 + $0xa0] sm:$0xff]  ;;  %v8814_v62 = vld [vmem:[#allocation3 + $0x78] sm:$0xff] }
 0x1e5   : > { %2297 = vmatprep.subr.mxu1 %v2184_v18  ;;  %2398 = vmatprep.subr.mxu0 %v2254_v21  ;;  %v8812_v12 = vld [vmem:[#allocation3 + $0x80] sm:$0xff]  ;;  %v1848_v18 = vpop.f32.mrf.mxu1 }
 0x1e6   : > { %2298 = vmatpush2.msra.mxu1 %v2183_v43  ;;  %2399 = vmatpush2.msra.mxu0 %v2253_v20  ;;  %v8820_v43 = vld [vmem:[#allocation3 + $0x60] sm:$0xff]  ;;  %v8822_v20 = vld [vmem:[#allocation3 + $0x58] sm:$0xff] }
 0x1e7   : > { %2299 = vmatprep.subr.mxu1 %v2182_v26  ;;  %2400 = vmatprep.subr.mxu0 %v2252_v28  ;;  %v1852_v21 = vpop.f32.mrf.mxu1  ;;  %v8828_v28 = vld [vmem:[#allocation3 + $0x40] sm:$0xff] }
 0x1e8   : > { %2300 = vmatpush2.msra.mxu1 %v2181_v17  ;;  %2401 = vmatpush2.msra.mxu0 %v2251_v46  ;;  %v8830_v17 = vld [vmem:[#allocation3 + $0x38] sm:$0xff] }
 0x1e9   : > { %2301 = vmatprep.subr.mxu1 %v2180_v30  ;;  %2402 = vmatprep.subr.mxu0 %v2250_v29  ;;  %v1854_v26 = vpop.f32.mrf.mxu1  ;;  %v8836_v30 = vld [vmem:[#allocation3 + $0x18] sm:$0xff] }
 0x1ea   : > { %2302 = vmatpush2.msra.mxu1 %v2179_v7  ;;  %2403 = vmatpush2.msra.mxu0 %v2249_v23  ;;  %v8842_v7 = vld [vmem:[#allocation3 + $0xd8] sm:$0xff]  ;;  %v8844_v23 = vpop.permute.xlu0 %1618 }
 0x1eb   : > { %2303 = vmatprep.subr.mxu1 %v2178_v60  ;;  %2404 = vmatprep.subr.mxu0 %v2248_v4  ;;  %v1858_v46 = vpop.f32.mrf.mxu1  ;;  %v8850_v4 = vpop.permute.xlu1 %1623 }
 0x1ec   : > { %2304 = vmatpush2.msra.mxu1 %v2177_v13  ;;  %2405 = vmatpush2.msra.mxu0 %v2247_v54 }
 0x1ed   : > { %2305 = vmatprep.subr.mxu1 %v2176_v8  ;;  %2406 = vmatprep.subr.mxu0 %v2246_v63  ;;  %v1860_v29 = vpop.f32.mrf.mxu1 }
 0x1ee   : > { %2306 = vmatpush2.msra.mxu1 %v2175_v22  ;;  %2407 = vmatpush2.msra.mxu0 %v2245_v36 }
 0x1ef   : > { %2307 = vmatprep.subr.mxu1 %v2174_v58  ;;  %2408 = vmatprep.subr.mxu0 %v2244_v19  ;;  %v1864_v60 = vpop.f32.mrf.mxu1 }
 0x1f0   : > { %2308 = vmatpush2.msra.mxu1 %v2173_v55  ;;  %2409 = vmatpush2.msra.mxu0 %v2243_v25  ;;  %v8858_v55 = vpop.permute.xlu1 %1628 }
 0x1f1   : > { %2309 = vmatprep.subr.mxu1 %v2172_v57  ;;  %2410 = vmatprep.subr.mxu0 %v2242_v38  ;;  %v1866_v63 = vpop.f32.mrf.mxu1 }
 0x1f2   : > { %2310 = vmatpush2.msra.mxu1 %v2171_v27  ;;  %2411 = vmatpush2.msra.mxu0 %v2241_v42 }
 0x1f3   : > { %2311 = vmatprep.subr.mxu1 %v2170_v14  ;;  %2412 = vmatprep.subr.mxu0 %v2240_v35  ;;  %v1870_v38 = vpop.f32.mrf.mxu1 }
 0x1f4   : > { %2312 = vmatpush2.msra.mxu1 %v2169_v15  ;;  %2413 = vmatpush2.msra.mxu0 %v2239_v11 }
 0x1f5   : > { %2313 = vmatprep.subr.mxu1 %v2168_v47  ;;  %2414 = vmatprep.subr.mxu0 %v2238_v0  ;;  %v8866_v47 = vpop.permute.xlu0 %1633 }
 0x1f6   : > { %2314 = vmatpush2.msra.mxu1 %v2167_v10  ;;  %2415 = vmatpush2.msra.mxu0 %v2237_v61  ;;  %v1872_v61 = vpop.f32.mrf.mxu1 }
 0x1f7   : > { %2315 = vmatprep.subr.mxu1 %v2166_v39  ;;  %2416 = vmatprep.subr.mxu0 %v2236_v31 }
 0x1f8   : > { %2316 = vmatpush2.msra.mxu1 %v2165_v37  ;;  %2417 = vmatpush2.msra.mxu0 %v2235_v33 }
 0x1f9   : > { %2317 = vmatprep.subr.mxu1 %v2164_v34  ;;  %2418 = vmatprep.subr.mxu0 %v2234_v49 }
 0x1fa   : > { %2318 = vmatpush2.msra.mxu1 %v2163_v3  ;;  %2419 = vmatpush2.msra.mxu0 %v2233_v2  ;;  %v8874_v3 = vpop.permute.xlu1 %1638 }
 0x1fb   : > { %2319 = vmatprep.subr.mxu1 %v2162_v1  ;;  %2420 = vmatprep.subr.mxu0 %v2232_v45  ;;  %v1876_v45 = vpop.f32.mrf.mxu1 }
 0x1fc   : > { %2320 = vmatpush2.msra.mxu1 %v2161_v44  ;;  %2421 = vmatpush2.msra.mxu0 %v2231_v16 }
 0x1fd   : > { %2422 = vmatprep.subr.mxu0 %v2230_v6  ;;  %2802 = vrot.lane.b32.xlu0 %v8788_v52, %s7522_s15 }
 0x1fe   : > { %2423 = vmatpush2.msra.mxu0 %v2229_v50  ;;  %2796 = vrot.lane.b32.xlu1 %v8790_v59, %s7522_s15 }
 0x1ff   : > { %2424 = vmatprep.subr.mxu0 %v2228_v51 }
 0x200   : > { %2425 = vmatpush2.msra.mxu0 %v2227_v5 }
 0x201   : > { %2426 = vmatprep.subr.mxu0 %v2226_v24  ;;  %2705 = vrot.lane.b32.xlu0 %v8796_v53, %s11183_s17  ;;  %v8882_v24 = vpop.permute.xlu0 %1643 }
 0x202   : > { %2427 = vmatpush2.msra.mxu0 %v2225_v32  ;;  %3238 = vrot.lane.b32.xlu1 %v8798_v56, %s11181_s22 }
 0x205   : > { %2699 = vrot.lane.b32.xlu0 %v8804_v40, %s11183_s17 }
 0x206   : > { %3232 = vrot.lane.b32.xlu1 %v8806_v48, %s11181_s22 }
 0x209   : > { %2693 = vrot.lane.b32.xlu0 %v8812_v12, %s11183_s17 }
 0x20a   : > { %3226 = vrot.lane.b32.xlu1 %v8814_v62, %s11181_s22 }
 0x20d   : > { %2687 = vrot.lane.b32.xlu0 %v8820_v43, %s11183_s17 }
 0x20e   : > { %3220 = vrot.lane.b32.xlu1 %v8822_v20, %s11181_s22 }
 0x211   : > { %2681 = vrot.lane.b32.xlu0 %v8828_v28, %s11183_s17 }
 0x212   : > { %3214 = vrot.lane.b32.xlu1 %v8830_v17, %s11181_s22 }
 0x215   : > { %2675 = vrot.lane.b32.xlu0 %v8788_v52, %s11183_s17 }
 0x216   : > { %3208 = vrot.lane.b32.xlu1 %v8836_v30, %s11181_s22 }
 0x219   : > { %2669 = vrot.lane.b32.xlu0 %v8790_v59, %s11183_s17 }
 0x21a   : > { %3118 = vrot.lane.b32.xlu1 %v8842_v7, %s7514_s23 }
 0x21d   : > { %2579 = vrot.lane.b32.xlu0 %v8796_v53, %s7524_s18 }
 0x21e   : > { %3112 = vrot.lane.b32.xlu1 %v8798_v56, %s7514_s23 }
 0x221   : > { %2573 = vrot.lane.b32.xlu0 %v8804_v40, %s7524_s18 }
 0x222   : > { %3106 = vrot.lane.b32.xlu1 %v8806_v48, %s7514_s23 }
 0x225   : > { %2567 = vrot.lane.b32.xlu0 %v8812_v12, %s7524_s18 }
 0x226   : > { %3100 = vrot.lane.b32.xlu1 %v8814_v62, %s7514_s23 }
 0x229   : > { %2561 = vrot.lane.b32.xlu0 %v8820_v43, %s7524_s18 }
 0x22a   : > { %3094 = vrot.lane.b32.xlu1 %v8822_v20, %s7514_s23 }
 0x22d   : > { %2555 = vrot.lane.b32.xlu0 %v8828_v28, %s7524_s18 }
 0x22e   : > { %3088 = vrot.lane.b32.xlu1 %v8830_v17, %s7514_s23 }
 0x231   : > { %2549 = vrot.lane.b32.xlu0 %v8788_v52, %s7524_s18 }
 0x232   : > { %3082 = vrot.lane.b32.xlu1 %v8836_v30, %s7514_s23 }
 0x235   : > { %2543 = vrot.lane.b32.xlu0 %v8790_v59, %s7524_s18 }
 0x236   : > { %3490 = vrot.lane.b32.xlu1 %v8798_v56, %s7511_s20 }
 0x239   : > { %3496 = vrot.lane.b32.xlu0 %v8842_v7, %s7511_s20 }
 0x23a   : > { %2959 = vrot.lane.b32.xlu1 %v8796_v53, %s7525_s25 }
 0x23d   : > { %v1739_v13 = vpop.f32.mrf.mxu0  ;;  %3484 = vrot.lane.b32.xlu0 %v8806_v48, %s7511_s20 }
 0x23e   : > { %v1740_v54 = vadd.f32 %v1739_v13, %v8844_v23  ;;  %2953 = vrot.lane.b32.xlu1 %v8804_v40, %s7525_s25 }
 0x23f   : > { %v1741_v8 = vpop.f32.mrf.mxu0 }
 0x240   : > { %v1742_v22 = vadd.f32 %v1741_v8, %v8844_v23  ;;  %v1847_v36 = vadd.f32 %v1846_v41, %v1740_v54  ;;  %v8890_v54 = vpop.permute.xlu1 %1648 }
 0x241   : > { %v1745_v58 = vpop.f32.mrf.mxu0  ;;  %3478 = vrot.lane.b32.xlu0 %v8814_v62, %s7511_s20 }
 0x242   : > { %v1849_v19 = vadd.f32 %v1848_v18, %v1742_v22  ;;  %v1746_v25 = vadd.f32 %v1745_v58, %v8850_v4  ;;  %v2101_v35 = vmax.f32 %v1847_v36, 0.0  ;;  %v1878_v18 = vpop.f32.mrf.mxu1  ;;  %2947 = vrot.lane.b32.xlu1 %v8812_v12, %s7525_s25 }
 0x243   : > { %v1747_v57 = vpop.f32.mrf.mxu0 }
 0x244   : > { %v2102_v27 = vmax.f32 %v1849_v19, 0.0  ;;  %v1748_v42 = vadd.f32 %v1747_v57, %v8850_v4  ;;  %v1853_v14 = vadd.f32 %v1852_v21, %v1746_v25  ;;  %v1882_v22 = vpop.f32.mrf.mxu1 }
 0x245   : > { %v1751_v15 = vpop.f32.mrf.mxu0  ;;  %3472 = vrot.lane.b32.xlu0 %v8822_v20, %s7511_s20 }
 0x246   : > { %2321 = vmatprep.mubr.f32.mxu1 %v2102_v27  ;;  %v1855_v11 = vadd.f32 %v1854_v26, %v1748_v42  ;;  %v1752_v0 = vadd.f32 %v1751_v15, %v8858_v55  ;;  %v2105_v39 = vmax.f32 %v1853_v14, 0.0  ;;  %v1884_v42 = vpop.f32.mrf.mxu1  ;;  %2941 = vrot.lane.b32.xlu1 %v8820_v43, %s7525_s25 }
 0x247   : > { %2322 = vmatmul.mubr.f32.vlgmr.msra.gmra.mxu1 %v2101_v35  ;;  %v1753_v10 = vpop.f32.mrf.mxu0 }
 0x248   : > { %v2106_v31 = vmax.f32 %v1855_v11, 0.0  ;;  %v1754_v37 = vadd.f32 %v1753_v10, %v8858_v55  ;;  %v1859_v33 = vadd.f32 %v1858_v46, %v1752_v0 }
 0x249   : > { %v1757_v34 = vpop.f32.mrf.mxu0  ;;  %3466 = vrot.lane.b32.xlu0 %v8830_v17, %s7511_s20 }
 0x24a   : > { %2327 = vmatprep.mubr.f32.mxu1 %v2106_v31  ;;  %v1861_v49 = vadd.f32 %v1860_v29, %v1754_v37  ;;  %v1758_v2 = vadd.f32 %v1757_v34, %v8866_v47  ;;  %v2109_v44 = vmax.f32 %v1859_v33, 0.0  ;;  %2935 = vrot.lane.b32.xlu1 %v8828_v28, %s7525_s25 }
 0x24b   : > { %v1759_v1 = vpop.f32.mrf.mxu0  ;;  %2328 = vmatmul.mubr.f32.gmra.mxu1 %v2105_v39 }
 0x24c   : > { %v2110_v16 = vmax.f32 %v1861_v49, 0.0  ;;  %v1760_v6 = vadd.f32 %v1759_v1, %v8866_v47  ;;  %v1865_v50 = vadd.f32 %v1864_v60, %v1758_v2 }
 0x24d   : > { %v1763_v51 = vpop.f32.mrf.mxu0  ;;  %3460 = vrot.lane.b32.xlu0 %v8836_v30, %s7511_s20 }
 0x24e   : > { %2333 = vmatprep.mubr.f32.mxu1 %v2110_v16  ;;  %v1867_v5 = vadd.f32 %v1866_v63, %v1760_v6  ;;  %v1764_v32 = vadd.f32 %v1763_v51, %v8874_v3  ;;  %v2113_v21 = vmax.f32 %v1865_v50, 0.0  ;;  %2929 = vrot.lane.b32.xlu1 %v8788_v52, %s7525_s25 }
 0x24f   : > { %v1765_v41 = vpop.f32.mrf.mxu0  ;;  %2334 = vmatmul.mubr.f32.gmra.mxu1 %v2109_v44 }
 0x250   : > { %v2114_v26 = vmax.f32 %v1867_v5, 0.0  ;;  %v1766_v46 = vadd.f32 %v1765_v41, %v8874_v3  ;;  %v1871_v29 = vadd.f32 %v1870_v38, %v1764_v32 }
 0x251   : > { %v1769_v60 = vpop.f32.mrf.mxu0  ;;  %3370 = vrot.lane.b32.xlu0 %v8842_v7, %s11185_s21 }
 0x252   : > { %2339 = vmatprep.mubr.f32.mxu1 %v2114_v26  ;;  %v1873_v13 = vadd.f32 %v1872_v61, %v1766_v46  ;;  %v1770_v8 = vadd.f32 %v1769_v60, %v8882_v24  ;;  %v2117_v36 = vmax.f32 %v1871_v29, 0.0  ;;  %2923 = vrot.lane.b32.xlu1 %v8790_v59, %s7525_s25 }
 0x253   : > { %v1771_v63 = vpop.f32.mrf.mxu0  ;;  %2340 = vmatmul.mubr.f32.gmra.mxu1 %v2113_v21 }
 0x254   : > { %v2118_v58 = vmax.f32 %v1873_v13, 0.0  ;;  %v1772_v19 = vadd.f32 %v1771_v63, %v8882_v24  ;;  %v1877_v25 = vadd.f32 %v1876_v45, %v1770_v8 }
 0x255   : > { %v1775_v57 = vpop.f32.mrf.mxu0  ;;  %3364 = vrot.lane.b32.xlu0 %v8798_v56, %s11185_s21 }
 0x256   : > { %2345 = vmatprep.mubr.f32.mxu1 %v2118_v58  ;;  %v1879_v38 = vadd.f32 %v1878_v18, %v1772_v19  ;;  %v1776_v27 = vadd.f32 %v1775_v57, %v8890_v54  ;;  %v2121_v35 = vmax.f32 %v1877_v25, 0.0  ;;  %2832 = vrot.lane.b32.xlu1 %v8796_v53, %s7522_s15 }
 0x257   : > { %v1777_v14 = vpop.f32.mrf.mxu0  ;;  %2346 = vmatmul.mubr.f32.gmra.mxu1 %v2117_v36 }
 0x258   : > { %v2122_v15 = vmax.f32 %v1879_v38, 0.0  ;;  %v1778_v11 = vadd.f32 %v1777_v14, %v8890_v54  ;;  %v1883_v0 = vadd.f32 %v1882_v22, %v1776_v27 }
 0x259   : > { %3358 = vrot.lane.b32.xlu0 %v8806_v48, %s11185_s21 }
 0x25a   : > { %2351 = vmatprep.mubr.f32.mxu1 %v2122_v15  ;;  %v1885_v10 = vadd.f32 %v1884_v42, %v1778_v11  ;;  %v2125_v61 = vmax.f32 %v1883_v0, 0.0 }
 0x25b   : > { %2352 = vmatmul.mubr.f32.gmra.mxu1 %v2121_v35 }
 0x25c   : > { %v2126_v39 = vmax.f32 %v1885_v10, 0.0 }
 0x25e   : > { %2357 = vmatprep.mubr.f32.mxu1 %v2126_v39 }
 0x25f   : > { %2358 = vmatmul.mubr.f32.gmra.mxu1 %v2125_v61 }
 0x26f   : > { %v8952_v40 = vpop.permute.xlu0 %2802 }
 0x272   : > { %v1953_v31 = vpop.f32.mrf.mxu1 }
 0x273   : > { %v1954_v37 = vadd.f32 %v1953_v31, %v8844_v23 }
 0x274   : > { %v1955_v33 = vpop.f32.mrf.mxu1 }
 0x275   : > { %v1956_v62 = vadd.f32 %v1955_v33, %v8844_v23 }
 0x276   : > { %v2060_v34 = vpop.f32.mrf.mxu0  ;;  %v1959_v49 = vpop.f32.mrf.mxu1 }
 0x277   : > { %v1960_v2 = vadd.f32 %v1959_v49, %v8850_v4  ;;  %v2061_v20 = vadd.f32 %v2060_v34, %v1954_v37 }
 0x278   : > { %v2062_v17 = vpop.f32.mrf.mxu0  ;;  %v1961_v1 = vpop.f32.mrf.mxu1 }
 0x279   : > { %v2063_v30 = vadd.f32 %v2062_v17, %v1956_v62  ;;  %v1962_v45 = vadd.f32 %v1961_v1, %v8850_v4  ;;  %v2103_v23 = vmax.f32 %v2061_v20, 0.0 }
 0x27a   : > { %v2066_v44 = vpop.f32.mrf.mxu0  ;;  %v1965_v7 = vpop.f32.mrf.mxu1 }
 0x27b   : > { %v2104_v16 = vmax.f32 %v2063_v30, 0.0  ;;  %v2067_v6 = vadd.f32 %v2066_v44, %v1960_v2  ;;  %v1966_v50 = vadd.f32 %v1965_v7, %v8858_v55 }
 0x27c   : > { %v2068_v51 = vpop.f32.mrf.mxu0  ;;  %v1967_v5 = vpop.f32.mrf.mxu1 }
 0x27d   : > { %v2069_v32 = vadd.f32 %v2068_v51, %v1962_v45  ;;  %2428 = vmatprep.mubr.f32.mxu0 %v2104_v16  ;;  %v1968_v56 = vadd.f32 %v1967_v5, %v8858_v55  ;;  %v2107_v41 = vmax.f32 %v2067_v6, 0.0  ;;  %v8956_v6 = vpop.permute.xlu0 %2705 }
 0x27e   : > { %v2072_v18 = vpop.f32.mrf.mxu0  ;;  %2429 = vmatmul.mubr.f32.vlgmr.msra.gmra.mxu0 %v2103_v23  ;;  %v1971_v4 = vpop.f32.mrf.mxu1 }
 0x27f   : > { %v2108_v21 = vmax.f32 %v2069_v32, 0.0  ;;  %v2073_v26 = vadd.f32 %v2072_v18, %v1966_v50  ;;  %v1972_v48 = vadd.f32 %v1971_v4, %v8866_v47 }
 0x280   : > { %v2074_v46 = vpop.f32.mrf.mxu0  ;;  %v1973_v29 = vpop.f32.mrf.mxu1 }
 0x281   : > { %v2075_v60 = vadd.f32 %v2074_v46, %v1968_v56  ;;  %2434 = vmatprep.mubr.f32.mxu0 %v2108_v21  ;;  %v2111_v13 = vmax.f32 %v2073_v26, 0.0  ;;  %v1974_v36 = vadd.f32 %v1973_v29, %v8866_v47  ;;  %v8960_v28 = vpop.permute.xlu0 %2699 }
 0x282   : > { %v2078_v8 = vpop.f32.mrf.mxu0  ;;  %2435 = vmatmul.mubr.f32.gmra.mxu0 %v2107_v41  ;;  %v1977_v63 = vpop.f32.mrf.mxu1 }
 0x283   : > { %v2112_v22 = vmax.f32 %v2075_v60, 0.0  ;;  %v1978_v55 = vadd.f32 %v1977_v63, %v8874_v3  ;;  %v2079_v58 = vadd.f32 %v2078_v8, %v1972_v48 }
 0x284   : > { %v2080_v19 = vpop.f32.mrf.mxu0  ;;  %v1979_v25 = vpop.f32.mrf.mxu1 }
 0x285   : > { %v2081_v57 = vadd.f32 %v2080_v19, %v1974_v36  ;;  %2440 = vmatprep.mubr.f32.mxu0 %v2112_v22  ;;  %v1980_v38 = vadd.f32 %v1979_v25, %v8874_v3  ;;  %v2115_v15 = vmax.f32 %v2079_v58, 0.0  ;;  %v8964_v59 = vpop.permute.xlu0 %2693 }
 0x286   : > { %v2084_v27 = vpop.f32.mrf.mxu0  ;;  %2441 = vmatmul.mubr.f32.gmra.mxu0 %v2111_v13  ;;  %v1983_v42 = vpop.f32.mrf.mxu1 }
 0x287   : > { %v2116_v14 = vmax.f32 %v2081_v57, 0.0  ;;  %v2085_v35 = vadd.f32 %v2084_v27, %v1978_v55  ;;  %v1984_v61 = vadd.f32 %v1983_v42, %v8882_v24 }
 0x288   : > { %v2086_v11 = vpop.f32.mrf.mxu0  ;;  %v1985_v0 = vpop.f32.mrf.mxu1 }
 0x289   : > { %v2087_v10 = vadd.f32 %v2086_v11, %v1980_v38  ;;  %2446 = vmatprep.mubr.f32.mxu0 %v2116_v14  ;;  %v2119_v47 = vmax.f32 %v2085_v35, 0.0  ;;  %v1986_v37 = vadd.f32 %v1985_v0, %v8882_v24  ;;  %v8968_v56 = vpop.permute.xlu0 %2687 }
 0x28a   : > { %v2090_v39 = vpop.f32.mrf.mxu0  ;;  %2447 = vmatmul.mubr.f32.gmra.mxu0 %v2115_v15  ;;  %v1989_v31 = vpop.f32.mrf.mxu1 }
 0x28b   : > { %v2120_v3 = vmax.f32 %v2087_v10, 0.0  ;;  %v1990_v33 = vadd.f32 %v1989_v31, %v8890_v54  ;;  %v2091_v34 = vadd.f32 %v2090_v39, %v1984_v61 }
 0x28c   : > { %v2092_v49 = vpop.f32.mrf.mxu0  ;;  %v1991_v62 = vpop.f32.mrf.mxu1 }
 0x28d   : > { %v2093_v2 = vadd.f32 %v2092_v49, %v1986_v37  ;;  %2452 = vmatprep.mubr.f32.mxu0 %v2120_v3  ;;  %v1992_v20 = vadd.f32 %v1991_v62, %v8890_v54  ;;  %v2123_v45 = vmax.f32 %v2091_v34, 0.0  ;;  %v8954_v54 = vpop.permute.xlu1 %2796  ;;  %v8976_v60 = vpop.permute.xlu0 %2681 }
 0x28e   : > { %v2096_v17 = vpop.f32.mrf.mxu0  ;;  %2453 = vmatmul.mubr.f32.gmra.mxu0 %v2119_v47 }
 0x28f   : > { %v2124_v1 = vmax.f32 %v2093_v2, 0.0  ;;  %v2097_v30 = vadd.f32 %v2096_v17, %v1990_v33 }
 0x290   : > { %v2098_v44 = vpop.f32.mrf.mxu0 }
 0x291   : > { %v2099_v7 = vadd.f32 %v2098_v44, %v1992_v20  ;;  %2458 = vmatprep.mubr.f32.mxu0 %v2124_v1  ;;  %v2127_v24 = vmax.f32 %v2097_v30, 0.0  ;;  %v8958_v23 = vpop.permute.xlu1 %3238  ;;  %v8993_v19 = vpop.permute.xlu0 %2675 }
 0x292   : > { %2459 = vmatmul.mubr.f32.gmra.mxu0 %v2123_v45 }
 0x293   : > { %v2128_v16 = vmax.f32 %v2099_v7, 0.0 }
 0x295   : > { %2464 = vmatprep.mubr.f32.mxu0 %v2128_v16  ;;  %v8962_v5 = vpop.permute.xlu1 %3232  ;;  %v9020_v10 = vpop.permute.xlu0 %2669 }
 0x296   : > { %2465 = vmatmul.mubr.f32.gmra.mxu0 %v2127_v24 }
 0x299   : > { %v8966_v32 = vpop.permute.xlu1 %3226  ;;  %v9041_v49 = vpop.permute.xlu0 %2579 }
 0x29d   : > { %v8974_v29 = vpop.permute.xlu1 %3220  ;;  %v9067_v24 = vpop.permute.xlu0 %2573 }
 0x2a1   : > { %v8991_v58 = vpop.permute.xlu1 %3214 }
 0x2a5   : > { %v9018_v0 = vpop.permute.xlu1 %3208 }
 0x2a9   : > { %v9039_v34 = vpop.permute.xlu1 %3118 }
 0x2ad   : > { %v9065_v7 = vpop.permute.xlu1 %3112 }
 0x2b1   : > { %v9077_v16 = vpop.permute.xlu1 %3106 }
 0x307   : > { %v2323_v12 = vpop.f32.mrf.mxu1 }
 0x309   : > { %v2325_v43 = vpop.f32.mrf.mxu1 }
 0x30b   : > { %v2329_v50 = vpop.f32.mrf.mxu1 }
 0x30d   : > { %v2331_v52 = vpop.f32.mrf.mxu1 }
 0x30f   : > { %v2335_v51 = vpop.f32.mrf.mxu1 }
 0x311   : > { %v2337_v53 = vpop.f32.mrf.mxu1 }
 0x313   : > { %v2341_v41 = vpop.f32.mrf.mxu1 }
 0x315   : > { %v2343_v26 = vpop.f32.mrf.mxu1 }
 0x317   : > { %v2347_v63 = vpop.f32.mrf.mxu1 }
 0x319   : > { %v2349_v25 = vpop.f32.mrf.mxu1 }
 0x31b   : > { %v2353_v35 = vpop.f32.mrf.mxu1 }
 0x31d   : > { %v2355_v39 = vpop.f32.mrf.mxu1 }
 0x31f   : > { %v2359_v62 = vpop.f32.mrf.mxu1 }
 0x321   : > { %v2361_v30 = vpop.f32.mrf.mxu1 }
 0x33e   : > { %v2430_v18 = vpop.f32.mrf.mxu0 }
 0x33f   : > { %v2431_v4 = vadd.f32 %v2430_v18, %v2323_v12  ;;  %v9079_v12 = vpop.permute.xlu0 %2567 }
 0x340   : > { %v2432_v21 = vpop.f32.mrf.mxu0  ;;  %11187 = vst [vmem:[#allocation4_spill] sm:$0xff] %v9079_v12 }
 0x341   : > { %2487 = vst [vmem:[#allocation3 + $0x8] sm:$0xff] %v2431_v4  ;;  %3022 = vst [vmem:[#allocation2 + $0x380] sm:$0xff] %v2431_v4  ;;  %v8970_v46 = vadd.f32 %v2432_v21, %v2325_v43  ;;  %2798 = vrot.lane.b32.xlu1 %v2431_v4, %s7522_s15  ;;  %2671 = vrot.lane.b32.xlu0 %v2431_v4, %s11183_s17  ;;  %v9089_v43 = vpop.permute.xlu1 %3100 }
 0x342   : > { %v2436_v13 = vpop.f32.mrf.mxu0 }
 0x343   : > { %2488 = vst [vmem:[#allocation3 + $0x10] sm:$0xff] %v8970_v46  ;;  %3023 = vst [vmem:[#allocation2 + $0x388] sm:$0xff] %v8970_v46  ;;  %v8980_v48 = vadd.f32 %v2436_v13, %v2329_v50  ;;  %v9091_v50 = vpop.permute.xlu0 %2561 }
 0x344   : > { %v2438_v8 = vpop.f32.mrf.mxu0  ;;  %11188 = vst [vmem:[#allocation5_spill] sm:$0xff] %v9091_v50 }
 0x345   : > { %3024 = vst [vmem:[#allocation2 + $0x3a0] sm:$0xff] %v8980_v48  ;;  %v8983_v22 = vadd.f32 %v2438_v8, %v2331_v52  ;;  %3204 = vrot.lane.b32.xlu1 %v2431_v4, %s11181_s22  ;;  %2545 = vrot.lane.b32.xlu0 %v2431_v4, %s7524_s18  ;;  %v9097_v52 = vpop.permute.xlu1 %3094 }
 0x346   : > { %v2442_v36 = vpop.f32.mrf.mxu0 }
 0x347   : > { %2490 = vst [vmem:[#allocation3 + $0x30] sm:$0xff] %v8983_v22  ;;  %3025 = vst [vmem:[#allocation2 + $0x3a8] sm:$0xff] %v8983_v22  ;;  %v8989_v55 = vadd.f32 %v2442_v36, %v2335_v51  ;;  %v9099_v51 = vpop.permute.xlu0 %2555 }
 0x348   : > { %v2444_v57 = vpop.f32.mrf.mxu0  ;;  %4132 = vst.msk [vmem:[#allocation3 + $0x30] sm:$0xff] %vm2479_vm12, %v11169_v9  ;;  %11189 = vst [vmem:[#allocation6_spill] sm:$0xff] %v9099_v51 }
 0x349   : > { %3026 = vst [vmem:[#allocation2 + $0x3c0] sm:$0xff] %v8989_v55  ;;  %v8998_v38 = vadd.f32 %v2444_v57, %v2337_v53  ;;  %3078 = vrot.lane.b32.xlu1 %v2431_v4, %s7514_s23  ;;  %3456 = vrot.lane.b32.xlu0 %v2431_v4, %s7511_s20  ;;  %v9109_v53 = vpop.permute.xlu1 %3088 }
 0x34a   : > { %v2448_v27 = vpop.f32.mrf.mxu0  ;;  %v9002_v42 = vld [vmem:[#allocation3 + $0x10] sm:$0xff] }
 0x34b   : > { %2492 = vst [vmem:[#allocation3 + $0x50] sm:$0xff] %v8998_v38  ;;  %3027 = vst [vmem:[#allocation2 + $0x3c8] sm:$0xff] %v8998_v38  ;;  %v9006_v14 = vadd.f32 %v2448_v27, %v2341_v41  ;;  %v9111_v41 = vpop.permute.xlu0 %2549 }
 0x34c   : > { %4131 = vst.msk [vmem:[#allocation3 + $0x10] sm:$0xff] %vm2479_vm12, %v11169_v9  ;;  %v2450_v15 = vpop.f32.mrf.mxu0  ;;  %4133 = vst.msk [vmem:[#allocation3 + $0x50] sm:$0xff] %vm2479_vm12, %v11169_v9 }
 0x34d   : > { %3028 = vst [vmem:[#allocation2 + $0x3e0] sm:$0xff] %v9006_v14  ;;  %v9013_v11 = vadd.f32 %v2450_v15, %v2343_v26  ;;  %2925 = vrot.lane.b32.xlu1 %v2431_v4, %s7525_s25  ;;  %2800 = vrot.lane.b32.xlu0 %v8970_v46, %s7522_s15  ;;  %11190 = vst [vmem:[#allocation7_spill] sm:$0xff] %v9111_v41  ;;  %v9117_v18 = vpop.permute.xlu1 %3082 }
 0x34e   : > { %v2454_v47 = vpop.f32.mrf.mxu0 }
 0x34f   : > { %2494 = vst [vmem:[#allocation3 + $0x70] sm:$0xff] %v9013_v11  ;;  %3029 = vst [vmem:[#allocation2 + $0x3e8] sm:$0xff] %v9013_v11  ;;  %v9024_v61 = vadd.f32 %v2454_v47, %v2347_v63  ;;  %v2544_v4 = vpop.permute.xlu0 %2543 }
 0x350   : > { %v2456_v31 = vpop.f32.mrf.mxu0  ;;  %4134 = vst.msk [vmem:[#allocation3 + $0x70] sm:$0xff] %vm2479_vm12, %v11169_v9 }
 0x351   : > { %3030 = vst [vmem:[#allocation2 + $0x400] sm:$0xff] %v9024_v61  ;;  %v9029_v3 = vadd.f32 %v2456_v31, %v2349_v25  ;;  %3206 = vrot.lane.b32.xlu0 %v8970_v46, %s11181_s22  ;;  %2673 = vrot.lane.b32.xlu1 %v8970_v46, %s11183_s17  ;;  %v9127_v21 = vpop.permute.xlu1 %3490 }
 0x352   : > { %v2460_v37 = vpop.f32.mrf.mxu0 }
 0x353   : > { %2496 = vst [vmem:[#allocation3 + $0x90] sm:$0xff] %v9029_v3  ;;  %3031 = vst [vmem:[#allocation2 + $0x408] sm:$0xff] %v9029_v3  ;;  %v9037_v33 = vadd.f32 %v2460_v37, %v2353_v35  ;;  %v9129_v26 = vpop.permute.xlu0 %3496 }
 0x354   : > { %v2462_v2 = vpop.f32.mrf.mxu0  ;;  %4135 = vst.msk [vmem:[#allocation3 + $0x90] sm:$0xff] %vm2479_vm12, %v11169_v9  ;;  %11191 = vst [vmem:[#allocation8_spill] sm:$0xff] %v9129_v26 }
 0x355   : > { %3032 = vst [vmem:[#allocation2 + $0x420] sm:$0xff] %v9037_v33  ;;  %v9046_v20 = vadd.f32 %v2462_v2, %v2355_v39  ;;  %3080 = vrot.lane.b32.xlu0 %v8970_v46, %s7514_s23  ;;  %2547 = vrot.lane.b32.xlu1 %v8970_v46, %s7524_s18 }
 0x356   : > { %v2466_v17 = vpop.f32.mrf.mxu0 }
 0x357   : > { %2498 = vst [vmem:[#allocation3 + $0xb0] sm:$0xff] %v9046_v20  ;;  %3033 = vst [vmem:[#allocation2 + $0x428] sm:$0xff] %v9046_v20  ;;  %v9054_v1 = vadd.f32 %v2466_v17, %v2359_v62  ;;  %v9137_v13 = vpop.permute.xlu0 %3484 }
 0x358   : > { %v2468_v45 = vpop.f32.mrf.mxu0  ;;  %4136 = vst.msk [vmem:[#allocation3 + $0xb0] sm:$0xff] %vm2479_vm12, %v11169_v9 }
 0x359   : > { %3034 = vst [vmem:[#allocation2 + $0x440] sm:$0xff] %v9054_v1  ;;  %v9059_v44 = vadd.f32 %v2468_v45, %v2361_v30  ;;  %2927 = vrot.lane.b32.xlu0 %v8970_v46, %s7525_s25  ;;  %3458 = vrot.lane.b32.xlu1 %v8970_v46, %s7511_s20  ;;  %v9135_v46 = vpop.permute.xlu1 %2959 }
 0x35a   : > { %11192 = vst [vmem:[#allocation9_spill] sm:$0xff] %v9135_v46 }
 0x35b   : > { %2500 = vst [vmem:[#allocation3 + $0xd0] sm:$0xff] %v9059_v44  ;;  %3035 = vst [vmem:[#allocation2 + $0x448] sm:$0xff] %v9059_v44  ;;  %v9149_v63 = vpop.permute.xlu0 %3478 }
 0x35c   : > { %4137 = vst.msk [vmem:[#allocation3 + $0xd0] sm:$0xff] %vm2479_vm12, %v11169_v9 }
 0x35d   : > { %3210 = vrot.lane.b32.xlu1 %v8980_v48, %s11181_s22  ;;  %2804 = vrot.lane.b32.xlu0 %v8980_v48, %s7522_s15  ;;  %v9147_v8 = vpop.permute.xlu1 %2953 }
 0x35e   : > { %11193 = vst [vmem:[#allocation10_spill] sm:$0xff] %v9147_v8 }
 0x35f   : > { %v9157_v25 = vpop.permute.xlu0 %3472 }
 0x361   : > { %3084 = vrot.lane.b32.xlu1 %v8980_v48, %s7514_s23  ;;  %2677 = vrot.lane.b32.xlu0 %v8980_v48, %s11183_s17  ;;  %v9155_v36 = vpop.permute.xlu1 %2947 }
 0x362   : > { %11194 = vst [vmem:[#allocation11_spill] sm:$0xff] %v9155_v36 }
 0x363   : > { %v9169_v27 = vpop.permute.xlu0 %3466 }
 0x365   : > { %2931 = vrot.lane.b32.xlu1 %v8980_v48, %s7525_s25  ;;  %2551 = vrot.lane.b32.xlu0 %v8980_v48, %s7524_s18  ;;  %v9167_v57 = vpop.permute.xlu1 %2941 }
 0x366   : > { %11195 = vst [vmem:[#allocation12_spill] sm:$0xff] %v9167_v57 }
 0x367   : > { %v3461_v15 = vpop.permute.xlu0 %3460 }
 0x369   : > { %3462 = vrot.lane.b32.xlu0 %v8980_v48, %s7511_s20  ;;  %2806 = vrot.lane.b32.xlu1 %v8983_v22, %s7522_s15  ;;  %v9175_v35 = vpop.permute.xlu1 %2935 }
 0x36a   : > { %11196 = vst [vmem:[#allocation13_spill] sm:$0xff] %v9175_v35 }
 0x36b   : > { %v9187_v39 = vpop.permute.xlu0 %3370 }
 0x36c   : > { %11197 = vst [vmem:[#allocation14_spill] sm:$0xff] %v9187_v39 }
 0x36d   : > { %3212 = vrot.lane.b32.xlu0 %v8983_v22, %s11181_s22  ;;  %2679 = vrot.lane.b32.xlu1 %v8983_v22, %s11183_s17  ;;  %v9185_v47 = vpop.permute.xlu1 %2929 }
 0x36f   : > { %v9193_v37 = vpop.permute.xlu0 %3364 }
 0x371   : > { %3086 = vrot.lane.b32.xlu0 %v8983_v22, %s7514_s23  ;;  %2553 = vrot.lane.b32.xlu1 %v8983_v22, %s7524_s18  ;;  %v2924_v31 = vpop.permute.xlu1 %2923 }
 0x373   : > { %v9205_v2 = vpop.permute.xlu0 %3358 }
 0x375   : > { %2933 = vrot.lane.b32.xlu0 %v8983_v22, %s7525_s25  ;;  %3464 = vrot.lane.b32.xlu1 %v8983_v22, %s7511_s20  ;;  %v9203_v62 = vpop.permute.xlu1 %2832 }
 0x376   : > { %11198 = vst [vmem:[#allocation15_spill] sm:$0xff] %v9203_v62 }
 0x379   : > { %3216 = vrot.lane.b32.xlu1 %v8989_v55, %s11181_s22  ;;  %2683 = vrot.lane.b32.xlu0 %v8989_v55, %s11183_s17 }
 0x37d   : > { %3090 = vrot.lane.b32.xlu1 %v8989_v55, %s7514_s23  ;;  %2557 = vrot.lane.b32.xlu0 %v8989_v55, %s7524_s18 }
 0x381   : > { %2937 = vrot.lane.b32.xlu1 %v8989_v55, %s7525_s25  ;;  %3468 = vrot.lane.b32.xlu0 %v8989_v55, %s7511_s20 }
 0x385   : > { %3218 = vrot.lane.b32.xlu0 %v8998_v38, %s11181_s22  ;;  %2685 = vrot.lane.b32.xlu1 %v8998_v38, %s11183_s17 }
 0x389   : > { %3092 = vrot.lane.b32.xlu0 %v8998_v38, %s7514_s23  ;;  %2559 = vrot.lane.b32.xlu1 %v8998_v38, %s7524_s18 }
 0x38d   : > { %2939 = vrot.lane.b32.xlu0 %v8998_v38, %s7525_s25  ;;  %3470 = vrot.lane.b32.xlu1 %v8998_v38, %s7511_s20 }
 0x391   : > { %3222 = vrot.lane.b32.xlu1 %v9006_v14, %s11181_s22  ;;  %2689 = vrot.lane.b32.xlu0 %v9006_v14, %s11183_s17 }
 0x395   : > { %3096 = vrot.lane.b32.xlu1 %v9006_v14, %s7514_s23  ;;  %2563 = vrot.lane.b32.xlu0 %v9006_v14, %s7524_s18 }
 0x399   : > { %2943 = vrot.lane.b32.xlu1 %v9006_v14, %s7525_s25  ;;  %3474 = vrot.lane.b32.xlu0 %v9006_v14, %s7511_s20 }
 0x39d   : > { %3224 = vrot.lane.b32.xlu0 %v9013_v11, %s11181_s22  ;;  %2691 = vrot.lane.b32.xlu1 %v9013_v11, %s11183_s17 }
 0x3a1   : > { %3098 = vrot.lane.b32.xlu0 %v9013_v11, %s7514_s23  ;;  %2565 = vrot.lane.b32.xlu1 %v9013_v11, %s7524_s18 }
 0x3a5   : > { %2945 = vrot.lane.b32.xlu0 %v9013_v11, %s7525_s25  ;;  %3476 = vrot.lane.b32.xlu1 %v9013_v11, %s7511_s20 }
 0x3a9   : > { %3228 = vrot.lane.b32.xlu1 %v9024_v61, %s11181_s22  ;;  %2695 = vrot.lane.b32.xlu0 %v9024_v61, %s11183_s17 }
 0x3ad   : > { %3102 = vrot.lane.b32.xlu1 %v9024_v61, %s7514_s23  ;;  %2569 = vrot.lane.b32.xlu0 %v9024_v61, %s7524_s18 }
 0x3b1   : > { %2949 = vrot.lane.b32.xlu1 %v9024_v61, %s7525_s25  ;;  %3480 = vrot.lane.b32.xlu0 %v9024_v61, %s7511_s20 }
 0x3b3   : > { %v9211_v17 = vpop.permute.xlu1 %2798  ;;  %v9213_v30 = vpop.permute.xlu0 %2671 }
 0x3b5   : > { %3354 = vrot.lane.b32.xlu0 %v9024_v61, %s11185_s21  ;;  %2697 = vrot.lane.b32.xlu1 %v9029_v3, %s11183_s17 }
 0x3b7   : > { %v9219_v45 = vpop.permute.xlu1 %3204  ;;  %v2546_v9 = vpop.permute.xlu0 %2545 }
 0x3b8   : > { %v2585_v62 = vsel %vm2479_vm12, %v2544_v4, %v2546_v9 }
 0x3b9   : > { %2613 = vst [vmem:[#allocation2] sm:$0xff] %v2585_v62  ;;  %3230 = vrot.lane.b32.xlu0 %v9029_v3, %s11181_s22  ;;  %2571 = vrot.lane.b32.xlu1 %v9029_v3, %s7524_s18 }
 0x3bb   : > { %v9226_v39 = vpop.permute.xlu1 %3078  ;;  %v3457_v35 = vpop.permute.xlu0 %3456 }
 0x3bc   : > { %11199 = vst [vmem:[#allocation16_spill] sm:$0xff] %v9226_v39 }
 0x3bd   : > { %3104 = vrot.lane.b32.xlu0 %v9029_v3, %s7514_s23  ;;  %3482 = vrot.lane.b32.xlu1 %v9029_v3, %s7511_s20 }
 0x3bf   : > { %v2926_v57 = vpop.permute.xlu1 %2925  ;;  %v2801_v4 = vpop.permute.xlu0 %2800 }
 0x3c0   : > { %v2966_v62 = vsel %vm2965_vm13, %v2924_v31, %v2926_v57  ;;  %v2840_v36 = vsel %vm2838_vm14, %v9211_v17, %v2801_v4 }
 0x3c1   : > { %2994 = vst [vmem:[#allocation2 + $0x2a0] sm:$0xff] %v2966_v62  ;;  %2951 = vrot.lane.b32.xlu0 %v9029_v3, %s7525_s25  ;;  %3356 = vrot.lane.b32.xlu1 %v9029_v3, %s11185_s21 }
 0x3c3   : > { %v9239_v8 = vpop.permute.xlu0 %3206  ;;  %v2674_v46 = vpop.permute.xlu1 %2673 }
 0x3c4   : > { %v9244_v26 = vsel %vm643_vm3, %v9239_v8, %v9018_v0  ;;  %v9248_v31 = vsel %vm2711_vm15, %v9213_v30, %v2674_v46 }
 0x3c5   : > { %3234 = vrot.lane.b32.xlu1 %v9037_v33, %s11181_s22  ;;  %2701 = vrot.lane.b32.xlu0 %v9037_v33, %s11183_s17 }
 0x3c7   : > { %v9254_v4 = vpop.permute.xlu0 %3080  ;;  %v2548_v62 = vpop.permute.xlu1 %2547 }
 0x3c8   : > { %11200 = vst [vmem:[#allocation17_spill] sm:$0xff] %v9254_v4  ;;  %v9259_v41 = vsel %vm546_vm4, %v9254_v4, %v9117_v18  ;;  %v9262_v0 = vsel %vm2479_vm12, %v2546_v9, %v2548_v62 }
 0x3c9   : > { %11201 = vst [vmem:[#allocation18_spill] sm:$0xff] %v9259_v41  ;;  %11202 = vst [vmem:[#allocation19_spill] sm:$0xff] %v9262_v0  ;;  %3108 = vrot.lane.b32.xlu1 %v9037_v33, %s7514_s23  ;;  %2575 = vrot.lane.b32.xlu0 %v9037_v33, %s7524_s18  ;;  %v2839_v0 = vsel %vm2838_vm14, %v8954_v54, %v9211_v17 }
 0x3cb   : > { %v2928_v46 = vpop.permute.xlu0 %2927  ;;  %v3459_v51 = vpop.permute.xlu1 %3458 }
 0x3cc   : > { %v2967_v39 = vsel %vm2965_vm13, %v2926_v57, %v2928_v46  ;;  %v3498_v50 = vsel %vm837_vm1, %v3457_v35, %v3459_v51  ;;  %v3499_v12 = vsel %vm837_vm1, %v3459_v51, %v3461_v15 }
 0x3cd   : > { %2995 = vst [vmem:[#allocation2 + $0x2a8] sm:$0xff] %v2967_v39  ;;  %3526 = vst [vmem:[#allocation2 + $0x700] sm:$0xff] %v3498_v50  ;;  %2955 = vrot.lane.b32.xlu1 %v9037_v33, %s7525_s25  ;;  %3486 = vrot.lane.b32.xlu0 %v9037_v33, %s7511_s20 }
 0x3ce   : > { %3527 = vst [vmem:[#allocation2 + $0x708] sm:$0xff] %v3499_v12 }
 0x3cf   : > { %v9275_v9 = vpop.permute.xlu1 %3210  ;;  %v2805_v18 = vpop.permute.xlu0 %2804 }
 0x3d1   : > { %2828 = vrot.lane.b32.xlu1 %v9037_v33, %s7522_s15  ;;  %3360 = vrot.lane.b32.xlu0 %v9037_v33, %s11185_s21 }
 0x3d3   : > { %v9281_v57 = vpop.permute.xlu1 %3084  ;;  %v9283_v51 = vpop.permute.xlu0 %2677 }
 0x3d4   : > { %11203 = vst [vmem:[#allocation20_spill] sm:$0xff] %v9281_v57 }
 0x3d5   : > { %3236 = vrot.lane.b32.xlu0 %v9046_v20, %s11181_s22  ;;  %2703 = vrot.lane.b32.xlu1 %v9046_v20, %s11183_s17 }
 0x3d7   : > { %v2932_v12 = vpop.permute.xlu1 %2931  ;;  %v9289_v50 = vpop.permute.xlu0 %2551 }
 0x3d8   : > { %11204 = vst [vmem:[#allocation21_spill] sm:$0xff] %v9289_v50  ;;  %v2968_v35 = vsel %vm2965_vm13, %v9185_v47, %v2932_v12  ;;  %v2841_v47 = vsel %vm2838_vm14, %v8952_v40, %v2805_v18 }
 0x3d9   : > { %2996 = vst [vmem:[#allocation2 + $0x2c0] sm:$0xff] %v2968_v35  ;;  %3110 = vrot.lane.b32.xlu0 %v9046_v20, %s7514_s23  ;;  %2577 = vrot.lane.b32.xlu1 %v9046_v20, %s7524_s18 }
 0x3db   : > { %v3463_v33 = vpop.permute.xlu0 %3462  ;;  %v2807_v15 = vpop.permute.xlu1 %2806 }
 0x3dc   : > { %v2842_v39 = vsel %vm2838_vm14, %v2805_v18, %v2807_v15 }
 0x3dd   : > { %3488 = vrot.lane.b32.xlu0 %v9046_v20, %s7511_s20  ;;  %3362 = vrot.lane.b32.xlu1 %v9046_v20, %s11185_s21 }
 0x3de   : > { %3757 = vmatprep.subr.mxu1 %v2842_v39 }
 0x3df   : > { %v9304_v62 = vpop.permute.xlu0 %3212  ;;  %v2680_v46 = vpop.permute.xlu1 %2679  ;;  %3758 = vmatpush1.msra.mxu1 %v2841_v47 }
 0x3e0   : > { %v9309_v35 = vsel %vm643_vm3, %v9304_v62, %v8991_v58  ;;  %v9313_v15 = vsel %vm2711_vm15, %v9283_v51, %v2680_v46  ;;  %3759 = vmatprep.subr.mxu1 %v2840_v36 }
 0x3e1   : > { %2957 = vrot.lane.b32.xlu0 %v9046_v20, %s7525_s25  ;;  %3114 = vrot.lane.b32.xlu1 %v9054_v1, %s7514_s23 }
 0x3e2   : > { %3760 = vmatpush1.msra.mxu1 %v2839_v0 }
 0x3e3   : > { %v9322_v40 = vpop.permute.xlu0 %3086  ;;  %v2554_v58 = vpop.permute.xlu1 %2553 }
 0x3e4   : > { %11205 = vst [vmem:[#allocation22_spill] sm:$0xff] %v9322_v40  ;;  %v9327_v18 = vsel %vm546_vm4, %v9322_v40, %v9109_v53  ;;  %v9331_v36 = vsel %vm2479_vm12, %v9289_v50, %v2554_v58  ;;  %v7455_v58 = vld [vmem:[#allocation3 + $0x78] sm:$0xff]  ;;  %v3698_v40 = vld [vmem:[%s8192_s19 + $0x20] sm:$0xff] }
 0x3e5   : > { %11206 = vst [vmem:[#allocation23_spill] sm:$0xff] %v9327_v18  ;;  %11207 = vst [vmem:[#allocation24_spill] sm:$0xff] %v9331_v36  ;;  %2830 = vrot.lane.b32.xlu0 %v9046_v20, %s7522_s15  ;;  %3492 = vrot.lane.b32.xlu1 %v9054_v1, %s7511_s20 }
 0x3e7   : > { %v2934_v54 = vpop.permute.xlu0 %2933  ;;  %v3465_v17 = vpop.permute.xlu1 %3464 }
 0x3e8   : > { %v2969_v0 = vsel %vm2965_vm13, %v2932_v12, %v2934_v54  ;;  %v9339_v39 = vsel %vm837_vm1, %v3463_v33, %v3465_v17  ;;  %v9343_v53 = vsel %vm837_vm1, %v3465_v17, %v9169_v27  ;;  %v2769_v54 = vld [vmem:[#allocation3 + $0xa0] sm:$0xff] }
 0x3e9   : > { %11208 = vst [vmem:[#allocation25_spill] sm:$0xff] %v9339_v39  ;;  %11209 = vst [vmem:[#allocation26_spill] sm:$0xff] %v9343_v53  ;;  %2961 = vrot.lane.b32.xlu1 %v9054_v1, %s7525_s25  ;;  %2707 = vrot.lane.b32.xlu0 %v9054_v1, %s11183_s17 }
 0x3ea   : > { %2997 = vst [vmem:[#allocation2 + $0x2c8] sm:$0xff] %v2969_v0 }
 0x3eb   : > { %v9349_v20 = vpop.permute.xlu1 %3216  ;;  %v9351_v47 = vpop.permute.xlu0 %2683 }
 0x3ed   : > { %2834 = vrot.lane.b32.xlu1 %v9054_v1, %s7522_s15  ;;  %2581 = vrot.lane.b32.xlu0 %v9054_v1, %s7524_s18 }
 0x3ef   : > { %v9357_v12 = vpop.permute.xlu1 %3090  ;;  %v9359_v27 = vpop.permute.xlu0 %2557 }
 0x3f0   : > { %11210 = vst [vmem:[#allocation27_spill] sm:$0xff] %v9357_v12  ;;  %11211 = vst [vmem:[#allocation28_spill] sm:$0xff] %v9359_v27 }
 0x3f1   : > { %3366 = vrot.lane.b32.xlu0 %v9054_v1, %s11185_s21  ;;  %2709 = vrot.lane.b32.xlu1 %v9059_v44, %s11183_s17 }
 0x3f3   : > { %v9365_v33 = vpop.permute.xlu1 %2937  ;;  %v3469_v46 = vpop.permute.xlu0 %3468 }
 0x3f4   : > { %11212 = vst [vmem:[#allocation29_spill] sm:$0xff] %v9365_v33 }
 0x3f5   : > { %3352 = vrot.lane.b32.xlu0 %v7455_v58, %s11185_s21  ;;  %3350 = vrot.lane.b32.xlu1 %v9013_v11, %s11185_s21 }
 0x3f7   : > { %v9370_v17 = vpop.permute.xlu0 %3218  ;;  %v2686_v0 = vpop.permute.xlu1 %2685 }
 0x3f8   : > { %v9375_v39 = vsel %vm643_vm3, %v9370_v17, %v8974_v29  ;;  %v9379_v53 = vsel %vm2711_vm15, %v9351_v47, %v2686_v0 }
 0x3f9   : > { %3348 = vrot.lane.b32.xlu0 %v9006_v14, %s11185_s21  ;;  %2826 = vrot.lane.b32.xlu1 %v2769_v54, %s7522_s15 }
 0x3fb   : > { %v9384_v58 = vpop.permute.xlu0 %3092  ;;  %v2560_v36 = vpop.permute.xlu1 %2559 }
 0x3fc   : > { %11213 = vst [vmem:[#allocation30_spill] sm:$0xff] %v9384_v58  ;;  %v9389_v50 = vsel %vm546_vm4, %v9384_v58, %v9097_v52  ;;  %v9393_v29 = vsel %vm2479_vm12, %v9359_v27, %v2560_v36 }
 0x3fd   : > { %11214 = vst [vmem:[#allocation31_spill] sm:$0xff] %v9389_v50  ;;  %11215 = vst [vmem:[#allocation32_spill] sm:$0xff] %v9393_v29  ;;  %3116 = vrot.lane.b32.xlu0 %v9059_v44, %s7514_s23  ;;  %2822 = vrot.lane.b32.xlu1 %v9024_v61, %s7522_s15  ;;  %v3296_v61 = vld [vmem:[#allocation3 + $0x58] sm:$0xff]  ;;  %v3699_v50 = vld [vmem:[%s8192_s19 + $0x28] sm:$0xff] }
 0x3ff   : > { %v2940_v0 = vpop.permute.xlu0 %2939  ;;  %v3471_v54 = vpop.permute.xlu1 %3470 }
 0x400   : > { %v9401_v41 = vsel %vm2965_vm13, %v9365_v33, %v2940_v0  ;;  %v9404_v4 = vsel %vm837_vm1, %v3469_v46, %v3471_v54  ;;  %v9408_v52 = vsel %vm837_vm1, %v3471_v54, %v9157_v25  ;;  %v2766_v46 = vld [vmem:[#allocation3 + $0x80] sm:$0xff] }
 0x401   : > { %11216 = vst [vmem:[#allocation33_spill] sm:$0xff] %v9401_v41  ;;  %11217 = vst [vmem:[#allocation34_spill] sm:$0xff] %v9404_v4  ;;  %2824 = vrot.lane.b32.xlu0 %v9029_v3, %s7522_s15  ;;  %2583 = vrot.lane.b32.xlu1 %v9059_v44, %s7524_s18  ;;  %s11282_s18 = smov 126  }
 0x402   : > { %11218 = vst [vmem:[#allocation35_spill] sm:$0xff] %v9408_v52 }
 0x403   : > { %v9414_v36 = vpop.permute.xlu1 %3222  ;;  %v9416_v29 = vpop.permute.xlu0 %2689 }
 0x405   : > { %3346 = vrot.lane.b32.xlu0 %v3296_v61, %s11185_s21  ;;  %3344 = vrot.lane.b32.xlu1 %v8998_v38, %s11185_s21  ;;  %v3293_v61 = vld [vmem:[#allocation3 + $0x38] sm:$0xff] }
 0x407   : > { %v9421_v0 = vpop.permute.xlu1 %3096  ;;  %v9423_v25 = vpop.permute.xlu0 %2563 }
 0x408   : > { %11219 = vst [vmem:[#allocation36_spill] sm:$0xff] %v9423_v25 }
 0x409   : > { %3342 = vrot.lane.b32.xlu0 %v8989_v55, %s11185_s21  ;;  %2820 = vrot.lane.b32.xlu1 %v2766_v46, %s7522_s15 }
 0x40b   : > { %v9428_v3 = vpop.permute.xlu1 %2943  ;;  %v3475_v54 = vpop.permute.xlu0 %3474 }
 0x40c   : > { %11220 = vst [vmem:[#allocation37_spill] sm:$0xff] %v9428_v3 }
 0x40d   : > { %2818 = vrot.lane.b32.xlu0 %v9013_v11, %s7522_s15  ;;  %2816 = vrot.lane.b32.xlu1 %v9006_v14, %s7522_s15 }
 0x40f   : > { %v9434_v41 = vpop.permute.xlu0 %3224  ;;  %v2692_v33 = vpop.permute.xlu1 %2691 }
 0x410   : > { %v9439_v4 = vsel %vm643_vm3, %v9434_v41, %v8966_v32  ;;  %v9443_v46 = vsel %vm2711_vm15, %v9416_v29, %v2692_v33  ;;  %v2763_v33 = vld [vmem:[#allocation3 + $0x60] sm:$0xff] }
 0x411   : > { %3340 = vrot.lane.b32.xlu0 %v3293_v61, %s11185_s21  ;;  %3494 = vrot.lane.b32.xlu1 %v9059_v44, %s7511_s20  ;;  %s9490_s20 = smul.u32 224, %s11295_s28 }
 0x413   : > { %v9448_v11 = vpop.permute.xlu0 %3098  ;;  %v2566_v14 = vpop.permute.xlu1 %2565  ;;  %s9500_s24 = scalar_lea.vmem %s11161_s2, %s9490_s20  ;;  %s10168_s17 = scalar_lea.vmem %s11162_s3, %s9490_s20 }
 0x414   : > { %v9453_v52 = vsel %vm546_vm4, %v9448_v11, %v9089_v43  ;;  %v9457_v32 = vsel %vm2479_vm12, %v9423_v25, %v2566_v14  ;;  %s10650_s16 = scalar_lea.vmem %s11163_s4, %s9490_s20 }
 0x415   : > { %11221 = vst [vmem:[#allocation38_spill] sm:$0xff] %v9457_v32  ;;  %2963 = vrot.lane.b32.xlu0 %v9059_v44, %s7525_s25  ;;  %3338 = vrot.lane.b32.xlu1 %v8983_v22, %s11185_s21 }
 0x417   : > { %v2946_v61 = vpop.permute.xlu0 %2945  ;;  %v3477_v27 = vpop.permute.xlu1 %3476 }
 0x418   : > { %v9465_v18 = vsel %vm2965_vm13, %v9428_v3, %v2946_v61  ;;  %v9468_v43 = vsel %vm837_vm1, %v3475_v54, %v3477_v27  ;;  %v9472_v14 = vsel %vm837_vm1, %v3477_v27, %v9149_v63  ;;  %v3541_v63 = vld [vmem:[%s9500_s24 + $0x8] sm:$0xff]  ;;  %v3543_v27 = vld [vmem:[%s9500_s24 + $0x18] sm:$0xff] }
 0x419   : > { %11222 = vst [vmem:[#allocation39_spill] sm:$0xff] %v9465_v18  ;;  %11223 = vst [vmem:[#allocation40_spill] sm:$0xff] %v9468_v43  ;;  %3336 = vrot.lane.b32.xlu0 %v8980_v48, %s11185_s21  ;;  %2814 = vrot.lane.b32.xlu1 %v2763_v33, %s7522_s15  ;;  %v3290_v48 = vld [vmem:[#allocation3 + $0x18] sm:$0xff]  ;;  %v2760_v33 = vld [vmem:[#allocation3 + $0x40] sm:$0xff] }
 0x41a   : > { %11224 = vst [vmem:[#allocation41_spill] sm:$0xff] %v9472_v14  ;;  %3821 = vmatprep.mubr.f32.mxu1 %v3541_v63  ;;  %6883 = vmatprep.mubr.msk.f32.mxu0 %vm1225_vm8, %v3543_v27  ;;  %v3288_v14 = vld [vmem:[#allocation3 + $0x8] sm:$0xff]  ;;  %v3182_v63 = vld [vmem:[#allocation3 + $0xd8] sm:$0xff] }
 0x41b   : > { %v9477_v22 = vpop.permute.xlu1 %3228  ;;  %v9479_v32 = vpop.permute.xlu0 %2695 }
 0x41d   : > { %2812 = vrot.lane.b32.xlu0 %v8998_v38, %s7522_s15  ;;  %2810 = vrot.lane.b32.xlu1 %v8989_v55, %s7522_s15 }
 0x41f   : > { %v9485_v54 = vpop.permute.xlu1 %3102  ;;  %v9487_v61 = vpop.permute.xlu0 %2569 }
 0x420   : > { %11225 = vst [vmem:[#allocation42_spill] sm:$0xff] %v9487_v61 }
 0x421   : > { %2836 = vrot.lane.b32.xlu0 %v9059_v44, %s7522_s15  ;;  %3368 = vrot.lane.b32.xlu1 %v9059_v44, %s11185_s21 }
 0x423   : > { %v9502_v55 = vpop.permute.xlu1 %2949  ;;  %v3481_v38 = vpop.permute.xlu0 %3480 }
 0x424   : > { %11226 = vst [vmem:[#allocation43_spill] sm:$0xff] %v9502_v55 }
 0x425   : > { %3334 = vrot.lane.b32.xlu0 %v3290_v48, %s11185_s21  ;;  %3332 = vrot.lane.b32.xlu1 %v9002_v42, %s11185_s21 }
 0x427   : > { %v3355_v18 = vpop.permute.xlu0 %3354  ;;  %v2698_v3 = vpop.permute.xlu1 %2697 }
 0x428   : > { %v9512_v43 = vsel %vm2711_vm15, %v9479_v32, %v2698_v3 }
 0x429   : > { %3330 = vrot.lane.b32.xlu0 %v3288_v14, %s11185_s21  ;;  %2808 = vrot.lane.b32.xlu1 %v2760_v33, %s7522_s15 }
 0x42b   : > { %v3231_v48 = vpop.permute.xlu0 %3230  ;;  %v2572_v25 = vpop.permute.xlu1 %2571 }
 0x42c   : > { %v3255_v42 = vsel %vm643_vm3, %v3231_v48, %v8962_v5  ;;  %v9520_v27 = vsel %vm2479_vm12, %v9487_v61, %v2572_v25 }
 0x42d   : > { %11227 = vst [vmem:[#allocation44_spill] sm:$0xff] %v9520_v27  ;;  %3244 = vrot.lane.b32.xlu0 %v3182_v63, %s11181_s22  ;;  %3242 = vrot.lane.b32.xlu1 %v9059_v44, %s11181_s22 }
 0x42f   : > { %v9525_v3 = vpop.permute.xlu0 %3104  ;;  %v3483_v14 = vpop.permute.xlu1 %3482 }
 0x430   : > { %v9530_v33 = vsel %vm546_vm4, %v9525_v3, %v9077_v16  ;;  %v9533_v5 = vsel %vm837_vm1, %v3481_v38, %v3483_v14  ;;  %v9537_v25 = vsel %vm837_vm1, %v3483_v14, %v9137_v13 }
 0x431   : > { %11228 = vst [vmem:[#allocation45_spill] sm:$0xff] %v9533_v5  ;;  %11229 = vst [vmem:[#allocation46_spill] sm:$0xff] %v9537_v25  ;;  %3240 = vrot.lane.b32.xlu1 %v9054_v1, %s11181_s22  ;;  %v3694_v25 = vld [vmem:[%s8192_s19] sm:$0xff] }
 0x433   : > { %v2952_v44 = vpop.permute.xlu0 %2951  ;;  %v3357_v63 = vpop.permute.xlu1 %3356 }
 0x434   : > { %v9543_v57 = vsel %vm2965_vm13, %v9502_v55, %v2952_v44  ;;  %v9546_v16 = vsel %vm740_vm2, %v3355_v18, %v3357_v63  ;;  %v9550_v38 = vsel %vm740_vm2, %v3357_v63, %v9205_v2  ;;  %v3695_v44 = vld [vmem:[%s8192_s19 + $0x8] sm:$0xff]  ;;  %v3696_v2 = vld [vmem:[%s8192_s19 + $0x10] sm:$0xff]  ;;  %v3697_v63 = vld [vmem:[%s8192_s19 + $0x18] sm:$0xff] }
 0x435   : > { %11230 = vst [vmem:[#allocation47_spill] sm:$0xff] %v9543_v57  ;;  %11231 = vst [vmem:[#allocation48_spill] sm:$0xff] %v9546_v16  ;;  %v7526_v16 = vmov 1  }
 0x436   : > { %11232 = vst [vmem:[#allocation49_spill] sm:$0xff] %v9550_v38  ;;  %7446 = vset.pattern.permute.xlu0 %v7526_v16  ;;  %7447 = vset.pattern.permute.xlu1 %v7526_v16  ;;  %v3700_v16 = vld [vmem:[%s8192_s19 + $0x30] sm:$0xff] }
 0x437   : > { %v3235_v13 = vpop.permute.xlu1 %3234  ;;  %v9552_v14 = vpop.permute.xlu0 %2701  ;;  %3703 = vperm.xlu0 %7446, %v3694_v25   ;;  %3708 = vperm.xlu1 %7447, %v3695_v44   ;;  %v3254_v44 = vsel %vm643_vm3, %v9477_v22, %v3231_v48 }
 0x43b   : > { %v9554_v5 = vpop.permute.xlu1 %3108  ;;  %v9556_v1 = vpop.permute.xlu0 %2575  ;;  %3713 = vperm.xlu1 %7447, %v3696_v2   ;;  %3718 = vperm.xlu0 %7446, %v3697_v63  }
 0x43f   : > { %v9560_v57 = vpop.permute.xlu1 %2955  ;;  %v3487_v18 = vpop.permute.xlu0 %3486  ;;  %3723 = vperm.xlu1 %7447, %v3698_v40   ;;  %3728 = vperm.xlu0 %7446, %v3699_v50   ;;  %v3252_v50 = vsel %vm643_vm3, %v9414_v36, %v9434_v41  ;;  %v3250_v40 = vsel %vm643_vm3, %v9349_v20, %v9370_v17  ;;  %v3248_v20 = vsel %vm643_vm3, %v9275_v9, %v9304_v62 }
 0x443   : > { %v9564_v38 = vpop.permute.xlu1 %2828  ;;  %v3361_v55 = vpop.permute.xlu0 %3360  ;;  %3733 = vperm.xlu1 %7447, %v3700_v16  }
 0x447   : > { %v3237_v27 = vpop.permute.xlu0 %3236  ;;  %v2704_v61 = vpop.permute.xlu1 %2703 }
 0x448   : > { %v3256_v12 = vsel %vm643_vm3, %v3235_v13, %v3237_v27  ;;  %v3257_v58 = vsel %vm643_vm3, %v3237_v27, %v8958_v23  ;;  %v2723_v25 = vsel %vm2711_vm15, %v9552_v14, %v2704_v61  ;;  %v2722_v27 = vsel %vm2711_vm15, %v8960_v28, %v9552_v14 }
 0x449   : > { %3864 = vmatprep.subr.mxu0 %v3257_v58 }
 0x44a   : > { %3865 = vmatpush1.msra.mxu0 %v3256_v12 }
 0x44b   : > { %v9576_v2 = vpop.permute.xlu0 %3110  ;;  %v2578_v63 = vpop.permute.xlu1 %2577  ;;  %3866 = vmatprep.subr.mxu0 %v3255_v42 }
 0x44c   : > { %v9581_v13 = vsel %vm546_vm4, %v9576_v2, %v9065_v7  ;;  %v9585_v23 = vsel %vm2479_vm12, %v9556_v1, %v2578_v63  ;;  %3867 = vmatpush1.msra.mxu0 %v3254_v44  ;;  %v2720_v63 = vsel %vm2711_vm15, %v8964_v59, %v9479_v32  ;;  %v2716_v59 = vsel %vm2711_vm15, %v8976_v60, %v9351_v47 }
 0x44d   : > { %3868 = vmatprep.subr.mxu0 %v9439_v4  ;;  %v2712_v60 = vsel %vm2711_vm15, %v9020_v10, %v9213_v30  ;;  %v3128_v10 = vsel %vm546_vm4, %v9485_v54, %v9525_v3  ;;  %v2595_v47 = vsel %vm2479_vm12, %v9067_v24, %v9556_v1  ;;  %v11233_v54 = vld [vmem:[#allocation30_spill] sm:$0xff]  ;;  %v11234_v3 = vld [vmem:[#allocation27_spill] sm:$0xff]  ;;  %v11237_v24 = vld [vmem:[#allocation44_spill] sm:$0xff] }
 0x44e   : > { %3869 = vmatpush1.msra.mxu0 %v3252_v50  ;;  %v11238_v1 = vld [vmem:[#allocation31_spill] sm:$0xff] }
 0x44f   : > { %v3489_v12 = vpop.permute.xlu0 %3488  ;;  %v3363_v7 = vpop.permute.xlu1 %3362  ;;  %3870 = vmatprep.subr.mxu0 %v9375_v39 }
 0x450   : > { %v9596_v58 = vsel %vm837_vm1, %v3487_v18, %v3489_v12  ;;  %v9600_v22 = vsel %vm837_vm1, %v3489_v12, %v9127_v21  ;;  %v9603_v41 = vsel %vm740_vm2, %v3361_v55, %v3363_v7  ;;  %v9607_v4 = vsel %vm740_vm2, %v3363_v7, %v9193_v37  ;;  %3871 = vmatpush1.msra.mxu0 %v3250_v40  ;;  %v11241_v40 = vld [vmem:[#allocation36_spill] sm:$0xff]  ;;  %v11242_v12 = vld [vmem:[#allocation5_spill] sm:$0xff] }
 0x451   : > { %3872 = vmatprep.subr.mxu0 %v9309_v35  ;;  %v3246_v21 = vsel %vm643_vm3, %v9219_v45, %v9239_v8  ;;  %v2591_v7 = vsel %vm2479_vm12, %v11242_v12, %v11241_v40  ;;  %v11256_v40 = vld [vmem:[#allocation46_spill] sm:$0xff]  ;;  %v3624_v12 = vld [vmem:[#allocation2 + $0x380] sm:$0xff] }
 0x452   : > { %3873 = vmatpush1.msra.mxu0 %v3248_v20 }
 0x453   : > { %v2958_v39 = vpop.permute.xlu0 %2957  ;;  %v3115_v17 = vpop.permute.xlu1 %3114  ;;  %3874 = vmatprep.subr.mxu0 %v9244_v26 }
 0x454   : > { %v9619_v37 = vsel %vm2965_vm13, %v9560_v57, %v2958_v39  ;;  %3875 = vmatpush1.msra.mxu0 %v3246_v21  ;;  %v11243_v39 = vld [vmem:[#allocation23_spill] sm:$0xff] }
 0x457   : > { %v2831_v36 = vpop.permute.xlu0 %2830  ;;  %v9621_v61 = vpop.permute.xlu1 %3492 }
 0x458   : > { %v9625_v9 = vsel %vm2838_vm14, %v9564_v38, %v2831_v36 }
 0x45b   : > { %v9627_v62 = vpop.permute.xlu1 %2961  ;;  %v2708_v35 = vpop.permute.xlu0 %2707 }
 0x45c   : > { %v2724_v42 = vsel %vm2711_vm15, %v8956_v6, %v2708_v35  ;;  %v2718_v6 = vsel %vm2711_vm15, %v8968_v56, %v9416_v29  ;;  %v2714_v56 = vsel %vm2711_vm15, %v8993_v19, %v9283_v51  ;;  %v3130_v19 = vsel %vm546_vm4, %v9554_v5, %v9576_v2 }
 0x45f   : > { %v9629_v8 = vpop.permute.xlu1 %2834  ;;  %v2582_v45 = vpop.permute.xlu0 %2581 }
 0x460   : > { %v2597_v30 = vsel %vm2479_vm12, %v9041_v49, %v2582_v45 }
 0x463   : > { %v9631_v55 = vpop.permute.xlu0 %3366  ;;  %v2710_v26 = vpop.permute.xlu1 %2709 }
 0x464   : > { %v2725_v48 = vsel %vm2711_vm15, %v2708_v35, %v2710_v26  ;;  %v11245_v35 = vld [vmem:[#allocation17_spill] sm:$0xff] }
 0x465   : > { %3761 = vmatprep.subr.mxu1 %v2725_v48  ;;  %v11247_v48 = vld [vmem:[#allocation28_spill] sm:$0xff] }
 0x466   : > { %3762 = vmatpush1.msra.mxu1 %v2724_v42  ;;  %v11248_v42 = vld [vmem:[#allocation6_spill] sm:$0xff] }
 0x467   : > { %v3353_v18 = vpop.permute.xlu0 %3352  ;;  %v3351_v16 = vpop.permute.xlu1 %3350  ;;  %3763 = vmatprep.subr.mxu1 %v2723_v25 }
 0x468   : > { %v9640_v44 = vsel %vm740_vm2, %v3351_v16, %v3353_v18  ;;  %3764 = vmatpush1.msra.mxu1 %v2722_v27  ;;  %v2589_v27 = vsel %vm2479_vm12, %v11248_v42, %v11247_v48  ;;  %v11249_v18 = vld [vmem:[#allocation32_spill] sm:$0xff]  ;;  %v11262_v42 = vld [vmem:[#allocation35_spill] sm:$0xff] }
 0x469   : > { %3765 = vmatprep.subr.mxu1 %v9512_v43 }
 0x46a   : > { %3766 = vmatpush1.msra.mxu1 %v2720_v63  ;;  %v3637_v63 = vld [vmem:[#allocation2 + $0x448] sm:$0xff] }
 0x46b   : > { %v3349_v50 = vpop.permute.xlu0 %3348  ;;  %v9649_v28 = vpop.permute.xlu1 %2826  ;;  %3767 = vmatprep.subr.mxu1 %v9443_v46 }
 0x46c   : > { %v9653_v14 = vsel %vm740_vm2, %v3349_v50, %v3351_v16  ;;  %3768 = vmatpush1.msra.mxu1 %v2718_v6  ;;  %v11250_v16 = vld [vmem:[#allocation18_spill] sm:$0xff]  ;;  %v11251_v6 = vld [vmem:[#allocation21_spill] sm:$0xff]  ;;  %v11252_v50 = vld [vmem:[#allocation7_spill] sm:$0xff] }
 0x46d   : > { %3769 = vmatprep.subr.mxu1 %v9379_v53 }
 0x46e   : > { %3770 = vmatpush1.msra.mxu1 %v2716_v59  ;;  %v2587_v59 = vsel %vm2479_vm12, %v11252_v50, %v11251_v6  ;;  %v11266_v50 = vld [vmem:[#allocation47_spill] sm:$0xff] }
 0x46f   : > { %v3117_v29 = vpop.permute.xlu0 %3116  ;;  %v9662_v32 = vpop.permute.xlu1 %2822  ;;  %3771 = vmatprep.subr.mxu1 %v9313_v15 }
 0x470   : > { %v3132_v46 = vsel %vm546_vm4, %v3115_v17, %v3117_v29  ;;  %v3133_v43 = vsel %vm546_vm4, %v3117_v29, %v9039_v34  ;;  %3772 = vmatpush1.msra.mxu1 %v2714_v56  ;;  %v11244_v17 = vld [vmem:[#allocation38_spill] sm:$0xff] }
 0x471   : > { %3773 = vmatprep.subr.mxu1 %v9248_v31  ;;  %3876 = vmatprep.subr.mxu0 %v3133_v43  ;;  %v3126_v31 = vsel %vm546_vm4, %v9421_v0, %v9448_v11  ;;  %v11235_v0 = vld [vmem:[#allocation42_spill] sm:$0xff]  ;;  %v11236_v11 = vld [vmem:[#allocation4_spill] sm:$0xff] }
 0x472   : > { %3774 = vmatpush1.msra.mxu1 %v2712_v60  ;;  %3877 = vmatpush1.msra.mxu0 %v3132_v46  ;;  %v2593_v2 = vsel %vm2479_vm12, %v11236_v11, %v11235_v0  ;;  %v11253_v46 = vld [vmem:[#allocation24_spill] sm:$0xff]  ;;  %v3629_v0 = vld [vmem:[#allocation2 + $0x3c8] sm:$0xff] }
 0x473   : > { %v2825_v51 = vpop.permute.xlu0 %2824  ;;  %v2584_v15 = vpop.permute.xlu1 %2583  ;;  %3878 = vmatprep.subr.mxu0 %v9581_v13  ;;  %v11240_v13 = vld [vmem:[#allocation20_spill] sm:$0xff] }
 0x474   : > { %v9678_v34 = vsel %vm2838_vm14, %v9662_v32, %v2825_v51  ;;  %v2598_v53 = vsel %vm2479_vm12, %v2582_v45, %v2584_v15  ;;  %3879 = vmatpush1.msra.mxu0 %v3130_v19  ;;  %v11246_v45 = vld [vmem:[#allocation16_spill] sm:$0xff]  ;;  %v3635_v19 = vld [vmem:[#allocation2 + $0x428] sm:$0xff]  ;;  %v11254_v51 = vld [vmem:[#allocation19_spill] sm:$0xff] }
 0x475   : > { %3775 = vmatprep.subr.mxu1 %v2598_v53  ;;  %3880 = vmatprep.subr.mxu0 %v9530_v33  ;;  %v3124_v33 = vsel %vm546_vm4, %v11234_v3, %v11233_v54  ;;  %v3120_v26 = vsel %vm546_vm4, %v11246_v45, %v11245_v35  ;;  %v3636_v43 = vld [vmem:[#allocation2 + $0x440] sm:$0xff]  ;;  %v11259_v35 = vld [vmem:[#allocation41_spill] sm:$0xff] }
 0x476   : > { %3776 = vmatpush1.msra.mxu1 %v2597_v30  ;;  %3881 = vmatpush1.msra.mxu0 %v3128_v10  ;;  %v3568_v15 = vld [vmem:[#allocation2] sm:$0xff]  ;;  %v3633_v10 = vld [vmem:[#allocation2 + $0x408] sm:$0xff] }
 0x477   : > { %v3347_v5 = vpop.permute.xlu0 %3346  ;;  %v3345_v25 = vpop.permute.xlu1 %3344  ;;  %3882 = vmatprep.subr.mxu0 %v9453_v52  ;;  %3777 = vmatprep.subr.mxu1 %v9585_v23  ;;  %v11239_v52 = vld [vmem:[#allocation22_spill] sm:$0xff]  ;;  %v3634_v53 = vld [vmem:[#allocation2 + $0x420] sm:$0xff]  ;;  %v3631_v30 = vld [vmem:[#allocation2 + $0x3e8] sm:$0xff] }
 0x478   : > { %v9696_v49 = vsel %vm740_vm2, %v3345_v25, %v3347_v5  ;;  %3778 = vmatpush1.msra.mxu1 %v2595_v47  ;;  %3883 = vmatpush1.msra.mxu0 %v3126_v31  ;;  %v3122_v23 = vsel %vm546_vm4, %v11240_v13, %v11239_v52  ;;  %v3630_v5 = vld [vmem:[#allocation2 + $0x3e0] sm:$0xff] }
 0x479   : > { %3779 = vmatprep.subr.mxu1 %v11237_v24  ;;  %3884 = vmatprep.subr.mxu0 %v11238_v1  ;;  %v11255_v3 = vld [vmem:[#allocation8_spill] sm:$0xff] }
 0x47a   : > { %3780 = vmatpush1.msra.mxu1 %v2593_v2  ;;  %3885 = vmatpush1.msra.mxu0 %v3124_v33  ;;  %v3628_v11 = vld [vmem:[#allocation2 + $0x3c0] sm:$0xff]  ;;  %v3627_v2 = vld [vmem:[#allocation2 + $0x3a8] sm:$0xff] }
 0x47b   : > { %v3343_v20 = vpop.permute.xlu0 %3342  ;;  %v9712_v21 = vpop.permute.xlu1 %2820  ;;  %3886 = vmatprep.subr.mxu0 %v11243_v39  ;;  %3781 = vmatprep.subr.mxu1 %v11244_v17  ;;  %v3626_v52 = vld [vmem:[#allocation2 + $0x3a0] sm:$0xff] }
 0x47c   : > { %v9717_v36 = vsel %vm740_vm2, %v3343_v20, %v3345_v25  ;;  %3782 = vmatpush1.msra.mxu1 %v2591_v7  ;;  %3887 = vmatpush1.msra.mxu0 %v3122_v23  ;;  %v3632_v25 = vld [vmem:[#allocation2 + $0x400] sm:$0xff]  ;;  %v3625_v23 = vld [vmem:[#allocation2 + $0x388] sm:$0xff] }
 0x47d   : > { %3783 = vmatprep.subr.mxu1 %v11249_v18  ;;  %3888 = vmatprep.subr.mxu0 %v11250_v16  ;;  %v11257_v7 = vld [vmem:[#allocation45_spill] sm:$0xff]  ;;  %v11260_v45 = vld [vmem:[#allocation40_spill] sm:$0xff]  ;;  %v11265_v18 = vld [vmem:[#allocation11_spill] sm:$0xff] }
 0x47e   : > { %3784 = vmatpush1.msra.mxu1 %v2589_v27  ;;  %3889 = vmatpush1.msra.mxu0 %v3120_v26  ;;  %v11261_v26 = vld [vmem:[#allocation10_spill] sm:$0xff]  ;;  %v11264_v27 = vld [vmem:[#allocation43_spill] sm:$0xff] }
 0x47f   : > { %v2819_v56 = vpop.permute.xlu0 %2818  ;;  %v9730_v29 = vpop.permute.xlu1 %2816  ;;  %3890 = vmatprep.subr.mxu0 %v3637_v63  ;;  %3785 = vmatprep.subr.mxu1 %v11253_v46  ;;  %v2976_v48 = vsel %vm2965_vm13, %v11261_v26, %v9560_v57  ;;  %v2974_v16 = vsel %vm2965_vm13, %v11265_v18, %v11264_v27  ;;  %v11269_v46 = vld [vmem:[#allocation37_spill] sm:$0xff]  ;;  %v4012_v26 = vld [vmem:[%s11166_s7 + $0xd0] sm:$0xff]  ;;  %v4027_v27 = vld [vmem:[%s11166_s7 + $0x1c0] sm:$0xff] }
 0x480   : > { %v9735_v60 = vsel %vm2838_vm14, %v9730_v29, %v2819_v56  ;;  %3786 = vmatpush1.msra.mxu1 %v2587_v59  ;;  %3891 = vmatpush1.msra.mxu0 %v3636_v43  ;;  %v11267_v59 = vld [vmem:[#allocation26_spill] sm:$0xff]  ;;  %v3681_v56 = vld [vmem:[#allocation2 + $0x708] sm:$0xff]  ;;  %v11270_v43 = vld [vmem:[#allocation12_spill] sm:$0xff] }
 0x481   : > { %3787 = vmatprep.subr.mxu1 %v11254_v51  ;;  %3892 = vmatprep.subr.mxu0 %v3635_v19  ;;  %v2972_v19 = vsel %vm2965_vm13, %v11270_v43, %v11269_v46  ;;  %v11271_v51 = vld [vmem:[#allocation39_spill] sm:$0xff]  ;;  %v4011_v18 = vld [vmem:[%s11166_s7 + $0xc0] sm:$0xff] }
 0x482   : > { %3788 = vmatpush1.msra.mxu1 %v3568_v15  ;;  %3893 = vmatpush1.msra.mxu0 %v3634_v53  ;;  %v3680_v15 = vld [vmem:[#allocation2 + $0x700] sm:$0xff]  ;;  %v11272_v53 = vld [vmem:[#allocation29_spill] sm:$0xff] }
 0x483   : > { %v3341_v31 = vpop.permute.xlu0 %3340  ;;  %v3495_v47 = vpop.permute.xlu1 %3494  ;;  %3894 = vmatprep.subr.mxu0 %v3633_v10  ;;  %3789 = vmatprep.subr.mxu1 %v3631_v30  ;;  %v11273_v10 = vld [vmem:[#allocation13_spill] sm:$0xff]  ;;  %v4009_v46 = vld [vmem:[%s11166_s7 + $0xa0] sm:$0xff] }
 0x484   : > { %v3510_v54 = vsel %vm837_vm1, %v9621_v61, %v3495_v47  ;;  %v3511_v33 = vsel %vm837_vm1, %v3495_v47, %v11255_v3  ;;  %3790 = vmatpush2.msra.mxu1 %v3630_v5  ;;  %3895 = vmatpush1.msra.mxu0 %v3632_v25  ;;  %v2970_v30 = vsel %vm2965_vm13, %v11273_v10, %v11272_v53  ;;  %v11274_v5 = vld [vmem:[#allocation33_spill] sm:$0xff]  ;;  %v11275_v3 = vld [vmem:[#allocation14_spill] sm:$0xff]  ;;  %v3556_v43 = vld [vmem:[%s9500_s24 + $0x80] sm:$0xff]  ;;  %vm5091_vm1 = vcmask 556544  }
 0x485   : > { %3791 = vmatprep.subr.mxu1 %v3629_v0  ;;  %3898 = vmatprep.subr.mxu0 %v3511_v33  ;;  %v3613_v0 = vld [vmem:[#allocation2 + $0x2c8] sm:$0xff]  ;;  %v4008_v53 = vld [vmem:[%s11166_s7 + $0x90] sm:$0xff] }
 0x486   : > { %3792 = vmatpush2.msra.mxu1 %v3628_v11  ;;  %3899 = vmatpush2.msra.mxu0 %v3510_v54  ;;  %v3612_v11 = vld [vmem:[#allocation2 + $0x2c0] sm:$0xff]  ;;  %v3558_v10 = vld [vmem:[%s9500_s24 + $0x90] sm:$0xff] }
 0x487   : > { %v2964_v24 = vpop.permute.xlu0 %2963  ;;  %v3339_v1 = vpop.permute.xlu1 %3338  ;;  %3793 = vmatprep.subr.mxu1 %v3627_v2  ;;  %3900 = vmatprep.subr.mxu0 %v9600_v22  ;;  %v11258_v22 = vld [vmem:[#allocation9_spill] sm:$0xff] }
 0x488   : > { %v2979_v61 = vsel %vm2965_vm13, %v9627_v62, %v2964_v24  ;;  %v9746_v13 = vsel %vm740_vm2, %v3339_v1, %v3341_v31  ;;  %3794 = vmatpush2.msra.mxu1 %v3626_v52  ;;  %3901 = vmatpush2.msra.mxu0 %v9596_v58  ;;  %v2978_v20 = vsel %vm2965_vm13, %v11258_v22, %v9627_v62  ;;  %v11263_v62 = vld [vmem:[#allocation34_spill] sm:$0xff]  ;;  %v3611_v2 = vld [vmem:[#allocation2 + $0x2a8] sm:$0xff]  ;;  %v3610_v52 = vld [vmem:[#allocation2 + $0x2a0] sm:$0xff] }
 0x489   : > { %3795 = vmatprep.subr.mxu1 %v3625_v23  ;;  %3902 = vmatprep.subr.mxu0 %v11256_v40  ;;  %v11277_v40 = vld [vmem:[#allocation49_spill] sm:$0xff] }
 0x48a   : > { %3796 = vmatpush2.msra.mxu1 %v3624_v12  ;;  %3903 = vmatpush2.msra.mxu0 %v11257_v7  ;;  %v11278_v12 = vld [vmem:[#allocation48_spill] sm:$0xff] }
 0x48b   : > { %v3337_v39 = vpop.permute.xlu0 %3336  ;;  %v9754_v17 = vpop.permute.xlu1 %2814  ;;  %3797 = vmatprep.subr.mxu1 %v2979_v61  ;;  %3904 = vmatprep.subr.mxu0 %v11259_v35  ;;  %v4013_v35 = vld [vmem:[%s11166_s7 + $0xe0] sm:$0xff] }
 0x48c   : > { %v9758_v58 = vsel %vm740_vm2, %v3337_v39, %v3339_v1  ;;  %3798 = vmatpush2.msra.mxu1 %v2978_v20  ;;  %3905 = vmatpush2.msra.mxu0 %v11260_v45  ;;  %v3544_v20 = vld [vmem:[%s9500_s24 + $0x20] sm:$0xff]  ;;  %v3547_v39 = vld [vmem:[%s9500_s24 + $0x38] sm:$0xff]  ;;  %v3546_v45 = vld [vmem:[%s9500_s24 + $0x30] sm:$0xff] }
 0x48d   : > { %3799 = vmatprep.subr.mxu1 %v9619_v37  ;;  %3906 = vmatprep.subr.mxu0 %v11262_v42  ;;  %v11268_v37 = vld [vmem:[#allocation25_spill] sm:$0xff]  ;;  %v3551_v42 = vld [vmem:[%s9500_s24 + $0x58] sm:$0xff] }
 0x48e   : > { %3800 = vmatpush2.msra.mxu1 %v2976_v48  ;;  %3907 = vmatpush2.msra.mxu0 %v11263_v62  ;;  %v3548_v48 = vld [vmem:[%s9500_s24 + $0x40] sm:$0xff]  ;;  %v3553_v62 = vld [vmem:[%s9500_s24 + $0x68] sm:$0xff] }
 0x48f   : > { %v2813_v63 = vpop.permute.xlu0 %2812  ;;  %v9770_v6 = vpop.permute.xlu1 %2810  ;;  %3801 = vmatprep.subr.mxu1 %v11266_v50  ;;  %3908 = vmatprep.subr.mxu0 %v11267_v59  ;;  %v3555_v50 = vld [vmem:[%s9500_s24 + $0x78] sm:$0xff]  ;;  %v3557_v59 = vld [vmem:[%s9500_s24 + $0x88] sm:$0xff] }
 0x490   : > { %v2844_v57 = vsel %vm2838_vm14, %v9770_v6, %v2813_v63  ;;  %3802 = vmatpush2.msra.mxu1 %v2974_v16  ;;  %3909 = vmatpush2.msra.mxu0 %v11268_v37  ;;  %v3550_v16 = vld [vmem:[%s9500_s24 + $0x50] sm:$0xff]  ;;  %v4025_v37 = vld [vmem:[%s11166_s7 + $0x1a0] sm:$0xff] }
 0x491   : > { %3803 = vmatprep.subr.mxu1 %v11271_v51  ;;  %3910 = vmatprep.subr.mxu0 %v3681_v56  ;;  %v4026_v63 = vld [vmem:[%s11166_s7 + $0x1b0] sm:$0xff]  ;;  %v3561_v51 = vld [vmem:[%s9500_s24 + $0xa8] sm:$0xff] }
 0x492   : > { %3804 = vmatpush2.msra.mxu1 %v2972_v19  ;;  %3911 = vmatpush2.msra.mxu0 %v3680_v15  ;;  %v3554_v56 = vld [vmem:[%s9500_s24 + $0x70] sm:$0xff]  ;;  %v3559_v19 = vld [vmem:[%s9500_s24 + $0x98] sm:$0xff] }
 0x493   : > { %v2837_v31 = vpop.permute.xlu0 %2836  ;;  %v3369_v47 = vpop.permute.xlu1 %3368  ;;  %3805 = vmatprep.subr.mxu1 %v11274_v5  ;;  %v4024_v15 = vld [vmem:[%s11166_s7 + $0x190] sm:$0xff]  ;;  %v3565_v5 = vld [vmem:[%s9500_s24 + $0xc8] sm:$0xff] }
 0x494   : > { %v2852_v25 = vsel %vm2838_vm14, %v9629_v8, %v2837_v31  ;;  %v3384_v54 = vsel %vm740_vm2, %v9631_v55, %v3369_v47  ;;  %v3385_v33 = vsel %vm740_vm2, %v3369_v47, %v11275_v3  ;;  %3806 = vmatpush2.msra.mxu1 %v2970_v30  ;;  %v11276_v55 = vld [vmem:[#allocation15_spill] sm:$0xff]  ;;  %v4023_v30 = vld [vmem:[%s11166_s7 + $0x180] sm:$0xff]  ;;  %v3562_v3 = vld [vmem:[%s9500_s24 + $0xb0] sm:$0xff] }
 0x495   : > { %3807 = vmatprep.subr.mxu1 %v3613_v0  ;;  %3912 = vmatprep.subr.mxu0 %v3385_v33  ;;  %v2851_v23 = vsel %vm2838_vm14, %v11276_v55, %v9629_v8  ;;  %v2847_v8 = vsel %vm2838_vm14, %v9712_v21, %v9662_v32  ;;  %v4014_v21 = vld [vmem:[%s11166_s7 + $0xf0] sm:$0xff]  ;;  %v3560_v31 = vld [vmem:[%s9500_s24 + $0xa0] sm:$0xff]  ;;  %v3563_v47 = vld [vmem:[%s9500_s24 + $0xb8] sm:$0xff] }
 0x496   : > { %3808 = vmatpush2.msra.mxu1 %v3612_v11  ;;  %3913 = vmatpush2.msra.mxu0 %v3384_v54  ;;  %v4022_v54 = vld [vmem:[%s11166_s7 + $0x170] sm:$0xff]  ;;  %v3564_v0 = vld [vmem:[%s9500_s24 + $0xc0] sm:$0xff]  ;;  %v3567_v11 = vld [vmem:[%s9500_s24 + $0xd8] sm:$0xff] }
 0x497   : > { %v3335_v24 = vpop.permute.xlu0 %3334  ;;  %v3333_v1 = vpop.permute.xlu1 %3332  ;;  %3809 = vmatprep.subr.mxu1 %v3611_v2  ;;  %3914 = vmatprep.subr.mxu0 %v9607_v4  ;;  %v2849_v4 = vsel %vm2838_vm14, %v9649_v28, %v9564_v38  ;;  %v2845_v38 = vsel %vm2838_vm14, %v9754_v17, %v9730_v29  ;;  %v3542_v29 = vld [vmem:[%s9500_s24 + $0x10] sm:$0xff]  ;;  %v3549_v17 = vld [vmem:[%s9500_s24 + $0x48] sm:$0xff]  ;;  %v4021_v2 = vld [vmem:[%s11166_s7 + $0x160] sm:$0xff] }
 0x498   : > { %v3373_v61 = vsel %vm740_vm2, %v3333_v1, %v3335_v24  ;;  %3810 = vmatpush2.msra.mxu1 %v3610_v52  ;;  %3915 = vmatpush2.msra.mxu0 %v9603_v41  ;;  %v4006_v33 = vld [vmem:[%s11166_s7 + $0x70] sm:$0xff]  ;;  %v4005_v24 = vld [vmem:[%s11166_s7 + $0x60] sm:$0xff] }
 0x499   : > { %3811 = vmatprep.subr.mxu1 %v2852_v25  ;;  %3916 = vmatprep.subr.mxu0 %v11277_v40  ;;  %v4007_v25 = vld [vmem:[%s11166_s7 + $0x80] sm:$0xff]  ;;  %v4020_v52 = vld [vmem:[%s11166_s7 + $0x150] sm:$0xff] }
 0x49a   : > { %3812 = vmatpush2.msra.mxu1 %v2851_v23  ;;  %3917 = vmatpush2.msra.mxu0 %v11278_v12  ;;  %v4019_v55 = vld [vmem:[%s11166_s7 + $0x140] sm:$0xff]  ;;  %v4018_v40 = vld [vmem:[%s11166_s7 + $0x130] sm:$0xff] }
 0x49b   : > { %v3331_v7 = vpop.permute.xlu0 %3330  ;;  %v2809_v22 = vpop.permute.xlu1 %2808  ;;  %3813 = vmatprep.subr.mxu1 %v9625_v9  ;;  %3918 = vmatprep.subr.mxu0 %v9640_v44  ;;  %v4003_v23 = vld [vmem:[%s11166_s7 + $0x40] sm:$0xff]  ;;  %v4002_v12 = vld [vmem:[%s11166_s7 + $0x30] sm:$0xff] }
 0x49c   : > { %v3372_v41 = vsel %vm740_vm2, %v3331_v7, %v3333_v1  ;;  %3814 = vmatpush2.msra.mxu1 %v2849_v4  ;;  %3919 = vmatpush2.msra.mxu0 %v9653_v14  ;;  %v3540_v14 = vld [vmem:[%s9500_s24] sm:$0xff]  ;;  %v2843_v32 = vsel %vm2838_vm14, %v2809_v22, %v9770_v6  ;;  %v3566_v1 = vld [vmem:[%s9500_s24 + $0xd0] sm:$0xff] }
 0x49d   : > { %3815 = vmatprep.subr.mxu1 %v9678_v34  ;;  %3920 = vmatprep.subr.mxu0 %v9696_v49  ;;  %v3545_v34 = vld [vmem:[%s9500_s24 + $0x28] sm:$0xff]  ;;  %v4030_v49 = vld [vmem:[%s11166_s7 + $0x1f0] sm:$0xff]  ;;  %v3552_v6 = vld [vmem:[%s9500_s24 + $0x60] sm:$0xff] }
 0x49e   : > { %3816 = vmatpush2.msra.mxu1 %v2847_v8  ;;  %3921 = vmatpush2.msra.mxu0 %v9717_v36  ;;  %v4017_v4 = vld [vmem:[%s11166_s7 + $0x120] sm:$0xff]  ;;  %v4016_v22 = vld [vmem:[%s11166_s7 + $0x110] sm:$0xff] }
 0x49f   : > { %v3245_v9 = vpop.permute.xlu0 %3244  ;;  %v3243_v44 = vpop.permute.xlu1 %3242  ;;  %3817 = vmatprep.subr.mxu1 %v9735_v60  ;;  %3922 = vmatprep.subr.mxu0 %v9746_v13  ;;  %v4029_v60 = vld [vmem:[%s11166_s7 + $0x1e0] sm:$0xff] }
 0x4a0   : > { %v3259_v28 = vsel %vm643_vm3, %v3243_v44, %v3245_v9  ;;  %3818 = vmatpush2.msra.mxu1 %v2845_v38  ;;  %3923 = vmatpush2.msra.mxu0 %v9758_v58  ;;  %v4028_v58 = vld [vmem:[%s11166_s7 + $0x1d0] sm:$0xff]  ;;  %v4001_v7 = vld [vmem:[%s11166_s7 + $0x20] sm:$0xff]  ;;  %v11279_v9 = vmov 0.0  }
 0x4a1   : > { %3819 = vmatprep.subr.mxu1 %v2844_v57  ;;  %3924 = vmatprep.subr.mxu0 %v3373_v61  ;;  %v4010_v57 = vld [vmem:[%s11166_s7 + $0xb0] sm:$0xff]  ;;  %v4015_v8 = vld [vmem:[%s11166_s7 + $0x100] sm:$0xff] }
 0x4a2   : > { %3820 = vmatpush2.msra.mxu1 %v2843_v32  ;;  %3925 = vmatpush2.msra.mxu0 %v3372_v41  ;;  %v4004_v61 = vld [vmem:[%s11166_s7 + $0x50] sm:$0xff]  ;;  %v3999_v38 = vld [vmem:[%s11166_s7] sm:$0xff] }
 0x4a3   : > { %v3241_v36 = vpop.permute.xlu1 %3240  ;;  %3926 = vmatprep.subr.mxu0 %v3259_v28  ;;  %3822 = vmatmul.mubr.f32.vlgmr.msra.gmra.mxu1 %v3540_v14  ;;  %v4000_v41 = vld [vmem:[%s11166_s7 + $0x10] sm:$0xff]  ;;  %v9952_v14 = vld [vmem:[#allocation3] sm:$0xff] }
 0x4a4   : > { %v3258_v13 = vsel %vm643_vm3, %v3241_v36, %v3243_v44  ;;  %3827 = vmatprep.mubr.f32.mxu1 %v3545_v34  ;;  %6927 = vmatprep.subr.mxu1 %v4030_v49  ;;  %v4301_v44 = vld [vmem:[#allocation3 + $0x20] sm:$0xff]  ;;  %v4397_v28 = vld [vmem:[#allocation3 + $0x70] sm:$0xff] }
 0x4a5   : > { %3927 = vmatpush2.msra.mxu0 %v3258_v13  ;;  %6928 = vmatpush3.msra.mxu1 %v4014_v21  ;;  %v4395_v32 = vld [vmem:[#allocation3 + $0x50] sm:$0xff]  ;;  %v4234_v34 = vld [vmem:[#allocation3 + $0xc0] sm:$0xff] }
 0x4a6   : > { %3929 = vmatmul.mubr.f32.vlgmr.msra.gmra.mxu0 %v3542_v29  ;;  %6929 = vmatprep.subr.mxu1 %v4029_v60  ;;  %v4393_v49 = vld [vmem:[#allocation3 + $0x30] sm:$0xff]  ;;  %v4232_v21 = vld [vmem:[#allocation3 + $0xa0] sm:$0xff] }
 0x4a7   : > { %3828 = vmatmul.mubr.f32.gmra.mxu1 %v3544_v20  ;;  %6884 = vmatprep.mubr.msk.f32.mxu0 %vm1225_vm8, %v3547_v39  ;;  %v9960_v36 = vld [vmem:[#allocation3 + $0xb0] sm:$0xff]  ;;  %v4230_v29 = vld [vmem:[#allocation3 + $0x80] sm:$0xff] }
 0x4a8   : > { %3833 = vmatprep.mubr.f32.mxu1 %v3549_v17  ;;  %6930 = vmatpush3.msra.mxu1 %v4013_v35  ;;  %v4391_v60 = vld [vmem:[#allocation3 + $0x10] sm:$0xff]  ;;  %v4228_v13 = vld [vmem:[#allocation3 + $0x60] sm:$0xff] }
 0x4a9   : > { %6931 = vmatprep.subr.mxu1 %v4028_v58  ;;  %4331 = vrot.lane.b32.xlu0 %v4301_v44, %s7525_s25  ;;  %v9967_v20 = vld [vmem:[#allocation3 + $0x90] sm:$0xff]  ;;  %v9970_v39 = vld [vmem:[#allocation3 + $0x40] sm:$0xff] }
 0x4aa   : > { %3935 = vmatmul.mubr.f32.gmra.mxu0 %v3546_v45  ;;  %6932 = vmatpush3.msra.mxu1 %v4012_v26  ;;  %v9984_v17 = vld [vmem:[#allocation3 + $0xd0] sm:$0xff] }
 0x4ab   : > { %3834 = vmatmul.mubr.f32.gmra.mxu1 %v3548_v48  ;;  %6885 = vmatprep.mubr.msk.f32.mxu0 %vm1225_vm8, %v3551_v42 }
 0x4ac   : > { %3839 = vmatprep.mubr.f32.mxu1 %v3553_v62  ;;  %6933 = vmatprep.subr.mxu1 %v4027_v27 }
 0x4ad   : > { %6934 = vmatpush3.msra.mxu1 %v4011_v18  ;;  %4432 = vrot.lane.b32.xlu1 %v4397_v28, %s7514_s23 }
 0x4ae   : > { %3941 = vmatmul.mubr.f32.gmra.mxu0 %v3550_v16  ;;  %6935 = vmatprep.subr.mxu1 %v4026_v63 }
 0x4af   : > { %3840 = vmatmul.mubr.f32.gmra.mxu1 %v3552_v6  ;;  %6886 = vmatprep.mubr.msk.f32.mxu0 %vm1225_vm8, %v3555_v50 }
 0x4b0   : > { %3845 = vmatprep.mubr.f32.mxu1 %v3557_v59  ;;  %6936 = vmatpush3.msra.mxu1 %v4010_v57 }
 0x4b1   : > { %6937 = vmatprep.subr.mxu1 %v4025_v37  ;;  %4327 = vrot.lane.b32.xlu0 %v9952_v14, %s7525_s25 }
 0x4b2   : > { %3947 = vmatmul.mubr.f32.gmra.mxu0 %v3554_v56  ;;  %6938 = vmatpush3.msra.mxu1 %v4009_v46  ;;  %v3704_v35 = vpop.permute.xlu0 %3703  ;;  %v3709_v48 = vpop.permute.xlu1 %3708 }
 0x4b3   : > { %3846 = vmatmul.mubr.f32.gmra.mxu1 %v3556_v43  ;;  %6887 = vmatprep.mubr.msk.f32.mxu0 %vm1225_vm8, %v3559_v19 }
 0x4b4   : > { %3851 = vmatprep.mubr.f32.mxu1 %v3561_v51  ;;  %6939 = vmatprep.subr.mxu1 %v4024_v15 }
 0x4b5   : > { %6940 = vmatpush3.msra.mxu1 %v4008_v53  ;;  %4428 = vrot.lane.b32.xlu1 %v4395_v32, %s7514_s23  ;;  %v7456_v53 = vld [vmem:[#allocation2 + $0x388] sm:$0xff] }
 0x4b6   : > { %3953 = vmatmul.mubr.f32.gmra.mxu0 %v3558_v10  ;;  %6941 = vmatprep.subr.mxu1 %v4023_v30  ;;  %v3714_v19 = vpop.permute.xlu1 %3713 }
 0x4b7   : > { %3852 = vmatmul.mubr.f32.gmra.mxu1 %v3560_v31  ;;  %6888 = vmatprep.mubr.msk.f32.mxu0 %vm1225_vm8, %v3563_v47  ;;  %v7457_v47 = vld [vmem:[#allocation3 + $0x8] sm:$0xff] }
 0x4b8   : > { %3857 = vmatprep.mubr.f32.mxu1 %v3565_v5  ;;  %6942 = vmatpush3.msra.mxu1 %v4007_v25 }
 0x4b9   : > { %6943 = vmatprep.subr.mxu1 %v4022_v54  ;;  %4274 = vrot.lane.b32.xlu0 %v4234_v34, %s7522_s15 }
 0x4ba   : > { %3959 = vmatmul.mubr.f32.gmra.mxu0 %v3562_v3  ;;  %6944 = vmatpush3.msra.mxu1 %v4006_v33 }
 0x4bb   : > { %3858 = vmatmul.mubr.f32.gmra.mxu1 %v3564_v0  ;;  %6889 = vmatprep.mubr.msk.f32.mxu0 %vm1225_vm8, %v3567_v11  ;;  %v3719_v11 = vpop.permute.xlu0 %3718 }
 0x4bc   : > { %6945 = vmatprep.subr.mxu1 %v4021_v2  ;;  %4424 = vrot.lane.b32.xlu1 %v4393_v49, %s7514_s23 }
 0x4bd   : > { %6946 = vmatpush3.msra.mxu1 %v4005_v24  ;;  %4270 = vrot.lane.b32.xlu0 %v4232_v21, %s7522_s15 }
 0x4be   : > { %3965 = vmatmul.mubr.f32.gmra.mxu0 %v3566_v1  ;;  %6947 = vmatprep.subr.mxu1 %v4020_v52  ;;  %v7458_v52 = vld [vmem:[#allocation2 + $0x3a8] sm:$0xff] }
 0x4bf   : > { %6948 = vmatpush3.msra.mxu1 %v4004_v61 }
 0x4c0   : > { %6949 = vmatprep.subr.mxu1 %v4019_v55  ;;  %4594 = vrot.lane.b32.xlu1 %v9960_v36, %s11280_s13 }
 0x4c1   : > { %6950 = vmatpush3.msra.mxu1 %v4003_v23  ;;  %4266 = vrot.lane.b32.xlu0 %v4230_v29, %s7522_s15 }
 0x4c2   : > { %6951 = vmatprep.subr.mxu1 %v4018_v40  ;;  %v7459_v40 = vld [vmem:[#allocation2 + $0x3a0] sm:$0xff] }
 0x4c3   : > { %6952 = vmatpush3.msra.mxu1 %v4002_v12 }
 0x4c4   : > { %6953 = vmatprep.subr.mxu1 %v4017_v4  ;;  %4420 = vrot.lane.b32.xlu1 %v4391_v60, %s7514_s23 }
 0x4c5   : > { %6954 = vmatpush3.msra.mxu1 %v4001_v7  ;;  %4262 = vrot.lane.b32.xlu0 %v4228_v13, %s7522_s15 }
 0x4c6   : > { %6955 = vmatprep.subr.mxu1 %v4016_v22 }
 0x4c7   : > { %6956 = vmatpush3.msra.mxu1 %v4000_v41 }
 0x4c8   : > { %6957 = vmatprep.subr.mxu1 %v4015_v8  ;;  %4590 = vrot.lane.b32.xlu1 %v9967_v20, %s11280_s13 }
 0x4c9   : > { %6958 = vmatpush3.msra.mxu1 %v3999_v38  ;;  %4258 = vrot.lane.b32.xlu0 %v9970_v39, %s7522_s15 }
 0x4ca   : > { %4861 = vmatprep.subr.mxu1 %v11279_v9 }
 0x4cc   : > { %4586 = vrot.lane.b32.xlu1 %v4397_v28, %s11280_s13 }
 0x4cd   : > { %4254 = vrot.lane.b32.xlu0 %v4301_v44, %s7522_s15 }
 0x4d0   : > { %4582 = vrot.lane.b32.xlu1 %v4395_v32, %s11280_s13 }
 0x4d1   : > { %4250 = vrot.lane.b32.xlu0 %v9952_v14, %s7522_s15 }
 0x4d4   : > { %4578 = vrot.lane.b32.xlu1 %v4393_v49, %s11280_s13 }
 0x4d5   : > { %4197 = vrot.lane.b32.xlu0 %v4234_v34, %s11281_s14 }
 0x4d8   : > { %4574 = vrot.lane.b32.xlu1 %v4391_v60, %s11280_s13 }
 0x4d9   : > { %4193 = vrot.lane.b32.xlu0 %v4232_v21, %s11281_s14 }
 0x4dc   : > { %4521 = vrot.lane.b32.xlu1 %v9984_v17, %s11282_s18 }
 0x4dd   : > { %4351 = vrot.lane.b32.xlu0 %v4234_v34, %s7525_s25  ;;  %v7460_v34 = vld [vmem:[#allocation2 + $0x3c8] sm:$0xff] }
 0x4e0   : > { %4517 = vrot.lane.b32.xlu1 %v9960_v36, %s11282_s18 }
 0x4e1   : > { %4189 = vrot.lane.b32.xlu0 %v4230_v29, %s11281_s14 }
 0x4e4   : > { %4513 = vrot.lane.b32.xlu1 %v9967_v20, %s11282_s18 }
 0x4e5   : > { %4347 = vrot.lane.b32.xlu0 %v4232_v21, %s7525_s25 }
 0x4e8   : > { %4509 = vrot.lane.b32.xlu1 %v4397_v28, %s11282_s18 }
 0x4e9   : > { %4185 = vrot.lane.b32.xlu0 %v4228_v13, %s11281_s14 }
 0x4ec   : > { %4505 = vrot.lane.b32.xlu1 %v4395_v32, %s11282_s18 }
 0x4ed   : > { %4343 = vrot.lane.b32.xlu0 %v4230_v29, %s7525_s25 }
 0x4f0   : > { %4501 = vrot.lane.b32.xlu1 %v4393_v49, %s11282_s18 }
 0x4f1   : > { %4181 = vrot.lane.b32.xlu0 %v9970_v39, %s11281_s14 }
 0x4f4   : > { %4497 = vrot.lane.b32.xlu1 %v4391_v60, %s11282_s18  ;;  %v7461_v60 = vld [vmem:[#allocation2 + $0x3c0] sm:$0xff] }
 0x4f5   : > { %4339 = vrot.lane.b32.xlu0 %v4228_v13, %s7525_s25 }
 0x4f9   : > { %4177 = vrot.lane.b32.xlu0 %v4301_v44, %s11281_s14  ;;  %v3724_v44 = vpop.permute.xlu1 %3723 }
 0x563   : > { %v3823_v58 = vpop.f32.mrf.mxu1 }
 0x564   : > { %v3824_v45 = vadd.f32 %v3823_v58, %v3704_v35 }
 0x565   : > { %v3825_v26 = vpop.f32.mrf.mxu1 }
 0x566   : > { %v3826_v42 = vadd.f32 %v3825_v26, %v3704_v35  ;;  %v3930_v62 = vpop.f32.mrf.mxu0 }
 0x567   : > { %v3931_v27 = vadd.f32 %v3930_v62, %v3824_v45  ;;  %v3829_v18 = vpop.f32.mrf.mxu1 }
 0x568   : > { %v3932_v16 = vpop.f32.mrf.mxu0  ;;  %v3830_v63 = vadd.f32 %v3829_v18, %v3709_v48 }
 0x569   : > { %v3933_v6 = vadd.f32 %v3932_v16, %v3826_v42  ;;  %v3831_v50 = vpop.f32.mrf.mxu1  ;;  %v3971_v59 = vmax.f32 %v3931_v27, 0.0  ;;  %v3729_v42 = vpop.permute.xlu0 %3728  ;;  %v7462_v16 = vld [vmem:[#allocation2 + $0x3e8] sm:$0xff] }
 0x56a   : > { %v3832_v57 = vadd.f32 %v3831_v50, %v3709_v48  ;;  %v3936_v37 = vpop.f32.mrf.mxu0 }
 0x56b   : > { %v3972_v56 = vmax.f32 %v3933_v6, 0.0  ;;  %v3937_v46 = vadd.f32 %v3936_v37, %v3830_v63  ;;  %v3835_v43 = vpop.f32.mrf.mxu1  ;;  %v3985_v5 = vadd.f32 %v7457_v47, %v3971_v59  ;;  %v7463_v59 = vld [vmem:[#allocation2 + $0x3e0] sm:$0xff] }
 0x56c   : > { %v3938_v51 = vpop.f32.mrf.mxu0  ;;  %v3836_v15 = vadd.f32 %v3835_v43, %v3714_v19 }
 0x56d   : > { %v3986_v10 = vadd.f32 %v7456_v53, %v3972_v56  ;;  %v3939_v30 = vadd.f32 %v3938_v51, %v3832_v57  ;;  %v3837_v31 = vpop.f32.mrf.mxu1  ;;  %v3973_v25 = vmax.f32 %v3937_v46, 0.0 }
 0x56e   : > { %v3838_v54 = vadd.f32 %v3837_v31, %v3714_v19  ;;  %v3942_v3 = vpop.f32.mrf.mxu0 }
 0x56f   : > { %v3974_v33 = vmax.f32 %v3939_v30, 0.0  ;;  %v3943_v0 = vadd.f32 %v3942_v3, %v3836_v15  ;;  %4095 = vmatprep.mubr.f32.mxu1 %v3986_v10  ;;  %v3841_v2 = vpop.f32.mrf.mxu1  ;;  %v3987_v12 = vadd.f32 %v7459_v40, %v3973_v25  ;;  %v3734_v15 = vpop.permute.xlu1 %3733  ;;  %v7464_v30 = vld [vmem:[#allocation2 + $0x408] sm:$0xff]  ;;  %v7465_v25 = vld [vmem:[#allocation2 + $0x400] sm:$0xff] }
 0x570   : > { %v3842_v24 = vadd.f32 %v3841_v2, %v3719_v11  ;;  %v3944_v1 = vpop.f32.mrf.mxu0  ;;  %4096 = vmatmul.mubr.f32.vlgmr.msra.gmra.mxu1 %v3985_v5 }
 0x571   : > { %v3988_v61 = vadd.f32 %v7458_v52, %v3974_v33  ;;  %v3945_v55 = vadd.f32 %v3944_v1, %v3838_v54  ;;  %v3843_v23 = vpop.f32.mrf.mxu1  ;;  %v3975_v4 = vmax.f32 %v3943_v0, 0.0  ;;  %v7466_v1 = vld [vmem:[#allocation2 + $0x428] sm:$0xff] }
 0x572   : > { %v3844_v7 = vadd.f32 %v3843_v23, %v3719_v11  ;;  %v3948_v22 = vpop.f32.mrf.mxu0 }
 0x573   : > { %v3976_v41 = vmax.f32 %v3945_v55, 0.0  ;;  %v3949_v8 = vadd.f32 %v3948_v22, %v3842_v24  ;;  %4100 = vmatprep.mubr.f32.mxu1 %v3988_v61  ;;  %v3847_v38 = vpop.f32.mrf.mxu1  ;;  %v3989_v13 = vadd.f32 %v7461_v60, %v3975_v4  ;;  %v7467_v55 = vld [vmem:[#allocation2 + $0x420] sm:$0xff]  ;;  %v7468_v4 = vld [vmem:[#allocation2 + $0x448] sm:$0xff] }
 0x574   : > { %v3950_v28 = vpop.f32.mrf.mxu0  ;;  %4101 = vmatmul.mubr.f32.gmra.mxu1 %v3987_v12  ;;  %v3848_v32 = vadd.f32 %v3847_v38, %v3724_v44  ;;  %v7469_v22 = vld [vmem:[#allocation2 + $0x440] sm:$0xff] }
 0x575   : > { %v3990_v49 = vadd.f32 %v7460_v34, %v3976_v41  ;;  %v3951_v21 = vadd.f32 %v3950_v28, %v3844_v7  ;;  %v3849_v29 = vpop.f32.mrf.mxu1  ;;  %v3977_v35 = vmax.f32 %v3949_v8, 0.0 }
 0x576   : > { %v3850_v58 = vadd.f32 %v3849_v29, %v3724_v44  ;;  %v3954_v45 = vpop.f32.mrf.mxu0 }
 0x577   : > { %v3978_v26 = vmax.f32 %v3951_v21, 0.0  ;;  %v3955_v48 = vadd.f32 %v3954_v45, %v3848_v32  ;;  %4105 = vmatprep.mubr.f32.mxu1 %v3990_v49  ;;  %v3853_v62 = vpop.f32.mrf.mxu1  ;;  %v3991_v57 = vadd.f32 %v7463_v59, %v3977_v35  ;;  %v10013_v32 = vpop.permute.xlu0 %4331 }
 0x578   : > { %v3854_v27 = vadd.f32 %v3853_v62, %v3729_v42  ;;  %v3956_v18 = vpop.f32.mrf.mxu0  ;;  %4106 = vmatmul.mubr.f32.gmra.mxu1 %v3989_v13 }
 0x579   : > { %v3992_v63 = vadd.f32 %v7462_v16, %v3978_v26  ;;  %v3957_v6 = vadd.f32 %v3956_v18, %v3850_v58  ;;  %v3855_v50 = vpop.f32.mrf.mxu1  ;;  %v3979_v37 = vmax.f32 %v3955_v48, 0.0 }
 0x57a   : > { %v3856_v56 = vadd.f32 %v3855_v50, %v3729_v42  ;;  %v3960_v46 = vpop.f32.mrf.mxu0  ;;  %v10043_v42 = vpop.permute.xlu1 %4432 }
 0x57b   : > { %v3980_v43 = vmax.f32 %v3957_v6, 0.0  ;;  %v3961_v19 = vadd.f32 %v3960_v46, %v3854_v27  ;;  %4110 = vmatprep.mubr.f32.mxu1 %v3992_v63  ;;  %v3859_v51 = vpop.f32.mrf.mxu1  ;;  %v3993_v54 = vadd.f32 %v7465_v25, %v3979_v37  ;;  %v10026_v13 = vpop.permute.xlu0 %4327 }
 0x57c   : > { %v3962_v53 = vpop.f32.mrf.mxu0  ;;  %4111 = vmatmul.mubr.f32.gmra.mxu1 %v3991_v57  ;;  %v3860_v10 = vadd.f32 %v3859_v51, %v3734_v15 }
 0x57d   : > { %v3994_v31 = vadd.f32 %v7464_v30, %v3980_v43  ;;  %v3963_v47 = vadd.f32 %v3962_v53, %v3856_v56  ;;  %v3861_v5 = vpop.f32.mrf.mxu1  ;;  %v3981_v3 = vmax.f32 %v3961_v19, 0.0 }
 0x57e   : > { %v3862_v33 = vadd.f32 %v3861_v5, %v3734_v15  ;;  %v3966_v0 = vpop.f32.mrf.mxu0  ;;  %v10058_v50 = vpop.permute.xlu1 %4428 }
 0x57f   : > { %v3982_v11 = vmax.f32 %v3963_v47, 0.0  ;;  %v3967_v2 = vadd.f32 %v3966_v0, %v3860_v10  ;;  %4115 = vmatprep.mubr.f32.mxu1 %v3994_v31  ;;  %v3995_v23 = vadd.f32 %v7467_v55, %v3981_v3  ;;  %v10041_v48 = vpop.permute.xlu0 %4274 }
 0x580   : > { %v3968_v24 = vpop.f32.mrf.mxu0  ;;  %4116 = vmatmul.mubr.f32.gmra.mxu1 %v3993_v54 }
 0x581   : > { %v3996_v52 = vadd.f32 %v7466_v1, %v3982_v11  ;;  %v3969_v61 = vadd.f32 %v3968_v24, %v3862_v33  ;;  %v3983_v40 = vmax.f32 %v3967_v2, 0.0 }
 0x582   : > { %v10075_v46 = vpop.permute.xlu1 %4424 }
 0x583   : > { %v3984_v12 = vmax.f32 %v3969_v61, 0.0  ;;  %4120 = vmatprep.mubr.f32.mxu1 %v3996_v52  ;;  %v3997_v41 = vadd.f32 %v7469_v22, %v3983_v40  ;;  %v10056_v6 = vpop.permute.xlu0 %4270  ;;  %v4624_v52 = vld [vmem:[%s10168_s17 + $0x18] sm:$0xff]  ;;  %v4698_v22 = vld [vmem:[%s8192_s19] sm:$0xff] }
 0x584   : > { %4121 = vmatmul.mubr.f32.gmra.mxu1 %v3995_v23 }
 0x585   : > { %v3998_v7 = vadd.f32 %v7468_v4, %v3984_v12 }
 0x586   : > { %v10084_v19 = vpop.permute.xlu1 %4594 }
 0x587   : > { %4125 = vmatprep.mubr.f32.mxu1 %v3998_v7  ;;  %v10073_v56 = vpop.permute.xlu0 %4266 }
 0x588   : > { %4126 = vmatmul.mubr.f32.gmra.mxu1 %v3997_v41  ;;  %v4699_v41 = vld [vmem:[%s8192_s19 + $0x8] sm:$0xff] }
 0x589   : > { %6890 = vmatprep.mubr.msk.f32.mxu1 %vm1651_vm6, %v4624_v52 }
 0x58a   : > { %v10096_v15 = vpop.permute.xlu1 %4420 }
 0x58b   : > { %v10082_v43 = vpop.permute.xlu0 %4262 }
 0x58e   : > { %v10104_v10 = vpop.permute.xlu1 %4590 }
 0x58f   : > { %v10094_v51 = vpop.permute.xlu0 %4258 }
 0x592   : > { %v10116_v31 = vpop.permute.xlu1 %4586 }
 0x593   : > { %v10102_v53 = vpop.permute.xlu0 %4254 }
 0x596   : > { %v10124_v5 = vpop.permute.xlu1 %4582 }
 0x597   : > { %v10114_v30 = vpop.permute.xlu0 %4250 }
 0x59a   : > { %v10136_v54 = vpop.permute.xlu1 %4578 }
 0x59b   : > { %v10122_v47 = vpop.permute.xlu0 %4197 }
 0x59e   : > { %v4575_v33 = vpop.permute.xlu1 %4574 }
 0x59f   : > { %v10134_v25 = vpop.permute.xlu0 %4193 }
 0x5a2   : > { %v10154_v0 = vpop.permute.xlu1 %4521 }
 0x5a3   : > { %v10142_v3 = vpop.permute.xlu0 %4351 }
 0x5a6   : > { %v10162_v2 = vpop.permute.xlu1 %4517 }
 0x5aa   : > { %v10181_v1 = vpop.permute.xlu1 %4513 }
 0x5ae   : > { %v10191_v55 = vpop.permute.xlu1 %4509 }
 0x5b2   : > { %v10199_v40 = vpop.permute.xlu1 %4505 }
 0x5b6   : > { %v4502_v4 = vpop.permute.xlu1 %4501 }
 0x5ba   : > { %v4498_v7 = vpop.permute.xlu1 %4497 }
 0x630   : > { %v6959_v8 = vpop.f32.mrf.mxu1 }
 0x632   : > { %v6960_v38 = vpop.f32.mrf.mxu1 }
 0x633   : > { %v10006_v44 = vadd.f32 %v6960_v38, %v6959_v8  ;;  %v7527_v8 = vmov 2  }
 0x634   : > { %v6962_v28 = vpop.f32.mrf.mxu1  ;;  %7448 = vset.pattern.permute.xlu0 %v7527_v8  ;;  %7449 = vset.pattern.permute.xlu1 %v7527_v8 }
 0x635   : > { %4138 = vst [vmem:[#allocation3 + $0x8] sm:$0xff] %v10006_v44  ;;  %4418 = vrot.lane.b32.xlu0 %v10006_v44, %s7514_s23  ;;  %4329 = vrot.lane.b32.xlu1 %v10006_v44, %s7525_s25  ;;  %4383 = vst [vmem:[#allocation2 + $0x2a0] sm:$0xff] %v10006_v44 }
 0x636   : > { %v6963_v34 = vpop.f32.mrf.mxu1  ;;  %5092 = vst.msk [vmem:[#allocation3 + $0x8] sm:$0xff] %vm5091_vm1, %v11279_v9 }
 0x637   : > { %v10016_v49 = vadd.f32 %v6963_v34, %v6962_v28 }
 0x638   : > { %v6965_v21 = vpop.f32.mrf.mxu1 }
 0x639   : > { %4139 = vst [vmem:[#allocation3 + $0x28] sm:$0xff] %v10016_v49  ;;  %4572 = vrot.lane.b32.xlu0 %v10006_v44, %s11280_s13  ;;  %4252 = vrot.lane.b32.xlu1 %v10006_v44, %s7522_s15  ;;  %4384 = vst [vmem:[#allocation2 + $0x2c0] sm:$0xff] %v10016_v49 }
 0x63a   : > { %v6966_v29 = vpop.f32.mrf.mxu1  ;;  %5093 = vst.msk [vmem:[#allocation3 + $0x28] sm:$0xff] %vm5091_vm1, %v11279_v9 }
 0x63b   : > { %v10024_v60 = vadd.f32 %v6966_v29, %v6965_v21  ;;  %v4702_v29 = vld [vmem:[%s8192_s19 + $0x20] sm:$0xff] }
 0x63c   : > { %v6968_v35 = vpop.f32.mrf.mxu1 }
 0x63d   : > { %4140 = vst [vmem:[#allocation3 + $0x48] sm:$0xff] %v10024_v60  ;;  %4495 = vrot.lane.b32.xlu0 %v10006_v44, %s11282_s18  ;;  %4333 = vrot.lane.b32.xlu1 %v10016_v49, %s7525_s25  ;;  %4385 = vst [vmem:[#allocation2 + $0x2e0] sm:$0xff] %v10024_v60 }
 0x63e   : > { %v6969_v58 = vpop.f32.mrf.mxu1  ;;  %5094 = vst.msk [vmem:[#allocation3 + $0x48] sm:$0xff] %vm5091_vm1, %v11279_v9 }
 0x63f   : > { %v10034_v45 = vadd.f32 %v6969_v58, %v6968_v35  ;;  %v4703_v35 = vld [vmem:[%s8192_s19 + $0x28] sm:$0xff] }
 0x640   : > { %v6971_v26 = vpop.f32.mrf.mxu1 }
 0x641   : > { %4141 = vst [vmem:[#allocation3 + $0x68] sm:$0xff] %v10034_v45  ;;  %4422 = vrot.lane.b32.xlu0 %v10016_v49, %s7514_s23  ;;  %4256 = vrot.lane.b32.xlu1 %v10016_v49, %s7522_s15  ;;  %4386 = vst [vmem:[#allocation2 + $0x300] sm:$0xff] %v10034_v45 }
 0x642   : > { %v6972_v62 = vpop.f32.mrf.mxu1  ;;  %5095 = vst.msk [vmem:[#allocation3 + $0x68] sm:$0xff] %vm5091_vm1, %v11279_v9 }
 0x643   : > { %v10046_v27 = vadd.f32 %v6972_v62, %v6971_v26 }
 0x644   : > { %v6974_v18 = vpop.f32.mrf.mxu1 }
 0x645   : > { %4142 = vst [vmem:[#allocation3 + $0x88] sm:$0xff] %v10046_v27  ;;  %4576 = vrot.lane.b32.xlu0 %v10016_v49, %s11280_s13  ;;  %4179 = vrot.lane.b32.xlu1 %v10016_v49, %s11281_s14  ;;  %4387 = vst [vmem:[#allocation2 + $0x320] sm:$0xff] %v10046_v27 }
 0x646   : > { %v6975_v16 = vpop.f32.mrf.mxu1  ;;  %5096 = vst.msk [vmem:[#allocation3 + $0x88] sm:$0xff] %vm5091_vm1, %v11279_v9 }
 0x647   : > { %v10054_v63 = vadd.f32 %v6975_v16, %v6974_v18 }
 0x648   : > { %v6977_v59 = vpop.f32.mrf.mxu1 }
 0x649   : > { %4143 = vst [vmem:[#allocation3 + $0xa8] sm:$0xff] %v10054_v63  ;;  %4499 = vrot.lane.b32.xlu0 %v10016_v49, %s11282_s18  ;;  %4260 = vrot.lane.b32.xlu1 %v10024_v60, %s7522_s15  ;;  %4388 = vst [vmem:[#allocation2 + $0x340] sm:$0xff] %v10054_v63 }
 0x64a   : > { %v6978_v57 = vpop.f32.mrf.mxu1  ;;  %5097 = vst.msk [vmem:[#allocation3 + $0xa8] sm:$0xff] %vm5091_vm1, %v11279_v9 }
 0x64b   : > { %v10066_v37 = vadd.f32 %v6978_v57, %v6977_v59 }
 0x64d   : > { %4144 = vst [vmem:[#allocation3 + $0xc8] sm:$0xff] %v10066_v37  ;;  %4426 = vrot.lane.b32.xlu0 %v10024_v60, %s7514_s23  ;;  %4183 = vrot.lane.b32.xlu1 %v10024_v60, %s11281_s14  ;;  %4389 = vst [vmem:[#allocation2 + $0x360] sm:$0xff] %v10066_v37 }
 0x64e   : > { %5098 = vst.msk [vmem:[#allocation3 + $0xc8] sm:$0xff] %vm5091_vm1, %v11279_v9 }
 0x651   : > { %4580 = vrot.lane.b32.xlu0 %v10024_v60, %s11280_s13  ;;  %4264 = vrot.lane.b32.xlu1 %v10034_v45, %s7522_s15 }
 0x655   : > { %4503 = vrot.lane.b32.xlu0 %v10024_v60, %s11282_s18  ;;  %4187 = vrot.lane.b32.xlu1 %v10034_v45, %s11281_s14 }
 0x659   : > { %4430 = vrot.lane.b32.xlu0 %v10034_v45, %s7514_s23  ;;  %4341 = vrot.lane.b32.xlu1 %v10034_v45, %s7525_s25 }
 0x65d   : > { %4584 = vrot.lane.b32.xlu0 %v10034_v45, %s11280_s13  ;;  %4268 = vrot.lane.b32.xlu1 %v10046_v27, %s7522_s15 }
 0x661   : > { %4507 = vrot.lane.b32.xlu0 %v10034_v45, %s11282_s18  ;;  %4191 = vrot.lane.b32.xlu1 %v10046_v27, %s11281_s14 }
 0x665   : > { %4588 = vrot.lane.b32.xlu0 %v10046_v27, %s11280_s13  ;;  %4345 = vrot.lane.b32.xlu1 %v10046_v27, %s7525_s25 }
 0x669   : > { %4511 = vrot.lane.b32.xlu0 %v10046_v27, %s11282_s18  ;;  %4272 = vrot.lane.b32.xlu1 %v10054_v63, %s7522_s15 }
 0x66d   : > { %4592 = vrot.lane.b32.xlu0 %v10054_v63, %s11280_s13  ;;  %4195 = vrot.lane.b32.xlu1 %v10054_v63, %s11281_s14 }
 0x671   : > { %4335 = vrot.lane.b32.xlu0 %v9970_v39, %s7525_s25  ;;  %4349 = vrot.lane.b32.xlu1 %v10054_v63, %s7525_s25  ;;  %v10152_v39 = vpop.permute.xlu0 %4189 }
 0x675   : > { %4515 = vrot.lane.b32.xlu0 %v10054_v63, %s11282_s18  ;;  %4276 = vrot.lane.b32.xlu1 %v10066_v37, %s7522_s15  ;;  %v10160_v11 = vpop.permute.xlu0 %4347 }
 0x679   : > { %4519 = vrot.lane.b32.xlu0 %v10066_v37, %s11282_s18  ;;  %4337 = vrot.lane.b32.xlu1 %v10024_v60, %s7525_s25  ;;  %v10179_v24 = vpop.permute.xlu0 %4185 }
 0x67d   : > { %4173 = vrot.lane.b32.xlu0 %v9952_v14, %s11281_s14  ;;  %4175 = vrot.lane.b32.xlu1 %v10006_v44, %s11281_s14  ;;  %v4622_v14 = vld [vmem:[%s10168_s17 + $0x8] sm:$0xff]  ;;  %v10189_v61 = vpop.permute.xlu0 %4343 }
 0x67e   : > { %4825 = vmatprep.mubr.f32.mxu0 %v4622_v14 }
 0x681   : > { %4438 = vrot.lane.b32.xlu0 %v10054_v63, %s7514_s23  ;;  %4199 = vrot.lane.b32.xlu1 %v10066_v37, %s11281_s14  ;;  %v10197_v23 = vpop.permute.xlu0 %4181 }
 0x685   : > { %4442 = vrot.lane.b32.xlu0 %v10066_v37, %s7514_s23  ;;  %4353 = vrot.lane.b32.xlu1 %v10066_v37, %s7525_s25  ;;  %v10201_v12 = vpop.permute.xlu0 %4339 }
 0x689   : > { %4434 = vrot.lane.b32.xlu0 %v10046_v27, %s7514_s23  ;;  %4444 = vrot.lane.b32.xlu1 %v9984_v17, %s7514_s23 }
 0x68d   : > { %4596 = vrot.lane.b32.xlu0 %v10066_v37, %s11280_s13  ;;  %4440 = vrot.lane.b32.xlu1 %v9960_v36, %s7514_s23  ;;  %v4178_v36 = vpop.permute.xlu0 %4177 }
 0x691   : > { %4436 = vrot.lane.b32.xlu1 %v9967_v20, %s7514_s23  ;;  %4707 = vperm.xlu0 %7448, %v4698_v22   ;;  %v4700_v20 = vld [vmem:[%s8192_s19 + $0x10] sm:$0xff] }
 0x695   : > { %4598 = vrot.lane.b32.xlu1 %v9984_v17, %s11280_s13  ;;  %v4701_v17 = vld [vmem:[%s8192_s19 + $0x18] sm:$0xff] }
 0x696   : > { %4722 = vperm.xlu0 %7448, %v4701_v17  }
 0x699   : > { %4712 = vperm.xlu1 %7449, %v4699_v41  }
 0x69a   : > { %4732 = vperm.xlu0 %7448, %v4703_v35  }
 0x69d   : > { %4717 = vperm.xlu1 %7449, %v4700_v20  }
 0x6a1   : > { %4727 = vperm.xlu1 %7449, %v4702_v29  }
 0x6a7   : > { %v4419_v38 = vpop.permute.xlu0 %4418  ;;  %v4330_v28 = vpop.permute.xlu1 %4329 }
 0x6a8   : > { %v10209_v34 = vsel %vm546_vm4, %v4419_v38, %v10096_v15  ;;  %v10213_v21 = vsel %vm2965_vm13, %v10026_v13, %v4330_v28  ;;  %v4704_v13 = vld [vmem:[%s8192_s19 + $0x30] sm:$0xff] }
 0x6a9   : > { %4460 = vst [vmem:[#allocation2 + $0x380] sm:$0xff] %v10209_v34  ;;  %4369 = vst [vmem:[#allocation2 + $0x1c0] sm:$0xff] %v10213_v21  ;;  %4737 = vperm.xlu1 %7449, %v4704_v13  }
 0x6ab   : > { %v4573_v58 = vpop.permute.xlu0 %4572  ;;  %v4253_v26 = vpop.permute.xlu1 %4252 }
 0x6ac   : > { %v10220_v62 = vsel %vm740_vm2, %v4573_v58, %v4575_v33  ;;  %v10224_v18 = vsel %vm2838_vm14, %v10114_v30, %v4253_v26 }
 0x6ad   : > { %4614 = vst [vmem:[#allocation2 + $0x540] sm:$0xff] %v10220_v62  ;;  %4292 = vst [vmem:[#allocation2 + $0xe0] sm:$0xff] %v10224_v18 }
 0x6af   : > { %v4496_v16 = vpop.permute.xlu0 %4495  ;;  %v4334_v59 = vpop.permute.xlu1 %4333 }
 0x6b0   : > { %v10230_v57 = vsel %vm643_vm3, %v4496_v16, %v4498_v7  ;;  %v4356_v15 = vsel %vm2965_vm13, %v10013_v32, %v4334_v59 }
 0x6b1   : > { %4537 = vst [vmem:[#allocation2 + $0x460] sm:$0xff] %v10230_v57  ;;  %4370 = vst [vmem:[#allocation2 + $0x1e0] sm:$0xff] %v4356_v15 }
 0x6b3   : > { %v4423_v30 = vpop.permute.xlu0 %4422  ;;  %v4257_v33 = vpop.permute.xlu1 %4256 }
 0x6b4   : > { %v4447_v14 = vsel %vm546_vm4, %v4423_v30, %v10075_v46  ;;  %v10239_v52 = vsel %vm2838_vm14, %v10102_v53, %v4257_v33 }
 0x6b5   : > { %4461 = vst [vmem:[#allocation2 + $0x3a0] sm:$0xff] %v4447_v14  ;;  %4293 = vst [vmem:[#allocation2 + $0x100] sm:$0xff] %v10239_v52 }
 0x6b7   : > { %v4577_v7 = vpop.permute.xlu0 %4576  ;;  %v4180_v22 = vpop.permute.xlu1 %4179 }
 0x6b8   : > { %v10244_v32 = vsel %vm740_vm2, %v4577_v7, %v10136_v54  ;;  %v10247_v41 = vsel %vm2711_vm15, %v4178_v36, %v4180_v22 }
 0x6b9   : > { %4615 = vst [vmem:[#allocation2 + $0x560] sm:$0xff] %v10244_v32  ;;  %4216 = vst [vmem:[#allocation2 + $0x20] sm:$0xff] %v10247_v41 }
 0x6bb   : > { %v4500_v46 = vpop.permute.xlu0 %4499  ;;  %v4261_v8 = vpop.permute.xlu1 %4260 }
 0x6bc   : > { %v10252_v53 = vsel %vm643_vm3, %v4500_v46, %v4502_v4  ;;  %v10256_v20 = vsel %vm2838_vm14, %v10094_v51, %v4261_v8 }
 0x6bd   : > { %4538 = vst [vmem:[#allocation2 + $0x480] sm:$0xff] %v10252_v53  ;;  %4294 = vst [vmem:[#allocation2 + $0x120] sm:$0xff] %v10256_v20 }
 0x6bf   : > { %v4427_v54 = vpop.permute.xlu0 %4426  ;;  %v4184_v36 = vpop.permute.xlu1 %4183 }
 0x6c0   : > { %v4448_v17 = vsel %vm546_vm4, %v4427_v54, %v10058_v50  ;;  %v10264_v38 = vsel %vm2711_vm15, %v10197_v23, %v4184_v36 }
 0x6c1   : > { %4462 = vst [vmem:[#allocation2 + $0x3c0] sm:$0xff] %v4448_v17  ;;  %4217 = vst [vmem:[#allocation2 + $0x40] sm:$0xff] %v10264_v38 }
 0x6c3   : > { %v4581_v4 = vpop.permute.xlu0 %4580  ;;  %v4265_v28 = vpop.permute.xlu1 %4264 }
 0x6c4   : > { %v4602_v51 = vsel %vm740_vm2, %v4581_v4, %v10124_v5  ;;  %v10271_v29 = vsel %vm2838_vm14, %v10082_v43, %v4265_v28 }
 0x6c5   : > { %4616 = vst [vmem:[#allocation2 + $0x580] sm:$0xff] %v4602_v51  ;;  %4295 = vst [vmem:[#allocation2 + $0x140] sm:$0xff] %v10271_v29 }
 0x6c7   : > { %v4504_v50 = vpop.permute.xlu0 %4503  ;;  %v4188_v35 = vpop.permute.xlu1 %4187 }
 0x6c8   : > { %v10276_v23 = vsel %vm643_vm3, %v4504_v50, %v10199_v40  ;;  %v10280_v58 = vsel %vm2711_vm15, %v10179_v24, %v4188_v35  ;;  %v4626_v50 = vld [vmem:[%s10168_s17 + $0x28] sm:$0xff] }
 0x6c9   : > { %4539 = vst [vmem:[#allocation2 + $0x4a0] sm:$0xff] %v10276_v23  ;;  %4218 = vst [vmem:[#allocation2 + $0x60] sm:$0xff] %v10280_v58 }
 0x6cb   : > { %v4431_v5 = vpop.permute.xlu0 %4430  ;;  %v4342_v43 = vpop.permute.xlu1 %4341 }
 0x6cc   : > { %v4449_v26 = vsel %vm546_vm4, %v4431_v5, %v10043_v42  ;;  %v10288_v13 = vsel %vm2965_vm13, %v10201_v12, %v4342_v43 }
 0x6cd   : > { %4463 = vst [vmem:[#allocation2 + $0x3e0] sm:$0xff] %v4449_v26  ;;  %4372 = vst [vmem:[#allocation2 + $0x220] sm:$0xff] %v10288_v13  ;;  %6980 = vmatprep.subr.mxu0 %v4449_v26  ;;  %v4623_v26 = vld [vmem:[%s10168_s17 + $0x10] sm:$0xff] }
 0x6ce   : > { %6981 = vmatpush3.msra.mxu0 %v4356_v15 }
 0x6cf   : > { %v4585_v24 = vpop.permute.xlu0 %4584  ;;  %v4269_v40 = vpop.permute.xlu1 %4268  ;;  %6982 = vmatprep.subr.mxu0 %v4448_v17 }
 0x6d0   : > { %v4603_v16 = vsel %vm740_vm2, %v4585_v24, %v10116_v31  ;;  %v4282_v59 = vsel %vm2838_vm14, %v10073_v56, %v4269_v40  ;;  %6983 = vmatpush3.msra.mxu0 %v10213_v21  ;;  %v4628_v40 = vld [vmem:[%s10168_s17 + $0x38] sm:$0xff] }
 0x6d1   : > { %4617 = vst [vmem:[#allocation2 + $0x5a0] sm:$0xff] %v4603_v16  ;;  %4296 = vst [vmem:[#allocation2 + $0x160] sm:$0xff] %v4282_v59  ;;  %6984 = vmatprep.subr.mxu0 %v4447_v14 }
 0x6d3   : > { %v4508_v42 = vpop.permute.xlu0 %4507  ;;  %v4192_v12 = vpop.permute.xlu1 %4191 }
 0x6d4   : > { %v10298_v30 = vsel %vm643_vm3, %v4508_v42, %v10191_v55  ;;  %v10302_v15 = vsel %vm2711_vm15, %v10152_v39, %v4192_v12  ;;  %v4988_v42 = vld [vmem:[%s11166_s7 + $0xd0] sm:$0xff] }
 0x6d5   : > { %4540 = vst [vmem:[#allocation2 + $0x4c0] sm:$0xff] %v10298_v30  ;;  %4219 = vst [vmem:[#allocation2 + $0x80] sm:$0xff] %v10302_v15  ;;  %v4627_v12 = vld [vmem:[%s10168_s17 + $0x30] sm:$0xff] }
 0x6d7   : > { %v4589_v56 = vpop.permute.xlu0 %4588  ;;  %v4346_v31 = vpop.permute.xlu1 %4345 }
 0x6d8   : > { %v4604_v21 = vsel %vm740_vm2, %v4589_v56, %v10104_v10  ;;  %v10310_v33 = vsel %vm2965_vm13, %v10189_v61, %v4346_v31  ;;  %v4633_v56 = vld [vmem:[%s10168_s17 + $0x60] sm:$0xff]  ;;  %v4638_v31 = vld [vmem:[%s10168_s17 + $0x88] sm:$0xff] }
 0x6d9   : > { %4618 = vst [vmem:[#allocation2 + $0x5c0] sm:$0xff] %v4604_v21  ;;  %4373 = vst [vmem:[#allocation2 + $0x240] sm:$0xff] %v10310_v33 }
 0x6db   : > { %v4512_v55 = vpop.permute.xlu0 %4511  ;;  %v4273_v14 = vpop.permute.xlu1 %4272 }
 0x6dc   : > { %v4527_v39 = vsel %vm643_vm3, %v4512_v55, %v10181_v1  ;;  %v4283_v7 = vsel %vm2838_vm14, %v10056_v6, %v4273_v14  ;;  %v4636_v55 = vld [vmem:[%s10168_s17 + $0x78] sm:$0xff]  ;;  %v4985_v14 = vld [vmem:[%s11166_s7 + $0xa0] sm:$0xff] }
 0x6dd   : > { %4541 = vst [vmem:[#allocation2 + $0x4e0] sm:$0xff] %v4527_v39  ;;  %4297 = vst [vmem:[#allocation2 + $0x180] sm:$0xff] %v4283_v7 }
 0x6df   : > { %v4593_v22 = vpop.permute.xlu0 %4592  ;;  %v4196_v46 = vpop.permute.xlu1 %4195 }
 0x6e0   : > { %v4605_v10 = vsel %vm740_vm2, %v4593_v22, %v10084_v19  ;;  %v10321_v61 = vsel %vm2711_vm15, %v10134_v25, %v4196_v46  ;;  %v4984_v22 = vld [vmem:[%s11166_s7 + $0x90] sm:$0xff] }
 0x6e1   : > { %4619 = vst [vmem:[#allocation2 + $0x5e0] sm:$0xff] %v4605_v10  ;;  %4220 = vst [vmem:[#allocation2 + $0xa0] sm:$0xff] %v10321_v61  ;;  %4862 = vmatpush1.msra.mxu1 %v4605_v10  ;;  %v4635_v46 = vld [vmem:[%s10168_s17 + $0x70] sm:$0xff]  ;;  %v4640_v10 = vld [vmem:[%s10168_s17 + $0x98] sm:$0xff] }
 0x6e2   : > { %4863 = vmatprep.subr.mxu1 %v11279_v9 }
 0x6e3   : > { %v4336_v1 = vpop.permute.xlu0 %4335  ;;  %v4350_v8 = vpop.permute.xlu1 %4349  ;;  %4864 = vmatpush1.msra.mxu1 %v4604_v21  ;;  %v4986_v21 = vld [vmem:[%s11166_s7 + $0xb0] sm:$0xff] }
 0x6e4   : > { %v10327_v6 = vsel %vm2965_vm13, %v10160_v11, %v4350_v8  ;;  %4865 = vmatprep.subr.mxu1 %v11279_v9  ;;  %v4646_v8 = vld [vmem:[%s10168_s17 + $0xc8] sm:$0xff] }
 0x6e5   : > { %4374 = vst [vmem:[#allocation2 + $0x260] sm:$0xff] %v10327_v6  ;;  %4866 = vmatpush1.msra.mxu1 %v4603_v16  ;;  %v4629_v16 = vld [vmem:[%s10168_s17 + $0x40] sm:$0xff] }
 0x6e6   : > { %4867 = vmatprep.subr.mxu1 %v11279_v9 }
 0x6e7   : > { %v4516_v19 = vpop.permute.xlu0 %4515  ;;  %v4277_v25 = vpop.permute.xlu1 %4276  ;;  %4868 = vmatpush1.msra.mxu1 %v4602_v51 }
 0x6e8   : > { %v4528_v54 = vsel %vm643_vm3, %v4516_v19, %v10162_v2  ;;  %v4284_v36 = vsel %vm2838_vm14, %v10041_v48, %v4277_v25  ;;  %4869 = vmatprep.subr.mxu1 %v11279_v9  ;;  %v4639_v19 = vld [vmem:[%s10168_s17 + $0x90] sm:$0xff]  ;;  %v4644_v25 = vld [vmem:[%s10168_s17 + $0xb8] sm:$0xff] }
 0x6e9   : > { %4542 = vst [vmem:[#allocation2 + $0x500] sm:$0xff] %v4528_v54  ;;  %4298 = vst [vmem:[#allocation2 + $0x1a0] sm:$0xff] %v4284_v36  ;;  %6985 = vmatpush3.msra.mxu0 %v4284_v36  ;;  %4870 = vmatpush1.msra.mxu1 %v10244_v32  ;;  %v4643_v36 = vld [vmem:[%s10168_s17 + $0xb0] sm:$0xff] }
 0x6ea   : > { %6986 = vmatprep.subr.mxu0 %v10209_v34  ;;  %4871 = vmatprep.subr.mxu1 %v11279_v9 }
 0x6eb   : > { %v4520_v11 = vpop.permute.xlu0 %4519  ;;  %v4338_v17 = vpop.permute.xlu1 %4337  ;;  %6987 = vmatpush3.msra.mxu0 %v4283_v7  ;;  %4872 = vmatpush1.msra.mxu1 %v10220_v62  ;;  %v4642_v7 = vld [vmem:[%s10168_s17 + $0xa8] sm:$0xff] }
 0x6ec   : > { %v4529_v2 = vsel %vm643_vm3, %v4520_v11, %v10154_v0  ;;  %v4357_v48 = vsel %vm2965_vm13, %v4336_v1, %v4338_v17  ;;  %6988 = vmatprep.subr.mxu0 %v10066_v37  ;;  %4873 = vmatprep.subr.mxu1 %v11279_v9  ;;  %v4641_v1 = vld [vmem:[%s10168_s17 + $0xa0] sm:$0xff]  ;;  %v4648_v11 = vld [vmem:[%s10168_s17 + $0xd8] sm:$0xff]  ;;  %v4647_v17 = vld [vmem:[%s10168_s17 + $0xd0] sm:$0xff]  ;;  %vm5961_vm3 = vcmask 294144  }
 0x6ed   : > { %4543 = vst [vmem:[#allocation2 + $0x520] sm:$0xff] %v4529_v2  ;;  %4371 = vst [vmem:[#allocation2 + $0x200] sm:$0xff] %v4357_v48  ;;  %6989 = vmatpush3.msra.mxu0 %v4282_v59  ;;  %4874 = vmatpush1.msra.mxu1 %v4529_v2  ;;  %v4634_v59 = vld [vmem:[%s10168_s17 + $0x68] sm:$0xff]  ;;  %v4981_v2 = vld [vmem:[%s11166_s7 + $0x60] sm:$0xff] }
 0x6ee   : > { %6990 = vmatprep.subr.mxu0 %v10054_v63  ;;  %4875 = vmatprep.subr.mxu1 %v11279_v9 }
 0x6ef   : > { %v4174_v34 = vpop.permute.xlu0 %4173  ;;  %v4176_v32 = vpop.permute.xlu1 %4175  ;;  %6991 = vmatpush3.msra.mxu0 %v10271_v29  ;;  %4876 = vmatpush1.msra.mxu1 %v4528_v54  ;;  %v4621_v29 = vld [vmem:[%s10168_s17] sm:$0xff] }
 0x6f0   : > { %v4201_v0 = vsel %vm2711_vm15, %v4174_v34, %v4176_v32  ;;  %6992 = vmatprep.subr.mxu0 %v10046_v27  ;;  %4877 = vmatprep.subr.mxu1 %v11279_v9  ;;  %v4645_v54 = vld [vmem:[%s10168_s17 + $0xc0] sm:$0xff]  ;;  %v4978_v32 = vld [vmem:[%s11166_s7 + $0x30] sm:$0xff] }
 0x6f1   : > { %4215 = vst [vmem:[#allocation2] sm:$0xff] %v4201_v0  ;;  %6993 = vmatpush3.msra.mxu0 %v10256_v20  ;;  %4878 = vmatpush1.msra.mxu1 %v4527_v39  ;;  %v4637_v39 = vld [vmem:[%s10168_s17 + $0x80] sm:$0xff] }
 0x6f2   : > { %6994 = vmatprep.subr.mxu0 %v10034_v45  ;;  %4879 = vmatprep.subr.mxu1 %v11279_v9  ;;  %v4979_v34 = vld [vmem:[%s11166_s7 + $0x40] sm:$0xff] }
 0x6f3   : > { %v4200_v62 = vpop.permute.xlu1 %4199  ;;  %6995 = vmatpush3.msra.mxu0 %v10239_v52  ;;  %4880 = vmatpush1.msra.mxu1 %v10298_v30  ;;  %v4439_v28 = vpop.permute.xlu0 %4438  ;;  %v4632_v30 = vld [vmem:[%s10168_s17 + $0x58] sm:$0xff] }
 0x6f4   : > { %v4207_v4 = vsel %vm2711_vm15, %v10122_v47, %v4200_v62  ;;  %6996 = vmatprep.subr.mxu0 %v10024_v60  ;;  %4881 = vmatprep.subr.mxu1 %v11279_v9  ;;  %v4976_v62 = vld [vmem:[%s11166_s7 + $0x10] sm:$0xff] }
 0x6f5   : > { %4221 = vst [vmem:[#allocation2 + $0xc0] sm:$0xff] %v4207_v4  ;;  %6997 = vmatpush3.msra.mxu0 %v10224_v18  ;;  %4882 = vmatpush1.msra.mxu1 %v10276_v23 }
 0x6f6   : > { %6998 = vmatprep.subr.mxu0 %v10016_v49  ;;  %4883 = vmatprep.subr.mxu1 %v11279_v9 }
 0x6f7   : > { %v4354_v52 = vpop.permute.xlu1 %4353  ;;  %6999 = vmatpush3.msra.mxu0 %v4207_v4  ;;  %4884 = vmatpush1.msra.mxu1 %v10252_v53  ;;  %v4443_v18 = vpop.permute.xlu0 %4442  ;;  %v4975_v4 = vld [vmem:[%s11166_s7] sm:$0xff] }
 0x6f8   : > { %v4361_v47 = vsel %vm2965_vm13, %v10142_v3, %v4354_v52  ;;  %7000 = vmatprep.subr.mxu0 %v10006_v44  ;;  %4885 = vmatprep.subr.mxu1 %v11279_v9  ;;  %v10490_v52 = vld [vmem:[#allocation3] sm:$0xff] }
 0x6f9   : > { %4375 = vst [vmem:[#allocation2 + $0x280] sm:$0xff] %v4361_v47  ;;  %7001 = vmatpush3.msra.mxu0 %v10321_v61  ;;  %4886 = vmatpush1.msra.mxu1 %v10230_v57  ;;  %v4983_v61 = vld [vmem:[%s11166_s7 + $0x80] sm:$0xff] }
 0x6fa   : > { %7002 = vmatprep.subr.mxu0 %v4361_v47  ;;  %4887 = vmatprep.subr.mxu1 %v11279_v9  ;;  %v5196_v47 = vld [vmem:[#allocation3 + $0xc0] sm:$0xff] }
 0x6fb   : > { %v4445_v20 = vpop.permute.xlu1 %4444  ;;  %7003 = vmatpush3.msra.mxu0 %v10302_v15  ;;  %v4435_v51 = vpop.permute.xlu0 %4434  ;;  %v4987_v15 = vld [vmem:[%s11166_s7 + $0xc0] sm:$0xff]  ;;  %5289 = vrot.lane.b32.xlu1 %v10490_v52, %s7525_s25 }
 0x6fc   : > { %v4452_v53 = vsel %vm546_vm4, %v4443_v18, %v4445_v20  ;;  %7004 = vmatprep.subr.mxu0 %v10327_v6  ;;  %v4982_v6 = vld [vmem:[%s11166_s7 + $0x70] sm:$0xff]  ;;  %v10494_v18 = vld [vmem:[#allocation3 + $0x60] sm:$0xff] }
 0x6fd   : > { %4466 = vst [vmem:[#allocation2 + $0x440] sm:$0xff] %v4452_v53  ;;  %7005 = vmatpush3.msra.mxu0 %v10280_v58  ;;  %4888 = vmatpush1.msra.mxu1 %v4452_v53  ;;  %v4630_v58 = vld [vmem:[%s10168_s17 + $0x48] sm:$0xff]  ;;  %v5194_v20 = vld [vmem:[#allocation3 + $0xa0] sm:$0xff] }
 0x6fe   : > { %7006 = vmatprep.subr.mxu0 %v10310_v33  ;;  %4889 = vmatprep.subr.mxu1 %v11279_v9  ;;  %v4631_v33 = vld [vmem:[%s10168_s17 + $0x50] sm:$0xff]  ;;  %v5192_v53 = vld [vmem:[#allocation3 + $0x80] sm:$0xff] }
 0x6ff   : > { %v4441_v3 = vpop.permute.xlu1 %4440  ;;  %7007 = vmatpush3.msra.mxu0 %v10264_v38  ;;  %v4990_v38 = vld [vmem:[%s11166_s7 + $0xf0] sm:$0xff]  ;;  %v4597_v5 = vpop.permute.xlu0 %4596  ;;  %5224 = vrot.lane.b32.xlu1 %v10494_v18, %s7522_s15 }
 0x700   : > { %v4451_v57 = vsel %vm546_vm4, %v4439_v28, %v4441_v3  ;;  %7008 = vmatprep.subr.mxu0 %v10288_v13  ;;  %v4989_v13 = vld [vmem:[%s11166_s7 + $0xe0] sm:$0xff] }
 0x701   : > { %4465 = vst [vmem:[#allocation2 + $0x420] sm:$0xff] %v4451_v57  ;;  %7009 = vmatpush3.msra.mxu0 %v10247_v41  ;;  %4890 = vmatpush1.msra.mxu1 %v4451_v57  ;;  %v4625_v41 = vld [vmem:[%s10168_s17 + $0x20] sm:$0xff] }
 0x702   : > { %7010 = vmatprep.subr.mxu0 %v4357_v48  ;;  %4891 = vmatprep.subr.mxu1 %v11279_v9  ;;  %v4980_v48 = vld [vmem:[%s11166_s7 + $0x50] sm:$0xff]  ;;  %v10486_v28 = vld [vmem:[#allocation3 + $0x20] sm:$0xff] }
 0x703   : > { %v4437_v35 = vpop.permute.xlu1 %4436  ;;  %7011 = vmatpush3.msra.mxu0 %v4201_v0  ;;  %v4977_v0 = vld [vmem:[%s11166_s7 + $0x20] sm:$0xff]  ;;  %5293 = vrot.lane.b32.xlu0 %v10486_v28, %s7525_s25 }
 0x704   : > { %v4450_v23 = vsel %vm546_vm4, %v4435_v51, %v4437_v35  ;;  %4826 = vmatmul.mubr.f32.vlgmr.msra.gmra.mxu0 %v4621_v29  ;;  %7198 = vmatprep.subr.mxu0 %v11279_v9  ;;  %v10503_v3 = vld [vmem:[#allocation3 + $0x40] sm:$0xff]  ;;  %vm5969_vm4 = vcmask 261120  }
 0x705   : > { %4464 = vst [vmem:[#allocation2 + $0x400] sm:$0xff] %v4450_v23  ;;  %4892 = vmatpush1.msra.mxu1 %v4450_v23  ;;  %4830 = vmatprep.mubr.f32.mxu0 %v4626_v50 }
 0x706   : > { %4923 = vmatprep.subr.mxu1 %v11279_v9  ;;  %7199 = vmatpush3.msra.mxu0 %v4990_v38 }
 0x707   : > { %v4599_v43 = vpop.permute.xlu1 %4598  ;;  %7200 = vmatprep.subr.mxu0 %v11279_v9  ;;  %5236 = vrot.lane.b32.xlu0 %v5196_v47, %s7522_s15 }
 0x708   : > { %v4606_v24 = vsel %vm740_vm2, %v4597_v5, %v4599_v43  ;;  %4831 = vmatmul.mubr.f32.gmra.mxu0 %v4625_v41  ;;  %5216 = vrot.lane.b32.xlu1 %v10486_v28, %s7522_s15  ;;  %vm5099_vm2 = vcmask 523264  }
 0x709   : > { %4620 = vst [vmem:[#allocation2 + $0x600] sm:$0xff] %v4606_v24  ;;  %4924 = vmatpush2.msra.mxu1 %v4606_v24  ;;  %4835 = vmatprep.mubr.f32.mxu0 %v4630_v58 }
 0x70a   : > { %4926 = vmatmul.mubr.f32.vlgmr.msra.gmra.mxu1 %v4623_v26  ;;  %7201 = vmatpush3.msra.mxu0 %v4989_v13 }
 0x70b   : > { %6891 = vmatprep.mubr.msk.f32.mxu1 %vm1651_vm6, %v4628_v40  ;;  %7202 = vmatprep.subr.mxu0 %v11279_v9 }
 0x70c   : > { %4836 = vmatmul.mubr.f32.gmra.mxu0 %v4629_v16  ;;  %5232 = vrot.lane.b32.xlu0 %v5194_v20, %s7522_s15  ;;  %v4708_v50 = vpop.permute.xlu0 %4707 }
 0x70d   : > { %4840 = vmatprep.mubr.f32.mxu0 %v4634_v59  ;;  %7203 = vmatpush3.msra.mxu0 %v4988_v42 }
 0x70e   : > { %4931 = vmatmul.mubr.f32.gmra.mxu1 %v4627_v12  ;;  %7204 = vmatprep.subr.mxu0 %v11279_v9 }
 0x70f   : > { %6892 = vmatprep.mubr.msk.f32.mxu1 %vm1651_vm6, %v4632_v30  ;;  %7205 = vmatpush3.msra.mxu0 %v4987_v15 }
 0x710   : > { %4841 = vmatmul.mubr.f32.gmra.mxu0 %v4633_v56  ;;  %7206 = vmatprep.subr.mxu0 %v11279_v9 }
 0x711   : > { %4845 = vmatprep.mubr.f32.mxu0 %v4638_v31  ;;  %7207 = vmatpush3.msra.mxu0 %v4986_v21 }
 0x712   : > { %4936 = vmatmul.mubr.f32.gmra.mxu1 %v4631_v33  ;;  %7208 = vmatprep.subr.mxu0 %v11279_v9 }
 0x713   : > { %6893 = vmatprep.mubr.msk.f32.mxu1 %vm1651_vm6, %v4636_v55  ;;  %7209 = vmatpush3.msra.mxu0 %v4985_v14 }
 0x714   : > { %4846 = vmatmul.mubr.f32.gmra.mxu0 %v4637_v39  ;;  %7210 = vmatprep.subr.mxu0 %v11279_v9  ;;  %v4713_v23 = vpop.permute.xlu1 %4712 }
 0x715   : > { %4850 = vmatprep.mubr.f32.mxu0 %v4642_v7  ;;  %7211 = vmatpush3.msra.mxu0 %v4984_v22 }
 0x716   : > { %4941 = vmatmul.mubr.f32.gmra.mxu1 %v4635_v46  ;;  %7212 = vmatprep.subr.mxu0 %v11279_v9  ;;  %v4723_v46 = vpop.permute.xlu0 %4722 }
 0x717   : > { %6894 = vmatprep.mubr.msk.f32.mxu1 %vm1651_vm6, %v4640_v10  ;;  %7213 = vmatpush3.msra.mxu0 %v4983_v61 }
 0x718   : > { %4851 = vmatmul.mubr.f32.gmra.mxu0 %v4641_v1  ;;  %7214 = vmatprep.subr.mxu0 %v11279_v9  ;;  %v4718_v15 = vpop.permute.xlu1 %4717 }
 0x719   : > { %4855 = vmatprep.mubr.f32.mxu0 %v4646_v8  ;;  %7215 = vmatpush3.msra.mxu0 %v4982_v6 }
 0x71a   : > { %4946 = vmatmul.mubr.f32.gmra.mxu1 %v4639_v19  ;;  %7216 = vmatprep.subr.mxu0 %v11279_v9 }
 0x71b   : > { %6895 = vmatprep.mubr.msk.f32.mxu1 %vm1651_vm6, %v4644_v25  ;;  %7217 = vmatpush3.msra.mxu0 %v4981_v2 }
 0x71c   : > { %4856 = vmatmul.mubr.f32.gmra.mxu0 %v4645_v54  ;;  %7218 = vmatprep.subr.mxu0 %v11279_v9 }
 0x71d   : > { %7219 = vmatpush3.msra.mxu0 %v4980_v48  ;;  %7230 = vmatprep.mubr.msk.f32.mxu0 %vm7528_vm0, %v11279_v9 }
 0x71e   : > { %4951 = vmatmul.mubr.f32.gmra.mxu1 %v4643_v36  ;;  %7220 = vmatprep.subr.mxu0 %v11279_v9  ;;  %v4728_v36 = vpop.permute.xlu1 %4727 }
 0x71f   : > { %6896 = vmatprep.mubr.msk.f32.mxu1 %vm1651_vm6, %v4648_v11  ;;  %7221 = vmatpush3.msra.mxu0 %v4979_v34 }
 0x720   : > { %7222 = vmatprep.subr.mxu0 %v11279_v9  ;;  %5228 = vrot.lane.b32.xlu0 %v5192_v53, %s7522_s15 }
 0x721   : > { %7223 = vmatpush3.msra.mxu0 %v4978_v32  ;;  %5159 = vrot.lane.b32.xlu1 %v5196_v47, %s11281_s14 }
 0x722   : > { %4956 = vmatmul.mubr.f32.gmra.mxu1 %v4647_v17  ;;  %7224 = vmatprep.subr.mxu0 %v11279_v9 }
 0x723   : > { %7225 = vmatpush3.msra.mxu0 %v4977_v0 }
 0x724   : > { %7226 = vmatprep.subr.mxu0 %v11279_v9  ;;  %5220 = vrot.lane.b32.xlu0 %v10503_v3, %s7522_s15 }
 0x725   : > { %7227 = vmatpush3.msra.mxu0 %v4976_v62  ;;  %5151 = vrot.lane.b32.xlu1 %v5192_v53, %s11281_s14 }
 0x726   : > { %7228 = vmatprep.subr.mxu0 %v11279_v9 }
 0x727   : > { %7229 = vmatpush3.msra.mxu0 %v4975_v4  ;;  %v4733_v4 = vpop.permute.xlu0 %4732 }
 0x728   : > { %5718 = vmatprep.subr.mxu0 %v11279_v9  ;;  %5212 = vrot.lane.b32.xlu0 %v10490_v52, %s7522_s15 }
 0x729   : > { %5309 = vrot.lane.b32.xlu1 %v5194_v20, %s7525_s25 }
 0x72c   : > { %5155 = vrot.lane.b32.xlu0 %v5194_v20, %s11281_s14 }
 0x72d   : > { %5143 = vrot.lane.b32.xlu1 %v10503_v3, %s11281_s14 }
 0x730   : > { %5313 = vrot.lane.b32.xlu0 %v5196_v47, %s7525_s25 }
 0x734   : > { %5147 = vrot.lane.b32.xlu0 %v10494_v18, %s11281_s14 }
 0x738   : > { %5305 = vrot.lane.b32.xlu0 %v5192_v53, %s7525_s25 }
 0x7c4   : > { %v7012_v57 = vpop.f32.mrf.mxu0 }
 0x7c6   : > { %v7013_v51 = vpop.f32.mrf.mxu0 }
 0x7c7   : > { %v7014_v29 = vadd.f32 %v7013_v51, %v7012_v57 }
 0x7c8   : > { %v7015_v35 = vpop.f32.mrf.mxu0 }
 0x7c9   : > { %v4828_v38 = vadd.f32 %v7014_v29, %v4708_v50 }
 0x7ca   : > { %v7016_v41 = vpop.f32.mrf.mxu0  ;;  %v4927_v58 = vpop.f32.mrf.mxu1 }
 0x7cb   : > { %v7017_v5 = vadd.f32 %v7016_v41, %v7015_v35  ;;  %v4928_v43 = vadd.f32 %v4927_v58, %v4828_v38 }
 0x7cc   : > { %v7018_v26 = vpop.f32.mrf.mxu0  ;;  %v4929_v13 = vpop.f32.mrf.mxu1 }
 0x7cd   : > { %v4961_v24 = vmax.f32 %v4928_v43, 0.0  ;;  %v4833_v40 = vadd.f32 %v7017_v5, %v4713_v23  ;;  %v4738_v23 = vpop.permute.xlu1 %4737 }
 0x7ce   : > { %v7019_v16 = vpop.f32.mrf.mxu0  ;;  %v4932_v59 = vpop.f32.mrf.mxu1 }
 0x7cf   : > { %v4968_v42 = vadd.f32 %v10006_v44, %v4961_v24  ;;  %v7020_v12 = vadd.f32 %v7019_v16, %v7018_v26  ;;  %v4933_v30 = vadd.f32 %v4932_v59, %v4833_v40 }
 0x7d0   : > { %v7021_v56 = vpop.f32.mrf.mxu0  ;;  %v4934_v31 = vpop.f32.mrf.mxu1 }
 0x7d1   : > { %v4962_v21 = vmax.f32 %v4933_v30, 0.0  ;;  %v4838_v33 = vadd.f32 %v7020_v12, %v4718_v15  ;;  %7231 = vmatmul.mubr.f32.vlgmr.msra.gmra.mxu0 %v4968_v42 }
 0x7d2   : > { %v7022_v55 = vpop.f32.mrf.mxu0  ;;  %v4937_v14 = vpop.f32.mrf.mxu1  ;;  %7233 = vmatprep.mubr.msk.f32.mxu0 %vm7528_vm0, %v11279_v9 }
 0x7d3   : > { %v4969_v39 = vadd.f32 %v10016_v49, %v4962_v21  ;;  %v7023_v7 = vadd.f32 %v7022_v55, %v7021_v56  ;;  %v4938_v22 = vadd.f32 %v4937_v14, %v4838_v33 }
 0x7d4   : > { %v7024_v10 = vpop.f32.mrf.mxu0  ;;  %v4939_v44 = vpop.f32.mrf.mxu1 }
 0x7d5   : > { %v4963_v61 = vmax.f32 %v4938_v22, 0.0  ;;  %v4843_v1 = vadd.f32 %v7023_v7, %v4723_v46  ;;  %7234 = vmatmul.mubr.f32.gmra.mxu0 %v4969_v39  ;;  %v10615_v44 = vpop.permute.xlu0 %5293 }
 0x7d6   : > { %v7025_v8 = vpop.f32.mrf.mxu0  ;;  %v4942_v6 = vpop.f32.mrf.mxu1  ;;  %7236 = vmatprep.mubr.msk.f32.mxu0 %vm7528_vm0, %v11279_v9 }
 0x7d7   : > { %v4970_v19 = vadd.f32 %v10024_v60, %v4963_v61  ;;  %v7026_v25 = vadd.f32 %v7025_v8, %v7024_v10  ;;  %v4943_v54 = vadd.f32 %v4942_v6, %v4843_v1  ;;  %v5290_v8 = vpop.permute.xlu1 %5289 }
 0x7d8   : > { %v7027_v11 = vpop.f32.mrf.mxu0  ;;  %v4944_v49 = vpop.f32.mrf.mxu1 }
 0x7d9   : > { %v4964_v17 = vmax.f32 %v4943_v54, 0.0  ;;  %v4848_v2 = vadd.f32 %v7026_v25, %v4728_v36  ;;  %7237 = vmatmul.mubr.f32.gmra.mxu0 %v4970_v19  ;;  %v10622_v61 = vpop.permute.xlu0 %5236  ;;  %v5481_v54 = vld [vmem:[%s10650_s16 + $0x18] sm:$0xff] }
 0x7da   : > { %v7028_v48 = vpop.f32.mrf.mxu0  ;;  %v4947_v34 = vpop.f32.mrf.mxu1  ;;  %7239 = vmatprep.mubr.msk.f32.mxu0 %vm7528_vm0, %v11279_v9 }
 0x7db   : > { %v4971_v32 = vadd.f32 %v10034_v45, %v4964_v17  ;;  %v7029_v0 = vadd.f32 %v7028_v48, %v7027_v11  ;;  %v4948_v62 = vadd.f32 %v4947_v34, %v4848_v2  ;;  %v10642_v6 = vpop.permute.xlu1 %5224 }
 0x7dc   : > { %v7030_v47 = vpop.f32.mrf.mxu0  ;;  %v4949_v60 = vpop.f32.mrf.mxu1 }
 0x7dd   : > { %v4965_v20 = vmax.f32 %v4948_v62, 0.0  ;;  %v4853_v53 = vadd.f32 %v7029_v0, %v4733_v4  ;;  %7240 = vmatmul.mubr.f32.gmra.mxu0 %v4971_v32  ;;  %v10627_v1 = vpop.permute.xlu0 %5232  ;;  %v10673_v62 = vld [vmem:[%s8192_s19] sm:$0xff]  ;;  %v10676_v4 = vld [vmem:[%s8192_s19 + $0x8] sm:$0xff]  ;;  %v7529_v60 = vmov 3  }
 0x7de   : > { %v7031_v57 = vpop.f32.mrf.mxu0  ;;  %v4952_v51 = vpop.f32.mrf.mxu1  ;;  %7242 = vmatprep.mubr.msk.f32.mxu0 %vm7528_vm0, %v11279_v9  ;;  %7450 = vset.pattern.permute.xlu1 %v7529_v60 }
 0x7df   : > { %v4972_v29 = vadd.f32 %v10046_v27, %v4965_v20  ;;  %v7032_v50 = vadd.f32 %v7031_v57, %v7030_v47  ;;  %v4953_v35 = vadd.f32 %v4952_v51, %v4853_v53  ;;  %v5217_v25 = vpop.permute.xlu1 %5216  ;;  %7451 = vset.pattern.permute.xlu0 %v7529_v60  ;;  %v10684_v20 = vld [vmem:[%s8192_s19 + $0x10] sm:$0xff]  ;;  %v10687_v53 = vld [vmem:[%s8192_s19 + $0x20] sm:$0xff] }
 0x7e0   : > { %v4954_v38 = vpop.f32.mrf.mxu1 }
 0x7e1   : > { %v4966_v45 = vmax.f32 %v4953_v35, 0.0  ;;  %v4858_v41 = vadd.f32 %v7032_v50, %v4738_v23  ;;  %7243 = vmatmul.mubr.f32.gmra.mxu0 %v4972_v29  ;;  %v10695_v50 = vld [vmem:[%s8192_s19 + $0x18] sm:$0xff]  ;;  %v10698_v35 = vld [vmem:[%s8192_s19 + $0x30] sm:$0xff] }
 0x7e2   : > { %v4957_v58 = vpop.f32.mrf.mxu1  ;;  %7245 = vmatprep.mubr.msk.f32.mxu0 %vm7528_vm0, %v11279_v9 }
 0x7e3   : > { %v4973_v5 = vadd.f32 %v10054_v63, %v4966_v45  ;;  %v4958_v43 = vadd.f32 %v4957_v58, %v4858_v41  ;;  %v10660_v11 = vpop.permute.xlu1 %5159  ;;  %v10707_v41 = vld [vmem:[%s8192_s19 + $0x28] sm:$0xff] }
 0x7e4   : > { %v4959_v26 = vpop.f32.mrf.mxu1 }
 0x7e5   : > { %v4967_v13 = vmax.f32 %v4958_v43, 0.0  ;;  %7246 = vmatmul.mubr.f32.gmra.mxu0 %v4973_v5 }
 0x7e6   : > { %7248 = vmatprep.mubr.msk.f32.mxu0 %vm7528_vm0, %v11279_v9 }
 0x7e7   : > { %v4974_v27 = vadd.f32 %v10066_v37, %v4967_v13 }
 0x7e9   : > { %7249 = vmatmul.mubr.f32.gmra.mxu0 %v4974_v27 }
 0x7ea   : > { %6897 = vmatprep.mubr.msk.f32.mxu0 %vm1651_vm6, %v5481_v54 }
 0x891   : > { %v10545_v63 = vpop.f32.mrf.mxu0 }
 0x892   : > { %5100 = vst.msk [vmem:[#allocation3 + $0x8] sm:$0xff] %vm5099_vm2, %v10545_v63 }
 0x893   : > { %v7232_v37 = vpop.f32.mrf.mxu0 }
 0x895   : > { %v10549_v24 = vpop.f32.mrf.mxu0 }
 0x896   : > { %5101 = vst.msk [vmem:[#allocation3 + $0x28] sm:$0xff] %vm5099_vm2, %v10549_v24 }
 0x897   : > { %v7235_v40 = vpop.f32.mrf.mxu0 }
 0x899   : > { %v10553_v16 = vld [vmem:[#allocation3 + $0x8] sm:$0xff]  ;;  %v10555_v59 = vpop.f32.mrf.mxu0 }
 0x89a   : > { %5345 = vst.msk [vmem:[#allocation2 + $0x2a0] sm:$0xff] %vm5099_vm2, %v10553_v16  ;;  %5102 = vst.msk [vmem:[#allocation3 + $0x48] sm:$0xff] %vm5099_vm2, %v10555_v59  ;;  %5450 = vrot.lane.b32.xlu1 %v10553_v16, %s11280_s13  ;;  %5291 = vrot.lane.b32.xlu0 %v10553_v16, %s7525_s25 }
 0x89b   : > { %v7238_v42 = vpop.f32.mrf.mxu0  ;;  %5962 = vst.msk [vmem:[#allocation3 + $0x8] sm:$0xff] %vm5961_vm3, %v11279_v9 }
 0x89d   : > { %v5339_v12 = vld [vmem:[#allocation3 + $0x28] sm:$0xff]  ;;  %v10565_v30 = vpop.f32.mrf.mxu0 }
 0x89e   : > { %5346 = vst.msk [vmem:[#allocation2 + $0x2c0] sm:$0xff] %vm5099_vm2, %v5339_v12  ;;  %5103 = vst.msk [vmem:[#allocation3 + $0x68] sm:$0xff] %vm5099_vm2, %v10565_v30  ;;  %5366 = vrot.lane.b32.xlu0 %v10553_v16, %s7514_s23  ;;  %5214 = vrot.lane.b32.xlu1 %v10553_v16, %s7522_s15 }
 0x89f   : > { %v7241_v15 = vpop.f32.mrf.mxu0  ;;  %5963 = vst.msk [vmem:[#allocation3 + $0x28] sm:$0xff] %vm5961_vm3, %v11279_v9 }
 0x8a1   : > { %v5340_v56 = vld [vmem:[#allocation3 + $0x48] sm:$0xff]  ;;  %v10574_v31 = vpop.f32.mrf.mxu0 }
 0x8a2   : > { %5347 = vst.msk [vmem:[#allocation2 + $0x2e0] sm:$0xff] %vm5099_vm2, %v5340_v56  ;;  %5104 = vst.msk [vmem:[#allocation3 + $0x88] sm:$0xff] %vm5099_vm2, %v10574_v31  ;;  %5368 = vrot.lane.b32.xlu0 %v5339_v12, %s7514_s23  ;;  %5295 = vrot.lane.b32.xlu1 %v5339_v12, %s7525_s25 }
 0x8a3   : > { %v7244_v21 = vpop.f32.mrf.mxu0  ;;  %5964 = vst.msk [vmem:[#allocation3 + $0x48] sm:$0xff] %vm5961_vm3, %v11279_v9 }
 0x8a5   : > { %v5341_v33 = vld [vmem:[#allocation3 + $0x68] sm:$0xff]  ;;  %v10581_v55 = vpop.f32.mrf.mxu0 }
 0x8a6   : > { %5348 = vst.msk [vmem:[#allocation2 + $0x300] sm:$0xff] %vm5099_vm2, %v5341_v33  ;;  %5105 = vst.msk [vmem:[#allocation3 + $0xa8] sm:$0xff] %vm5099_vm2, %v10581_v55  ;;  %5452 = vrot.lane.b32.xlu0 %v5339_v12, %s11280_s13  ;;  %5370 = vrot.lane.b32.xlu1 %v5340_v56, %s7514_s23 }
 0x8a7   : > { %v7247_v14 = vpop.f32.mrf.mxu0  ;;  %5965 = vst.msk [vmem:[#allocation3 + $0x68] sm:$0xff] %vm5961_vm3, %v11279_v9 }
 0x8a9   : > { %v5342_v39 = vld [vmem:[#allocation3 + $0x88] sm:$0xff]  ;;  %v10588_v7 = vpop.f32.mrf.mxu0 }
 0x8aa   : > { %5349 = vst.msk [vmem:[#allocation2 + $0x320] sm:$0xff] %vm5099_vm2, %v5342_v39  ;;  %5106 = vst.msk [vmem:[#allocation3 + $0xc8] sm:$0xff] %vm5099_vm2, %v10588_v7  ;;  %5218 = vrot.lane.b32.xlu0 %v5339_v12, %s7522_s15  ;;  %5454 = vrot.lane.b32.xlu1 %v5340_v56, %s11280_s13 }
 0x8ab   : > { %v7250_v22 = vpop.f32.mrf.mxu0  ;;  %5966 = vst.msk [vmem:[#allocation3 + $0x88] sm:$0xff] %vm5961_vm3, %v11279_v9 }
 0x8ad   : > { %v5343_v46 = vld [vmem:[#allocation3 + $0xa8] sm:$0xff] }
 0x8ae   : > { %5350 = vst.msk [vmem:[#allocation2 + $0x340] sm:$0xff] %vm5099_vm2, %v5343_v46  ;;  %5412 = vrot.lane.b32.xlu0 %v5340_v56, %s11282_s18  ;;  %5222 = vrot.lane.b32.xlu1 %v5340_v56, %s7522_s15 }
 0x8af   : > { %5967 = vst.msk [vmem:[#allocation3 + $0xa8] sm:$0xff] %vm5961_vm3, %v11279_v9 }
 0x8b1   : > { %v5344_v10 = vld [vmem:[#allocation3 + $0xc8] sm:$0xff] }
 0x8b2   : > { %5351 = vst.msk [vmem:[#allocation2 + $0x360] sm:$0xff] %vm5099_vm2, %v5344_v10  ;;  %5145 = vrot.lane.b32.xlu0 %v5340_v56, %s11281_s14  ;;  %5414 = vrot.lane.b32.xlu1 %v5341_v33, %s11282_s18 }
 0x8b3   : > { %5968 = vst.msk [vmem:[#allocation3 + $0xc8] sm:$0xff] %vm5961_vm3, %v11279_v9 }
 0x8b6   : > { %5372 = vrot.lane.b32.xlu0 %v5341_v33, %s7514_s23  ;;  %5149 = vrot.lane.b32.xlu1 %v5341_v33, %s11281_s14 }
 0x8ba   : > { %5456 = vrot.lane.b32.xlu0 %v5341_v33, %s11280_s13  ;;  %5458 = vrot.lane.b32.xlu1 %v5342_v39, %s11280_s13 }
 0x8be   : > { %5226 = vrot.lane.b32.xlu0 %v5341_v33, %s7522_s15  ;;  %5230 = vrot.lane.b32.xlu1 %v5342_v39, %s7522_s15 }
 0x8c2   : > { %5416 = vrot.lane.b32.xlu0 %v5342_v39, %s11282_s18  ;;  %5307 = vrot.lane.b32.xlu1 %v5342_v39, %s7525_s25 }
 0x8c6   : > { %5153 = vrot.lane.b32.xlu0 %v5342_v39, %s11281_s14  ;;  %5460 = vrot.lane.b32.xlu1 %v5343_v46, %s11280_s13 }
 0x8ca   : > { %5311 = vrot.lane.b32.xlu0 %v5343_v46, %s7525_s25  ;;  %5234 = vrot.lane.b32.xlu1 %v5343_v46, %s7522_s15 }
 0x8ce   : > { %5303 = vrot.lane.b32.xlu0 %v5341_v33, %s7525_s25  ;;  %5418 = vrot.lane.b32.xlu1 %v5343_v46, %s11282_s18 }
 0x8d2   : > { %5139 = vrot.lane.b32.xlu0 %v10486_v28, %s11281_s14  ;;  %5157 = vrot.lane.b32.xlu1 %v5343_v46, %s11281_s14  ;;  %v10635_v28 = vpop.permute.xlu0 %5228 }
 0x8d6   : > { %5420 = vrot.lane.b32.xlu0 %v5344_v10, %s11282_s18  ;;  %5238 = vrot.lane.b32.xlu1 %v5344_v10, %s7522_s15 }
 0x8da   : > { %5301 = vrot.lane.b32.xlu1 %v10494_v18, %s7525_s25  ;;  %5161 = vrot.lane.b32.xlu0 %v5344_v10, %s11281_s14  ;;  %v10640_v18 = vpop.permute.xlu0 %5220 }
 0x8de   : > { %5410 = vrot.lane.b32.xlu1 %v5339_v12, %s11282_s18  ;;  %5297 = vrot.lane.b32.xlu0 %v10503_v3, %s7525_s25  ;;  %v5479_v3 = vld [vmem:[%s10650_s16 + $0x8] sm:$0xff]  ;;  %v5213_v19 = vpop.permute.xlu0 %5212 }
 0x8df   : > { %5682 = vmatprep.mubr.f32.mxu1 %v5479_v3 }
 0x8e2   : > { %5141 = vrot.lane.b32.xlu1 %v5339_v12, %s11281_s14  ;;  %5408 = vrot.lane.b32.xlu0 %v10553_v16, %s11282_s18  ;;  %v10658_v36 = vpop.permute.xlu0 %5155 }
 0x8e6   : > { %5315 = vrot.lane.b32.xlu1 %v5344_v10, %s7525_s25  ;;  %5137 = vrot.lane.b32.xlu0 %v10553_v16, %s11281_s14  ;;  %v10664_v49 = vpop.permute.xlu0 %5313 }
 0x8ea   : > { %5299 = vrot.lane.b32.xlu1 %v5340_v56, %s7525_s25  ;;  %5376 = vrot.lane.b32.xlu0 %v5343_v46, %s7514_s23  ;;  %v5148_v17 = vpop.permute.xlu0 %5147 }
 0x8ee   : > { %5135 = vrot.lane.b32.xlu1 %v10490_v52, %s11281_s14  ;;  %5462 = vrot.lane.b32.xlu0 %v5344_v10, %s11280_s13  ;;  %v10666_v52 = vpop.permute.xlu1 %5151  ;;  %v10670_v48 = vpop.permute.xlu0 %5305 }
 0x8f2   : > { %5378 = vrot.lane.b32.xlu1 %v5344_v10, %s7514_s23  ;;  %v10668_v2 = vpop.permute.xlu1 %5309  ;;  %5569 = vperm.xlu0 %7451, %v10676_v4  }
 0x8f6   : > { %5374 = vrot.lane.b32.xlu1 %v5342_v39, %s7514_s23  ;;  %v5144_v34 = vpop.permute.xlu1 %5143  ;;  %5584 = vperm.xlu0 %7451, %v10687_v53  }
 0x8fa   : > { %5564 = vperm.xlu1 %7450, %v10673_v62   ;;  %5594 = vperm.xlu0 %7451, %v10698_v35  }
 0x8fe   : > { %5574 = vperm.xlu1 %7450, %v10684_v20  }
 0x902   : > { %5579 = vperm.xlu1 %7450, %v10695_v50  }
 0x906   : > { %5589 = vperm.xlu1 %7450, %v10707_v41  }
 0x90c   : > { %v5292_v32 = vpop.permute.xlu0 %5291  ;;  %v5451_v0 = vpop.permute.xlu1 %5450 }
 0x90d   : > { %v5317_v47 = vsel %vm2965_vm13, %v5290_v8, %v5292_v32  ;;  %5471 = vst.msk [vmem:[#allocation2 + $0x540] sm:$0xff] %vm5099_vm2, %v5451_v0 }
 0x90e   : > { %5331 = vst.msk [vmem:[#allocation2 + $0x1c0] sm:$0xff] %vm5099_vm2, %v5317_v47 }
 0x910   : > { %v5367_v57 = vpop.permute.xlu0 %5366  ;;  %v5215_v51 = vpop.permute.xlu1 %5214 }
 0x911   : > { %5387 = vst.msk [vmem:[#allocation2 + $0x380] sm:$0xff] %vm5099_vm2, %v5367_v57  ;;  %v5240_v29 = vsel %vm2838_vm14, %v5213_v19, %v5215_v51 }
 0x912   : > { %5254 = vst.msk [vmem:[#allocation2 + $0xe0] sm:$0xff] %vm5099_vm2, %v5240_v29 }
 0x914   : > { %v5369_v38 = vpop.permute.xlu0 %5368  ;;  %v5296_v23 = vpop.permute.xlu1 %5295 }
 0x915   : > { %5388 = vst.msk [vmem:[#allocation2 + $0x3a0] sm:$0xff] %vm5099_vm2, %v5369_v38  ;;  %v5318_v45 = vsel %vm2965_vm13, %v10615_v44, %v5296_v23  ;;  %v5520_v3 = vld [vmem:[#allocation2 + $0x1c0] sm:$0xff] }
 0x916   : > { %5332 = vst.msk [vmem:[#allocation2 + $0x1e0] sm:$0xff] %vm5099_vm2, %v5318_v45 }
 0x918   : > { %v5453_v58 = vpop.permute.xlu0 %5452  ;;  %v5371_v5 = vpop.permute.xlu1 %5370 }
 0x919   : > { %5472 = vst.msk [vmem:[#allocation2 + $0x560] sm:$0xff] %vm5099_vm2, %v5453_v58  ;;  %5389 = vst.msk [vmem:[#allocation2 + $0x3c0] sm:$0xff] %vm5099_vm2, %v5371_v5 }
 0x91c   : > { %v5219_v43 = vpop.permute.xlu0 %5218  ;;  %v5455_v26 = vpop.permute.xlu1 %5454  ;;  %v5535_v54 = vld [vmem:[#allocation2 + $0x3a0] sm:$0xff] }
 0x91d   : > { %v5241_v13 = vsel %vm2838_vm14, %v5217_v25, %v5219_v43  ;;  %5473 = vst.msk [vmem:[#allocation2 + $0x580] sm:$0xff] %vm5099_vm2, %v5455_v26  ;;  %v5521_v8 = vld [vmem:[#allocation2 + $0x1e0] sm:$0xff] }
 0x91e   : > { %5255 = vst.msk [vmem:[#allocation2 + $0x100] sm:$0xff] %vm5099_vm2, %v5241_v13 }
 0x920   : > { %v5413_v27 = vpop.permute.xlu0 %5412  ;;  %v5223_v37 = vpop.permute.xlu1 %5222  ;;  %v5549_v5 = vld [vmem:[#allocation2 + $0x560] sm:$0xff] }
 0x921   : > { %5431 = vst.msk [vmem:[#allocation2 + $0x4a0] sm:$0xff] %vm5099_vm2, %v5413_v27  ;;  %v5242_v40 = vsel %vm2838_vm14, %v10640_v18, %v5223_v37  ;;  %v5536_v18 = vld [vmem:[#allocation2 + $0x3c0] sm:$0xff] }
 0x922   : > { %5256 = vst.msk [vmem:[#allocation2 + $0x120] sm:$0xff] %vm5099_vm2, %v5242_v40 }
 0x924   : > { %v5146_v16 = vpop.permute.xlu0 %5145  ;;  %v5415_v42 = vpop.permute.xlu1 %5414  ;;  %v5550_v23 = vld [vmem:[#allocation2 + $0x580] sm:$0xff] }
 0x925   : > { %v5165_v12 = vsel %vm2711_vm15, %v5144_v34, %v5146_v16  ;;  %5432 = vst.msk [vmem:[#allocation2 + $0x4c0] sm:$0xff] %vm5099_vm2, %v5415_v42 }
 0x926   : > { %5179 = vst.msk [vmem:[#allocation2 + $0x40] sm:$0xff] %vm5099_vm2, %v5165_v12  ;;  %v5534_v12 = vld [vmem:[#allocation2 + $0x380] sm:$0xff] }
 0x928   : > { %v5373_v15 = vpop.permute.xlu0 %5372  ;;  %v5150_v56 = vpop.permute.xlu1 %5149 }
 0x929   : > { %5390 = vst.msk [vmem:[#allocation2 + $0x3e0] sm:$0xff] %vm5099_vm2, %v5373_v15  ;;  %v5166_v21 = vsel %vm2711_vm15, %v5148_v17, %v5150_v56 }
 0x92a   : > { %5180 = vst.msk [vmem:[#allocation2 + $0x60] sm:$0xff] %vm5099_vm2, %v5166_v21 }
 0x92c   : > { %v5457_v33 = vpop.permute.xlu0 %5456  ;;  %v5459_v14 = vpop.permute.xlu1 %5458 }
 0x92d   : > { %5474 = vst.msk [vmem:[#allocation2 + $0x5a0] sm:$0xff] %vm5099_vm2, %v5457_v33  ;;  %5475 = vst.msk [vmem:[#allocation2 + $0x5c0] sm:$0xff] %vm5099_vm2, %v5459_v14  ;;  %v5533_v33 = vld [vmem:[#allocation2 + $0x360] sm:$0xff] }
 0x930   : > { %v5227_v39 = vpop.permute.xlu0 %5226  ;;  %v5231_v22 = vpop.permute.xlu1 %5230  ;;  %v5537_v46 = vld [vmem:[#allocation2 + $0x3e0] sm:$0xff] }
 0x931   : > { %v5243_v10 = vsel %vm2838_vm14, %v10642_v6, %v5227_v39  ;;  %v5244_v44 = vsel %vm2838_vm14, %v10635_v28, %v5231_v22  ;;  %7056 = vmatprep.subr.mxu1 %v5537_v46  ;;  %v5532_v46 = vld [vmem:[#allocation2 + $0x340] sm:$0xff] }
 0x932   : > { %5257 = vst.msk [vmem:[#allocation2 + $0x140] sm:$0xff] %vm5099_vm2, %v5243_v10  ;;  %5258 = vst.msk [vmem:[#allocation2 + $0x160] sm:$0xff] %vm5099_vm2, %v5244_v44  ;;  %7057 = vmatpush3.msra.mxu1 %v5521_v8  ;;  %v5544_v10 = vld [vmem:[#allocation2 + $0x4c0] sm:$0xff] }
 0x933   : > { %7058 = vmatprep.subr.mxu1 %v5536_v18 }
 0x934   : > { %v5417_v19 = vpop.permute.xlu0 %5416  ;;  %7059 = vmatpush3.msra.mxu1 %v5520_v3  ;;  %v5308_v25 = vpop.permute.xlu1 %5307  ;;  %v5551_v38 = vld [vmem:[#allocation2 + $0x5a0] sm:$0xff] }
 0x935   : > { %5433 = vst.msk [vmem:[#allocation2 + $0x4e0] sm:$0xff] %vm5099_vm2, %v5417_v19  ;;  %v5321_v6 = vsel %vm2965_vm13, %v10670_v48, %v5308_v25  ;;  %7060 = vmatprep.subr.mxu1 %v5535_v54  ;;  %v5531_v3 = vld [vmem:[#allocation2 + $0x320] sm:$0xff] }
 0x936   : > { %5335 = vst.msk [vmem:[#allocation2 + $0x240] sm:$0xff] %vm5099_vm2, %v5321_v6  ;;  %v5543_v19 = vld [vmem:[#allocation2 + $0x4a0] sm:$0xff] }
 0x937   : > { %v5515_v54 = vld [vmem:[#allocation2 + $0x120] sm:$0xff] }
 0x938   : > { %v5154_v28 = vpop.permute.xlu0 %5153  ;;  %v5461_v17 = vpop.permute.xlu1 %5460  ;;  %v5530_v6 = vld [vmem:[#allocation2 + $0x300] sm:$0xff] }
 0x939   : > { %v5167_v34 = vsel %vm2711_vm15, %v10666_v52, %v5154_v28  ;;  %5476 = vst.msk [vmem:[#allocation2 + $0x5e0] sm:$0xff] %vm5099_vm2, %v5461_v17  ;;  %v5552_v52 = vld [vmem:[#allocation2 + $0x5c0] sm:$0xff] }
 0x93a   : > { %5181 = vst.msk [vmem:[#allocation2 + $0x80] sm:$0xff] %vm5099_vm2, %v5167_v34  ;;  %v5517_v22 = vld [vmem:[#allocation2 + $0x160] sm:$0xff] }
 0x93b   : > { %v5516_v44 = vld [vmem:[#allocation2 + $0x140] sm:$0xff] }
 0x93c   : > { %v5312_v32 = vpop.permute.xlu0 %5311  ;;  %v5235_v0 = vpop.permute.xlu1 %5234  ;;  %v5545_v14 = vld [vmem:[#allocation2 + $0x4e0] sm:$0xff] }
 0x93d   : > { %v5322_v47 = vsel %vm2965_vm13, %v10668_v2, %v5312_v32  ;;  %v5245_v48 = vsel %vm2838_vm14, %v10627_v1, %v5235_v0  ;;  %v5514_v17 = vld [vmem:[#allocation2 + $0x100] sm:$0xff] }
 0x93e   : > { %5336 = vst.msk [vmem:[#allocation2 + $0x260] sm:$0xff] %vm5099_vm2, %v5322_v47  ;;  %5259 = vst.msk [vmem:[#allocation2 + $0x180] sm:$0xff] %vm5099_vm2, %v5245_v48  ;;  %v5529_v0 = vld [vmem:[#allocation2 + $0x2e0] sm:$0xff] }
 0x93f   : > { %v5513_v48 = vld [vmem:[#allocation2 + $0xe0] sm:$0xff] }
 0x940   : > { %v5304_v60 = vpop.permute.xlu0 %5303  ;;  %v5419_v57 = vpop.permute.xlu1 %5418  ;;  %v5553_v51 = vld [vmem:[#allocation2 + $0x5e0] sm:$0xff] }
 0x941   : > { %5434 = vst.msk [vmem:[#allocation2 + $0x500] sm:$0xff] %vm5099_vm2, %v5419_v57  ;;  %5719 = vmatpush1.msra.mxu0 %v5553_v51 }
 0x942   : > { %5720 = vmatprep.subr.mxu0 %v11279_v9 }
 0x943   : > { %5721 = vmatpush1.msra.mxu0 %v5552_v52 }
 0x944   : > { %v5140_v29 = vpop.permute.xlu0 %5139  ;;  %5722 = vmatprep.subr.mxu0 %v11279_v9  ;;  %v5158_v2 = vpop.permute.xlu1 %5157 }
 0x945   : > { %v5168_v1 = vsel %vm2711_vm15, %v10658_v36, %v5158_v2  ;;  %5723 = vmatpush1.msra.mxu0 %v5551_v38  ;;  %v5548_v36 = vld [vmem:[#allocation2 + $0x540] sm:$0xff] }
 0x946   : > { %5182 = vst.msk [vmem:[#allocation2 + $0xa0] sm:$0xff] %vm5099_vm2, %v5168_v1  ;;  %5724 = vmatprep.subr.mxu0 %v11279_v9 }
 0x947   : > { %5725 = vmatpush1.msra.mxu0 %v5550_v23  ;;  %v5510_v23 = vld [vmem:[#allocation2 + $0x80] sm:$0xff] }
 0x948   : > { %v5421_v45 = vpop.permute.xlu0 %5420  ;;  %5726 = vmatprep.subr.mxu0 %v11279_v9  ;;  %v5239_v58 = vpop.permute.xlu1 %5238  ;;  %v5546_v15 = vld [vmem:[#allocation2 + $0x500] sm:$0xff] }
 0x949   : > { %5435 = vst.msk [vmem:[#allocation2 + $0x520] sm:$0xff] %vm5099_vm2, %v5421_v45  ;;  %v5246_v43 = vsel %vm2838_vm14, %v10622_v61, %v5239_v58  ;;  %5727 = vmatpush1.msra.mxu0 %v5549_v5  ;;  %v5525_v58 = vld [vmem:[#allocation2 + $0x260] sm:$0xff] }
 0x94a   : > { %5260 = vst.msk [vmem:[#allocation2 + $0x1a0] sm:$0xff] %vm5099_vm2, %v5246_v43  ;;  %5728 = vmatprep.subr.mxu0 %v11279_v9  ;;  %v5509_v5 = vld [vmem:[#allocation2 + $0x60] sm:$0xff] }
 0x94b   : > { %5729 = vmatpush1.msra.mxu0 %v5548_v36  ;;  %v5524_v43 = vld [vmem:[#allocation2 + $0x240] sm:$0xff] }
 0x94c   : > { %v5162_v26 = vpop.permute.xlu0 %5161  ;;  %v5302_v13 = vpop.permute.xlu1 %5301  ;;  %5730 = vmatprep.subr.mxu0 %v11279_v9  ;;  %v5508_v36 = vld [vmem:[#allocation2 + $0x40] sm:$0xff] }
 0x94d   : > { %v5169_v27 = vsel %vm2711_vm15, %v10660_v11, %v5162_v26  ;;  %v5320_v37 = vsel %vm2965_vm13, %v5302_v13, %v5304_v60  ;;  %v5518_v11 = vld [vmem:[#allocation2 + $0x180] sm:$0xff] }
 0x94e   : > { %5183 = vst.msk [vmem:[#allocation2 + $0xc0] sm:$0xff] %vm5099_vm2, %v5169_v27  ;;  %5334 = vst.msk [vmem:[#allocation2 + $0x220] sm:$0xff] %vm5099_vm2, %v5320_v37  ;;  %v5528_v60 = vld [vmem:[#allocation2 + $0x2c0] sm:$0xff] }
 0x94f   : > { %v5511_v38 = vld [vmem:[#allocation2 + $0xa0] sm:$0xff] }
 0x950   : > { %v5298_v61 = vpop.permute.xlu0 %5297  ;;  %v5411_v40 = vpop.permute.xlu1 %5410  ;;  %v5547_v16 = vld [vmem:[#allocation2 + $0x520] sm:$0xff] }
 0x951   : > { %5430 = vst.msk [vmem:[#allocation2 + $0x480] sm:$0xff] %vm5099_vm2, %v5411_v40  ;;  %5731 = vmatpush1.msra.mxu0 %v5547_v16  ;;  %v5519_v42 = vld [vmem:[#allocation2 + $0x1a0] sm:$0xff]  ;;  %v5483_v16 = vld [vmem:[%s10650_s16 + $0x28] sm:$0xff] }
 0x952   : > { %7061 = vmatpush3.msra.mxu1 %v5519_v42  ;;  %5732 = vmatprep.subr.mxu0 %v11279_v9 }
 0x953   : > { %7062 = vmatprep.subr.mxu1 %v5534_v12  ;;  %5733 = vmatpush1.msra.mxu0 %v5546_v15  ;;  %v5839_v12 = vld [vmem:[%s11166_s7 + $0x70] sm:$0xff] }
 0x954   : > { %v5409_v56 = vpop.permute.xlu0 %5408  ;;  %7063 = vmatpush3.msra.mxu1 %v5518_v11  ;;  %5734 = vmatprep.subr.mxu0 %v11279_v9  ;;  %v5142_v21 = vpop.permute.xlu1 %5141  ;;  %v5482_v11 = vld [vmem:[%s10650_s16 + $0x20] sm:$0xff] }
 0x955   : > { %5429 = vst.msk [vmem:[#allocation2 + $0x460] sm:$0xff] %vm5099_vm2, %v5409_v56  ;;  %v5164_v39 = vsel %vm2711_vm15, %v5140_v29, %v5142_v21  ;;  %7064 = vmatprep.subr.mxu1 %v5533_v33  ;;  %5735 = vmatpush1.msra.mxu0 %v5545_v14  ;;  %v5512_v57 = vld [vmem:[#allocation2 + $0xc0] sm:$0xff]  ;;  %v5487_v56 = vld [vmem:[%s10650_s16 + $0x48] sm:$0xff]  ;;  %v5480_v33 = vld [vmem:[%s10650_s16 + $0x10] sm:$0xff] }
 0x956   : > { %5178 = vst.msk [vmem:[#allocation2 + $0x20] sm:$0xff] %vm5099_vm2, %v5164_v39  ;;  %7065 = vmatpush3.msra.mxu1 %v5517_v22  ;;  %5736 = vmatprep.subr.mxu0 %v11279_v9  ;;  %v5527_v29 = vld [vmem:[#allocation2 + $0x2a0] sm:$0xff]  ;;  %v5485_v22 = vld [vmem:[%s10650_s16 + $0x38] sm:$0xff] }
 0x957   : > { %7066 = vmatprep.subr.mxu1 %v5532_v46  ;;  %5737 = vmatpush1.msra.mxu0 %v5544_v10  ;;  %v5523_v13 = vld [vmem:[#allocation2 + $0x220] sm:$0xff]  ;;  %v5491_v46 = vld [vmem:[%s10650_s16 + $0x68] sm:$0xff]  ;;  %v5484_v10 = vld [vmem:[%s10650_s16 + $0x30] sm:$0xff] }
 0x958   : > { %v5138_v8 = vpop.permute.xlu0 %5137  ;;  %7067 = vmatpush3.msra.mxu1 %v5516_v44  ;;  %5738 = vmatprep.subr.mxu0 %v11279_v9  ;;  %v5316_v18 = vpop.permute.xlu1 %5315  ;;  %v5542_v28 = vld [vmem:[#allocation2 + $0x480] sm:$0xff] }
 0x959   : > { %v5323_v25 = vsel %vm2965_vm13, %v10664_v49, %v5316_v18  ;;  %7068 = vmatprep.subr.mxu1 %v5531_v3  ;;  %5739 = vmatpush1.msra.mxu0 %v5543_v19  ;;  %v5486_v39 = vld [vmem:[%s10650_s16 + $0x40] sm:$0xff]  ;;  %v5495_v18 = vld [vmem:[%s10650_s16 + $0x88] sm:$0xff]  ;;  %v5488_v3 = vld [vmem:[%s10650_s16 + $0x50] sm:$0xff] }
 0x95a   : > { %5337 = vst.msk [vmem:[#allocation2 + $0x280] sm:$0xff] %vm5099_vm2, %v5323_v25  ;;  %7069 = vmatpush3.msra.mxu1 %v5515_v54  ;;  %5740 = vmatprep.subr.mxu0 %v11279_v9  ;;  %v5490_v44 = vld [vmem:[%s10650_s16 + $0x60] sm:$0xff]  ;;  %v5493_v25 = vld [vmem:[%s10650_s16 + $0x78] sm:$0xff]  ;;  %v5499_v54 = vld [vmem:[%s10650_s16 + $0xa8] sm:$0xff] }
 0x95b   : > { %7070 = vmatprep.subr.mxu1 %v5530_v6  ;;  %5741 = vmatpush1.msra.mxu0 %v5542_v28  ;;  %v5494_v19 = vld [vmem:[%s10650_s16 + $0x80] sm:$0xff]  ;;  %v5492_v6 = vld [vmem:[%s10650_s16 + $0x70] sm:$0xff] }
 0x95c   : > { %v5377_v34 = vpop.permute.xlu0 %5376  ;;  %7071 = vmatpush3.msra.mxu1 %v5514_v17  ;;  %5742 = vmatprep.subr.mxu0 %v11279_v9  ;;  %v5300_v32 = vpop.permute.xlu1 %5299  ;;  %v5541_v49 = vld [vmem:[#allocation2 + $0x460] sm:$0xff]  ;;  %v5497_v17 = vld [vmem:[%s10650_s16 + $0x98] sm:$0xff] }
 0x95d   : > { %5392 = vst.msk [vmem:[#allocation2 + $0x420] sm:$0xff] %vm5099_vm2, %v5377_v34  ;;  %v5319_v47 = vsel %vm2965_vm13, %v5298_v61, %v5300_v32  ;;  %7072 = vmatprep.subr.mxu1 %v5529_v0  ;;  %5743 = vmatpush1.msra.mxu0 %v5541_v49  ;;  %v5507_v27 = vld [vmem:[#allocation2 + $0x20] sm:$0xff]  ;;  %v5503_v34 = vld [vmem:[%s10650_s16 + $0xc8] sm:$0xff]  ;;  %v5496_v32 = vld [vmem:[%s10650_s16 + $0x90] sm:$0xff] }
 0x95e   : > { %5333 = vst.msk [vmem:[#allocation2 + $0x200] sm:$0xff] %vm5099_vm2, %v5319_v47  ;;  %7073 = vmatpush3.msra.mxu1 %v5513_v48  ;;  %5744 = vmatprep.subr.mxu0 %v11279_v9  ;;  %v5478_v61 = vld [vmem:[%s10650_s16] sm:$0xff]  ;;  %v5501_v49 = vld [vmem:[%s10650_s16 + $0xb8] sm:$0xff]  ;;  %v5500_v47 = vld [vmem:[%s10650_s16 + $0xb0] sm:$0xff] }
 0x95f   : > { %7074 = vmatprep.subr.mxu1 %v5528_v60  ;;  %v5498_v28 = vld [vmem:[%s10650_s16 + $0xa0] sm:$0xff]  ;;  %v5505_v48 = vld [vmem:[%s10650_s16 + $0xd8] sm:$0xff]  ;;  %v5504_v60 = vld [vmem:[%s10650_s16 + $0xd0] sm:$0xff] }
 0x960   : > { %v5463_v51 = vpop.permute.xlu0 %5462  ;;  %7075 = vmatpush3.msra.mxu1 %v5512_v57  ;;  %v5136_v52 = vpop.permute.xlu1 %5135  ;;  %v5502_v0 = vld [vmem:[%s10650_s16 + $0xc0] sm:$0xff] }
 0x961   : > { %5477 = vst.msk [vmem:[#allocation2 + $0x600] sm:$0xff] %vm5099_vm2, %v5463_v51  ;;  %v5163_v2 = vsel %vm2711_vm15, %v5136_v52, %v5138_v8  ;;  %7076 = vmatprep.subr.mxu1 %v5527_v29  ;;  %v5526_v1 = vld [vmem:[#allocation2 + $0x280] sm:$0xff]  ;;  %v5489_v8 = vld [vmem:[%s10650_s16 + $0x58] sm:$0xff]  ;;  %v5837_v51 = vld [vmem:[%s11166_s7 + $0x50] sm:$0xff] }
 0x962   : > { %5177 = vst.msk [vmem:[#allocation2] sm:$0xff] %vm5099_vm2, %v5163_v2  ;;  %7077 = vmatpush3.msra.mxu1 %v5511_v38  ;;  %v5838_v57 = vld [vmem:[%s11166_s7 + $0x60] sm:$0xff]  ;;  %v10845_v29 = vld [vmem:[%s11166_s7 + $0x30] sm:$0xff] }
 0x963   : > { %7078 = vmatprep.subr.mxu1 %v5526_v1  ;;  %v5836_v52 = vld [vmem:[%s11166_s7 + $0x40] sm:$0xff]  ;;  %v10859_v38 = vld [vmem:[%s11166_s7 + $0x10] sm:$0xff] }
 0x964   : > { %7079 = vmatpush3.msra.mxu1 %v5510_v23  ;;  %v5379_v45 = vpop.permute.xlu1 %5378  ;;  %v5539_v15 = vld [vmem:[#allocation2 + $0x420] sm:$0xff] }
 0x965   : > { %5393 = vst.msk [vmem:[#allocation2 + $0x440] sm:$0xff] %vm5099_vm2, %v5379_v45  ;;  %7080 = vmatprep.subr.mxu1 %v5525_v58  ;;  %v5522_v37 = vld [vmem:[#allocation2 + $0x200] sm:$0xff] }
 0x966   : > { %7081 = vmatpush3.msra.mxu1 %v5509_v5  ;;  %v10852_v2 = vld [vmem:[%s11166_s7 + $0x20] sm:$0xff] }
 0x967   : > { %7082 = vmatprep.subr.mxu1 %v5524_v43  ;;  %v10866_v1 = vld [vmem:[%s11166_s7] sm:$0xff] }
 0x968   : > { %7083 = vmatpush3.msra.mxu1 %v5508_v36  ;;  %v5375_v26 = vpop.permute.xlu1 %5374  ;;  %v5554_v14 = vld [vmem:[#allocation2 + $0x600] sm:$0xff] }
 0x969   : > { %5391 = vst.msk [vmem:[#allocation2 + $0x400] sm:$0xff] %vm5099_vm2, %v5375_v26  ;;  %7084 = vmatprep.subr.mxu1 %v5523_v13  ;;  %v5506_v40 = vld [vmem:[#allocation2] sm:$0xff] }
 0x96a   : > { %7085 = vmatpush3.msra.mxu1 %v5507_v27  ;;  %v10869_v23 = vld [vmem:[#allocation3 + $0xa0] sm:$0xff] }
 0x96b   : > { %7086 = vmatprep.subr.mxu1 %v5522_v37  ;;  %v10871_v45 = vld [vmem:[#allocation3 + $0xc0] sm:$0xff]  ;;  %6102 = vrot.lane.b32.xlu0 %v10869_v23, %s7525_s25 }
 0x96c   : > { %7087 = vmatpush3.msra.mxu1 %v5506_v40  ;;  %v5540_v42 = vld [vmem:[#allocation2 + $0x440] sm:$0xff]  ;;  %6106 = vrot.lane.b32.xlu1 %v10871_v45, %s7525_s25 }
 0x96d   : > { %5745 = vmatpush1.msra.mxu0 %v5540_v42  ;;  %5683 = vmatmul.mubr.f32.vlgmr.msra.gmra.mxu1 %v5478_v61  ;;  %v10877_v58 = vld [vmem:[#allocation3 + $0x60] sm:$0xff]  ;;  %v5570_v42 = vpop.permute.xlu0 %5569 }
 0x96e   : > { %5746 = vmatprep.subr.mxu0 %v11279_v9  ;;  %5687 = vmatprep.mubr.f32.mxu1 %v5483_v16 }
 0x96f   : > { %5747 = vmatpush1.msra.mxu0 %v5539_v15  ;;  %7251 = vmatprep.subr.mxu1 %v11279_v9 }
 0x970   : > { %5748 = vmatprep.subr.mxu0 %v11279_v9  ;;  %v5538_v21 = vld [vmem:[#allocation2 + $0x400] sm:$0xff]  ;;  %7252 = vmatpush3.msra.mxu1 %v5839_v12 }
 0x971   : > { %5749 = vmatpush1.msra.mxu0 %v5538_v21  ;;  %5688 = vmatmul.mubr.f32.gmra.mxu1 %v5482_v11 }
 0x972   : > { %5780 = vmatprep.subr.mxu0 %v11279_v9  ;;  %5692 = vmatprep.mubr.f32.mxu1 %v5487_v56 }
 0x973   : > { %5781 = vmatpush2.msra.mxu0 %v5554_v14  ;;  %7253 = vmatprep.subr.mxu1 %v11279_v9 }
 0x974   : > { %5783 = vmatmul.mubr.f32.vlgmr.msra.gmra.mxu0 %v5480_v33  ;;  %7254 = vmatpush3.msra.mxu1 %v5838_v57  ;;  %v5585_v57 = vpop.permute.xlu0 %5584 }
 0x975   : > { %5693 = vmatmul.mubr.f32.gmra.mxu1 %v5486_v39  ;;  %6898 = vmatprep.mubr.msk.f32.mxu0 %vm1651_vm6, %v5485_v22  ;;  %v5565_v13 = vpop.permute.xlu1 %5564 }
 0x976   : > { %5697 = vmatprep.mubr.f32.mxu1 %v5491_v46  ;;  %7255 = vmatprep.subr.mxu1 %v11279_v9 }
 0x977   : > { %7256 = vmatpush3.msra.mxu1 %v5837_v51  ;;  %6094 = vrot.lane.b32.xlu0 %v10877_v58, %s7525_s25 }
 0x978   : > { %5788 = vmatmul.mubr.f32.gmra.mxu0 %v5484_v10  ;;  %7257 = vmatprep.subr.mxu1 %v11279_v9 }
 0x979   : > { %5698 = vmatmul.mubr.f32.gmra.mxu1 %v5490_v44  ;;  %6899 = vmatprep.mubr.msk.f32.mxu0 %vm1651_vm6, %v5489_v8  ;;  %v5575_v33 = vpop.permute.xlu1 %5574 }
 0x97a   : > { %5702 = vmatprep.mubr.f32.mxu1 %v5495_v18  ;;  %7258 = vmatpush3.msra.mxu1 %v5836_v52 }
 0x97b   : > { %7259 = vmatprep.subr.mxu1 %v11279_v9 }
 0x97c   : > { %5793 = vmatmul.mubr.f32.gmra.mxu0 %v5488_v3  ;;  %7260 = vmatpush3.msra.mxu1 %v10845_v29 }
 0x97d   : > { %5703 = vmatmul.mubr.f32.gmra.mxu1 %v5494_v19  ;;  %6900 = vmatprep.mubr.msk.f32.mxu0 %vm1651_vm6, %v5493_v25 }
 0x97e   : > { %5707 = vmatprep.mubr.f32.mxu1 %v5499_v54  ;;  %7261 = vmatprep.subr.mxu1 %v11279_v9 }
 0x97f   : > { %7262 = vmatpush3.msra.mxu1 %v10852_v2 }
 0x980   : > { %5798 = vmatmul.mubr.f32.gmra.mxu0 %v5492_v6  ;;  %7263 = vmatprep.subr.mxu1 %v11279_v9 }
 0x981   : > { %5708 = vmatmul.mubr.f32.gmra.mxu1 %v5498_v28  ;;  %6901 = vmatprep.mubr.msk.f32.mxu0 %vm1651_vm6, %v5497_v17  ;;  %v5580_v17 = vpop.permute.xlu1 %5579 }
 0x982   : > { %5712 = vmatprep.mubr.f32.mxu1 %v5503_v34  ;;  %7264 = vmatpush3.msra.mxu1 %v10859_v38 }
 0x983   : > { %7265 = vmatprep.subr.mxu1 %v11279_v9 }
 0x984   : > { %5803 = vmatmul.mubr.f32.gmra.mxu0 %v5496_v32  ;;  %7266 = vmatpush3.msra.mxu1 %v10866_v1 }
 0x985   : > { %5713 = vmatmul.mubr.f32.gmra.mxu1 %v5502_v0  ;;  %6902 = vmatprep.mubr.msk.f32.mxu0 %vm1651_vm6, %v5501_v49 }
 0x986   : > { %7267 = vmatprep.mubr.msk.f32.mxu1 %vm7528_vm0, %v11279_v9 }
 0x988   : > { %5808 = vmatmul.mubr.f32.gmra.mxu0 %v5500_v47 }
 0x989   : > { %6903 = vmatprep.mubr.msk.f32.mxu0 %vm1651_vm6, %v5505_v48  ;;  %vm6681_vm6 = vcmask 130048  }
 0x98c   : > { %5813 = vmatmul.mubr.f32.gmra.mxu0 %v5504_v60 }
 0xa2d   : > { %v7088_v5 = vpop.f32.mrf.mxu1 }
 0xa2f   : > { %v7089_v43 = vpop.f32.mrf.mxu1 }
 0xa30   : > { %v7090_v36 = vadd.f32 %v7089_v43, %v7088_v5 }
 0xa31   : > { %v7091_v26 = vpop.f32.mrf.mxu1 }
 0xa32   : > { %v5685_v27 = vadd.f32 %v7090_v36, %v5565_v13 }
 0xa33   : > { %v7092_v37 = vpop.f32.mrf.mxu1 }
 0xa34   : > { %v7093_v61 = vadd.f32 %v7092_v37, %v7091_v26  ;;  %v5784_v40 = vpop.f32.mrf.mxu0 }
 0xa35   : > { %v5785_v16 = vadd.f32 %v5784_v40, %v5685_v27  ;;  %v7094_v12 = vpop.f32.mrf.mxu1 }
 0xa36   : > { %v5690_v15 = vadd.f32 %v7093_v61, %v5570_v42  ;;  %v5786_v11 = vpop.f32.mrf.mxu0  ;;  %v5590_v61 = vpop.permute.xlu1 %5589 }
 0xa37   : > { %v5818_v56 = vmax.f32 %v5785_v16, 0.0  ;;  %v7095_v21 = vpop.f32.mrf.mxu1 }
 0xa38   : > { %v7096_v14 = vadd.f32 %v7095_v21, %v7094_v12  ;;  %v5789_v39 = vpop.f32.mrf.mxu0  ;;  %v5595_v21 = vpop.permute.xlu0 %5594 }
 0xa39   : > { %v5825_v22 = vadd.f32 %v5818_v56, %v10545_v63  ;;  %v5790_v46 = vadd.f32 %v5789_v39, %v5690_v15  ;;  %v7097_v10 = vpop.f32.mrf.mxu1 }
 0xa3a   : > { %v5791_v44 = vpop.f32.mrf.mxu0  ;;  %v5695_v8 = vadd.f32 %v7096_v14, %v5575_v33 }
 0xa3b   : > { %v5819_v18 = vmax.f32 %v5790_v46, 0.0  ;;  %7268 = vmatmul.mubr.msk.f32.vlgmr.msra.gmra.mxu1 %vm5099_vm2, %v5825_v22  ;;  %v7098_v3 = vpop.f32.mrf.mxu1 }
 0xa3c   : > { %v7099_v19 = vadd.f32 %v7098_v3, %v7097_v10  ;;  %v5794_v25 = vpop.f32.mrf.mxu0  ;;  %7270 = vmatprep.mubr.msk.f32.mxu1 %vm7528_vm0, %v11279_v9 }
 0xa3d   : > { %v5826_v54 = vadd.f32 %v5819_v18, %v10549_v24  ;;  %v5795_v6 = vadd.f32 %v5794_v25, %v5695_v8  ;;  %v7100_v28 = vpop.f32.mrf.mxu1  ;;  %v10922_v8 = vld [vmem:[#allocation3 + $0x40] sm:$0xff] }
 0xa3e   : > { %v5796_v34 = vpop.f32.mrf.mxu0  ;;  %v5700_v63 = vadd.f32 %v7099_v19, %v5580_v17  ;;  %v10928_v18 = vld [vmem:[#allocation3] sm:$0xff] }
 0xa3f   : > { %v5820_v32 = vmax.f32 %v5795_v6, 0.0  ;;  %7271 = vmatmul.mubr.msk.f32.gmra.mxu1 %vm5099_vm2, %v5826_v54  ;;  %v7101_v0 = vpop.f32.mrf.mxu1 }
 0xa40   : > { %v7102_v49 = vadd.f32 %v7101_v0, %v7100_v28  ;;  %v5799_v47 = vpop.f32.mrf.mxu0  ;;  %7273 = vmatprep.mubr.msk.f32.mxu1 %vm7528_vm0, %v11279_v9 }
 0xa41   : > { %v5827_v48 = vadd.f32 %v5820_v32, %v10555_v59  ;;  %v5800_v60 = vadd.f32 %v5799_v47, %v5700_v63  ;;  %v7103_v51 = vpop.f32.mrf.mxu1 }
 0xa42   : > { %v5705_v24 = vadd.f32 %v7102_v49, %v5585_v57  ;;  %v5801_v52 = vpop.f32.mrf.mxu0 }
 0xa43   : > { %v5821_v5 = vmax.f32 %v5800_v60, 0.0  ;;  %7274 = vmatmul.mubr.msk.f32.gmra.mxu1 %vm5099_vm2, %v5827_v48  ;;  %v7104_v43 = vpop.f32.mrf.mxu1 }
 0xa44   : > { %v7105_v36 = vadd.f32 %v7104_v43, %v7103_v51  ;;  %v5804_v26 = vpop.f32.mrf.mxu0  ;;  %7276 = vmatprep.mubr.msk.f32.mxu1 %vm7528_vm0, %v11279_v9  ;;  %v11002_v43 = vpop.permute.xlu0 %6102 }
 0xa45   : > { %v5828_v13 = vadd.f32 %v5821_v5, %v10565_v30  ;;  %v5805_v27 = vadd.f32 %v5804_v26, %v5705_v24  ;;  %v7106_v37 = vpop.f32.mrf.mxu1 }
 0xa46   : > { %v5806_v59 = vpop.f32.mrf.mxu0  ;;  %v5710_v40 = vadd.f32 %v7105_v36, %v5590_v61  ;;  %v11004_v36 = vpop.permute.xlu1 %6106 }
 0xa47   : > { %v5822_v16 = vmax.f32 %v5805_v27, 0.0  ;;  %7277 = vmatmul.mubr.msk.f32.gmra.mxu1 %vm5099_vm2, %v5828_v13  ;;  %v7107_v42 = vpop.f32.mrf.mxu1  ;;  %v7530_v13 = vmov 4  }
 0xa48   : > { %v7108_v12 = vadd.f32 %v7107_v42, %v7106_v37  ;;  %v5809_v15 = vpop.f32.mrf.mxu0  ;;  %7279 = vmatprep.mubr.msk.f32.mxu1 %vm7528_vm0, %v11279_v9  ;;  %v6095_v26 = vpop.permute.xlu0 %6094  ;;  %7452 = vset.pattern.permute.xlu1 %v7530_v13 }
 0xa49   : > { %v5829_v11 = vadd.f32 %v5822_v16, %v10574_v31  ;;  %v5810_v56 = vadd.f32 %v5809_v15, %v5710_v40  ;;  %7453 = vset.pattern.permute.xlu0 %v7530_v13 }
 0xa4a   : > { %v5715_v33 = vadd.f32 %v7108_v12, %v5595_v21  ;;  %v5811_v30 = vpop.f32.mrf.mxu0 }
 0xa4b   : > { %v5823_v14 = vmax.f32 %v5810_v56, 0.0  ;;  %7280 = vmatmul.mubr.msk.f32.gmra.mxu1 %vm5099_vm2, %v5829_v11 }
 0xa4c   : > { %v5814_v39 = vpop.f32.mrf.mxu0  ;;  %7282 = vmatprep.mubr.msk.f32.mxu1 %vm7528_vm0, %v11279_v9 }
 0xa4d   : > { %v5830_v22 = vadd.f32 %v5823_v14, %v10581_v55  ;;  %v5815_v46 = vadd.f32 %v5814_v39, %v5715_v33  ;;  %v10914_v55 = vld [vmem:[#allocation3 + $0x80] sm:$0xff] }
 0xa4e   : > { %v5816_v10 = vpop.f32.mrf.mxu0  ;;  %6098 = vrot.lane.b32.xlu1 %v10914_v55, %s7525_s25 }
 0xa4f   : > { %v5824_v44 = vmax.f32 %v5815_v46, 0.0  ;;  %7283 = vmatmul.mubr.msk.f32.gmra.mxu1 %vm5099_vm2, %v5830_v22 }
 0xa50   : > { %7285 = vmatprep.mubr.msk.f32.mxu1 %vm7528_vm0, %v11279_v9 }
 0xa51   : > { %v5831_v31 = vadd.f32 %v5824_v44, %v10588_v7  ;;  %v10916_v7 = vld [vmem:[#allocation3 + $0x20] sm:$0xff] }
 0xa52   : > { %6086 = vrot.lane.b32.xlu0 %v10916_v7, %s7525_s25  ;;  %6090 = vrot.lane.b32.xlu1 %v10922_v8, %s7525_s25 }
 0xa53   : > { %7286 = vmatmul.mubr.msk.f32.gmra.mxu1 %vm5099_vm2, %v5831_v31 }
 0xa56   : > { %6029 = vrot.lane.b32.xlu0 %v10871_v45, %s7522_s15  ;;  %6082 = vrot.lane.b32.xlu1 %v10928_v18, %s7525_s25 }
 0xac0   : > { %v6099_v27 = vpop.permute.xlu1 %6098 }
 0xac4   : > { %v6087_v37 = vpop.permute.xlu0 %6086  ;;  %v6091_v61 = vpop.permute.xlu1 %6090 }
 0xac8   : > { %v11012_v59 = vpop.permute.xlu0 %6029  ;;  %v6083_v40 = vpop.permute.xlu1 %6082 }
 0xafb   : > { %v5927_v3 = vpop.f32.mrf.mxu1 }
 0xafc   : > { %5970 = vst.msk [vmem:[#allocation3 + $0x8] sm:$0xff] %vm5969_vm4, %v5927_v3 }
 0xafd   : > { %v7269_v19 = vpop.f32.mrf.mxu1 }
 0xaff   : > { %v5932_v25 = vpop.f32.mrf.mxu1 }
 0xb00   : > { %5971 = vst.msk [vmem:[#allocation3 + $0x28] sm:$0xff] %vm5969_vm4, %v5932_v25 }
 0xb01   : > { %v7272_v54 = vpop.f32.mrf.mxu1 }
 0xb03   : > { %v10934_v6 = vld [vmem:[#allocation3 + $0x8] sm:$0xff]  ;;  %v5937_v28 = vpop.f32.mrf.mxu1 }
 0xb04   : > { %6138 = vst.msk [vmem:[#allocation2 + $0x1c0] sm:$0xff] %vm5969_vm4, %v10934_v6  ;;  %5972 = vst.msk [vmem:[#allocation3 + $0x48] sm:$0xff] %vm5969_vm4, %v5937_v28  ;;  %6201 = vrot.lane.b32.xlu0 %v10934_v6, %s11282_s18 }
 0xb05   : > { %v7275_v45 = vpop.f32.mrf.mxu1 }
 0xb07   : > { %v6132_v17 = vld [vmem:[#allocation3 + $0x28] sm:$0xff]  ;;  %v5942_v34 = vpop.f32.mrf.mxu1 }
 0xb08   : > { %6139 = vst.msk [vmem:[#allocation2 + $0x1e0] sm:$0xff] %vm5969_vm4, %v6132_v17  ;;  %5973 = vst.msk [vmem:[#allocation3 + $0x68] sm:$0xff] %vm5969_vm4, %v5942_v34  ;;  %6084 = vrot.lane.b32.xlu0 %v10934_v6, %s7525_s25  ;;  %6203 = vrot.lane.b32.xlu1 %v6132_v17, %s11282_s18 }
 0xb09   : > { %v7278_v63 = vpop.f32.mrf.mxu1 }
 0xb0b   : > { %v6133_v32 = vld [vmem:[#allocation3 + $0x48] sm:$0xff]  ;;  %v5947_v0 = vpop.f32.mrf.mxu1  ;;  %v6264_v44 = vld [vmem:[#allocation2 + $0x1c0] sm:$0xff] }
 0xb0c   : > { %6140 = vst.msk [vmem:[#allocation2 + $0x200] sm:$0xff] %vm5969_vm4, %v6133_v32  ;;  %5974 = vst.msk [vmem:[#allocation3 + $0x88] sm:$0xff] %vm5969_vm4, %v5947_v0  ;;  %6088 = vrot.lane.b32.xlu1 %v6132_v17, %s7525_s25  ;;  %6205 = vrot.lane.b32.xlu0 %v6133_v32, %s11282_s18 }
 0xb0d   : > { %v7281_v49 = vpop.f32.mrf.mxu1 }
 0xb0f   : > { %v6134_v47 = vld [vmem:[#allocation3 + $0x68] sm:$0xff]  ;;  %v5952_v48 = vpop.f32.mrf.mxu1  ;;  %v6265_v46 = vld [vmem:[#allocation2 + $0x1e0] sm:$0xff] }
 0xb10   : > { %6141 = vst.msk [vmem:[#allocation2 + $0x220] sm:$0xff] %vm5969_vm4, %v6134_v47  ;;  %5975 = vst.msk [vmem:[#allocation3 + $0xa8] sm:$0xff] %vm5969_vm4, %v5952_v48  ;;  %6163 = vrot.lane.b32.xlu1 %v6133_v32, %s7514_s23  ;;  %6092 = vrot.lane.b32.xlu0 %v6133_v32, %s7525_s25 }
 0xb11   : > { %v7284_v60 = vpop.f32.mrf.mxu1 }
 0xb13   : > { %v6135_v57 = vld [vmem:[#allocation3 + $0x88] sm:$0xff]  ;;  %v5957_v51 = vpop.f32.mrf.mxu1 }
 0xb14   : > { %6142 = vst.msk [vmem:[#allocation2 + $0x240] sm:$0xff] %vm5969_vm4, %v6135_v57  ;;  %5976 = vst.msk [vmem:[#allocation3 + $0xc8] sm:$0xff] %vm5969_vm4, %v5957_v51  ;;  %6207 = vrot.lane.b32.xlu1 %v6134_v47, %s11282_s18  ;;  %6165 = vrot.lane.b32.xlu0 %v6134_v47, %s7514_s23 }
 0xb15   : > { %v7287_v24 = vpop.f32.mrf.mxu1 }
 0xb17   : > { %v6136_v52 = vld [vmem:[#allocation3 + $0xa8] sm:$0xff] }
 0xb18   : > { %6143 = vst.msk [vmem:[#allocation2 + $0x260] sm:$0xff] %vm5969_vm4, %v6136_v52  ;;  %6096 = vrot.lane.b32.xlu1 %v6134_v47, %s7525_s25  ;;  %6100 = vrot.lane.b32.xlu0 %v6135_v57, %s7525_s25 }
 0xb1b   : > { %v6137_v5 = vld [vmem:[#allocation3 + $0xc8] sm:$0xff] }
 0xb1c   : > { %6144 = vst.msk [vmem:[#allocation2 + $0x280] sm:$0xff] %vm5969_vm4, %v6137_v5  ;;  %6167 = vrot.lane.b32.xlu1 %v6135_v57, %s7514_s23  ;;  %6169 = vrot.lane.b32.xlu0 %v6136_v52, %s7514_s23 }
 0xb20   : > { %6104 = vrot.lane.b32.xlu1 %v6136_v52, %s7525_s25  ;;  %6108 = vrot.lane.b32.xlu0 %v6137_v5, %s7525_s25 }
 0xb24   : > { %6025 = vrot.lane.b32.xlu1 %v10869_v23, %s7522_s15  ;;  %6161 = vrot.lane.b32.xlu0 %v6132_v17, %s7514_s23 }
 0xb28   : > { %6159 = vrot.lane.b32.xlu1 %v10934_v6, %s7514_s23  ;;  %6027 = vrot.lane.b32.xlu0 %v6136_v52, %s7522_s15 }
 0xb2c   : > { %6171 = vrot.lane.b32.xlu1 %v6137_v5, %s7514_s23  ;;  %6021 = vrot.lane.b32.xlu0 %v10914_v55, %s7522_s15  ;;  %s11283_s23 = smul.u32 168, %s11295_s28 }
 0xb2e   : > { %s10994_s21 = scalar_lea.vmem %s11164_s5, %s11283_s23 }
 0xb2f   : > { %v6242_v23 = vld [vmem:[%s10994_s21 + $0x68] sm:$0xff] }
 0xb30   : > { %6023 = vrot.lane.b32.xlu1 %v6135_v57, %s7522_s15  ;;  %6017 = vrot.lane.b32.xlu0 %v10877_v58, %s7522_s15  ;;  %v6230_v58 = vld [vmem:[%s10994_s21 + $0x8] sm:$0xff] }
 0xb31   : > { %6433 = vmatprep.mubr.f32.mxu1 %v6242_v23  ;;  %6413 = vmatprep.mubr.f32.mxu0 %v6230_v58 }
 0xb34   : > { %6019 = vrot.lane.b32.xlu1 %v6134_v47, %s7522_s15  ;;  %6013 = vrot.lane.b32.xlu0 %v10922_v8, %s7522_s15 }
 0xb38   : > { %6009 = vrot.lane.b32.xlu0 %v10916_v7, %s7522_s15  ;;  %6031 = vrot.lane.b32.xlu1 %v6137_v5, %s7522_s15 }
 0xb3c   : > { %6005 = vrot.lane.b32.xlu0 %v10928_v18, %s7522_s15  ;;  %6015 = vrot.lane.b32.xlu1 %v6133_v32, %s7522_s15 }
 0xb40   : > { %6213 = vrot.lane.b32.xlu0 %v6137_v5, %s11282_s18  ;;  %6011 = vrot.lane.b32.xlu1 %v6132_v17, %s7522_s15 }
 0xb44   : > { %6209 = vrot.lane.b32.xlu0 %v6135_v57, %s11282_s18  ;;  %6007 = vrot.lane.b32.xlu1 %v10934_v6, %s7522_s15  ;;  %s7381_s15 = smul.u32 7, %s11297_s27 }
 0xb48   : > { %6211 = vrot.lane.b32.xlu1 %v6136_v52, %s11282_s18  ;;  %6299 = vperm.xlu0 %7453, %v10676_v4   ;;  %s7382_s18 = smul.u32 14, %s11295_s28 }
 0xb4a   : > { %s459_s17 = sadd.s32 %s7382_s18, %s7381_s15 }
 0xb4b   : > { %s6868_s26 = sshll.u32 %s459_s17, 3 }
 0xb4c   : > { %6294 = vperm.xlu1 %7452, %v10673_v62   ;;  %6314 = vperm.xlu0 %7453, %v10687_v53   ;;  %s461_s19 = scalar_lea.vmem %s11167_s8, %s6868_s26 }
 0xb50   : > { %6304 = vperm.xlu1 %7452, %v10684_v20   ;;  %6324 = vperm.xlu0 %7453, %v10698_v35  }
 0xb54   : > { %6309 = vperm.xlu1 %7452, %v10695_v50  }
 0xb58   : > { %6319 = vperm.xlu1 %7452, %v10707_v41  }
 0xb76   : > { %v6202_v16 = vpop.permute.xlu0 %6201 }
 0xb77   : > { %6222 = vst.msk [vmem:[#allocation2 + $0x380] sm:$0xff] %vm5969_vm4, %v6202_v16 }
 0xb7a   : > { %v6085_v62 = vpop.permute.xlu0 %6084  ;;  %v6204_v4 = vpop.permute.xlu1 %6203 }
 0xb7b   : > { %v6110_v42 = vsel %vm2965_vm13, %v6083_v40, %v6085_v62  ;;  %6223 = vst.msk [vmem:[#allocation2 + $0x3a0] sm:$0xff] %vm5969_vm4, %v6204_v4 }
 0xb7c   : > { %6124 = vst.msk [vmem:[#allocation2 + $0xe0] sm:$0xff] %vm5969_vm4, %v6110_v42 }
 0xb7e   : > { %v6206_v20 = vpop.permute.xlu0 %6205  ;;  %v6089_v53 = vpop.permute.xlu1 %6088  ;;  %v6278_v45 = vld [vmem:[#allocation2 + $0x380] sm:$0xff] }
 0xb7f   : > { %6224 = vst.msk [vmem:[#allocation2 + $0x3c0] sm:$0xff] %vm5969_vm4, %v6206_v20  ;;  %v6111_v50 = vsel %vm2965_vm13, %v6087_v37, %v6089_v53 }
 0xb80   : > { %6125 = vst.msk [vmem:[#allocation2 + $0x100] sm:$0xff] %vm5969_vm4, %v6111_v50 }
 0xb82   : > { %v6093_v35 = vpop.permute.xlu0 %6092  ;;  %v6164_v41 = vpop.permute.xlu1 %6163  ;;  %v6279_v7 = vld [vmem:[#allocation2 + $0x3a0] sm:$0xff] }
 0xb83   : > { %v6112_v12 = vsel %vm2965_vm13, %v6091_v61, %v6093_v35  ;;  %6182 = vst.msk [vmem:[#allocation2 + $0x2e0] sm:$0xff] %vm5969_vm4, %v6164_v41 }
 0xb84   : > { %6126 = vst.msk [vmem:[#allocation2 + $0x120] sm:$0xff] %vm5969_vm4, %v6112_v12  ;;  %v6270_v12 = vld [vmem:[#allocation2 + $0x280] sm:$0xff] }
 0xb86   : > { %v6166_v15 = vpop.permute.xlu0 %6165  ;;  %v6208_v11 = vpop.permute.xlu1 %6207  ;;  %v6280_v10 = vld [vmem:[#allocation2 + $0x3c0] sm:$0xff] }
 0xb87   : > { %6183 = vst.msk [vmem:[#allocation2 + $0x300] sm:$0xff] %vm5969_vm4, %v6166_v15  ;;  %6225 = vst.msk [vmem:[#allocation2 + $0x3e0] sm:$0xff] %vm5969_vm4, %v6208_v11  ;;  %v6258_v13 = vld [vmem:[#allocation2 + $0x100] sm:$0xff] }
 0xb8a   : > { %v6101_v56 = vpop.permute.xlu0 %6100  ;;  %v6097_v21 = vpop.permute.xlu1 %6096  ;;  %v6273_v61 = vld [vmem:[#allocation2 + $0x2e0] sm:$0xff] }
 0xb8b   : > { %v6114_v33 = vsel %vm2965_vm13, %v6099_v27, %v6101_v56  ;;  %v6113_v30 = vsel %vm2965_vm13, %v6095_v26, %v6097_v21  ;;  %v6269_v56 = vld [vmem:[#allocation2 + $0x260] sm:$0xff] }
 0xb8c   : > { %6128 = vst.msk [vmem:[#allocation2 + $0x160] sm:$0xff] %vm5969_vm4, %v6114_v33  ;;  %6127 = vst.msk [vmem:[#allocation2 + $0x140] sm:$0xff] %vm5969_vm4, %v6113_v30  ;;  %v6268_v30 = vld [vmem:[#allocation2 + $0x240] sm:$0xff] }
 0xb8e   : > { %v6170_v14 = vpop.permute.xlu0 %6169  ;;  %v6168_v39 = vpop.permute.xlu1 %6167  ;;  %v6281_v22 = vld [vmem:[#allocation2 + $0x3e0] sm:$0xff] }
 0xb8f   : > { %6185 = vst.msk [vmem:[#allocation2 + $0x340] sm:$0xff] %vm5969_vm4, %v6170_v14  ;;  %6184 = vst.msk [vmem:[#allocation2 + $0x320] sm:$0xff] %vm5969_vm4, %v6168_v39  ;;  %7124 = vmatprep.subr.mxu0 %v6281_v22  ;;  %7344 = vmatprep.subr.mxu1 %v6281_v22  ;;  %v6274_v26 = vld [vmem:[#allocation2 + $0x300] sm:$0xff] }
 0xb90   : > { %7125 = vmatpush3.msra.mxu0 %v6265_v46  ;;  %7360 = vmatpush3.msra.mxu1 %v6265_v46  ;;  %v6267_v39 = vld [vmem:[#allocation2 + $0x220] sm:$0xff] }
 0xb91   : > { %7126 = vmatprep.subr.mxu0 %v6280_v10  ;;  %7345 = vmatprep.subr.mxu1 %v6280_v10  ;;  %v6266_v46 = vld [vmem:[#allocation2 + $0x200] sm:$0xff] }
 0xb92   : > { %v6109_v31 = vpop.permute.xlu0 %6108  ;;  %7127 = vmatpush3.msra.mxu0 %v6264_v44  ;;  %7361 = vmatpush3.msra.mxu1 %v6264_v44  ;;  %v6105_v55 = vpop.permute.xlu1 %6104  ;;  %v6241_v10 = vld [vmem:[%s10994_s21 + $0x60] sm:$0xff] }
 0xb93   : > { %v6116_v8 = vsel %vm2965_vm13, %v11004_v36, %v6109_v31  ;;  %v6115_v18 = vsel %vm2965_vm13, %v11002_v43, %v6105_v55  ;;  %7128 = vmatprep.subr.mxu0 %v6279_v7  ;;  %7346 = vmatprep.subr.mxu1 %v6279_v7  ;;  %v6261_v51 = vld [vmem:[#allocation2 + $0x160] sm:$0xff] }
 0xb94   : > { %6130 = vst.msk [vmem:[#allocation2 + $0x1a0] sm:$0xff] %vm5969_vm4, %v6116_v8  ;;  %6129 = vst.msk [vmem:[#allocation2 + $0x180] sm:$0xff] %vm5969_vm4, %v6115_v18  ;;  %v6260_v52 = vld [vmem:[#allocation2 + $0x140] sm:$0xff] }
 0xb95   : > { %v6259_v36 = vld [vmem:[#allocation2 + $0x120] sm:$0xff] }
 0xb96   : > { %v6162_v3 = vpop.permute.xlu0 %6161  ;;  %v6026_v19 = vpop.permute.xlu1 %6025  ;;  %v6276_v24 = vld [vmem:[#allocation2 + $0x340] sm:$0xff] }
 0xb97   : > { %6181 = vst.msk [vmem:[#allocation2 + $0x2c0] sm:$0xff] %vm5969_vm4, %v6162_v3  ;;  %v6275_v58 = vld [vmem:[#allocation2 + $0x320] sm:$0xff]  ;;  %v6244_v3 = vld [vmem:[%s10994_s21 + $0x78] sm:$0xff] }
 0xb98   : > { %v6245_v31 = vld [vmem:[%s10994_s21 + $0x80] sm:$0xff] }
 0xb99   : > { %v6229_v55 = vld [vmem:[%s10994_s21] sm:$0xff] }
 0xb9a   : > { %v6028_v25 = vpop.permute.xlu0 %6027  ;;  %v6160_v54 = vpop.permute.xlu1 %6159  ;;  %v6233_v8 = vld [vmem:[%s10994_s21 + $0x20] sm:$0xff] }
 0xb9b   : > { %v6038_v6 = vsel %vm2838_vm14, %v6026_v19, %v6028_v25  ;;  %6180 = vst.msk [vmem:[#allocation2 + $0x2a0] sm:$0xff] %vm5969_vm4, %v6160_v54  ;;  %v6263_v28 = vld [vmem:[#allocation2 + $0x1a0] sm:$0xff]  ;;  %v6248_v19 = vld [vmem:[%s10994_s21 + $0x98] sm:$0xff] }
 0xb9c   : > { %6052 = vst.msk [vmem:[#allocation2 + $0xa0] sm:$0xff] %vm5969_vm4, %v6038_v6  ;;  %7129 = vmatpush3.msra.mxu0 %v6263_v28  ;;  %7362 = vmatpush3.msra.mxu1 %v6263_v28  ;;  %v6262_v17 = vld [vmem:[#allocation2 + $0x180] sm:$0xff]  ;;  %v6232_v25 = vld [vmem:[%s10994_s21 + $0x18] sm:$0xff]  ;;  %v6247_v28 = vld [vmem:[%s10994_s21 + $0x90] sm:$0xff] }
 0xb9d   : > { %7130 = vmatprep.subr.mxu0 %v6278_v45  ;;  %7347 = vmatprep.subr.mxu1 %v6278_v45  ;;  %v6236_v6 = vld [vmem:[%s10994_s21 + $0x38] sm:$0xff]  ;;  %v6235_v45 = vld [vmem:[%s10994_s21 + $0x30] sm:$0xff] }
 0xb9e   : > { %v6022_v34 = vpop.permute.xlu0 %6021  ;;  %7131 = vmatpush3.msra.mxu0 %v6262_v17  ;;  %7363 = vmatpush3.msra.mxu1 %v6262_v17  ;;  %v6172_v63 = vpop.permute.xlu1 %6171  ;;  %v6272_v16 = vld [vmem:[#allocation2 + $0x2c0] sm:$0xff]  ;;  %v6239_v17 = vld [vmem:[%s10994_s21 + $0x50] sm:$0xff] }
 0xb9f   : > { %6186 = vst.msk [vmem:[#allocation2 + $0x360] sm:$0xff] %vm5969_vm4, %v6172_v63  ;;  %v6238_v63 = vld [vmem:[%s10994_s21 + $0x48] sm:$0xff] }
 0xba2   : > { %v6018_v32 = vpop.permute.xlu0 %6017  ;;  %v6024_v0 = vpop.permute.xlu1 %6023  ;;  %v6271_v53 = vld [vmem:[#allocation2 + $0x2a0] sm:$0xff] }
 0xba3   : > { %v6037_v49 = vsel %vm2838_vm14, %v6022_v34, %v6024_v0  ;;  %v6255_v50 = vld [vmem:[#allocation2 + $0xa0] sm:$0xff]  ;;  %v6231_v34 = vld [vmem:[%s10994_s21 + $0x10] sm:$0xff] }
 0xba4   : > { %6051 = vst.msk [vmem:[#allocation2 + $0x80] sm:$0xff] %vm5969_vm4, %v6037_v49  ;;  %v6249_v0 = vld [vmem:[%s10994_s21 + $0xa0] sm:$0xff] }
 0xba6   : > { %v6014_v47 = vpop.permute.xlu0 %6013  ;;  %v6020_v48 = vpop.permute.xlu1 %6019  ;;  %v6277_v60 = vld [vmem:[#allocation2 + $0x360] sm:$0xff] }
 0xba7   : > { %v6036_v57 = vsel %vm2838_vm14, %v6018_v32, %v6020_v48  ;;  %7132 = vmatprep.subr.mxu0 %v6277_v60  ;;  %7348 = vmatprep.subr.mxu1 %v6277_v60  ;;  %v6246_v32 = vld [vmem:[%s10994_s21 + $0x88] sm:$0xff] }
 0xba8   : > { %6050 = vst.msk [vmem:[#allocation2 + $0x60] sm:$0xff] %vm5969_vm4, %v6036_v57  ;;  %7133 = vmatpush3.msra.mxu0 %v6261_v51  ;;  %7364 = vmatpush3.msra.mxu1 %v6261_v51 }
 0xba9   : > { %7134 = vmatprep.subr.mxu0 %v6276_v24  ;;  %7349 = vmatprep.subr.mxu1 %v6276_v24 }
 0xbaa   : > { %v6010_v5 = vpop.permute.xlu0 %6009  ;;  %7135 = vmatpush3.msra.mxu0 %v6260_v52  ;;  %7365 = vmatpush3.msra.mxu1 %v6260_v52  ;;  %v6032_v23 = vpop.permute.xlu1 %6031 }
 0xbab   : > { %v6039_v43 = vsel %vm2838_vm14, %v11012_v59, %v6032_v23  ;;  %7136 = vmatprep.subr.mxu0 %v6275_v58  ;;  %7350 = vmatprep.subr.mxu1 %v6275_v58  ;;  %v6257_v59 = vld [vmem:[#allocation2 + $0xe0] sm:$0xff] }
 0xbac   : > { %6053 = vst.msk [vmem:[#allocation2 + $0xc0] sm:$0xff] %vm5969_vm4, %v6039_v43  ;;  %7137 = vmatpush3.msra.mxu0 %v6259_v36  ;;  %7366 = vmatpush3.msra.mxu1 %v6259_v36  ;;  %v6254_v11 = vld [vmem:[#allocation2 + $0x80] sm:$0xff] }
 0xbad   : > { %7138 = vmatprep.subr.mxu0 %v6274_v26  ;;  %7351 = vmatprep.subr.mxu1 %v6274_v26 }
 0xbae   : > { %v6006_v27 = vpop.permute.xlu0 %6005  ;;  %7139 = vmatpush3.msra.mxu0 %v6258_v13  ;;  %7367 = vmatpush3.msra.mxu1 %v6258_v13  ;;  %v6016_v37 = vpop.permute.xlu1 %6015 }
 0xbaf   : > { %v6035_v40 = vsel %vm2838_vm14, %v6014_v47, %v6016_v37  ;;  %7140 = vmatprep.subr.mxu0 %v6273_v61  ;;  %7352 = vmatprep.subr.mxu1 %v6273_v61  ;;  %v6253_v21 = vld [vmem:[#allocation2 + $0x60] sm:$0xff] }
 0xbb0   : > { %6049 = vst.msk [vmem:[#allocation2 + $0x40] sm:$0xff] %vm5969_vm4, %v6035_v40  ;;  %7141 = vmatpush3.msra.mxu0 %v6257_v59  ;;  %7368 = vmatpush3.msra.mxu1 %v6257_v59 }
 0xbb1   : > { %7142 = vmatprep.subr.mxu0 %v6272_v16  ;;  %7353 = vmatprep.subr.mxu1 %v6272_v16 }
 0xbb2   : > { %v6214_v62 = vpop.permute.xlu0 %6213  ;;  %v6012_v4 = vpop.permute.xlu1 %6011 }
 0xbb3   : > { %6228 = vst.msk [vmem:[#allocation2 + $0x440] sm:$0xff] %vm5969_vm4, %v6214_v62  ;;  %v6034_v42 = vsel %vm2838_vm14, %v6010_v5, %v6012_v4  ;;  %v6256_v20 = vld [vmem:[#allocation2 + $0xc0] sm:$0xff] }
 0xbb4   : > { %6048 = vst.msk [vmem:[#allocation2 + $0x20] sm:$0xff] %vm5969_vm4, %v6034_v42  ;;  %7143 = vmatpush3.msra.mxu0 %v6256_v20  ;;  %7369 = vmatpush3.msra.mxu1 %v6256_v20 }
 0xbb5   : > { %7144 = vmatprep.subr.mxu0 %v6271_v53  ;;  %7354 = vmatprep.subr.mxu1 %v6271_v53 }
 0xbb6   : > { %v6210_v35 = vpop.permute.xlu0 %6209  ;;  %7145 = vmatpush3.msra.mxu0 %v6255_v50  ;;  %7370 = vmatpush3.msra.mxu1 %v6255_v50  ;;  %v6008_v41 = vpop.permute.xlu1 %6007 }
 0xbb7   : > { %6226 = vst.msk [vmem:[#allocation2 + $0x400] sm:$0xff] %vm5969_vm4, %v6210_v35  ;;  %v6033_v15 = vsel %vm2838_vm14, %v6006_v27, %v6008_v41  ;;  %7146 = vmatprep.subr.mxu0 %v6270_v12  ;;  %7355 = vmatprep.subr.mxu1 %v6270_v12  ;;  %v6252_v14 = vld [vmem:[#allocation2 + $0x40] sm:$0xff] }
 0xbb8   : > { %6047 = vst.msk [vmem:[#allocation2] sm:$0xff] %vm5969_vm4, %v6033_v15  ;;  %7147 = vmatpush3.msra.mxu0 %v6254_v11  ;;  %7371 = vmatpush3.msra.mxu1 %v6254_v11 }
 0xbb9   : > { %7148 = vmatprep.subr.mxu0 %v6269_v56  ;;  %7356 = vmatprep.subr.mxu1 %v6269_v56 }
 0xbba   : > { %7149 = vmatpush3.msra.mxu0 %v6253_v21  ;;  %7372 = vmatpush3.msra.mxu1 %v6253_v21  ;;  %v6212_v33 = vpop.permute.xlu1 %6211  ;;  %v6284_v7 = vld [vmem:[#allocation2 + $0x440] sm:$0xff] }
 0xbbb   : > { %6227 = vst.msk [vmem:[#allocation2 + $0x420] sm:$0xff] %vm5969_vm4, %v6212_v33  ;;  %7150 = vmatprep.subr.mxu0 %v6268_v30  ;;  %7357 = vmatprep.subr.mxu1 %v6268_v30  ;;  %v6251_v22 = vld [vmem:[#allocation2 + $0x20] sm:$0xff] }
 0xbbc   : > { %7151 = vmatpush3.msra.mxu0 %v6252_v14  ;;  %7373 = vmatpush3.msra.mxu1 %v6252_v14 }
 0xbbd   : > { %7152 = vmatprep.subr.mxu0 %v6267_v39  ;;  %7358 = vmatprep.subr.mxu1 %v6267_v39 }
 0xbbe   : > { %7153 = vmatpush3.msra.mxu0 %v6251_v22  ;;  %7374 = vmatpush3.msra.mxu1 %v6251_v22  ;;  %v6282_v54 = vld [vmem:[#allocation2 + $0x400] sm:$0xff] }
 0xbbf   : > { %7154 = vmatprep.subr.mxu0 %v6266_v46  ;;  %7359 = vmatprep.subr.mxu1 %v6266_v46  ;;  %v6250_v44 = vld [vmem:[#allocation2] sm:$0xff] }
 0xbc0   : > { %7155 = vmatpush3.msra.mxu0 %v6250_v44  ;;  %7375 = vmatpush3.msra.mxu1 %v6250_v44 }
 0xbc1   : > { %7288 = vmatprep.subr.mxu1 %v11279_v9  ;;  %6434 = vmatmul.mubr.f32.vlgmr.msra.gmra.mxu1 %v6241_v10 }
 0xbc2   : > { %7289 = vmatpush3.msra.mxu1 %v6284_v7  ;;  %v6283_v18 = vld [vmem:[#allocation2 + $0x420] sm:$0xff]  ;;  %6438 = vmatprep.mubr.f32.mxu1 %v6245_v31 }
 0xbc3   : > { %7290 = vmatprep.subr.mxu1 %v11279_v9  ;;  %6414 = vmatmul.mubr.f32.vlgmr.msra.gmra.mxu0 %v6229_v55  ;;  %v6300_v40 = vpop.permute.xlu0 %6299 }
 0xbc4   : > { %7291 = vmatpush3.msra.mxu1 %v6283_v18  ;;  %6418 = vmatprep.mubr.f32.mxu0 %v6233_v8 }
 0xbc5   : > { %7292 = vmatprep.subr.mxu1 %v11279_v9  ;;  %6439 = vmatmul.mubr.f32.gmra.mxu1 %v6244_v3 }
 0xbc6   : > { %7293 = vmatpush3.msra.mxu1 %v6282_v54  ;;  %6443 = vmatprep.mubr.f32.mxu1 %v6248_v19 }
 0xbc7   : > { %6419 = vmatmul.mubr.f32.gmra.mxu0 %v6232_v25  ;;  %7315 = vmatprep.subr.mxu0 %v11279_v9  ;;  %v6295_v58 = vpop.permute.xlu1 %6294  ;;  %v6315_v10 = vpop.permute.xlu0 %6314 }
 0xbc8   : > { %6423 = vmatprep.mubr.f32.mxu0 %v6236_v6  ;;  %7316 = vmatpush3.msra.mxu0 %v10845_v29  ;;  %v6234_v29 = vld [vmem:[%s10994_s21 + $0x28] sm:$0xff] }
 0xbc9   : > { %6444 = vmatmul.mubr.f32.gmra.mxu1 %v6247_v28  ;;  %7317 = vmatprep.subr.mxu0 %v11279_v9 }
 0xbca   : > { %7294 = vmatprep.mubr.msk.f32.mxu1 %vm7528_vm0, %v11279_v9  ;;  %7318 = vmatpush3.msra.mxu0 %v10852_v2  ;;  %v6237_v2 = vld [vmem:[%s10994_s21 + $0x40] sm:$0xff] }
 0xbcb   : > { %6424 = vmatmul.mubr.f32.gmra.mxu0 %v6235_v45  ;;  %7319 = vmatprep.subr.mxu0 %v11279_v9  ;;  %v6305_v20 = vpop.permute.xlu1 %6304 }
 0xbcc   : > { %6428 = vmatprep.mubr.f32.mxu0 %v6239_v17  ;;  %7320 = vmatpush3.msra.mxu0 %v10859_v38  ;;  %v6240_v38 = vld [vmem:[%s10994_s21 + $0x58] sm:$0xff]  ;;  %v6325_v17 = vpop.permute.xlu0 %6324 }
 0xbcd   : > { %7295 = vmatmul.mubr.msk.f32.vlgmr.msra.gmra.mxu1 %vm6327_vm5, %v6231_v34  ;;  %7321 = vmatprep.subr.mxu0 %v11279_v9 }
 0xbce   : > { %7297 = vmatprep.mubr.msk.f32.mxu1 %vm7528_vm0, %v11279_v9  ;;  %7322 = vmatpush3.msra.mxu0 %v10866_v1  ;;  %v6243_v1 = vld [vmem:[%s10994_s21 + $0x70] sm:$0xff] }
 0xbcf   : > { %6429 = vmatmul.mubr.f32.gmra.mxu0 %v6238_v63  ;;  %v6310_v30 = vpop.permute.xlu1 %6309 }
 0xbd0   : > { %7323 = vmatprep.mubr.msk.f32.mxu0 %vm7528_vm0, %v11279_v9 }
 0xbd1   : > { %7298 = vmatmul.mubr.msk.f32.gmra.mxu1 %vm6327_vm5, %v6234_v29 }
 0xbd2   : > { %7300 = vmatprep.mubr.msk.f32.mxu1 %vm7528_vm0, %v11279_v9 }
 0xbd3   : > { %v6320_v3 = vpop.permute.xlu1 %6319 }
 0xbd5   : > { %7301 = vmatmul.mubr.msk.f32.gmra.mxu1 %vm6327_vm5, %v6237_v2 }
 0xbd6   : > { %7303 = vmatprep.mubr.msk.f32.mxu1 %vm7528_vm0, %v11279_v9 }
 0xbd9   : > { %7304 = vmatmul.mubr.msk.f32.gmra.mxu1 %vm6327_vm5, %v6240_v38 }
 0xbda   : > { %7306 = vmatprep.mubr.msk.f32.mxu1 %vm7528_vm0, %v11279_v9 }
 0xbdd   : > { %7307 = vmatmul.mubr.msk.f32.gmra.mxu1 %vm6327_vm5, %v6243_v1 }
 0xbde   : > { %7309 = vmatprep.mubr.msk.f32.mxu1 %vm7528_vm0, %v11279_v9 }
 0xbe1   : > { %7310 = vmatmul.mubr.msk.f32.gmra.mxu1 %vm6327_vm5, %v6246_v32 }
 0xbe2   : > { %7312 = vmatprep.mubr.msk.f32.mxu1 %vm7528_vm0, %v11279_v9 }
 0xbe5   : > { %7313 = vmatmul.mubr.msk.f32.gmra.mxu1 %vm6327_vm5, %v6249_v0 }
 0xc81   : > { %v7168_v49 = vpop.f32.mrf.mxu1 }
 0xc83   : > { %v7169_v47 = vpop.f32.mrf.mxu1  ;;  %v7156_v48 = vpop.f32.mrf.mxu0 }
 0xc84   : > { %v7170_v14 = vadd.f32 %v7169_v47, %v7168_v49 }
 0xc85   : > { %v7171_v60 = vpop.f32.mrf.mxu1  ;;  %v7157_v57 = vpop.f32.mrf.mxu0 }
 0xc86   : > { %v7158_v52 = vadd.f32 %v7157_v57, %v7156_v48  ;;  %v6436_v8 = vadd.f32 %v7170_v14, %v6315_v10 }
 0xc87   : > { %v7172_v51 = vpop.f32.mrf.mxu1  ;;  %v7159_v24 = vpop.f32.mrf.mxu0 }
 0xc88   : > { %v6416_v26 = vadd.f32 %v7158_v52, %v6295_v58  ;;  %v7173_v55 = vadd.f32 %v7172_v51, %v7171_v60 }
 0xc89   : > { %v7174_v5 = vpop.f32.mrf.mxu1  ;;  %v7160_v23 = vpop.f32.mrf.mxu0 }
 0xc8a   : > { %v7161_v13 = vadd.f32 %v7160_v23, %v7159_v24  ;;  %v6441_v28 = vadd.f32 %v7173_v55, %v6320_v3 }
 0xc8b   : > { %v7175_v43 = vpop.f32.mrf.mxu1  ;;  %v7162_v36 = vpop.f32.mrf.mxu0 }
 0xc8c   : > { %v6421_v4 = vadd.f32 %v7161_v13, %v6300_v40  ;;  %v7176_v54 = vadd.f32 %v7175_v43, %v7174_v5 }
 0xc8d   : > { %v6515_v27 = vpop.f32.mrf.mxu1  ;;  %v7163_v37 = vpop.f32.mrf.mxu0 }
 0xc8e   : > { %v6516_v61 = vadd.f32 %v6515_v27, %v6416_v26  ;;  %v7164_v42 = vadd.f32 %v7163_v37, %v7162_v36  ;;  %v6446_v2 = vadd.f32 %v7176_v54, %v6325_v17 }
 0xc8f   : > { %v7296_v59 = vpop.f32.mrf.mxu1  ;;  %v7165_v16 = vpop.f32.mrf.mxu0 }
 0xc90   : > { %v6549_v62 = vmax.f32 %v6516_v61, 0.0  ;;  %v6426_v15 = vadd.f32 %v7164_v42, %v6305_v20 }
 0xc91   : > { %v6520_v53 = vpop.f32.mrf.mxu1  ;;  %v7166_v50 = vpop.f32.mrf.mxu0 }
 0xc92   : > { %v6521_v35 = vadd.f32 %v6520_v53, %v6421_v4  ;;  %7324 = vmatmul.mubr.msk.f32.vlgmr.msra.gmra.mxu0 %vm5969_vm4, %v6549_v62  ;;  %v7167_v11 = vadd.f32 %v7166_v50, %v7165_v16 }
 0xc93   : > { %v7299_v41 = vpop.f32.mrf.mxu1  ;;  %7326 = vmatprep.mubr.msk.f32.mxu0 %vm7528_vm0, %v11279_v9 }
 0xc94   : > { %v6550_v12 = vmax.f32 %v6521_v35, 0.0  ;;  %v6431_v22 = vadd.f32 %v7167_v11, %v6310_v30 }
 0xc95   : > { %v6525_v56 = vpop.f32.mrf.mxu1 }
 0xc96   : > { %v6526_v21 = vadd.f32 %v6525_v56, %v6426_v15  ;;  %7327 = vmatmul.mubr.msk.f32.gmra.mxu0 %vm5969_vm4, %v6550_v12 }
 0xc97   : > { %v7302_v33 = vpop.f32.mrf.mxu1  ;;  %7329 = vmatprep.mubr.msk.f32.mxu0 %vm7528_vm0, %v11279_v9 }
 0xc98   : > { %v6551_v39 = vmax.f32 %v6526_v21, 0.0 }
 0xc99   : > { %v6530_v46 = vpop.f32.mrf.mxu1 }
 0xc9a   : > { %v6531_v44 = vadd.f32 %v6530_v46, %v6431_v22  ;;  %7330 = vmatmul.mubr.msk.f32.gmra.mxu0 %vm5969_vm4, %v6551_v39 }
 0xc9b   : > { %v7305_v31 = vpop.f32.mrf.mxu1  ;;  %7332 = vmatprep.mubr.msk.f32.mxu0 %vm7528_vm0, %v11279_v9 }
 0xc9c   : > { %v6552_v7 = vmax.f32 %v6531_v44, 0.0 }
 0xc9d   : > { %v6535_v18 = vpop.f32.mrf.mxu1 }
 0xc9e   : > { %v6536_v19 = vadd.f32 %v6535_v18, %v6436_v8  ;;  %7333 = vmatmul.mubr.msk.f32.gmra.mxu0 %vm5969_vm4, %v6552_v7 }
 0xc9f   : > { %v7308_v25 = vpop.f32.mrf.mxu1  ;;  %7335 = vmatprep.mubr.msk.f32.mxu0 %vm7528_vm0, %v11279_v9 }
 0xca0   : > { %v6553_v6 = vmax.f32 %v6536_v19, 0.0 }
 0xca1   : > { %v6540_v45 = vpop.f32.mrf.mxu1 }
 0xca2   : > { %v6541_v34 = vadd.f32 %v6540_v45, %v6441_v28  ;;  %7336 = vmatmul.mubr.msk.f32.gmra.mxu0 %vm5969_vm4, %v6553_v6 }
 0xca3   : > { %v7311_v63 = vpop.f32.mrf.mxu1  ;;  %7338 = vmatprep.mubr.msk.f32.mxu0 %vm7528_vm0, %v11279_v9 }
 0xca4   : > { %v6554_v29 = vmax.f32 %v6541_v34, 0.0 }
 0xca5   : > { %v6545_v38 = vpop.f32.mrf.mxu1 }
 0xca6   : > { %v6546_v1 = vadd.f32 %v6545_v38, %v6446_v2  ;;  %7339 = vmatmul.mubr.msk.f32.gmra.mxu0 %vm5969_vm4, %v6554_v29 }
 0xca7   : > { %7341 = vmatprep.mubr.msk.f32.mxu0 %vm7528_vm0, %v11279_v9  ;;  %v7314_v32 = vpop.f32.mrf.mxu1 }
 0xca8   : > { %v6555_v0 = vmax.f32 %v6546_v1, 0.0 }
 0xcaa   : > { %7342 = vmatmul.mubr.msk.f32.gmra.mxu0 %vm5969_vm4, %v6555_v0 }
 0xd52   : > { %v6647_v49 = vpop.f32.mrf.mxu0 }
 0xd53   : > { %6682 = vst.msk [vmem:[%s461_s19] sm:$0xff] %vm6681_vm6, %v6647_v49 }
 0xd54   : > { %v7325_v47 = vpop.f32.mrf.mxu0 }
 0xd56   : > { %v6652_v48 = vpop.f32.mrf.mxu0 }
 0xd57   : > { %6683 = vst.msk [vmem:[%s461_s19 + $0x8] sm:$0xff] %vm6681_vm6, %v6652_v48 }
 0xd58   : > { %v7328_v9 = vpop.f32.mrf.mxu0 }
 0xd5a   : > { %v6657_v60 = vpop.f32.mrf.mxu0 }
 0xd5b   : > { %6684 = vst.msk [vmem:[%s461_s19 + $0x10] sm:$0xff] %vm6681_vm6, %v6657_v60 }
 0xd5c   : > { %v7331_v57 = vpop.f32.mrf.mxu0 }
 0xd5e   : > { %v6662_v51 = vpop.f32.mrf.mxu0 }
 0xd5f   : > { %6685 = vst.msk [vmem:[%s461_s19 + $0x18] sm:$0xff] %vm6681_vm6, %v6662_v51 }
 0xd60   : > { %v7334_v24 = vpop.f32.mrf.mxu0 }
 0xd62   : > { %v6667_v52 = vpop.f32.mrf.mxu0 }
 0xd63   : > { %6686 = vst.msk [vmem:[%s461_s19 + $0x20] sm:$0xff] %vm6681_vm6, %v6667_v52 }
 0xd64   : > { %v7337_v5 = vpop.f32.mrf.mxu0 }
 0xd66   : > { %v6672_v23 = vpop.f32.mrf.mxu0 }
 0xd67   : > { %6687 = vst.msk [vmem:[%s461_s19 + $0x28] sm:$0xff] %vm6681_vm6, %v6672_v23 }
 0xd68   : > { %v7340_v58 = vpop.f32.mrf.mxu0 }
 0xd6a   : > { %v6677_v43 = vpop.f32.mrf.mxu0 }
 0xd6b   : > { %6688 = vst.msk [vmem:[%s461_s19 + $0x30] sm:$0xff] %vm6681_vm6, %v6677_v43 }
 0xd6c   : > { %v7343_v36 = vpop.f32.mrf.mxu0 }
 0xd6d PF: > { %s18_s9 = sadd.s32 1, %s7508_s9   ;;  %s11284_s27 = smov %s7500_s29 }
 0xd6e   : > { %p15_p7 = scmp.ge.s32.totalorder %s18_s9, 6   ;;  %s11285_s28 = smov %s7504_s30 }
 0xd6f   : > { %s11286_s29 = smov %s11289_s10  ;;  %s11287_s30 = smov %s11293_s11 }
 0xd70   :  { %17 = sbr.rel (!%p15_p7) target bundleno = 3 (0x3), region = 100 }

// kernel: model_forward.3
= control target key start
LH: loop header
LB: loop body
LE: loop exit
PB: predicated region body
PF: predicated region fallthrough
CT: control target
= control target key end

     0   :  { %v9433_v36 = vmov 1983009808   ;;  %v39_v38 = vlaneseq  ;;  %vm9436_vm0 = vmmov 0   ;;  %s12348_s0 = inlined_call_operand.vmem [shape: f32[2,896], index: 0, kind: input, shape index: {}]   ;;  %s12349_s1 = inlined_call_operand.vmem [shape: f32[2,896], index: 1, kind: input, shape index: {}]   ;;  %s12350_s2 = inlined_call_operand.vmem [shape: bf16[896,896], index: 2, kind: input, shape index: {}]   ;;  %s12351_s3 = inlined_call_operand.vmem [shape: f32[1,896], index: 3, kind: input, shape index: {}]   ;;  %s12352_s4 = inlined_call_operand.vmem [shape: bf16[896,896], index: 4, kind: input, shape index: {}]   ;;  %s12353_s5 = inlined_call_operand.vmem [shape: f32[1,896], index: 5, kind: input, shape index: {}]   ;;  %s12354_s6 = inlined_call_operand.vmem [shape: bf16[896,2], index: 6, kind: input, shape index: {}]   ;;  %s12355_s7 = inlined_call_operand.vmem [shape: f32[1,2], index: 7, kind: input, shape index: {}]   ;;  %s12356_s8 = inlined_call_operand.hbm [shape: f32[2,2], index: 8, kind: output, shape index: {}]  }
   0x1   :  { %v8229_v0 = vld [vmem:[%s12350_s2 + $0x18c] ss:$28 sps:$4 sm:$0xff]   ;;  %v8235_v4 = vld [vmem:[%s12350_s2 + $0x154] ss:$28 sps:$4 sm:$0xff]   ;;  %v8241_v8 = vld [vmem:[%s12350_s2 + $0x11c] ss:$28 sps:$4 sm:$0xff]   ;;  %v37_v37 = vunpack.c.l.s4 %v9433_v36 }
   0x2   :  { %v8231_v1 = vld [vmem:[%s12350_s2 + $0x50c] ss:$28 sps:$4 sm:$0xff]   ;;  %2583 = vmatprep.subr.bf16.mxu0 %v8229_v0  ;;  %v8237_v5 = vld [vmem:[%s12350_s2 + $0x4d4] ss:$28 sps:$4 sm:$0xff]   ;;  %v8243_v9 = vld [vmem:[%s12350_s2 + $0x49c] ss:$28 sps:$4 sm:$0xff]  }
   0x3   :  { %v8233_v2 = vld [vmem:[%s12350_s2 + $0x188] ss:$28 sps:$4 sm:$0xff]   ;;  %2624 = vmatprep.subr.bf16.mxu1 %v8231_v1  ;;  %v8239_v6 = vld [vmem:[%s12350_s2 + $0x150] ss:$28 sps:$4 sm:$0xff]   ;;  %v8245_v10 = vld [vmem:[%s12350_s2 + $0x118] ss:$28 sps:$4 sm:$0xff]   ;;  %v38_v42 = vunpack.c.0.s8 %v37_v37 }
   0x4   :  { %v8234_v3 = vld [vmem:[%s12350_s2 + $0x508] ss:$28 sps:$4 sm:$0xff]   ;;  %2584 = vmatpush1.bf16.msra.mxu0 %v8233_v2  ;;  %v8240_v7 = vld [vmem:[%s12350_s2 + $0x4d0] ss:$28 sps:$4 sm:$0xff]   ;;  %v8246_v11 = vld [vmem:[%s12350_s2 + $0x498] ss:$28 sps:$4 sm:$0xff]  }
   0x5   :  { %2625 = vmatpush1.bf16.msra.mxu1 %v8234_v3  ;;  %2585 = vmatprep.subr.bf16.mxu0 %v8235_v4  ;;  %v8247_v12 = vld [vmem:[%s12350_s2 + $0xe4] ss:$28 sps:$4 sm:$0xff]   ;;  %v8253_v16 = vld [vmem:[%s12350_s2 + $0xac] ss:$28 sps:$4 sm:$0xff]   ;;  %v8259_v20 = vld [vmem:[%s12350_s2 + $0x74] ss:$28 sps:$4 sm:$0xff]  }
   0x6   :  { %2626 = vmatprep.subr.bf16.mxu1 %v8237_v5  ;;  %v8249_v13 = vld [vmem:[%s12350_s2 + $0x464] ss:$28 sps:$4 sm:$0xff]   ;;  %v8255_v17 = vld [vmem:[%s12350_s2 + $0x42c] ss:$28 sps:$4 sm:$0xff]   ;;  %v8261_v21 = vld [vmem:[%s12350_s2 + $0x3f4] ss:$28 sps:$4 sm:$0xff]  }
   0x7   :  { %v8251_v14 = vld [vmem:[%s12350_s2 + $0xe0] ss:$28 sps:$4 sm:$0xff]   ;;  %v8257_v18 = vld [vmem:[%s12350_s2 + $0xa8] ss:$28 sps:$4 sm:$0xff]   ;;  %v8263_v22 = vld [vmem:[%s12350_s2 + $0x70] ss:$28 sps:$4 sm:$0xff]  }
   0x8   :  { %2586 = vmatpush1.bf16.msra.mxu0 %v8239_v6  ;;  %v8252_v15 = vld [vmem:[%s12350_s2 + $0x460] ss:$28 sps:$4 sm:$0xff]   ;;  %v8258_v19 = vld [vmem:[%s12350_s2 + $0x428] ss:$28 sps:$4 sm:$0xff]   ;;  %v8264_v23 = vld [vmem:[%s12350_s2 + $0x3f0] ss:$28 sps:$4 sm:$0xff]  }
   0x9   :  { %2627 = vmatpush1.bf16.msra.mxu1 %v8240_v7  ;;  %2587 = vmatprep.subr.bf16.mxu0 %v8241_v8  ;;  %v8265_v24 = vld [vmem:[%s12350_s2 + $0x3c] ss:$28 sps:$4 sm:$0xff]   ;;  %v8271_v28 = vld [vmem:[%s12350_s2 + $0x4] ss:$28 sps:$4 sm:$0xff]   ;;  %v8277_v32 = vld [vmem:[%s12350_s2 + $0x34c] ss:$28 sps:$4 sm:$0xff]  }
   0xa   :  { %2628 = vmatprep.subr.bf16.mxu1 %v8243_v9  ;;  %v8267_v25 = vld [vmem:[%s12350_s2 + $0x3bc] ss:$28 sps:$4 sm:$0xff]   ;;  %v8273_v29 = vld [vmem:[%s12350_s2 + $0x384] ss:$28 sps:$4 sm:$0xff]   ;;  %v8279_v33 = vld [vmem:[%s12350_s2 + $0x6cc] ss:$28 sps:$4 sm:$0xff]  }
   0xb   :  { %v8269_v26 = vld [vmem:[%s12350_s2 + $0x38] ss:$28 sps:$4 sm:$0xff]   ;;  %v8275_v30 = vld [vmem:[%s12350_s2] ss:$28 sps:$4 sm:$0xff]   ;;  %v8281_v34 = vld [vmem:[%s12350_s2 + $0x348] ss:$28 sps:$4 sm:$0xff]  }
   0xc   :  { %2588 = vmatpush1.bf16.msra.mxu0 %v8245_v10  ;;  %v8270_v27 = vld [vmem:[%s12350_s2 + $0x3b8] ss:$28 sps:$4 sm:$0xff]   ;;  %v8276_v31 = vld [vmem:[%s12350_s2 + $0x380] ss:$28 sps:$4 sm:$0xff]   ;;  %v8282_v35 = vld [vmem:[%s12350_s2 + $0x6c8] ss:$28 sps:$4 sm:$0xff]  }
   0xd   :  { %2629 = vmatpush1.bf16.msra.mxu1 %v8246_v11  ;;  %2589 = vmatprep.subr.bf16.mxu0 %v8247_v12  ;;  %v8283_v39 = vld [vmem:[%s12350_s2 + $0x314] ss:$28 sps:$4 sm:$0xff]   ;;  %v9600_v43 = vshrl.u32 %v39_v38, 7  ;;  %v8289_v45 = vld [vmem:[%s12350_s2 + $0x2dc] ss:$28 sps:$4 sm:$0xff]   ;;  %v31_v52 = vld [vmem:[%s12348_s0] sm:$0xff] }
   0xe   :  { %2630 = vmatprep.subr.bf16.mxu1 %v8249_v13  ;;  %v8285_v40 = vld [vmem:[%s12350_s2 + $0x694] ss:$28 sps:$4 sm:$0xff]   ;;  %v8291_v46 = vld [vmem:[%s12350_s2 + $0x65c] ss:$28 sps:$4 sm:$0xff]   ;;  %v8295_v50 = vld [vmem:[%s12350_s2 + $0x2a4] ss:$28 sps:$4 sm:$0xff]   ;;  %v35_v55 = vcombine.high %v31_v52, %v31_v52 }
   0xf   :  { %v8287_v41 = vld [vmem:[%s12350_s2 + $0x310] ss:$28 sps:$4 sm:$0xff]   ;;  %v8293_v47 = vld [vmem:[%s12350_s2 + $0x2d8] ss:$28 sps:$4 sm:$0xff]   ;;  %v9618_v49 = vsub.s32 %v38_v42, %v9600_v43  ;;  %v8297_v51 = vld [vmem:[%s12350_s2 + $0x624] ss:$28 sps:$4 sm:$0xff]  }
  0x10   :  { %2590 = vmatpush1.bf16.msra.mxu0 %v8251_v14  ;;  %v8288_v44 = vld [vmem:[%s12350_s2 + $0x690] ss:$28 sps:$4 sm:$0xff]   ;;  %v8294_v48 = vld [vmem:[%s12350_s2 + $0x658] ss:$28 sps:$4 sm:$0xff]   ;;  %v8299_v53 = vld [vmem:[%s12350_s2 + $0x2a0] ss:$28 sps:$4 sm:$0xff]  }
  0x11   :  { %2631 = vmatpush1.bf16.msra.mxu1 %v8252_v15  ;;  %2591 = vmatprep.subr.bf16.mxu0 %v8253_v16  ;;  %v42_v54 = vrot.slane %v31_v52, %v9618_v49  ;;  %v8300_v56 = vld [vmem:[%s12350_s2 + $0x620] ss:$28 sps:$4 sm:$0xff]   ;;  %v8301_v57 = vld [vmem:[%s12350_s2 + $0x26c] ss:$28 sps:$4 sm:$0xff]   ;;  %v49_v60 = vrot.slane %v35_v55, %v9618_v49  ;;  %v8307_v1 = vld [vmem:[%s12350_s2 + $0x234] ss:$28 sps:$4 sm:$0xff]  }
  0x12   :  { %2632 = vmatprep.subr.bf16.mxu1 %v8255_v17  ;;  %v8303_v58 = vld [vmem:[%s12350_s2 + $0x5ec] ss:$28 sps:$4 sm:$0xff]   ;;  %v8309_v2 = vld [vmem:[%s12350_s2 + $0x5b4] ss:$28 sps:$4 sm:$0xff]   ;;  %v8313_v6 = vld [vmem:[%s12350_s2 + $0x1fc] ss:$28 sps:$4 sm:$0xff]  }
  0x13   :  { %v50_v59 = vcombine.high %v42_v54, %v42_v54  ;;  %v8305_v61 = vld [vmem:[%s12350_s2 + $0x268] ss:$28 sps:$4 sm:$0xff]   ;;  %v51_v63 = vcombine.high %v49_v60, %v49_v60  ;;  %v8311_v4 = vld [vmem:[%s12350_s2 + $0x230] ss:$28 sps:$4 sm:$0xff]   ;;  %v8315_v7 = vld [vmem:[%s12350_s2 + $0x57c] ss:$28 sps:$4 sm:$0xff]   ;;  %v9697_v16 = vpack.c.bf16 %v42_v54, %v42_v54 }
  0x14   :  { %2592 = vmatpush1.bf16.msra.mxu0 %v8257_v18  ;;  %v8306_v0 = vld [vmem:[%s12350_s2 + $0x5e8] ss:$28 sps:$4 sm:$0xff]   ;;  %v8312_v5 = vld [vmem:[%s12350_s2 + $0x5b0] ss:$28 sps:$4 sm:$0xff]   ;;  %v8317_v8 = vld [vmem:[%s12350_s2 + $0x1f8] ss:$28 sps:$4 sm:$0xff]   ;;  %v9702_v18 = vpack.c.bf16 %v49_v60, %v49_v60 }
  0x15   :  { %2633 = vmatpush1.bf16.msra.mxu1 %v8258_v19  ;;  %2593 = vmatprep.subr.bf16.mxu0 %v8259_v20  ;;  %v9646_v62 = vpack.c.bf16 %v50_v59, %v50_v59  ;;  %v9657_v3 = vpack.c.bf16 %v51_v63, %v51_v63  ;;  %v8318_v9 = vld [vmem:[%s12350_s2 + $0x578] ss:$28 sps:$4 sm:$0xff]   ;;  %v8319_v10 = vld [vmem:[%s12350_s2 + $0x1c4] ss:$28 sps:$4 sm:$0xff]   ;;  %v8328_v14 = vld [vmem:[%s12350_s2 + $0x88c] ss:$28 sps:$4 sm:$0xff]  }
  0x16   :  { %2634 = vmatprep.subr.bf16.mxu1 %v8261_v21  ;;  %v8321_v11 = vld [vmem:[%s12350_s2 + $0x544] ss:$28 sps:$4 sm:$0xff]   ;;  %v8331_v15 = vld [vmem:[%s12350_s2 + $0xc0c] ss:$28 sps:$4 sm:$0xff]   ;;  %v8334_v20 = vld [vmem:[%s12350_s2 + $0x854] ss:$28 sps:$4 sm:$0xff]  }
  0x17   :  { %2615 = vmatprep.mubr.bf16.mxu0 %v9646_v62  ;;  %2656 = vmatprep.mubr.bf16.mxu1 %v9657_v3  ;;  %v8323_v12 = vld [vmem:[%s12350_s2 + $0x1c0] ss:$28 sps:$4 sm:$0xff]   ;;  %v8326_v17 = vld [vmem:[%s12350_s2 + $0x888] ss:$28 sps:$4 sm:$0xff]   ;;  %v8337_v21 = vld [vmem:[%s12350_s2 + $0xbd4] ss:$28 sps:$4 sm:$0xff]  }
  0x18   :  { %2594 = vmatpush1.bf16.msra.mxu0 %v8263_v22  ;;  %v8324_v13 = vld [vmem:[%s12350_s2 + $0x540] ss:$28 sps:$4 sm:$0xff]   ;;  %v8329_v19 = vld [vmem:[%s12350_s2 + $0xc08] ss:$28 sps:$4 sm:$0xff]   ;;  %v8361_v42 = vld [vmem:[%s12350_s2 + $0xaf4] ss:$28 sps:$4 sm:$0xff]  }
  0x19   :  { %2635 = vmatpush1.bf16.msra.mxu1 %v8264_v23  ;;  %2595 = vmatprep.subr.bf16.mxu0 %v8265_v24  ;;  %v32_v22 = vld [vmem:[%s12348_s0 + $0x8] sm:$0x3f]  ;;  %v8347_v36 = vld [vmem:[%s12350_s2 + $0xb60] ss:$28 sps:$4 sm:$0xff]   ;;  %v8383_v63 = vld [vmem:[%s12350_s2 + $0xa14] ss:$28 sps:$4 sm:$0xff]  }
  0x1a   :  { %2636 = vmatprep.subr.bf16.mxu1 %v8267_v25  ;;  %v8332_v23 = vld [vmem:[%s12350_s2 + $0x850] ss:$28 sps:$4 sm:$0xff]   ;;  %v9725_v25 = vrot.slane %v32_v22, %v9618_v49  ;;  %v8370_v52 = vld [vmem:[%s12350_s2 + $0x704] ss:$28 sps:$4 sm:$0xff]  }
  0x1b   :  { %v8335_v24 = vld [vmem:[%s12350_s2 + $0xbd0] ss:$28 sps:$4 sm:$0xff]   ;;  %v8368_v55 = vld [vmem:[%s12350_s2 + $0x700] ss:$28 sps:$4 sm:$0xff]   ;;  %v8374_v60 = vld [vmem:[%s12350_s2 + $0xa48] ss:$28 sps:$4 sm:$0xff]  }
  0x1c   :  { %2596 = vmatpush1.bf16.msra.mxu0 %v8269_v26  ;;  %v8340_v26 = vld [vmem:[%s12350_s2 + $0x81c] ss:$28 sps:$4 sm:$0xff]   ;;  %v8352_v37 = vld [vmem:[%s12350_s2 + $0x7ac] ss:$28 sps:$4 sm:$0xff]  }
  0x1d   :  { %2637 = vmatpush1.bf16.msra.mxu1 %v8270_v27  ;;  %2597 = vmatprep.subr.bf16.mxu0 %v8271_v28  ;;  %v8343_v27 = vld [vmem:[%s12350_s2 + $0xb9c] ss:$28 sps:$4 sm:$0xff]   ;;  %v9434_v28 = vmov 0   ;;  %v8355_v38 = vld [vmem:[%s12350_s2 + $0xb2c] ss:$28 sps:$4 sm:$0xff]  }
  0x1e   :  { %2638 = vmatprep.subr.bf16.mxu1 %v8273_v29  ;;  %v67_v29 = vcombine.high %v9725_v25, %v9725_v25 }
  0x20   :  { %2598 = vmatpush1.bf16.msra.mxu0 %v8275_v30  ;;  %v8338_v30 = vld [vmem:[%s12350_s2 + $0x818] ss:$28 sps:$4 sm:$0xff]  }
  0x21   :  { %2639 = vmatpush1.bf16.msra.mxu1 %v8276_v31  ;;  %2599 = vmatprep.subr.bf16.mxu0 %v8277_v32  ;;  %v8341_v31 = vld [vmem:[%s12350_s2 + $0xb98] ss:$28 sps:$4 sm:$0xff]   ;;  %v9742_v32 = vpack.c.bf16 %v67_v29, %v67_v29  ;;  %v8422_v29 = vld [vmem:[%s12350_s2 + $0xc] ss:$28 sps:$4 sm:$0xff]  }
  0x22   :  { %2640 = vmatprep.subr.bf16.mxu1 %v8279_v33  ;;  %v8346_v33 = vld [vmem:[%s12350_s2 + $0x7e4] ss:$28 sps:$4 sm:$0xff]  }
  0x24   :  { %2600 = vmatpush2.bf16.msra.mxu0 %v8281_v34  ;;  %v8349_v34 = vld [vmem:[%s12350_s2 + $0xb64] ss:$28 sps:$4 sm:$0xff]  }
  0x25   :  { %2641 = vmatpush2.bf16.msra.mxu1 %v8282_v35  ;;  %2601 = vmatprep.subr.bf16.mxu0 %v8283_v39  ;;  %v8344_v35 = vld [vmem:[%s12350_s2 + $0x7e0] ss:$28 sps:$4 sm:$0xff]   ;;  %v8350_v39 = vld [vmem:[%s12350_s2 + $0x7a8] ss:$28 sps:$4 sm:$0xff]  }
  0x26   :  { %2642 = vmatprep.subr.bf16.mxu1 %v8285_v40  ;;  %v8353_v40 = vld [vmem:[%s12350_s2 + $0xb28] ss:$28 sps:$4 sm:$0xff]  }
  0x28   :  { %2602 = vmatpush2.bf16.msra.mxu0 %v8287_v41  ;;  %v8358_v41 = vld [vmem:[%s12350_s2 + $0x774] ss:$28 sps:$4 sm:$0xff]  }
  0x29   :  { %2643 = vmatpush2.bf16.msra.mxu1 %v8288_v44  ;;  %2603 = vmatprep.subr.bf16.mxu0 %v8289_v45  ;;  %v8356_v44 = vld [vmem:[%s12350_s2 + $0x770] ss:$28 sps:$4 sm:$0xff]  }
  0x2a   :  { %2644 = vmatprep.subr.bf16.mxu1 %v8291_v46  ;;  %v8359_v45 = vld [vmem:[%s12350_s2 + $0xaf0] ss:$28 sps:$4 sm:$0xff]   ;;  %v8364_v46 = vld [vmem:[%s12350_s2 + $0x73c] ss:$28 sps:$4 sm:$0xff]  }
  0x2c   :  { %2604 = vmatpush2.bf16.msra.mxu0 %v8293_v47  ;;  %v8367_v47 = vld [vmem:[%s12350_s2 + $0xabc] ss:$28 sps:$4 sm:$0xff]  }
  0x2d   :  { %2645 = vmatpush2.bf16.msra.mxu1 %v8294_v48  ;;  %2605 = vmatprep.subr.bf16.mxu0 %v8295_v50  ;;  %v52_v48 = vcombine.high %v32_v22, %v32_v22  ;;  %v8362_v50 = vld [vmem:[%s12350_s2 + $0x738] ss:$28 sps:$4 sm:$0xff]  }
  0x2e   :  { %2646 = vmatprep.subr.bf16.mxu1 %v8297_v51  ;;  %v8365_v51 = vld [vmem:[%s12350_s2 + $0xab8] ss:$28 sps:$4 sm:$0xff]  }
  0x2f   :  { %v66_v54 = vrot.slane %v52_v48, %v9618_v49  ;;  %v8413_v22 = vld [vmem:[%s12350_s2 + $0x8fc] ss:$28 sps:$4 sm:$0xff]   ;;  %v8441_v48 = vld [vmem:[%s12350_s2 + $0x2a8] ss:$28 sps:$4 sm:$0xff]  }
  0x30   :  { %2606 = vmatpush2.bf16.msra.mxu0 %v8299_v53  ;;  %v8373_v53 = vld [vmem:[%s12350_s2 + $0xa84] ss:$28 sps:$4 sm:$0xff]  }
  0x31   :  { %2647 = vmatpush2.bf16.msra.mxu1 %v8300_v56  ;;  %2607 = vmatprep.subr.bf16.mxu0 %v8301_v57  ;;  %v8371_v56 = vld [vmem:[%s12350_s2 + $0xa80] ss:$28 sps:$4 sm:$0xff]   ;;  %v8376_v57 = vld [vmem:[%s12350_s2 + $0xa4c] ss:$28 sps:$4 sm:$0xff]   ;;  %v9812_v59 = vpack.c.bf16 %v66_v54, %v66_v54 }
  0x32   :  { %2648 = vmatprep.subr.bf16.mxu1 %v8303_v58  ;;  %v8379_v58 = vld [vmem:[%s12350_s2 + $0x194] ss:$28 sps:$4 sm:$0xff]  }
  0x33   :  { %v8450_v54 = vld [vmem:[%s12350_s2 + $0x430] ss:$28 sps:$4 sm:$0xff]  }
  0x34   :  { %2608 = vmatpush2.bf16.msra.mxu0 %v8305_v61  ;;  %v8377_v61 = vld [vmem:[%s12350_s2 + $0x190] ss:$28 sps:$4 sm:$0xff]  }
  0x35   :  { %2649 = vmatpush2.bf16.msra.mxu1 %v8306_v0  ;;  %2609 = vmatprep.subr.bf16.mxu0 %v8307_v1  ;;  %v8386_v0 = vld [vmem:[%s12350_s2 + $0x15c] ss:$28 sps:$4 sm:$0xff]   ;;  %v8381_v1 = vld [vmem:[%s12350_s2 + $0xa10] ss:$28 sps:$4 sm:$0xff]  }
  0x36   :  { %2650 = vmatprep.subr.bf16.mxu1 %v8309_v2  ;;  %v8384_v2 = vld [vmem:[%s12350_s2 + $0x158] ss:$28 sps:$4 sm:$0xff]  }
  0x38   :  { %2610 = vmatpush2.bf16.msra.mxu0 %v8311_v4  ;;  %v8389_v4 = vld [vmem:[%s12350_s2 + $0x9dc] ss:$28 sps:$4 sm:$0xff]  }
  0x39   :  { %2651 = vmatpush2.bf16.msra.mxu1 %v8312_v5  ;;  %2611 = vmatprep.subr.bf16.mxu0 %v8313_v6  ;;  %v8392_v5 = vld [vmem:[%s12350_s2 + $0x124] ss:$28 sps:$4 sm:$0xff]   ;;  %v8387_v6 = vld [vmem:[%s12350_s2 + $0x9d8] ss:$28 sps:$4 sm:$0xff]  }
  0x3a   :  { %2652 = vmatprep.subr.bf16.mxu1 %v8315_v7  ;;  %v8390_v7 = vld [vmem:[%s12350_s2 + $0x120] ss:$28 sps:$4 sm:$0xff]  }
  0x3c   :  { %2612 = vmatpush2.bf16.msra.mxu0 %v8317_v8  ;;  %v8395_v8 = vld [vmem:[%s12350_s2 + $0x9a4] ss:$28 sps:$4 sm:$0xff]  }
  0x3d   :  { %2653 = vmatpush2.bf16.msra.mxu1 %v8318_v9  ;;  %2613 = vmatprep.subr.bf16.mxu0 %v8319_v10  ;;  %v8398_v9 = vld [vmem:[%s12350_s2 + $0xec] ss:$28 sps:$4 sm:$0xff]   ;;  %v8393_v10 = vld [vmem:[%s12350_s2 + $0x9a0] ss:$28 sps:$4 sm:$0xff]  }
  0x3e   :  { %2654 = vmatprep.subr.bf16.mxu1 %v8321_v11  ;;  %v8396_v11 = vld [vmem:[%s12350_s2 + $0xe8] ss:$28 sps:$4 sm:$0xff]  }
  0x40   :  { %2614 = vmatpush2.bf16.msra.mxu0 %v8323_v12  ;;  %v8401_v12 = vld [vmem:[%s12350_s2 + $0x96c] ss:$28 sps:$4 sm:$0xff]  }
  0x41   :  { %2655 = vmatpush2.bf16.msra.mxu1 %v8324_v13  ;;  %2665 = vmatprep.subr.bf16.mxu0 %v8328_v14  ;;  %v8404_v13 = vld [vmem:[%s12350_s2 + $0xb4] ss:$28 sps:$4 sm:$0xff]   ;;  %v8399_v14 = vld [vmem:[%s12350_s2 + $0x968] ss:$28 sps:$4 sm:$0xff]  }
  0x42   :  { %2706 = vmatprep.subr.bf16.mxu1 %v8331_v15  ;;  %v8402_v15 = vld [vmem:[%s12350_s2 + $0xb0] ss:$28 sps:$4 sm:$0xff]  }
  0x43   :  { %2616 = vmatmul.mubr.bf16.vlgmr.msra.gmra.mxu0 %v9697_v16 }
  0x44   :  { %2657 = vmatmul.mubr.bf16.vlgmr.msra.gmra.mxu1 %v9702_v18  ;;  %2666 = vmatpush1.bf16.msra.mxu0 %v8326_v17  ;;  %v8407_v17 = vld [vmem:[%s12350_s2 + $0x934] ss:$28 sps:$4 sm:$0xff]  }
  0x45   :  { %2707 = vmatpush1.bf16.msra.mxu1 %v8329_v19  ;;  %2667 = vmatprep.subr.bf16.mxu0 %v8334_v20  ;;  %v8410_v19 = vld [vmem:[%s12350_s2 + $0x7c] ss:$28 sps:$4 sm:$0xff]   ;;  %v8405_v20 = vld [vmem:[%s12350_s2 + $0x930] ss:$28 sps:$4 sm:$0xff]  }
  0x46   :  { %2708 = vmatprep.subr.bf16.mxu1 %v8337_v21  ;;  %2738 = vmatprep.mubr.bf16.mxu1 %v9434_v28  ;;  %v8408_v21 = vld [vmem:[%s12350_s2 + $0x78] ss:$28 sps:$4 sm:$0xff]  }
  0x47   :  { %2697 = vmatprep.mubr.bf16.mxu0 %v9742_v32 }
  0x48   :  { %2668 = vmatpush1.bf16.msra.mxu0 %v8332_v23  ;;  %v8416_v23 = vld [vmem:[%s12350_s2 + $0x44] ss:$28 sps:$4 sm:$0xff]  }
  0x49   :  { %2709 = vmatpush1.bf16.msra.mxu1 %v8335_v24  ;;  %2669 = vmatprep.subr.bf16.mxu0 %v8340_v26  ;;  %v8411_v24 = vld [vmem:[%s12350_s2 + $0x8f8] ss:$28 sps:$4 sm:$0xff]   ;;  %v8414_v26 = vld [vmem:[%s12350_s2 + $0x40] ss:$28 sps:$4 sm:$0xff]  }
  0x4a   :  { %2710 = vmatprep.subr.bf16.mxu1 %v8343_v27  ;;  %v8419_v27 = vld [vmem:[%s12350_s2 + $0x8c4] ss:$28 sps:$4 sm:$0xff]  }
  0x4c   :  { %2670 = vmatpush1.bf16.msra.mxu0 %v8338_v30  ;;  %v8417_v30 = vld [vmem:[%s12350_s2 + $0x8c0] ss:$28 sps:$4 sm:$0xff]  }
  0x4d   :  { %2711 = vmatpush1.bf16.msra.mxu1 %v8341_v31  ;;  %2671 = vmatprep.subr.bf16.mxu0 %v8346_v33  ;;  %v8420_v31 = vld [vmem:[%s12350_s2 + $0x8] ss:$28 sps:$4 sm:$0xff]   ;;  %v8425_v33 = vld [vmem:[%s12350_s2 + $0x354] ss:$28 sps:$4 sm:$0xff]  }
  0x4e   :  { %2712 = vmatprep.subr.bf16.mxu1 %v8349_v34  ;;  %v8428_v34 = vld [vmem:[%s12350_s2 + $0x514] ss:$28 sps:$4 sm:$0xff]  }
  0x50   :  { %2672 = vmatpush1.bf16.msra.mxu0 %v8344_v35  ;;  %v9914_v35 = vpack.c.bf16 %v9725_v25, %v9725_v25  ;;  %v8434_v25 = vld [vmem:[%s12350_s2 + $0x4dc] ss:$28 sps:$4 sm:$0xff]  }
  0x51   :  { %2713 = vmatpush1.bf16.msra.mxu1 %v8347_v36  ;;  %2673 = vmatprep.subr.bf16.mxu0 %v8352_v37  ;;  %v8423_v36 = vld [vmem:[%s12350_s2 + $0x350] ss:$28 sps:$4 sm:$0xff]  }
  0x52   :  { %2714 = vmatprep.subr.bf16.mxu1 %v8355_v38  ;;  %v8426_v37 = vld [vmem:[%s12350_s2 + $0x510] ss:$28 sps:$4 sm:$0xff]   ;;  %v8431_v38 = vld [vmem:[%s12350_s2 + $0x31c] ss:$28 sps:$4 sm:$0xff]  }
  0x54   :  { %2674 = vmatpush1.bf16.msra.mxu0 %v8350_v39  ;;  %v8429_v39 = vld [vmem:[%s12350_s2 + $0x318] ss:$28 sps:$4 sm:$0xff]  }
  0x55   :  { %2715 = vmatpush1.bf16.msra.mxu1 %v8353_v40  ;;  %2675 = vmatprep.subr.bf16.mxu0 %v8358_v41  ;;  %v8432_v40 = vld [vmem:[%s12350_s2 + $0x4d8] ss:$28 sps:$4 sm:$0xff]   ;;  %v8437_v41 = vld [vmem:[%s12350_s2 + $0x2e4] ss:$28 sps:$4 sm:$0xff]  }
  0x56   :  { %2716 = vmatprep.subr.bf16.mxu1 %v8361_v42  ;;  %v8440_v42 = vld [vmem:[%s12350_s2 + $0x4a4] ss:$28 sps:$4 sm:$0xff]  }
  0x58   :  { %2676 = vmatpush1.bf16.msra.mxu0 %v8356_v44  ;;  %v8435_v44 = vld [vmem:[%s12350_s2 + $0x2e0] ss:$28 sps:$4 sm:$0xff]  }
  0x59   :  { %2717 = vmatpush1.bf16.msra.mxu1 %v8359_v45  ;;  %2677 = vmatprep.subr.bf16.mxu0 %v8364_v46  ;;  %v8438_v45 = vld [vmem:[%s12350_s2 + $0x4a0] ss:$28 sps:$4 sm:$0xff]   ;;  %v8443_v46 = vld [vmem:[%s12350_s2 + $0x2ac] ss:$28 sps:$4 sm:$0xff]  }
  0x5a   :  { %2718 = vmatprep.subr.bf16.mxu1 %v8367_v47  ;;  %v8446_v47 = vld [vmem:[%s12350_s2 + $0x46c] ss:$28 sps:$4 sm:$0xff]  }
  0x5c   :  { %2678 = vmatpush1.bf16.msra.mxu0 %v8362_v50  ;;  %v8444_v50 = vld [vmem:[%s12350_s2 + $0x468] ss:$28 sps:$4 sm:$0xff]  }
  0x5d   :  { %2719 = vmatpush1.bf16.msra.mxu1 %v8365_v51  ;;  %2679 = vmatprep.subr.bf16.mxu0 %v8370_v52  ;;  %v8449_v51 = vld [vmem:[%s12350_s2 + $0x274] ss:$28 sps:$4 sm:$0xff]  }
  0x5e   :  { %2720 = vmatprep.subr.bf16.mxu1 %v8373_v53  ;;  %v8452_v52 = vld [vmem:[%s12350_s2 + $0x434] ss:$28 sps:$4 sm:$0xff]  }
  0x5f   :  { %v8447_v53 = vld [vmem:[%s12350_s2 + $0x270] ss:$28 sps:$4 sm:$0xff]  }
  0x60   :  { %2680 = vmatpush1.bf16.msra.mxu0 %v8368_v55  ;;  %v8455_v55 = vld [vmem:[%s12350_s2 + $0x23c] ss:$28 sps:$4 sm:$0xff]  }
  0x61   :  { %2721 = vmatpush1.bf16.msra.mxu1 %v8371_v56  ;;  %2681 = vmatprep.subr.bf16.mxu0 %v8376_v57  ;;  %v8458_v56 = vld [vmem:[%s12350_s2 + $0x3fc] ss:$28 sps:$4 sm:$0xff]  }
  0x62   :  { %2747 = vmatprep.subr.bf16.mxu1 %v8379_v58  ;;  %v8453_v57 = vld [vmem:[%s12350_s2 + $0x238] ss:$28 sps:$4 sm:$0xff]  }
  0x63   :  { %v8456_v58 = vld [vmem:[%s12350_s2 + $0x3f8] ss:$28 sps:$4 sm:$0xff]  }
  0x64   :  { %2739 = vmatmul.mubr.bf16.vlgmr.msra.gmra.mxu1 %v9812_v59  ;;  %2682 = vmatpush2.bf16.msra.mxu0 %v8374_v60  ;;  %v8461_v60 = vld [vmem:[%s12350_s2 + $0x204] ss:$28 sps:$4 sm:$0xff]  }
  0x65   :  { %2748 = vmatpush1.bf16.msra.mxu1 %v8377_v61  ;;  %2683 = vmatprep.subr.bf16.mxu0 %v8383_v63  ;;  %v8464_v61 = vld [vmem:[%s12350_s2 + $0x3c4] ss:$28 sps:$4 sm:$0xff]  }
  0x66   :  { %2749 = vmatprep.subr.bf16.mxu1 %v8386_v0  ;;  %2779 = vmatprep.mubr.bf16.mxu1 %v9646_v62  ;;  %v8459_v63 = vld [vmem:[%s12350_s2 + $0x200] ss:$28 sps:$4 sm:$0xff]  }
  0x67   :  { %v8462_v0 = vld [vmem:[%s12350_s2 + $0x3c0] ss:$28 sps:$4 sm:$0xff]  }
  0x68   :  { %2684 = vmatpush2.bf16.msra.mxu0 %v8381_v1  ;;  %v8467_v1 = vld [vmem:[%s12350_s2 + $0x1cc] ss:$28 sps:$4 sm:$0xff]  }
  0x69   :  { %2750 = vmatpush1.bf16.msra.mxu1 %v8384_v2  ;;  %2685 = vmatprep.subr.bf16.mxu0 %v8389_v4  ;;  %v8470_v2 = vld [vmem:[%s12350_s2 + $0x38c] ss:$28 sps:$4 sm:$0xff]  }
  0x6a   :  { %2751 = vmatprep.subr.bf16.mxu1 %v8392_v5  ;;  %v8465_v4 = vld [vmem:[%s12350_s2 + $0x1c8] ss:$28 sps:$4 sm:$0xff]  }
  0x6b   :  { %v8468_v5 = vld [vmem:[%s12350_s2 + $0x388] ss:$28 sps:$4 sm:$0xff]  }
  0x6c   :  { %2686 = vmatpush2.bf16.msra.mxu0 %v8387_v6  ;;  %v8473_v6 = vld [vmem:[%s12350_s2 + $0x6d4] ss:$28 sps:$4 sm:$0xff]  }
  0x6d   :  { %2752 = vmatpush1.bf16.msra.mxu1 %v8390_v7  ;;  %2687 = vmatprep.subr.bf16.mxu0 %v8395_v8  ;;  %v8476_v7 = vld [vmem:[%s12350_s2 + $0x894] ss:$28 sps:$4 sm:$0xff]  }
  0x6e   :  { %2753 = vmatprep.subr.bf16.mxu1 %v8398_v9  ;;  %v8471_v8 = vld [vmem:[%s12350_s2 + $0x6d0] ss:$28 sps:$4 sm:$0xff]  }
  0x6f   :  { %v8474_v9 = vld [vmem:[%s12350_s2 + $0x890] ss:$28 sps:$4 sm:$0xff]  }
  0x70   :  { %2688 = vmatpush2.bf16.msra.mxu0 %v8393_v10  ;;  %v8479_v10 = vld [vmem:[%s12350_s2 + $0x69c] ss:$28 sps:$4 sm:$0xff]  }
  0x71   :  { %2754 = vmatpush1.bf16.msra.mxu1 %v8396_v11  ;;  %2689 = vmatprep.subr.bf16.mxu0 %v8401_v12  ;;  %v8482_v11 = vld [vmem:[%s12350_s2 + $0x85c] ss:$28 sps:$4 sm:$0xff]  }
  0x72   :  { %2755 = vmatprep.subr.bf16.mxu1 %v8404_v13  ;;  %v8477_v12 = vld [vmem:[%s12350_s2 + $0x698] ss:$28 sps:$4 sm:$0xff]  }
  0x73   :  { %v8480_v13 = vld [vmem:[%s12350_s2 + $0x858] ss:$28 sps:$4 sm:$0xff]  }
  0x74   :  { %2690 = vmatpush2.bf16.msra.mxu0 %v8399_v14  ;;  %v8485_v14 = vld [vmem:[%s12350_s2 + $0x664] ss:$28 sps:$4 sm:$0xff]  }
  0x75   :  { %2756 = vmatpush1.bf16.msra.mxu1 %v8402_v15  ;;  %2691 = vmatprep.subr.bf16.mxu0 %v8407_v17  ;;  %v8488_v15 = vld [vmem:[%s12350_s2 + $0x824] ss:$28 sps:$4 sm:$0xff]  }
  0x76   :  { %2757 = vmatprep.subr.bf16.mxu1 %v8410_v19  ;;  %v8483_v17 = vld [vmem:[%s12350_s2 + $0x660] ss:$28 sps:$4 sm:$0xff]  }
  0x77   :  { %v8486_v19 = vld [vmem:[%s12350_s2 + $0x820] ss:$28 sps:$4 sm:$0xff]  }
  0x78   :  { %2692 = vmatpush2.bf16.msra.mxu0 %v8405_v20  ;;  %v8491_v20 = vld [vmem:[%s12350_s2 + $0x62c] ss:$28 sps:$4 sm:$0xff]  }
  0x79   :  { %2758 = vmatpush1.bf16.msra.mxu1 %v8408_v21  ;;  %2693 = vmatprep.subr.bf16.mxu0 %v8413_v22  ;;  %v8494_v21 = vld [vmem:[%s12350_s2 + $0x7ec] ss:$28 sps:$4 sm:$0xff]  }
  0x7a   :  { %2759 = vmatprep.subr.bf16.mxu1 %v8416_v23  ;;  %v8489_v22 = vld [vmem:[%s12350_s2 + $0x628] ss:$28 sps:$4 sm:$0xff]  }
  0x7b   :  { %v8492_v23 = vld [vmem:[%s12350_s2 + $0x7e8] ss:$28 sps:$4 sm:$0xff]  }
  0x7c   :  { %2694 = vmatpush2.bf16.msra.mxu0 %v8411_v24  ;;  %v8497_v24 = vld [vmem:[%s12350_s2 + $0x5f4] ss:$28 sps:$4 sm:$0xff]  }
  0x7d   :  { %2760 = vmatpush1.bf16.msra.mxu1 %v8414_v26  ;;  %2695 = vmatprep.subr.bf16.mxu0 %v8419_v27  ;;  %v8500_v26 = vld [vmem:[%s12350_s2 + $0x7b4] ss:$28 sps:$4 sm:$0xff]  }
  0x7e   :  { %2761 = vmatprep.subr.bf16.mxu1 %v8422_v29  ;;  %v8495_v27 = vld [vmem:[%s12350_s2 + $0x5f0] ss:$28 sps:$4 sm:$0xff]  }
  0x7f   :  { %v8498_v29 = vld [vmem:[%s12350_s2 + $0x7b0] ss:$28 sps:$4 sm:$0xff]  }
  0x80   :  { %2696 = vmatpush2.bf16.msra.mxu0 %v8417_v30  ;;  %v8503_v30 = vld [vmem:[%s12350_s2 + $0x5bc] ss:$28 sps:$4 sm:$0xff]  }
  0x81   :  { %2762 = vmatpush1.bf16.msra.mxu1 %v8420_v31  ;;  %2788 = vmatprep.subr.bf16.mxu0 %v8428_v34  ;;  %v8506_v31 = vld [vmem:[%s12350_s2 + $0x77c] ss:$28 sps:$4 sm:$0xff]  }
  0x82   :  { %2763 = vmatprep.subr.bf16.mxu1 %v8425_v33  ;;  %v8501_v33 = vld [vmem:[%s12350_s2 + $0x5b8] ss:$28 sps:$4 sm:$0xff]  }
  0x83   :  { %2698 = vmatmul.mubr.bf16.vlgmr.msra.gmra.mxu0 %v9914_v35  ;;  %v8504_v34 = vld [vmem:[%s12350_s2 + $0x778] ss:$28 sps:$4 sm:$0xff]  }
  0x84   :  { %2789 = vmatpush1.bf16.msra.mxu0 %v8426_v37  ;;  %2820 = vmatprep.mubr.bf16.mxu0 %v9657_v3  ;;  %v8512_v37 = vld [vmem:[%s12350_s2 + $0x744] ss:$28 sps:$4 sm:$0xff]  }
  0x85   :  { %2764 = vmatpush2.bf16.msra.mxu1 %v8423_v36  ;;  %2790 = vmatprep.subr.bf16.mxu0 %v8434_v25  ;;  %v8509_v36 = vld [vmem:[%s12350_s2 + $0x584] ss:$28 sps:$4 sm:$0xff]  }
  0x86   :  { %2765 = vmatprep.subr.bf16.mxu1 %v8431_v38  ;;  %v8507_v38 = vld [vmem:[%s12350_s2 + $0x580] ss:$28 sps:$4 sm:$0xff]  }
  0x87   :  { %v8510_v25 = vld [vmem:[%s12350_s2 + $0x740] ss:$28 sps:$4 sm:$0xff]  }
  0x88   :  { %2791 = vmatpush1.bf16.msra.mxu0 %v8432_v40  ;;  %v8518_v40 = vld [vmem:[%s12350_s2 + $0x70c] ss:$28 sps:$4 sm:$0xff]  }
  0x89   :  { %2766 = vmatpush2.bf16.msra.mxu1 %v8429_v39  ;;  %2792 = vmatprep.subr.bf16.mxu0 %v8440_v42  ;;  %v8515_v39 = vld [vmem:[%s12350_s2 + $0x54c] ss:$28 sps:$4 sm:$0xff]  }
  0x8a   :  { %2767 = vmatprep.subr.bf16.mxu1 %v8437_v41  ;;  %v8513_v41 = vld [vmem:[%s12350_s2 + $0x548] ss:$28 sps:$4 sm:$0xff]  }
  0x8b   :  { %v8516_v42 = vld [vmem:[%s12350_s2 + $0x708] ss:$28 sps:$4 sm:$0xff]  }
  0x8c   :  { %2793 = vmatpush1.bf16.msra.mxu0 %v8438_v45  ;;  %v8524_v45 = vld [vmem:[%s12350_s2 + $0xc14] ss:$28 sps:$4 sm:$0xff]  }
  0x8d   :  { %2768 = vmatpush2.bf16.msra.mxu1 %v8435_v44  ;;  %2794 = vmatprep.subr.bf16.mxu0 %v8446_v47  ;;  %v8521_v44 = vld [vmem:[%s12350_s2 + $0xa54] ss:$28 sps:$4 sm:$0xff]  }
  0x8e   :  { %2769 = vmatprep.subr.bf16.mxu1 %v8443_v46  ;;  %v8519_v46 = vld [vmem:[%s12350_s2 + $0xa50] ss:$28 sps:$4 sm:$0xff]  }
  0x8f   :  { %v8522_v47 = vld [vmem:[%s12350_s2 + $0xc10] ss:$28 sps:$4 sm:$0xff]  }
  0x90   :  { %2795 = vmatpush1.bf16.msra.mxu0 %v8444_v50  ;;  %v8530_v50 = vld [vmem:[%s12350_s2 + $0xbdc] ss:$28 sps:$4 sm:$0xff]  }
  0x91   :  { %2770 = vmatpush2.bf16.msra.mxu1 %v8441_v48  ;;  %2796 = vmatprep.subr.bf16.mxu0 %v8452_v52  ;;  %v8527_v48 = vld [vmem:[%s12350_s2 + $0xa1c] ss:$28 sps:$4 sm:$0xff]  }
  0x92   :  { %2771 = vmatprep.subr.bf16.mxu1 %v8449_v51  ;;  %v8525_v51 = vld [vmem:[%s12350_s2 + $0xa18] ss:$28 sps:$4 sm:$0xff]  }
  0x93   :  { %v8528_v52 = vld [vmem:[%s12350_s2 + $0xbd8] ss:$28 sps:$4 sm:$0xff]  }
  0x94   :  { %2797 = vmatpush1.bf16.msra.mxu0 %v8450_v54  ;;  %v8536_v54 = vld [vmem:[%s12350_s2 + $0xba4] ss:$28 sps:$4 sm:$0xff]  }
  0x95   :  { %2772 = vmatpush2.bf16.msra.mxu1 %v8447_v53  ;;  %2798 = vmatprep.subr.bf16.mxu0 %v8458_v56  ;;  %v8533_v53 = vld [vmem:[%s12350_s2 + $0x9e4] ss:$28 sps:$4 sm:$0xff]  }
  0x96   :  { %2773 = vmatprep.subr.bf16.mxu1 %v8455_v55  ;;  %v8531_v55 = vld [vmem:[%s12350_s2 + $0x9e0] ss:$28 sps:$4 sm:$0xff]  }
  0x97   :  { %v8534_v56 = vld [vmem:[%s12350_s2 + $0xba0] ss:$28 sps:$4 sm:$0xff]  }
  0x98   :  { %2799 = vmatpush1.bf16.msra.mxu0 %v8456_v58  ;;  %v8542_v58 = vld [vmem:[%s12350_s2 + $0xb6c] ss:$28 sps:$4 sm:$0xff]  }
  0x99   :  { %2774 = vmatpush2.bf16.msra.mxu1 %v8453_v57  ;;  %2800 = vmatprep.subr.bf16.mxu0 %v8464_v61  ;;  %v8539_v57 = vld [vmem:[%s12350_s2 + $0x9ac] ss:$28 sps:$4 sm:$0xff]  }
  0x9a   :  { %2775 = vmatprep.subr.bf16.mxu1 %v8461_v60  ;;  %v8537_v60 = vld [vmem:[%s12350_s2 + $0x9a8] ss:$28 sps:$4 sm:$0xff]  }
  0x9b   :  { %v8540_v61 = vld [vmem:[%s12350_s2 + $0xb68] ss:$28 sps:$4 sm:$0xff]  }
  0x9c   :  { %2801 = vmatpush1.bf16.msra.mxu0 %v8462_v0  ;;  %v8548_v0 = vld [vmem:[%s12350_s2 + $0xb34] ss:$28 sps:$4 sm:$0xff]  }
  0x9d   :  { %2776 = vmatpush2.bf16.msra.mxu1 %v8459_v63  ;;  %2802 = vmatprep.subr.bf16.mxu0 %v8470_v2  ;;  %v8545_v63 = vld [vmem:[%s12350_s2 + $0x974] ss:$28 sps:$4 sm:$0xff]  }
  0x9e   :  { %2777 = vmatprep.subr.bf16.mxu1 %v8467_v1  ;;  %v8543_v1 = vld [vmem:[%s12350_s2 + $0x970] ss:$28 sps:$4 sm:$0xff]  }
  0x9f   :  { %v8546_v2 = vld [vmem:[%s12350_s2 + $0xb30] ss:$28 sps:$4 sm:$0xff]  }
  0xa0   :  { %2803 = vmatpush1.bf16.msra.mxu0 %v8468_v5  ;;  %v8554_v5 = vld [vmem:[%s12350_s2 + $0xafc] ss:$28 sps:$4 sm:$0xff]  }
  0xa1   :  { %2778 = vmatpush2.bf16.msra.mxu1 %v8465_v4  ;;  %2804 = vmatprep.subr.bf16.mxu0 %v8473_v6  ;;  %v8551_v4 = vld [vmem:[%s12350_s2 + $0x93c] ss:$28 sps:$4 sm:$0xff]  }
  0xa2   :  { %2829 = vmatprep.subr.bf16.mxu1 %v8476_v7  ;;  %v8549_v6 = vld [vmem:[%s12350_s2 + $0x938] ss:$28 sps:$4 sm:$0xff]  }
  0xa3   :  { %v8552_v7 = vld [vmem:[%s12350_s2 + $0xaf8] ss:$28 sps:$4 sm:$0xff]  }
  0xa4   :  { %2780 = vmatmul.mubr.bf16.vlgmr.msra.gmra.mxu1 %v9697_v16  ;;  %2805 = vmatpush2.bf16.msra.mxu0 %v8471_v8  ;;  %v8557_v8 = vld [vmem:[%s12350_s2 + $0x904] ss:$28 sps:$4 sm:$0xff]  }
  0xa5   :  { %2830 = vmatpush1.bf16.msra.mxu1 %v8474_v9  ;;  %2806 = vmatprep.subr.bf16.mxu0 %v8479_v10  ;;  %v8560_v9 = vld [vmem:[%s12350_s2 + $0xac4] ss:$28 sps:$4 sm:$0xff]  }
  0xa6   :  { %2831 = vmatprep.subr.bf16.mxu1 %v8482_v11  ;;  %2861 = vmatprep.mubr.bf16.mxu1 %v9742_v32  ;;  %v8555_v10 = vld [vmem:[%s12350_s2 + $0x900] ss:$28 sps:$4 sm:$0xff]  }
  0xa7   :  { %v8558_v11 = vld [vmem:[%s12350_s2 + $0xac0] ss:$28 sps:$4 sm:$0xff]  }
  0xa8   :  { %2807 = vmatpush2.bf16.msra.mxu0 %v8477_v12  ;;  %v8563_v12 = vld [vmem:[%s12350_s2 + $0x8cc] ss:$28 sps:$4 sm:$0xff]  }
  0xa9   :  { %2832 = vmatpush1.bf16.msra.mxu1 %v8480_v13  ;;  %2808 = vmatprep.subr.bf16.mxu0 %v8485_v14  ;;  %v8566_v13 = vld [vmem:[%s12350_s2 + $0xa8c] ss:$28 sps:$4 sm:$0xff]  }
  0xaa   :  { %2833 = vmatprep.subr.bf16.mxu1 %v8488_v15  ;;  %v8561_v14 = vld [vmem:[%s12350_s2 + $0x8c8] ss:$28 sps:$4 sm:$0xff]  }
  0xab   :  { %v8564_v15 = vld [vmem:[%s12350_s2 + $0xa88] ss:$28 sps:$4 sm:$0xff]  }
  0xac   :  { %2809 = vmatpush2.bf16.msra.mxu0 %v8483_v17  ;;  %v8569_v17 = vld [vmem:[%s12350_s2 + $0x19c] ss:$28 sps:$4 sm:$0xff]  }
  0xad   :  { %2834 = vmatpush1.bf16.msra.mxu1 %v8486_v19  ;;  %2810 = vmatprep.subr.bf16.mxu0 %v8491_v20  ;;  %v8572_v19 = vld [vmem:[%s12350_s2 + $0x51c] ss:$28 sps:$4 sm:$0xff]  }
  0xae   :  { %2835 = vmatprep.subr.bf16.mxu1 %v8494_v21  ;;  %v8567_v20 = vld [vmem:[%s12350_s2 + $0x198] ss:$28 sps:$4 sm:$0xff]  }
  0xaf   :  { %v8570_v21 = vld [vmem:[%s12350_s2 + $0x518] ss:$28 sps:$4 sm:$0xff]  }
  0xb0   :  { %2811 = vmatpush2.bf16.msra.mxu0 %v8489_v22  ;;  %v8575_v22 = vld [vmem:[%s12350_s2 + $0x164] ss:$28 sps:$4 sm:$0xff]  }
  0xb1   :  { %2836 = vmatpush1.bf16.msra.mxu1 %v8492_v23  ;;  %2812 = vmatprep.subr.bf16.mxu0 %v8497_v24  ;;  %v8578_v23 = vld [vmem:[%s12350_s2 + $0x4e4] ss:$28 sps:$4 sm:$0xff]  }
  0xb2   :  { %2837 = vmatprep.subr.bf16.mxu1 %v8500_v26  ;;  %v8573_v24 = vld [vmem:[%s12350_s2 + $0x160] ss:$28 sps:$4 sm:$0xff]  }
  0xb3   :  { %v8576_v26 = vld [vmem:[%s12350_s2 + $0x4e0] ss:$28 sps:$4 sm:$0xff]  }
  0xb4   :  { %2813 = vmatpush2.bf16.msra.mxu0 %v8495_v27  ;;  %v8581_v27 = vld [vmem:[%s12350_s2 + $0x12c] ss:$28 sps:$4 sm:$0xff]  }
  0xb5   :  { %2838 = vmatpush1.bf16.msra.mxu1 %v8498_v29  ;;  %2814 = vmatprep.subr.bf16.mxu0 %v8503_v30  ;;  %v8584_v29 = vld [vmem:[%s12350_s2 + $0x4ac] ss:$28 sps:$4 sm:$0xff]  }
  0xb6   :  { %2839 = vmatprep.subr.bf16.mxu1 %v8506_v31  ;;  %v8579_v30 = vld [vmem:[%s12350_s2 + $0x128] ss:$28 sps:$4 sm:$0xff]  }
  0xb7   :  { %v8582_v31 = vld [vmem:[%s12350_s2 + $0x4a8] ss:$28 sps:$4 sm:$0xff]  }
  0xb8   :  { %2815 = vmatpush2.bf16.msra.mxu0 %v8501_v33  ;;  %v8587_v33 = vld [vmem:[%s12350_s2 + $0xf4] ss:$28 sps:$4 sm:$0xff]  }
  0xb9   :  { %2840 = vmatpush1.bf16.msra.mxu1 %v8504_v34  ;;  %2816 = vmatprep.subr.bf16.mxu0 %v8509_v36  ;;  %v8590_v34 = vld [vmem:[%s12350_s2 + $0x474] ss:$28 sps:$4 sm:$0xff]  }
  0xba   :  { %2841 = vmatprep.subr.bf16.mxu1 %v8512_v37  ;;  %v8585_v36 = vld [vmem:[%s12350_s2 + $0xf0] ss:$28 sps:$4 sm:$0xff]  }
  0xbb   :  { %v8588_v37 = vld [vmem:[%s12350_s2 + $0x470] ss:$28 sps:$4 sm:$0xff]  }
  0xbc   :  { %2817 = vmatpush2.bf16.msra.mxu0 %v8507_v38  ;;  %v8593_v38 = vld [vmem:[%s12350_s2 + $0xbc] ss:$28 sps:$4 sm:$0xff]  }
  0xbd   :  { %2842 = vmatpush1.bf16.msra.mxu1 %v8510_v25  ;;  %2818 = vmatprep.subr.bf16.mxu0 %v8515_v39  ;;  %v8596_v25 = vld [vmem:[%s12350_s2 + $0x43c] ss:$28 sps:$4 sm:$0xff]  }
  0xbe   :  { %2843 = vmatprep.subr.bf16.mxu1 %v8518_v40  ;;  %v8591_v39 = vld [vmem:[%s12350_s2 + $0xb8] ss:$28 sps:$4 sm:$0xff]   ;;  %v534_v40 = vsub.s32 0, %v9600_v43 }
  0xc0   :  { %2819 = vmatpush2.bf16.msra.mxu0 %v8513_v41  ;;  %v8594_v41 = vld [vmem:[%s12350_s2 + $0x438] ss:$28 sps:$4 sm:$0xff]  }
  0xc1   :  { %2844 = vmatpush1.bf16.msra.mxu1 %v8516_v42  ;;  %2870 = vmatprep.subr.bf16.mxu0 %v8524_v45  ;;  %v8599_v42 = vld [vmem:[%s12350_s2 + $0x84] ss:$28 sps:$4 sm:$0xff]  }
  0xc2   :  { %2845 = vmatprep.subr.bf16.mxu1 %v8521_v44  ;;  %v8602_v44 = vld [vmem:[%s12350_s2 + $0x404] ss:$28 sps:$4 sm:$0xff]  }
  0xc3   :  { %2821 = vmatmul.mubr.bf16.vlgmr.msra.gmra.mxu0 %v9702_v18  ;;  %v8597_v45 = vld [vmem:[%s12350_s2 + $0x80] ss:$28 sps:$4 sm:$0xff]  }
  0xc4   :  { %2871 = vmatpush1.bf16.msra.mxu0 %v8522_v47  ;;  %2902 = vmatprep.mubr.bf16.mxu0 %v9434_v28  ;;  %v8605_v47 = vld [vmem:[%s12350_s2 + $0x4c] ss:$28 sps:$4 sm:$0xff]  }
  0xc5   :  { %2846 = vmatpush2.bf16.msra.mxu1 %v8519_v46  ;;  %2872 = vmatprep.subr.bf16.mxu0 %v8530_v50  ;;  %v8600_v46 = vld [vmem:[%s12350_s2 + $0x400] ss:$28 sps:$4 sm:$0xff]   ;;  %v8603_v50 = vld [vmem:[%s12350_s2 + $0x48] ss:$28 sps:$4 sm:$0xff]  }
  0xc6   :  { %2847 = vmatprep.subr.bf16.mxu1 %v8527_v48  ;;  %v8608_v48 = vld [vmem:[%s12350_s2 + $0x3cc] ss:$28 sps:$4 sm:$0xff]  }
  0xc8   :  { %2873 = vmatpush1.bf16.msra.mxu0 %v8528_v52  ;;  %v8611_v52 = vld [vmem:[%s12350_s2 + $0x14] ss:$28 sps:$4 sm:$0xff]  }
  0xc9   :  { %2848 = vmatpush2.bf16.msra.mxu1 %v8525_v51  ;;  %2874 = vmatprep.subr.bf16.mxu0 %v8536_v54  ;;  %v8606_v51 = vld [vmem:[%s12350_s2 + $0x3c8] ss:$28 sps:$4 sm:$0xff]   ;;  %v8609_v54 = vld [vmem:[%s12350_s2 + $0x10] ss:$28 sps:$4 sm:$0xff]  }
  0xca   :  { %2849 = vmatprep.subr.bf16.mxu1 %v8533_v53  ;;  %v8614_v53 = vld [vmem:[%s12350_s2 + $0x394] ss:$28 sps:$4 sm:$0xff]  }
  0xcc   :  { %2875 = vmatpush1.bf16.msra.mxu0 %v8534_v56  ;;  %v530_v56 = vld [vmem:[%s12351_s3] sm:$0xff] }
  0xcd   :  { %2850 = vmatpush2.bf16.msra.mxu1 %v8531_v55  ;;  %2876 = vmatprep.subr.bf16.mxu0 %v8542_v58  ;;  %v8612_v55 = vld [vmem:[%s12350_s2 + $0x390] ss:$28 sps:$4 sm:$0xff]   ;;  %v8617_v58 = vld [vmem:[%s12350_s2 + $0x35c] ss:$28 sps:$4 sm:$0xff]  }
  0xce   :  { %2851 = vmatprep.subr.bf16.mxu1 %v8539_v57  ;;  %v538_v57 = vsub.s32 1, %v9600_v43 }
  0xd0   :  { %2877 = vmatpush1.bf16.msra.mxu0 %v8540_v61  ;;  %v8615_v61 = vld [vmem:[%s12350_s2 + $0x358] ss:$28 sps:$4 sm:$0xff]  }
  0xd1   :  { %2852 = vmatpush2.bf16.msra.mxu1 %v8537_v60  ;;  %2878 = vmatprep.subr.bf16.mxu0 %v8548_v0  ;;  %v8620_v60 = vld [vmem:[%s12350_s2 + $0x6dc] ss:$28 sps:$4 sm:$0xff]   ;;  %v535_v0 = vrot.slane %v530_v56, %v534_v40 }
  0xd2   :  { %2853 = vmatprep.subr.bf16.mxu1 %v8545_v63  ;;  %v8618_v63 = vld [vmem:[%s12350_s2 + $0x6d8] ss:$28 sps:$4 sm:$0xff]  }
  0xd4   :  { %2879 = vmatpush1.bf16.msra.mxu0 %v8546_v2  ;;  %v8626_v2 = vld [vmem:[%s12350_s2 + $0x6a4] ss:$28 sps:$4 sm:$0xff]  }
  0xd5   :  { %2854 = vmatpush2.bf16.msra.mxu1 %v8543_v1  ;;  %2880 = vmatprep.subr.bf16.mxu0 %v8554_v5  ;;  %v8623_v1 = vld [vmem:[%s12350_s2 + $0x324] ss:$28 sps:$4 sm:$0xff]  }
  0xd6   :  { %2855 = vmatprep.subr.bf16.mxu1 %v8551_v4  ;;  %v539_v4 = vrot.slane %v530_v56, %v538_v57  ;;  %v8621_v5 = vld [vmem:[%s12350_s2 + $0x320] ss:$28 sps:$4 sm:$0xff]  }
  0xd7   :  { %v8674_v56 = vld [vmem:[%s12350_s2 + $0xbe4] ss:$28 sps:$4 sm:$0xff]  }
  0xd8   :  { %2881 = vmatpush1.bf16.msra.mxu0 %v8552_v7 }
  0xd9   :  { %2856 = vmatpush2.bf16.msra.mxu1 %v8549_v6  ;;  %2882 = vmatprep.subr.bf16.mxu0 %v8560_v9 }
  0xda   :  { %2857 = vmatprep.subr.bf16.mxu1 %v8557_v8  ;;  %v8624_v8 = vld [vmem:[%s12350_s2 + $0x6a0] ss:$28 sps:$4 sm:$0xff]  }
  0xdc   :  { %2883 = vmatpush1.bf16.msra.mxu0 %v8558_v11 }
  0xdd   :  { %2858 = vmatpush2.bf16.msra.mxu1 %v8555_v10  ;;  %2884 = vmatprep.subr.bf16.mxu0 %v8566_v13  ;;  %v8629_v10 = vld [vmem:[%s12350_s2 + $0x2ec] ss:$28 sps:$4 sm:$0xff]  }
  0xde   :  { %2859 = vmatprep.subr.bf16.mxu1 %v8563_v12  ;;  %v8632_v13 = vld [vmem:[%s12350_s2 + $0x66c] ss:$28 sps:$4 sm:$0xff]  }
  0xe0   :  { %2885 = vmatpush1.bf16.msra.mxu0 %v8564_v15 }
  0xe1   :  { %2860 = vmatpush2.bf16.msra.mxu1 %v8561_v14  ;;  %2911 = vmatprep.subr.bf16.mxu0 %v8569_v17  ;;  %v8627_v17 = vld [vmem:[%s12350_s2 + $0x2e8] ss:$28 sps:$4 sm:$0xff]  }
  0xe2   :  { %2952 = vmatprep.subr.bf16.mxu1 %v8572_v19 }
  0xe3   :  { %2903 = vmatmul.mubr.bf16.vlgmr.msra.gmra.mxu0 %v9812_v59 }
  0xe4   :  { %2862 = vmatmul.mubr.bf16.vlgmr.msra.gmra.mxu1 %v9914_v35  ;;  %2912 = vmatpush1.bf16.msra.mxu0 %v8567_v20 }
  0xe5   :  { %2953 = vmatpush1.bf16.msra.mxu1 %v8570_v21  ;;  %2913 = vmatprep.subr.bf16.mxu0 %v8575_v22  ;;  %v8630_v21 = vld [vmem:[%s12350_s2 + $0x668] ss:$28 sps:$4 sm:$0xff]  }
  0xe6   :  { %2954 = vmatprep.subr.bf16.mxu1 %v8578_v23  ;;  %2943 = vmatprep.mubr.bf16.mxu0 %v9646_v62  ;;  %v8635_v23 = vld [vmem:[%s12350_s2 + $0x2b4] ss:$28 sps:$4 sm:$0xff]  }
  0xe7   :  { %2984 = vmatprep.mubr.bf16.mxu1 %v9657_v3 }
  0xe8   :  { %2914 = vmatpush1.bf16.msra.mxu0 %v8573_v24 }
  0xe9   :  { %2955 = vmatpush1.bf16.msra.mxu1 %v8576_v26  ;;  %2915 = vmatprep.subr.bf16.mxu0 %v8581_v27  ;;  %v8638_v27 = vld [vmem:[%s12350_s2 + $0x634] ss:$28 sps:$4 sm:$0xff]  }
  0xea   :  { %2956 = vmatprep.subr.bf16.mxu1 %v8584_v29  ;;  %v8633_v29 = vld [vmem:[%s12350_s2 + $0x2b0] ss:$28 sps:$4 sm:$0xff]  }
  0xec   :  { %2916 = vmatpush1.bf16.msra.mxu0 %v8579_v30  ;;  %v8636_v30 = vld [vmem:[%s12350_s2 + $0x630] ss:$28 sps:$4 sm:$0xff]  }
  0xed   :  { %2957 = vmatpush1.bf16.msra.mxu1 %v8582_v31  ;;  %2917 = vmatprep.subr.bf16.mxu0 %v8587_v33  ;;  %v8641_v31 = vld [vmem:[%s12350_s2 + $0x27c] ss:$28 sps:$4 sm:$0xff]  }
  0xee   :  { %2958 = vmatprep.subr.bf16.mxu1 %v8590_v34  ;;  %v8644_v33 = vld [vmem:[%s12350_s2 + $0x5fc] ss:$28 sps:$4 sm:$0xff]  }
  0xef   :  { %v8639_v34 = vld [vmem:[%s12350_s2 + $0x278] ss:$28 sps:$4 sm:$0xff]  }
  0xf0   :  { %2918 = vmatpush1.bf16.msra.mxu0 %v8585_v36  ;;  %v8642_v36 = vld [vmem:[%s12350_s2 + $0x5f8] ss:$28 sps:$4 sm:$0xff]  }
  0xf1   :  { %2959 = vmatpush1.bf16.msra.mxu1 %v8588_v37  ;;  %2919 = vmatprep.subr.bf16.mxu0 %v8593_v38  ;;  %v8647_v37 = vld [vmem:[%s12350_s2 + $0x244] ss:$28 sps:$4 sm:$0xff]  }
  0xf2   :  { %2960 = vmatprep.subr.bf16.mxu1 %v8596_v25  ;;  %v8650_v38 = vld [vmem:[%s12350_s2 + $0x5c4] ss:$28 sps:$4 sm:$0xff]  }
  0xf3   :  { %v8645_v25 = vld [vmem:[%s12350_s2 + $0x240] ss:$28 sps:$4 sm:$0xff]  }
  0xf4   :  { %2920 = vmatpush1.bf16.msra.mxu0 %v8591_v39  ;;  %v8648_v39 = vld [vmem:[%s12350_s2 + $0x5c0] ss:$28 sps:$4 sm:$0xff]  }
  0xf5   :  { %2961 = vmatpush1.bf16.msra.mxu1 %v8594_v41  ;;  %2921 = vmatprep.subr.bf16.mxu0 %v8599_v42  ;;  %v8653_v41 = vld [vmem:[%s12350_s2 + $0x20c] ss:$28 sps:$4 sm:$0xff]  }
  0xf6   :  { %2962 = vmatprep.subr.bf16.mxu1 %v8602_v44  ;;  %v8656_v42 = vld [vmem:[%s12350_s2 + $0x58c] ss:$28 sps:$4 sm:$0xff]  }
  0xf7   :  { %v8651_v44 = vld [vmem:[%s12350_s2 + $0x208] ss:$28 sps:$4 sm:$0xff]  }
  0xf8   :  { %2922 = vmatpush1.bf16.msra.mxu0 %v8597_v45  ;;  %v8654_v45 = vld [vmem:[%s12350_s2 + $0x588] ss:$28 sps:$4 sm:$0xff]  }
  0xf9   :  { %2963 = vmatpush1.bf16.msra.mxu1 %v8600_v46  ;;  %2923 = vmatprep.subr.bf16.mxu0 %v8605_v47  ;;  %v8659_v46 = vld [vmem:[%s12350_s2 + $0x1d4] ss:$28 sps:$4 sm:$0xff]  }
  0xfa   :  { %2964 = vmatprep.subr.bf16.mxu1 %v8608_v48  ;;  %v8662_v47 = vld [vmem:[%s12350_s2 + $0x554] ss:$28 sps:$4 sm:$0xff]  }
  0xfb   :  { %v8657_v48 = vld [vmem:[%s12350_s2 + $0x1d0] ss:$28 sps:$4 sm:$0xff]  }
  0xfc   :  { %2924 = vmatpush1.bf16.msra.mxu0 %v8603_v50  ;;  %v8660_v50 = vld [vmem:[%s12350_s2 + $0x550] ss:$28 sps:$4 sm:$0xff]  }
  0xfd   :  { %2965 = vmatpush1.bf16.msra.mxu1 %v8606_v51  ;;  %2925 = vmatprep.subr.bf16.mxu0 %v8611_v52  ;;  %v8665_v51 = vld [vmem:[%s12350_s2 + $0x89c] ss:$28 sps:$4 sm:$0xff]  }
  0xfe   :  { %2966 = vmatprep.subr.bf16.mxu1 %v8614_v53  ;;  %v8668_v52 = vld [vmem:[%s12350_s2 + $0xc1c] ss:$28 sps:$4 sm:$0xff]  }
  0xff   :  { %v8663_v53 = vld [vmem:[%s12350_s2 + $0x898] ss:$28 sps:$4 sm:$0xff]  }
 0x100   :  { %2926 = vmatpush1.bf16.msra.mxu0 %v8609_v54  ;;  %v8666_v54 = vld [vmem:[%s12350_s2 + $0xc18] ss:$28 sps:$4 sm:$0xff]  }
 0x101   :  { %2967 = vmatpush1.bf16.msra.mxu1 %v8612_v55  ;;  %2927 = vmatprep.subr.bf16.mxu0 %v8617_v58  ;;  %v8671_v55 = vld [vmem:[%s12350_s2 + $0x864] ss:$28 sps:$4 sm:$0xff]  }
 0x102   :  { %2968 = vmatprep.subr.bf16.mxu1 %v8620_v60  ;;  %v8669_v60 = vld [vmem:[%s12350_s2 + $0x860] ss:$28 sps:$4 sm:$0xff]  }
 0x103   :  { %v2617_v6 = vpop.f32.mrf.mxu0 }
 0x104   :  { %v2658_v7 = vpop.f32.mrf.mxu1  ;;  %v2618_v9 = vadd.f32 %v2617_v6, %v535_v0  ;;  %2928 = vmatpush2.bf16.msra.mxu0 %v8615_v61  ;;  %v8672_v61 = vld [vmem:[%s12350_s2 + $0xbe0] ss:$28 sps:$4 sm:$0xff]   ;;  %v8683_v6 = vld [vmem:[%s12350_s2 + $0x7f4] ss:$28 sps:$4 sm:$0xff]  }
 0x105   :  { %2969 = vmatpush2.bf16.msra.mxu1 %v8618_v63  ;;  %v2619_v11 = vpop.f32.mrf.mxu0  ;;  %2929 = vmatprep.subr.bf16.mxu0 %v8623_v1  ;;  %v8677_v63 = vld [vmem:[%s12350_s2 + $0x82c] ss:$28 sps:$4 sm:$0xff]  }
 0x106   :  { %v2660_v12 = vpop.f32.mrf.mxu1  ;;  %2970 = vmatprep.subr.bf16.mxu1 %v8626_v2  ;;  %v10343_v14 = vadd.f32 %v2658_v7, %v2618_v9  ;;  %v2620_v15 = vadd.f32 %v2619_v11, %v539_v4  ;;  %v8680_v1 = vld [vmem:[%s12350_s2 + $0xbac] ss:$28 sps:$4 sm:$0xff]   ;;  %v8689_v11 = vld [vmem:[%s12350_s2 + $0x7bc] ss:$28 sps:$4 sm:$0xff]  }
 0x107   :  { %v2621_v19 = vpop.f32.mrf.mxu0  ;;  %v8675_v4 = vld [vmem:[%s12350_s2 + $0x828] ss:$28 sps:$4 sm:$0xff]   ;;  %v8681_v9 = vld [vmem:[%s12350_s2 + $0x7f0] ss:$28 sps:$4 sm:$0xff]  }
 0x108   :  { %v2662_v20 = vpop.f32.mrf.mxu1  ;;  %v10351_v22 = vadd.f32 %v2660_v12, %v2620_v15  ;;  %2930 = vmatpush2.bf16.msra.mxu0 %v8621_v5  ;;  %v8678_v5 = vld [vmem:[%s12350_s2 + $0xba8] ss:$28 sps:$4 sm:$0xff]   ;;  %v8692_v12 = vld [vmem:[%s12350_s2 + $0xb3c] ss:$28 sps:$4 sm:$0xff]  }
 0x109   :  { %2971 = vmatpush2.bf16.msra.mxu1 %v8624_v8  ;;  %v2622_v24 = vpop.f32.mrf.mxu0  ;;  %2931 = vmatprep.subr.bf16.mxu0 %v8629_v10  ;;  %v8686_v8 = vld [vmem:[%s12350_s2 + $0xb74] ss:$28 sps:$4 sm:$0xff]   ;;  %v8698_v19 = vld [vmem:[%s12350_s2 + $0xb04] ss:$28 sps:$4 sm:$0xff]  }
 0x10a   :  { %v2663_v26 = vpop.f32.mrf.mxu1  ;;  %2972 = vmatprep.subr.bf16.mxu1 %v8632_v13  ;;  %v8684_v10 = vld [vmem:[%s12350_s2 + $0xb70] ss:$28 sps:$4 sm:$0xff]   ;;  %v8687_v13 = vld [vmem:[%s12350_s2 + $0x7b8] ss:$28 sps:$4 sm:$0xff]   ;;  %v8693_v20 = vld [vmem:[%s12350_s2 + $0x780] ss:$28 sps:$4 sm:$0xff]  }
 0x10b   :  { %v8690_v15 = vld [vmem:[%s12350_s2 + $0xb38] ss:$28 sps:$4 sm:$0xff]   ;;  %v8704_v24 = vld [vmem:[%s12350_s2 + $0xacc] ss:$28 sps:$4 sm:$0xff]  }
 0x10c   :  { %2932 = vmatpush2.bf16.msra.mxu0 %v8627_v17  ;;  %v8695_v17 = vld [vmem:[%s12350_s2 + $0x784] ss:$28 sps:$4 sm:$0xff]  }
 0x10d   :  { %2973 = vmatpush2.bf16.msra.mxu1 %v8630_v21  ;;  %2933 = vmatprep.subr.bf16.mxu0 %v8635_v23  ;;  %v8696_v21 = vld [vmem:[%s12350_s2 + $0xb00] ss:$28 sps:$4 sm:$0xff]   ;;  %v8701_v23 = vld [vmem:[%s12350_s2 + $0x74c] ss:$28 sps:$4 sm:$0xff]  }
 0x10e   :  { %2974 = vmatprep.subr.bf16.mxu1 %v8638_v27  ;;  %v8699_v26 = vld [vmem:[%s12350_s2 + $0x748] ss:$28 sps:$4 sm:$0xff]  }
 0x10f   :  { %v8702_v27 = vld [vmem:[%s12350_s2 + $0xac8] ss:$28 sps:$4 sm:$0xff]  }
 0x110   :  { %2934 = vmatpush2.bf16.msra.mxu0 %v8633_v29  ;;  %v8707_v29 = vld [vmem:[%s12350_s2 + $0x714] ss:$28 sps:$4 sm:$0xff]  }
 0x111   :  { %2975 = vmatpush2.bf16.msra.mxu1 %v8636_v30  ;;  %2935 = vmatprep.subr.bf16.mxu0 %v8641_v31  ;;  %v8710_v30 = vld [vmem:[%s12350_s2 + $0xa94] ss:$28 sps:$4 sm:$0xff]  }
 0x112   :  { %2976 = vmatprep.subr.bf16.mxu1 %v8644_v33  ;;  %v8705_v31 = vld [vmem:[%s12350_s2 + $0x710] ss:$28 sps:$4 sm:$0xff]  }
 0x113   :  { %v8708_v33 = vld [vmem:[%s12350_s2 + $0xa90] ss:$28 sps:$4 sm:$0xff]  }
 0x114   :  { %2936 = vmatpush2.bf16.msra.mxu0 %v8639_v34  ;;  %v8713_v34 = vld [vmem:[%s12350_s2 + $0xa5c] ss:$28 sps:$4 sm:$0xff]  }
 0x115   :  { %2977 = vmatpush2.bf16.msra.mxu1 %v8642_v36  ;;  %2937 = vmatprep.subr.bf16.mxu0 %v8647_v37  ;;  %v8714_v36 = vld [vmem:[%s12350_s2 + $0x360] ss:$28 sps:$4 sm:$0xff]   ;;  %v8711_v37 = vld [vmem:[%s12350_s2 + $0xa58] ss:$28 sps:$4 sm:$0xff]  }
 0x116   :  { %2978 = vmatprep.subr.bf16.mxu1 %v8650_v38  ;;  %v8715_v38 = vld [vmem:[%s12350_s2 + $0x1a0] ss:$28 sps:$4 sm:$0xff]  }
 0x118   :  { %2938 = vmatpush2.bf16.msra.mxu0 %v8645_v25  ;;  %v8718_v25 = vld [vmem:[%s12350_s2 + $0xa24] ss:$28 sps:$4 sm:$0xff]  }
 0x119   :  { %2979 = vmatpush2.bf16.msra.mxu1 %v8648_v39  ;;  %2939 = vmatprep.subr.bf16.mxu0 %v8653_v41  ;;  %v8719_v39 = vld [vmem:[%s12350_s2 + $0x328] ss:$28 sps:$4 sm:$0xff]  }
 0x11a   :  { %2980 = vmatprep.subr.bf16.mxu1 %v8656_v42 }
 0x11c   :  { %2940 = vmatpush2.bf16.msra.mxu0 %v8651_v44  ;;  %v8716_v44 = vld [vmem:[%s12350_s2 + $0xa20] ss:$28 sps:$4 sm:$0xff]  }
 0x11d   :  { %2981 = vmatpush2.bf16.msra.mxu1 %v8654_v45  ;;  %2941 = vmatprep.subr.bf16.mxu0 %v8659_v46  ;;  %v8720_v45 = vld [vmem:[%s12350_s2 + $0x168] ss:$28 sps:$4 sm:$0xff]  }
 0x11e   :  { %2982 = vmatprep.subr.bf16.mxu1 %v8662_v47  ;;  %v8723_v47 = vld [vmem:[%s12350_s2 + $0x9ec] ss:$28 sps:$4 sm:$0xff]  }
 0x120   :  { %2942 = vmatpush2.bf16.msra.mxu0 %v8657_v48 }
 0x121   :  { %2983 = vmatpush2.bf16.msra.mxu1 %v8660_v50  ;;  %2993 = vmatprep.subr.bf16.mxu0 %v8665_v51 }
 0x122   :  { %3034 = vmatprep.subr.bf16.mxu1 %v8668_v52 }
 0x123   :  { %2944 = vmatmul.mubr.bf16.vlgmr.msra.gmra.mxu0 %v9697_v16 }
 0x124   :  { %v10432_v58 = vpop.f32.mrf.mxu1  ;;  %2985 = vmatmul.mubr.bf16.vlgmr.msra.gmra.mxu1 %v9702_v18  ;;  %2994 = vmatpush1.bf16.msra.mxu0 %v8663_v53  ;;  %v8721_v53 = vld [vmem:[%s12350_s2 + $0x9e8] ss:$28 sps:$4 sm:$0xff]  }
 0x125   :  { %3035 = vmatpush1.bf16.msra.mxu1 %v8666_v54  ;;  %2995 = vmatprep.subr.bf16.mxu0 %v8671_v55  ;;  %v8725_v54 = vld [vmem:[%s12350_s2 + $0x130] ss:$28 sps:$4 sm:$0xff]  }
 0x126   :  { %v10444_v0 = vpop.f32.mrf.mxu1  ;;  %3036 = vmatprep.subr.bf16.mxu1 %v8674_v56  ;;  %3066 = vmatprep.mubr.bf16.mxu1 %v9434_v28  ;;  %v8726_v56 = vld [vmem:[%s12350_s2 + $0x9b0] ss:$28 sps:$4 sm:$0xff]  }
 0x127   :  { %3025 = vmatprep.mubr.bf16.mxu0 %v9742_v32 }
 0x128   :  { %v2744_v2 = vpop.f32.mrf.mxu1  ;;  %2996 = vmatpush1.bf16.msra.mxu0 %v8669_v60  ;;  %v8733_v60 = vld [vmem:[%s12350_s2 + $0x97c] ss:$28 sps:$4 sm:$0xff]  }
 0x129   :  { %3037 = vmatpush1.bf16.msra.mxu1 %v8672_v61  ;;  %2997 = vmatprep.subr.bf16.mxu0 %v8677_v63  ;;  %v8734_v61 = vld [vmem:[%s12350_s2 + $0x280] ss:$28 sps:$4 sm:$0xff]   ;;  %v8731_v63 = vld [vmem:[%s12350_s2 + $0x978] ss:$28 sps:$4 sm:$0xff]   ;;  %v8739_v2 = vld [vmem:[%s12350_s2 + $0x248] ss:$28 sps:$4 sm:$0xff]  }
 0x12a   :  { %v2745_v7 = vpop.f32.mrf.mxu1  ;;  %3038 = vmatprep.subr.bf16.mxu1 %v8680_v1  ;;  %v8738_v1 = vld [vmem:[%s12350_s2 + $0x944] ss:$28 sps:$4 sm:$0xff]  }
 0x12b   :  { %v8744_v7 = vld [vmem:[%s12350_s2 + $0x210] ss:$28 sps:$4 sm:$0xff]  }
 0x12c   :  { %2998 = vmatpush1.bf16.msra.mxu0 %v8675_v4  ;;  %v8736_v4 = vld [vmem:[%s12350_s2 + $0x940] ss:$28 sps:$4 sm:$0xff]  }
 0x12d   :  { %3039 = vmatpush1.bf16.msra.mxu1 %v8678_v5  ;;  %2999 = vmatprep.subr.bf16.mxu0 %v8683_v6  ;;  %v8740_v5 = vld [vmem:[%s12350_s2 + $0x88] ss:$28 sps:$4 sm:$0xff]  }
 0x12e   :  { %3040 = vmatprep.subr.bf16.mxu1 %v8686_v8  ;;  %v8743_v6 = vld [vmem:[%s12350_s2 + $0x90c] ss:$28 sps:$4 sm:$0xff]  }
 0x12f   :  { %v8741_v8 = vld [vmem:[%s12350_s2 + $0x908] ss:$28 sps:$4 sm:$0xff]  }
 0x130   :  { %3000 = vmatpush1.bf16.msra.mxu0 %v8681_v9  ;;  %v8745_v9 = vld [vmem:[%s12350_s2 + $0x50] ss:$28 sps:$4 sm:$0xff]  }
 0x131   :  { %3041 = vmatpush1.bf16.msra.mxu1 %v8684_v10  ;;  %3001 = vmatprep.subr.bf16.mxu0 %v8689_v11  ;;  %v8748_v10 = vld [vmem:[%s12350_s2 + $0x8d4] ss:$28 sps:$4 sm:$0xff]  }
 0x132   :  { %3042 = vmatprep.subr.bf16.mxu1 %v8692_v12  ;;  %v8749_v11 = vld [vmem:[%s12350_s2 + $0x1d8] ss:$28 sps:$4 sm:$0xff]   ;;  %v8746_v12 = vld [vmem:[%s12350_s2 + $0x8d0] ss:$28 sps:$4 sm:$0xff]  }
 0x134   :  { %3002 = vmatpush1.bf16.msra.mxu0 %v8687_v13  ;;  %v8750_v13 = vld [vmem:[%s12350_s2 + $0x18] ss:$28 sps:$4 sm:$0xff]  }
 0x135   :  { %3043 = vmatpush1.bf16.msra.mxu1 %v8690_v15  ;;  %3003 = vmatprep.subr.bf16.mxu0 %v8695_v17  ;;  %v8751_v15 = vld [vmem:[%s12350_s2 + $0x6e0] ss:$28 sps:$4 sm:$0xff]  }
 0x136   :  { %3044 = vmatprep.subr.bf16.mxu1 %v8698_v19  ;;  %v8752_v17 = vld [vmem:[%s12350_s2 + $0xa60] ss:$28 sps:$4 sm:$0xff]  }
 0x137   :  { %v8753_v19 = vld [vmem:[%s12350_s2 + $0x520] ss:$28 sps:$4 sm:$0xff]  }
 0x138   :  { %3004 = vmatpush1.bf16.msra.mxu0 %v8693_v20  ;;  %v8754_v20 = vld [vmem:[%s12350_s2 + $0x8a0] ss:$28 sps:$4 sm:$0xff]  }
 0x139   :  { %3045 = vmatpush1.bf16.msra.mxu1 %v8696_v21  ;;  %3005 = vmatprep.subr.bf16.mxu0 %v8701_v23  ;;  %v8755_v21 = vld [vmem:[%s12350_s2 + $0x6a8] ss:$28 sps:$4 sm:$0xff]  }
 0x13a   :  { %3046 = vmatprep.subr.bf16.mxu1 %v8704_v24  ;;  %v8756_v23 = vld [vmem:[%s12350_s2 + $0xa28] ss:$28 sps:$4 sm:$0xff]  }
 0x13b   :  { %v8757_v24 = vld [vmem:[%s12350_s2 + $0x4e8] ss:$28 sps:$4 sm:$0xff]  }
 0x13c   :  { %3006 = vmatpush1.bf16.msra.mxu0 %v8699_v26  ;;  %v8758_v26 = vld [vmem:[%s12350_s2 + $0x868] ss:$28 sps:$4 sm:$0xff]  }
 0x13d   :  { %3047 = vmatpush1.bf16.msra.mxu1 %v8702_v27  ;;  %3007 = vmatprep.subr.bf16.mxu0 %v8707_v29 }
 0x13e   :  { %3048 = vmatprep.subr.bf16.mxu1 %v8710_v30  ;;  %v8759_v30 = vld [vmem:[%s12350_s2 + $0x670] ss:$28 sps:$4 sm:$0xff]  }
 0x140   :  { %3008 = vmatpush1.bf16.msra.mxu0 %v8705_v31  ;;  %v8760_v31 = vld [vmem:[%s12350_s2 + $0x9f0] ss:$28 sps:$4 sm:$0xff]  }
 0x141   :  { %3049 = vmatpush1.bf16.msra.mxu1 %v8708_v33  ;;  %3009 = vmatprep.subr.bf16.mxu0 %v8713_v34  ;;  %v8761_v33 = vld [vmem:[%s12350_s2 + $0x4b0] ss:$28 sps:$4 sm:$0xff]  }
 0x142   :  { %7939 = vmatprep.subr.bf16.mxu1 %v8714_v36 }
 0x143   :  { %v2699_v41 = vpop.f32.mrf.mxu0 }
 0x144   :  { %3067 = vmatmul.mubr.bf16.vlgmr.msra.gmra.mxu1 %v9812_v59  ;;  %v2700_v42 = vadd.f32 %v2699_v41, %v10343_v14  ;;  %3010 = vmatpush2.bf16.msra.mxu0 %v8711_v37  ;;  %v8724_v14 = vld [vmem:[%s12350_s2 + $0x2f0] ss:$28 sps:$4 sm:$0xff]   ;;  %v8763_v37 = vld [vmem:[%s12350_s2 + $0x638] ss:$28 sps:$4 sm:$0xff]   ;;  %v8769_v41 = vld [vmem:[%s12350_s2 + $0x440] ss:$28 sps:$4 sm:$0xff]  }
 0x145   :  { %7940 = vmatpush3.bf16.msra.mxu1 %v8715_v38  ;;  %v2701_v46 = vpop.f32.mrf.mxu0  ;;  %3011 = vmatprep.subr.bf16.mxu0 %v8718_v25  ;;  %v8764_v38 = vld [vmem:[%s12350_s2 + $0x9b8] ss:$28 sps:$4 sm:$0xff]   ;;  %v8767_v25 = vld [vmem:[%s12350_s2 + $0x600] ss:$28 sps:$4 sm:$0xff]  }
 0x146   :  { %7941 = vmatprep.subr.bf16.mxu1 %v8719_v39  ;;  %v10550_v48 = vadd.f32 %v10432_v58, %v2700_v42  ;;  %v2702_v50 = vadd.f32 %v2701_v46, %v10351_v22  ;;  %3107 = vmatprep.mubr.bf16.mxu1 %v9646_v62  ;;  %v8728_v62 = vld [vmem:[%s12350_s2 + $0x9b4] ss:$28 sps:$4 sm:$0xff]   ;;  %v8768_v39 = vld [vmem:[%s12350_s2 + $0x980] ss:$28 sps:$4 sm:$0xff]   ;;  %v8773_v46 = vld [vmem:[%s12350_s2 + $0x408] ss:$28 sps:$4 sm:$0xff]  }
 0x147   :  { %v2703_v51 = vpop.f32.mrf.mxu0  ;;  %v8729_v22 = vld [vmem:[%s12350_s2 + $0x2b8] ss:$28 sps:$4 sm:$0xff]   ;;  %v8770_v42 = vld [vmem:[%s12350_s2 + $0x7c0] ss:$28 sps:$4 sm:$0xff]  }
 0x148   :  { %v10555_v52 = vadd.f32 %v10444_v0, %v2702_v50  ;;  %3012 = vmatpush2.bf16.msra.mxu0 %v8716_v44  ;;  %v8730_v58 = vld [vmem:[%s12350_s2 + $0xf8] ss:$28 sps:$4 sm:$0xff]   ;;  %v8735_v0 = vld [vmem:[%s12350_s2 + $0xc0] ss:$28 sps:$4 sm:$0xff]   ;;  %v8771_v44 = vld [vmem:[%s12350_s2 + $0x5c8] ss:$28 sps:$4 sm:$0xff]  }
 0x149   :  { %7942 = vmatpush3.bf16.msra.mxu1 %v8720_v45  ;;  %v2704_v55 = vpop.f32.mrf.mxu0  ;;  %3013 = vmatprep.subr.bf16.mxu0 %v8723_v47  ;;  %v8772_v45 = vld [vmem:[%s12350_s2 + $0x948] ss:$28 sps:$4 sm:$0xff]   ;;  %v8776_v50 = vld [vmem:[%s12350_s2 + $0x910] ss:$28 sps:$4 sm:$0xff]  }
 0x14a   :  { %7943 = vmatprep.subr.bf16.mxu1 %v8724_v14  ;;  %v8774_v47 = vld [vmem:[%s12350_s2 + $0x788] ss:$28 sps:$4 sm:$0xff]   ;;  %v8775_v14 = vld [vmem:[%s12350_s2 + $0x590] ss:$28 sps:$4 sm:$0xff]   ;;  %v8779_v55 = vld [vmem:[%s12350_s2 + $0x558] ss:$28 sps:$4 sm:$0xff]  }
 0x14b   :  { %v10712_v51 = vld [vmem:[%s12349_s1] sm:$0xff] }
 0x14c   :  { %3014 = vmatpush2.bf16.msra.mxu0 %v8721_v53  ;;  %v8777_v53 = vld [vmem:[%s12350_s2 + $0x3d0] ss:$28 sps:$4 sm:$0xff]  }
 0x14d   :  { %7944 = vmatpush3.bf16.msra.mxu1 %v8725_v54  ;;  %3015 = vmatprep.subr.bf16.mxu0 %v8728_v62  ;;  %v8778_v54 = vld [vmem:[%s12350_s2 + $0x750] ss:$28 sps:$4 sm:$0xff]   ;;  %v8780_v62 = vld [vmem:[%s12350_s2 + $0x8d8] ss:$28 sps:$4 sm:$0xff]  }
 0x14e   :  { %7945 = vmatprep.subr.bf16.mxu1 %v8729_v22  ;;  %v542_v22 = vsub.s32 2, %v9600_v43 }
 0x150   :  { %3016 = vmatpush2.bf16.msra.mxu0 %v8726_v56  ;;  %v10729_v56 = vrot.slane %v10712_v51, %v9618_v49 }
 0x151   :  { %7946 = vmatpush3.bf16.msra.mxu1 %v8730_v58  ;;  %3017 = vmatprep.subr.bf16.mxu0 %v8733_v60  ;;  %v546_v58 = vsub.s32 3, %v9600_v43  ;;  %v8781_v60 = vld [vmem:[%s12350_s2 + $0x398] ss:$28 sps:$4 sm:$0xff]  }
 0x152   :  { %7947 = vmatprep.subr.bf16.mxu1 %v8734_v61  ;;  %v8782_v61 = vld [vmem:[%s12350_s2 + $0x718] ss:$28 sps:$4 sm:$0xff]  }
 0x154   :  { %3018 = vmatpush2.bf16.msra.mxu0 %v8731_v63  ;;  %v8785_v63 = vld [vmem:[%s12352_s4 + $0x18c] ss:$28 sps:$4 sm:$0xff]  }
 0x155   :  { %7948 = vmatpush3.bf16.msra.mxu1 %v8735_v0  ;;  %3019 = vmatprep.subr.bf16.mxu0 %v8738_v1  ;;  %v10744_v0 = vld [vmem:[%s12351_s3] sm:$0xff] }
 0x156   :  { %7949 = vmatprep.subr.bf16.mxu1 %v8739_v2  ;;  %v543_v1 = vrot.slane %v10744_v0, %v542_v22  ;;  %v8783_v2 = vld [vmem:[%s12352_s4 + $0x188] ss:$28 sps:$4 sm:$0xff]  }
 0x158   :  { %3020 = vmatpush2.bf16.msra.mxu0 %v8736_v4  ;;  %v8786_v4 = vld [vmem:[%s12350_s2 + $0xc20] ss:$28 sps:$4 sm:$0xff]  }
 0x159   :  { %7950 = vmatpush3.bf16.msra.mxu1 %v8740_v5  ;;  %3021 = vmatprep.subr.bf16.mxu0 %v8743_v6  ;;  %v3261_v5 = vcombine.high %v10729_v56, %v10729_v56  ;;  %v547_v6 = vrot.slane %v10744_v0, %v546_v58 }
 0x15a   :  { %7951 = vmatprep.subr.bf16.mxu1 %v8744_v7  ;;  %v9435_v7 = vmov 0.0  }
 0x15c   :  { %3022 = vmatpush2.bf16.msra.mxu0 %v8741_v8  ;;  %v8789_v8 = vld [vmem:[%s12352_s4 + $0x154] ss:$28 sps:$4 sm:$0xff]  }
 0x15d   :  { %7952 = vmatpush3.bf16.msra.mxu1 %v8745_v9  ;;  %3023 = vmatprep.subr.bf16.mxu0 %v8748_v10  ;;  %v8787_v10 = vld [vmem:[%s12352_s4 + $0x150] ss:$28 sps:$4 sm:$0xff]  }
 0x15e   :  { %7953 = vmatprep.subr.bf16.mxu1 %v8749_v11  ;;  %v8790_v11 = vld [vmem:[%s12350_s2 + $0xbe8] ss:$28 sps:$4 sm:$0xff]  }
 0x160   :  { %3024 = vmatpush2.bf16.msra.mxu0 %v8746_v12  ;;  %v10771_v12 = vpack.c.bf16 %v3261_v5, %v3261_v5 }
 0x161   :  { %7954 = vmatpush3.bf16.msra.mxu1 %v8750_v13  ;;  %7961 = vmatprep.subr.bf16.mxu0 %v8751_v15 }
 0x162   :  { %7983 = vmatprep.subr.bf16.mxu1 %v8752_v17 }
 0x163   :  { %3026 = vmatmul.mubr.bf16.vlgmr.msra.gmra.mxu0 %v9914_v35 }
 0x164   :  { %v10648_v27 = vpop.f32.mrf.mxu1  ;;  %3108 = vmatmul.mubr.bf16.vlgmr.msra.gmra.mxu1 %v9697_v16  ;;  %7962 = vmatpush3.bf16.msra.mxu0 %v8753_v19  ;;  %v8762_v16 = vld [vmem:[%s12350_s2 + $0x830] ss:$28 sps:$4 sm:$0xff]  }
 0x165   :  { %7984 = vmatpush3.bf16.msra.mxu1 %v8754_v20  ;;  %7963 = vmatprep.subr.bf16.mxu0 %v8755_v21  ;;  %v2782_v9 = vadd.f32 %v10648_v27, %v543_v1  ;;  %v8793_v20 = vld [vmem:[%s12352_s4 + $0x11c] ss:$28 sps:$4 sm:$0xff]  }
 0x166   :  { %v10651_v29 = vpop.f32.mrf.mxu1  ;;  %7985 = vmatprep.subr.bf16.mxu1 %v8756_v23  ;;  %3147 = vmatprep.mubr.bf16.mxu0 %v9657_v3  ;;  %v8765_v3 = vld [vmem:[%s12350_s2 + $0x478] ss:$28 sps:$4 sm:$0xff]   ;;  %v8795_v27 = vld [vmem:[%s12352_s4 + $0xe0] ss:$28 sps:$4 sm:$0xff]  }
 0x167   :  { %3187 = vmatprep.mubr.bf16.mxu1 %v9742_v32  ;;  %v8766_v32 = vld [vmem:[%s12350_s2 + $0x7f8] ss:$28 sps:$4 sm:$0xff]   ;;  %v2784_v15 = vadd.f32 %v10651_v29, %v547_v6 }
 0x168   :  { %v2785_v34 = vpop.f32.mrf.mxu1  ;;  %7964 = vmatpush3.bf16.msra.mxu0 %v8757_v24  ;;  %v8798_v29 = vld [vmem:[%s12350_s2 + $0xb78] ss:$28 sps:$4 sm:$0xff]  }
 0x169   :  { %7986 = vmatpush3.bf16.msra.mxu1 %v8758_v26  ;;  %7965 = vmatprep.subr.bf16.mxu0 %v8759_v30  ;;  %v8797_v26 = vld [vmem:[%s12352_s4 + $0xe4] ss:$28 sps:$4 sm:$0xff]   ;;  %v8801_v30 = vld [vmem:[%s12352_s4 + $0xac] ss:$28 sps:$4 sm:$0xff]   ;;  %v8827_v6 = vld [vmem:[%s12352_s4 + $0x2d8] ss:$28 sps:$4 sm:$0xff]  }
 0x16a   :  { %v2786_v36 = vpop.f32.mrf.mxu1  ;;  %7987 = vmatprep.subr.bf16.mxu1 %v8760_v31  ;;  %v8799_v31 = vld [vmem:[%s12352_s4 + $0xa8] ss:$28 sps:$4 sm:$0xff]   ;;  %v8803_v34 = vld [vmem:[%s12352_s4 + $0x70] ss:$28 sps:$4 sm:$0xff]  }
 0x16b   :  { %v8806_v36 = vld [vmem:[%s12350_s2 + $0xb08] ss:$28 sps:$4 sm:$0xff]  }
 0x16c   :  { %7966 = vmatpush3.bf16.msra.mxu0 %v8761_v33  ;;  %v8802_v33 = vld [vmem:[%s12350_s2 + $0xb40] ss:$28 sps:$4 sm:$0xff]  }
 0x16d   :  { %7988 = vmatpush3.bf16.msra.mxu1 %v8762_v16  ;;  %7967 = vmatprep.subr.bf16.mxu0 %v8763_v37  ;;  %v8805_v16 = vld [vmem:[%s12352_s4 + $0x74] ss:$28 sps:$4 sm:$0xff]   ;;  %v8809_v37 = vld [vmem:[%s12352_s4 + $0x3c] ss:$28 sps:$4 sm:$0xff]  }
 0x16e   :  { %7989 = vmatprep.subr.bf16.mxu1 %v8764_v38  ;;  %v3246_v38 = vcombine.high %v10712_v51, %v10712_v51  ;;  %v8826_v51 = vld [vmem:[%s12352_s4 + $0x4d4] ss:$28 sps:$4 sm:$0xff]  }
 0x170   :  { %7968 = vmatpush3.bf16.msra.mxu0 %v8765_v3  ;;  %v8807_v3 = vld [vmem:[%s12352_s4 + $0x38] ss:$28 sps:$4 sm:$0xff]  }
 0x171   :  { %7990 = vmatpush3.bf16.msra.mxu1 %v8766_v32  ;;  %7969 = vmatprep.subr.bf16.mxu0 %v8767_v25  ;;  %v8810_v32 = vld [vmem:[%s12350_s2 + $0xad0] ss:$28 sps:$4 sm:$0xff]   ;;  %v8813_v25 = vld [vmem:[%s12352_s4 + $0x4] ss:$28 sps:$4 sm:$0xff]  }
 0x172   :  { %7991 = vmatprep.subr.bf16.mxu1 %v8768_v39  ;;  %v10840_v39 = vrot.slane %v3246_v38, %v9618_v49  ;;  %v8862_v38 = vld [vmem:[%s12352_s4 + $0x384] ss:$28 sps:$4 sm:$0xff]  }
 0x174   :  { %7970 = vmatpush3.bf16.msra.mxu0 %v8769_v41  ;;  %v8811_v41 = vld [vmem:[%s12352_s4] ss:$28 sps:$4 sm:$0xff]  }
 0x175   :  { %7992 = vmatpush3.bf16.msra.mxu1 %v8770_v42  ;;  %7971 = vmatprep.subr.bf16.mxu0 %v8771_v44  ;;  %v8814_v42 = vld [vmem:[%s12350_s2 + $0xa98] ss:$28 sps:$4 sm:$0xff]   ;;  %v8817_v44 = vld [vmem:[%s12352_s4 + $0x34c] ss:$28 sps:$4 sm:$0xff]  }
 0x176   :  { %7993 = vmatprep.subr.bf16.mxu1 %v8772_v45  ;;  %v8820_v45 = vld [vmem:[%s12352_s4 + $0x50c] ss:$28 sps:$4 sm:$0xff]  }
 0x178   :  { %7972 = vmatpush3.bf16.msra.mxu0 %v8773_v46  ;;  %v8815_v46 = vld [vmem:[%s12352_s4 + $0x348] ss:$28 sps:$4 sm:$0xff]  }
 0x179   :  { %7994 = vmatpush3.bf16.msra.mxu1 %v8774_v47  ;;  %7973 = vmatprep.subr.bf16.mxu0 %v8775_v14  ;;  %v8818_v47 = vld [vmem:[%s12352_s4 + $0x508] ss:$28 sps:$4 sm:$0xff]   ;;  %v3262_v14 = vcombine.high %v10840_v39, %v10840_v39 }
 0x17a   :  { %7995 = vmatprep.subr.bf16.mxu1 %v8776_v50  ;;  %v8823_v50 = vld [vmem:[%s12352_s4 + $0x314] ss:$28 sps:$4 sm:$0xff]  }
 0x17c   :  { %7974 = vmatpush3.bf16.msra.mxu0 %v8777_v53  ;;  %v8821_v53 = vld [vmem:[%s12352_s4 + $0x310] ss:$28 sps:$4 sm:$0xff]  }
 0x17d   :  { %7996 = vmatpush3.bf16.msra.mxu1 %v8778_v54  ;;  %7975 = vmatprep.subr.bf16.mxu0 %v8779_v55  ;;  %v8824_v54 = vld [vmem:[%s12352_s4 + $0x4d0] ss:$28 sps:$4 sm:$0xff]   ;;  %v10875_v55 = vpack.c.bf16 %v3262_v14, %v3262_v14 }
 0x17e   :  { %7997 = vmatprep.subr.bf16.mxu1 %v8780_v62  ;;  %v8871_v14 = vld [vmem:[%s12352_s4 + $0x694] ss:$28 sps:$4 sm:$0xff]  }
 0x180   :  { %7976 = vmatpush3.bf16.msra.mxu0 %v8781_v60 }
 0x181   :  { %7998 = vmatpush3.bf16.msra.mxu1 %v8782_v61  ;;  %8164 = vmatprep.subr.bf16.mxu0 %v9435_v7 }
 0x182   :  { %5794 = vmatprep.subr.bf16.mxu1 %v8785_v63 }
 0x183   :  { %v2822_v13 = vpop.f32.mrf.mxu0  ;;  %3148 = vmatmul.mubr.bf16.vlgmr.msra.gmra.mxu0 %v9702_v18  ;;  %v8791_v18 = vld [vmem:[%s12352_s4 + $0x118] ss:$28 sps:$4 sm:$0xff]  }
 0x184   :  { %3188 = vmatmul.mubr.bf16.vlgmr.msra.gmra.mxu1 %v9914_v35  ;;  %v10776_v17 = vadd.f32 %v2822_v13, %v2782_v9  ;;  %8165 = vmatpush3.bf16.msra.mxu0 %v8786_v4  ;;  %v8794_v35 = vld [vmem:[%s12350_s2 + $0xbb0] ss:$28 sps:$4 sm:$0xff]   ;;  %v8832_v4 = vld [vmem:[%s12352_s4 + $0x49c] ss:$28 sps:$4 sm:$0xff]  }
 0x185   :  { %5795 = vmatpush1.bf16.msra.mxu1 %v8783_v2  ;;  %v2824_v19 = vpop.f32.mrf.mxu0  ;;  %8166 = vmatprep.subr.bf16.mxu0 %v9435_v7  ;;  %v8829_v2 = vld [vmem:[%s12352_s4 + $0x2dc] ss:$28 sps:$4 sm:$0xff]  }
 0x186   :  { %5796 = vmatprep.subr.bf16.mxu1 %v8789_v8  ;;  %v10782_v21 = vadd.f32 %v2824_v19, %v2784_v15  ;;  %8180 = vmatprep.mubr.msk.bf16.mxu0 %vm9436_vm0, %v9435_v7  ;;  %v8830_v8 = vld [vmem:[%s12352_s4 + $0x498] ss:$28 sps:$4 sm:$0xff]   ;;  %v8838_v19 = vld [vmem:[%s12352_s4 + $0x464] ss:$28 sps:$4 sm:$0xff]  }
 0x187   :  { %5826 = vmatprep.mubr.bf16.mxu1 %v10771_v12  ;;  %v2826_v23 = vpop.f32.mrf.mxu0 }
 0x188   :  { %8167 = vmatpush3.bf16.msra.mxu0 %v8790_v11  ;;  %v8839_v23 = vld [vmem:[%s12352_s4 + $0x268] ss:$28 sps:$4 sm:$0xff]  }
 0x189   :  { %5797 = vmatpush1.bf16.msra.mxu1 %v8787_v10  ;;  %v2827_v24 = vpop.f32.mrf.mxu0  ;;  %8168 = vmatprep.subr.bf16.mxu0 %v9435_v7 }
 0x18a   :  { %5798 = vmatprep.subr.bf16.mxu1 %v8793_v20  ;;  %v8833_v20 = vld [vmem:[%s12352_s4 + $0x2a0] ss:$28 sps:$4 sm:$0xff]   ;;  %v8842_v24 = vld [vmem:[%s12352_s4 + $0x428] ss:$28 sps:$4 sm:$0xff]  }
 0x18c   :  { %8169 = vmatpush3.bf16.msra.mxu0 %v8794_v35  ;;  %v8844_v35 = vld [vmem:[%s12352_s4 + $0x42c] ss:$28 sps:$4 sm:$0xff]  }
 0x18d   :  { %5799 = vmatpush1.bf16.msra.mxu1 %v8791_v18  ;;  %8170 = vmatprep.subr.bf16.mxu0 %v9435_v7  ;;  %v8841_v18 = vld [vmem:[%s12352_s4 + $0x26c] ss:$28 sps:$4 sm:$0xff]  }
 0x18e   :  { %5800 = vmatprep.subr.bf16.mxu1 %v8797_v26  ;;  %v8847_v26 = vld [vmem:[%s12352_s4 + $0x234] ss:$28 sps:$4 sm:$0xff]  }
 0x190   :  { %8171 = vmatpush3.bf16.msra.mxu0 %v8798_v29  ;;  %v8845_v29 = vld [vmem:[%s12352_s4 + $0x230] ss:$28 sps:$4 sm:$0xff]  }
 0x191   :  { %5801 = vmatpush1.bf16.msra.mxu1 %v8795_v27  ;;  %8172 = vmatprep.subr.bf16.mxu0 %v9435_v7  ;;  %v8850_v27 = vld [vmem:[%s12352_s4 + $0x3f4] ss:$28 sps:$4 sm:$0xff]  }
 0x192   :  { %5802 = vmatprep.subr.bf16.mxu1 %v8801_v30  ;;  %v8848_v30 = vld [vmem:[%s12352_s4 + $0x3f0] ss:$28 sps:$4 sm:$0xff]  }
 0x194   :  { %8173 = vmatpush3.bf16.msra.mxu0 %v8802_v33  ;;  %v8856_v33 = vld [vmem:[%s12352_s4 + $0x3bc] ss:$28 sps:$4 sm:$0xff]  }
 0x195   :  { %5803 = vmatpush1.bf16.msra.mxu1 %v8799_v31  ;;  %8174 = vmatprep.subr.bf16.mxu0 %v9435_v7  ;;  %v8853_v31 = vld [vmem:[%s12352_s4 + $0x1fc] ss:$28 sps:$4 sm:$0xff]  }
 0x196   :  { %5804 = vmatprep.subr.bf16.mxu1 %v8805_v16  ;;  %v10942_v16 = vld [vmem:[%s12349_s1 + $0x8] sm:$0x3f] }
 0x198   :  { %8175 = vmatpush3.bf16.msra.mxu0 %v8806_v36  ;;  %v8854_v36 = vld [vmem:[%s12352_s4 + $0x3b8] ss:$28 sps:$4 sm:$0xff]  }
 0x199   :  { %5805 = vmatpush1.bf16.msra.mxu1 %v8803_v34  ;;  %8176 = vmatprep.subr.bf16.mxu0 %v9435_v7  ;;  %v8851_v34 = vld [vmem:[%s12352_s4 + $0x1f8] ss:$28 sps:$4 sm:$0xff]  }
 0x19a   :  { %5806 = vmatprep.subr.bf16.mxu1 %v8809_v37  ;;  %v8859_v37 = vld [vmem:[%s12352_s4 + $0x1c4] ss:$28 sps:$4 sm:$0xff]  }
 0x19c   :  { %8177 = vmatpush3.bf16.msra.mxu0 %v8810_v32  ;;  %v8857_v32 = vld [vmem:[%s12352_s4 + $0x1c0] ss:$28 sps:$4 sm:$0xff]  }
 0x19d   :  { %5807 = vmatpush1.bf16.msra.mxu1 %v8807_v3  ;;  %8178 = vmatprep.subr.bf16.mxu0 %v9435_v7  ;;  %v10958_v3 = vrot.slane %v10942_v16, %v9618_v49 }
 0x19e   :  { %5808 = vmatprep.subr.bf16.mxu1 %v8813_v25  ;;  %v8860_v25 = vld [vmem:[%s12352_s4 + $0x380] ss:$28 sps:$4 sm:$0xff]  }
 0x1a0   :  { %8179 = vmatpush3.bf16.msra.mxu0 %v8814_v42  ;;  %v8868_v42 = vld [vmem:[%s12352_s4 + $0x88c] ss:$28 sps:$4 sm:$0xff]  }
 0x1a1   :  { %5809 = vmatpush1.bf16.msra.mxu1 %v8811_v41  ;;  %5835 = vmatprep.subr.bf16.mxu0 %v8820_v45  ;;  %v8865_v41 = vld [vmem:[%s12352_s4 + $0x6cc] ss:$28 sps:$4 sm:$0xff]  }
 0x1a2   :  { %5810 = vmatprep.subr.bf16.mxu1 %v8817_v44  ;;  %v8863_v44 = vld [vmem:[%s12352_s4 + $0x6c8] ss:$28 sps:$4 sm:$0xff]  }
 0x1a3   :  { %v2904_v60 = vpop.f32.mrf.mxu0  ;;  %8181 = vmatmul.mubr.bf16.vlgmr.msra.gmra.mxu0 %v9812_v59  ;;  %v8866_v45 = vld [vmem:[%s12352_s4 + $0x888] ss:$28 sps:$4 sm:$0xff]  }
 0x1a4   :  { %v2863_v62 = vpop.f32.mrf.mxu1  ;;  %5836 = vmatpush1.bf16.msra.mxu0 %v8818_v47  ;;  %5867 = vmatprep.mubr.bf16.mxu0 %v10875_v55  ;;  %v10982_v47 = vpack.c.bf16 %v10729_v56, %v10729_v56  ;;  %v8872_v56 = vld [vmem:[%s12352_s4 + $0x850] ss:$28 sps:$4 sm:$0xff]  }
 0x1a5   :  { %v2864_v61 = vadd.f32 %v2863_v62, %v10776_v17  ;;  %5811 = vmatpush2.bf16.msra.mxu1 %v8815_v46  ;;  %v2906_v1 = vpop.f32.mrf.mxu0  ;;  %5837 = vmatprep.subr.bf16.mxu0 %v8826_v51  ;;  %v8835_v17 = vld [vmem:[%s12352_s4 + $0x2a4] ss:$28 sps:$4 sm:$0xff]   ;;  %v3278_v46 = vcombine.high %v10958_v3, %v10958_v3  ;;  %v8869_v51 = vld [vmem:[%s12352_s4 + $0x690] ss:$28 sps:$4 sm:$0xff]   ;;  %v8880_v62 = vld [vmem:[%s12352_s4 + $0x81c] ss:$28 sps:$4 sm:$0xff]  }
 0x1a6   :  { %v2865_v63 = vpop.f32.mrf.mxu1  ;;  %5812 = vmatprep.subr.bf16.mxu1 %v8823_v50  ;;  %v8874_v50 = vld [vmem:[%s12352_s4 + $0x854] ss:$28 sps:$4 sm:$0xff]  }
 0x1a7   :  { %v10885_v5 = vadd.f32 %v2904_v60, %v2864_v61  ;;  %v2866_v59 = vadd.f32 %v2865_v63, %v10782_v21  ;;  %v2908_v9 = vpop.f32.mrf.mxu0  ;;  %v8836_v21 = vld [vmem:[%s12352_s4 + $0x460] ss:$28 sps:$4 sm:$0xff]   ;;  %v8875_v60 = vld [vmem:[%s12352_s4 + $0x658] ss:$28 sps:$4 sm:$0xff]  }
 0x1a8   :  { %v2867_v10 = vpop.f32.mrf.mxu1  ;;  %5838 = vmatpush1.bf16.msra.mxu0 %v8824_v54  ;;  %v8877_v54 = vld [vmem:[%s12352_s4 + $0x65c] ss:$28 sps:$4 sm:$0xff]   ;;  %v8883_v63 = vld [vmem:[%s12352_s4 + $0x624] ss:$28 sps:$4 sm:$0xff]  }
 0x1a9   :  { %v10895_v11 = vadd.f32 %v2906_v1, %v2866_v59  ;;  %5813 = vmatpush2.bf16.msra.mxu1 %v8821_v53  ;;  %v2909_v13 = vpop.f32.mrf.mxu0  ;;  %5839 = vmatprep.subr.bf16.mxu0 %v8832_v4  ;;  %v10996_v53 = vpack.c.bf16 %v3278_v46, %v3278_v46  ;;  %v8878_v61 = vld [vmem:[%s12352_s4 + $0x818] ss:$28 sps:$4 sm:$0xff]   ;;  %v8886_v1 = vld [vmem:[%s12352_s4 + $0x7e4] ss:$28 sps:$4 sm:$0xff]   ;;  %v8889_v59 = vld [vmem:[%s12352_s4 + $0x5ec] ss:$28 sps:$4 sm:$0xff]  }
 0x1aa   :  { %v2868_v15 = vpop.f32.mrf.mxu1  ;;  %5814 = vmatprep.subr.bf16.mxu1 %v8829_v2  ;;  %v8881_v2 = vld [vmem:[%s12352_s4 + $0x620] ss:$28 sps:$4 sm:$0xff]   ;;  %v8890_v9 = vld [vmem:[%s12352_s4 + $0x7a8] ss:$28 sps:$4 sm:$0xff]   ;;  %v8895_v10 = vld [vmem:[%s12352_s4 + $0x5b4] ss:$28 sps:$4 sm:$0xff]  }
 0x1ab   :  { %v8884_v4 = vld [vmem:[%s12352_s4 + $0x7e0] ss:$28 sps:$4 sm:$0xff]   ;;  %v8898_v13 = vld [vmem:[%s12352_s4 + $0x774] ss:$28 sps:$4 sm:$0xff]  }
 0x1ac   :  { %5840 = vmatpush1.bf16.msra.mxu0 %v8830_v8  ;;  %v8887_v8 = vld [vmem:[%s12352_s4 + $0x5e8] ss:$28 sps:$4 sm:$0xff]   ;;  %v8893_v15 = vld [vmem:[%s12352_s4 + $0x5b0] ss:$28 sps:$4 sm:$0xff]  }
 0x1ad   :  { %5815 = vmatpush2.bf16.msra.mxu1 %v8827_v6  ;;  %5841 = vmatprep.subr.bf16.mxu0 %v8838_v19  ;;  %v8892_v6 = vld [vmem:[%s12352_s4 + $0x7ac] ss:$28 sps:$4 sm:$0xff]   ;;  %v8901_v19 = vld [vmem:[%s12352_s4 + $0x57c] ss:$28 sps:$4 sm:$0xff]  }
 0x1ae   :  { %5816 = vmatprep.subr.bf16.mxu1 %v8835_v17  ;;  %v8896_v17 = vld [vmem:[%s12352_s4 + $0x770] ss:$28 sps:$4 sm:$0xff]  }
 0x1b0   :  { %5842 = vmatpush1.bf16.msra.mxu0 %v8836_v21  ;;  %v8899_v21 = vld [vmem:[%s12352_s4 + $0x578] ss:$28 sps:$4 sm:$0xff]  }
 0x1b1   :  { %5817 = vmatpush2.bf16.msra.mxu1 %v8833_v20  ;;  %5843 = vmatprep.subr.bf16.mxu0 %v8844_v35  ;;  %v8904_v20 = vld [vmem:[%s12352_s4 + $0x73c] ss:$28 sps:$4 sm:$0xff]   ;;  %v8907_v35 = vld [vmem:[%s12352_s4 + $0x544] ss:$28 sps:$4 sm:$0xff]  }
 0x1b2   :  { %5818 = vmatprep.subr.bf16.mxu1 %v8841_v18  ;;  %v8902_v18 = vld [vmem:[%s12352_s4 + $0x738] ss:$28 sps:$4 sm:$0xff]  }
 0x1b4   :  { %5844 = vmatpush1.bf16.msra.mxu0 %v8842_v24  ;;  %v8905_v24 = vld [vmem:[%s12352_s4 + $0x540] ss:$28 sps:$4 sm:$0xff]  }
 0x1b5   :  { %5819 = vmatpush2.bf16.msra.mxu1 %v8839_v23  ;;  %5845 = vmatprep.subr.bf16.mxu0 %v8850_v27  ;;  %v8910_v23 = vld [vmem:[%s12352_s4 + $0x704] ss:$28 sps:$4 sm:$0xff]   ;;  %v550_v27 = vsub.s32 4, %v9600_v43 }
 0x1b6   :  { %5820 = vmatprep.subr.bf16.mxu1 %v8847_v26  ;;  %v8908_v26 = vld [vmem:[%s12352_s4 + $0x700] ss:$28 sps:$4 sm:$0xff]  }
 0x1b8   :  { %5846 = vmatpush1.bf16.msra.mxu0 %v8848_v30  ;;  %v8917_v30 = vld [vmem:[%s12352_s4 + $0xc0c] ss:$28 sps:$4 sm:$0xff]  }
 0x1b9   :  { %5821 = vmatpush2.bf16.msra.mxu1 %v8845_v29  ;;  %5847 = vmatprep.subr.bf16.mxu0 %v8856_v33  ;;  %v8914_v29 = vld [vmem:[%s12352_s4 + $0xa4c] ss:$28 sps:$4 sm:$0xff]  }
 0x1ba   :  { %5822 = vmatprep.subr.bf16.mxu1 %v8853_v31  ;;  %v554_v31 = vsub.s32 5, %v9600_v43  ;;  %v8912_v33 = vld [vmem:[%s12352_s4 + $0xa48] ss:$28 sps:$4 sm:$0xff]  }
 0x1bc   :  { %5848 = vmatpush1.bf16.msra.mxu0 %v8854_v36  ;;  %v11088_v36 = vpack.c.bf16 %v10840_v39, %v10840_v39  ;;  %v555_v39 = vrot.slane %v10744_v0, %v554_v31 }
 0x1bd   :  { %5823 = vmatpush2.bf16.msra.mxu1 %v8851_v34  ;;  %5849 = vmatprep.subr.bf16.mxu0 %v8862_v38  ;;  %v8915_v34 = vld [vmem:[%s12352_s4 + $0xc08] ss:$28 sps:$4 sm:$0xff]   ;;  %v8920_v38 = vld [vmem:[%s12352_s4 + $0xa14] ss:$28 sps:$4 sm:$0xff]  }
 0x1be   :  { %5824 = vmatprep.subr.bf16.mxu1 %v8859_v37  ;;  %v551_v37 = vrot.slane %v10744_v0, %v550_v27  ;;  %v8926_v0 = vld [vmem:[%s12352_s4 + $0x9dc] ss:$28 sps:$4 sm:$0xff]  }
 0x1c0   :  { %5850 = vmatpush1.bf16.msra.mxu0 %v8860_v25  ;;  %v8918_v25 = vld [vmem:[%s12352_s4 + $0xa10] ss:$28 sps:$4 sm:$0xff]  }
 0x1c1   :  { %5825 = vmatpush2.bf16.msra.mxu1 %v8857_v32  ;;  %5851 = vmatprep.subr.bf16.mxu0 %v8865_v41  ;;  %v8923_v32 = vld [vmem:[%s12352_s4 + $0xbd4] ss:$28 sps:$4 sm:$0xff]  }
 0x1c2   :  { %5876 = vmatprep.subr.bf16.mxu1 %v8868_v42  ;;  %v8921_v41 = vld [vmem:[%s12352_s4 + $0xbd0] ss:$28 sps:$4 sm:$0xff]  }
 0x1c4   :  { %5827 = vmatmul.mubr.bf16.vlgmr.msra.gmra.mxu1 %v10982_v47  ;;  %5852 = vmatpush2.bf16.msra.mxu0 %v8863_v44 }
 0x1c5   :  { %5877 = vmatpush1.bf16.msra.mxu1 %v8866_v45  ;;  %5853 = vmatprep.subr.bf16.mxu0 %v8871_v14 }
 0x1c6   :  { %5878 = vmatprep.subr.bf16.mxu1 %v8874_v50  ;;  %5908 = vmatprep.mubr.bf16.mxu1 %v10996_v53  ;;  %v8929_v50 = vld [vmem:[%s12352_s4 + $0xb9c] ss:$28 sps:$4 sm:$0xff]  }
 0x1c8   :  { %5854 = vmatpush2.bf16.msra.mxu0 %v8869_v51 }
 0x1c9   :  { %5879 = vmatpush1.bf16.msra.mxu1 %v8872_v56  ;;  %5855 = vmatprep.subr.bf16.mxu0 %v8877_v54  ;;  %v8924_v54 = vld [vmem:[%s12352_s4 + $0x9d8] ss:$28 sps:$4 sm:$0xff]  }
 0x1ca   :  { %5880 = vmatprep.subr.bf16.mxu1 %v8880_v62  ;;  %v8927_v62 = vld [vmem:[%s12352_s4 + $0xb98] ss:$28 sps:$4 sm:$0xff]  }
 0x1cc   :  { %5856 = vmatpush2.bf16.msra.mxu0 %v8875_v60 }
 0x1cd   :  { %5881 = vmatpush1.bf16.msra.mxu1 %v8878_v61  ;;  %5857 = vmatprep.subr.bf16.mxu0 %v8883_v63 }
 0x1ce   :  { %5882 = vmatprep.subr.bf16.mxu1 %v8886_v1 }
 0x1d0   :  { %5858 = vmatpush2.bf16.msra.mxu0 %v8881_v2 }
 0x1d1   :  { %5883 = vmatpush1.bf16.msra.mxu1 %v8884_v4  ;;  %5859 = vmatprep.subr.bf16.mxu0 %v8889_v59  ;;  %v8932_v4 = vld [vmem:[%s12352_s4 + $0x9a4] ss:$28 sps:$4 sm:$0xff]  }
 0x1d2   :  { %5884 = vmatprep.subr.bf16.mxu1 %v8892_v6  ;;  %v8935_v59 = vld [vmem:[%s12352_s4 + $0xb64] ss:$28 sps:$4 sm:$0xff]  }
 0x1d3   :  { %v8930_v6 = vld [vmem:[%s12352_s4 + $0x9a0] ss:$28 sps:$4 sm:$0xff]  }
 0x1d4   :  { %5860 = vmatpush2.bf16.msra.mxu0 %v8887_v8  ;;  %v8933_v8 = vld [vmem:[%s12352_s4 + $0xb60] ss:$28 sps:$4 sm:$0xff]  }
 0x1d5   :  { %5885 = vmatpush1.bf16.msra.mxu1 %v8890_v9  ;;  %5861 = vmatprep.subr.bf16.mxu0 %v8895_v10  ;;  %v8938_v9 = vld [vmem:[%s12352_s4 + $0x96c] ss:$28 sps:$4 sm:$0xff]  }
 0x1d6   :  { %5886 = vmatprep.subr.bf16.mxu1 %v8898_v13  ;;  %v8941_v10 = vld [vmem:[%s12352_s4 + $0xb2c] ss:$28 sps:$4 sm:$0xff]  }
 0x1d7   :  { %v8936_v13 = vld [vmem:[%s12352_s4 + $0x968] ss:$28 sps:$4 sm:$0xff]  }
 0x1d8   :  { %5862 = vmatpush2.bf16.msra.mxu0 %v8893_v15  ;;  %v8939_v15 = vld [vmem:[%s12352_s4 + $0xb28] ss:$28 sps:$4 sm:$0xff]  }
 0x1d9   :  { %5887 = vmatpush1.bf16.msra.mxu1 %v8896_v17  ;;  %5863 = vmatprep.subr.bf16.mxu0 %v8901_v19  ;;  %v8944_v17 = vld [vmem:[%s12352_s4 + $0x934] ss:$28 sps:$4 sm:$0xff]  }
 0x1da   :  { %5888 = vmatprep.subr.bf16.mxu1 %v8904_v20  ;;  %v8947_v19 = vld [vmem:[%s12352_s4 + $0xaf4] ss:$28 sps:$4 sm:$0xff]  }
 0x1db   :  { %v8942_v20 = vld [vmem:[%s12352_s4 + $0x930] ss:$28 sps:$4 sm:$0xff]  }
 0x1dc   :  { %5864 = vmatpush2.bf16.msra.mxu0 %v8899_v21  ;;  %v8945_v21 = vld [vmem:[%s12352_s4 + $0xaf0] ss:$28 sps:$4 sm:$0xff]  }
 0x1dd   :  { %5889 = vmatpush1.bf16.msra.mxu1 %v8902_v18  ;;  %5865 = vmatprep.subr.bf16.mxu0 %v8907_v35  ;;  %v8950_v18 = vld [vmem:[%s12352_s4 + $0x8fc] ss:$28 sps:$4 sm:$0xff]  }
 0x1de   :  { %5890 = vmatprep.subr.bf16.mxu1 %v8910_v23  ;;  %v8953_v35 = vld [vmem:[%s12352_s4 + $0xabc] ss:$28 sps:$4 sm:$0xff]   ;;  %v3263_v23 = vcombine.high %v10942_v16, %v10942_v16  ;;  %v8959_v16 = vld [vmem:[%s12352_s4 + $0xa84] ss:$28 sps:$4 sm:$0xff]  }
 0x1e0   :  { %5866 = vmatpush2.bf16.msra.mxu0 %v8905_v24  ;;  %v8948_v24 = vld [vmem:[%s12352_s4 + $0x8f8] ss:$28 sps:$4 sm:$0xff]  }
 0x1e1   :  { %5891 = vmatpush1.bf16.msra.mxu1 %v8908_v26  ;;  %5917 = vmatprep.subr.bf16.mxu0 %v8917_v30  ;;  %v8951_v26 = vld [vmem:[%s12352_s4 + $0xab8] ss:$28 sps:$4 sm:$0xff]   ;;  %v3277_v30 = vrot.slane %v3263_v23, %v9618_v49  ;;  %v9003_v23 = vld [vmem:[%s12352_s4 + $0x8] ss:$28 sps:$4 sm:$0xff]  }
 0x1e2   :  { %5892 = vmatprep.subr.bf16.mxu1 %v8914_v29  ;;  %v8956_v29 = vld [vmem:[%s12352_s4 + $0x8c4] ss:$28 sps:$4 sm:$0xff]   ;;  %v8966_v49 = vld [vmem:[%s12352_s4 + $0x514] ss:$28 sps:$4 sm:$0xff]  }
 0x1e3   :  { %v2945_v42 = vpop.f32.mrf.mxu0  ;;  %5868 = vmatmul.mubr.bf16.vlgmr.msra.gmra.mxu0 %v11088_v36 }
 0x1e4   :  { %v2986_v44 = vpop.f32.mrf.mxu1  ;;  %v2946_v45 = vadd.f32 %v2945_v42, %v551_v37  ;;  %5918 = vmatpush1.bf16.msra.mxu0 %v8915_v34  ;;  %5949 = vmatprep.mubr.bf16.mxu0 %v9434_v28  ;;  %v8957_v34 = vld [vmem:[%s12352_s4 + $0xa80] ss:$28 sps:$4 sm:$0xff]   ;;  %v8963_v37 = vld [vmem:[%s12352_s4 + $0x194] ss:$28 sps:$4 sm:$0xff]  }
 0x1e5   :  { %5893 = vmatpush2.bf16.msra.mxu1 %v8912_v33  ;;  %v2947_v46 = vpop.f32.mrf.mxu0  ;;  %5919 = vmatprep.subr.bf16.mxu0 %v8923_v32  ;;  %v8954_v33 = vld [vmem:[%s12352_s4 + $0x8c0] ss:$28 sps:$4 sm:$0xff]   ;;  %v8964_v32 = vld [vmem:[%s12352_s4 + $0x510] ss:$28 sps:$4 sm:$0xff]  }
 0x1e6   :  { %v2988_v14 = vpop.f32.mrf.mxu1  ;;  %5894 = vmatprep.subr.bf16.mxu1 %v8920_v38  ;;  %v11115_v51 = vadd.f32 %v2986_v44, %v2946_v45  ;;  %v2948_v56 = vadd.f32 %v2947_v46, %v555_v39  ;;  %v8961_v38 = vld [vmem:[%s12352_s4 + $0x190] ss:$28 sps:$4 sm:$0xff]   ;;  %v11203_v39 = vpack.c.bf16 %v10958_v3, %v10958_v3  ;;  %v8972_v42 = vld [vmem:[%s12352_s4 + $0x4dc] ss:$28 sps:$4 sm:$0xff]  }
 0x1e7   :  { %v2949_v60 = vpop.f32.mrf.mxu0  ;;  %v8967_v44 = vld [vmem:[%s12352_s4 + $0x158] ss:$28 sps:$4 sm:$0xff]  }
 0x1e8   :  { %v2990_v61 = vpop.f32.mrf.mxu1  ;;  %v11124_v63 = vadd.f32 %v2988_v14, %v2948_v56  ;;  %5920 = vmatpush1.bf16.msra.mxu0 %v8921_v41  ;;  %v8969_v41 = vld [vmem:[%s12352_s4 + $0x15c] ss:$28 sps:$4 sm:$0xff]   ;;  %v8975_v14 = vld [vmem:[%s12352_s4 + $0x124] ss:$28 sps:$4 sm:$0xff]   ;;  %v8981_v60 = vld [vmem:[%s12352_s4 + $0xec] ss:$28 sps:$4 sm:$0xff]  }
 0x1e9   :  { %5895 = vmatpush2.bf16.msra.mxu1 %v8918_v25  ;;  %v2950_v1 = vpop.f32.mrf.mxu0  ;;  %5921 = vmatprep.subr.bf16.mxu0 %v8929_v50  ;;  %v11205_v25 = vpack.c.bf16 %v3277_v30, %v3277_v30  ;;  %v8970_v45 = vld [vmem:[%s12352_s4 + $0x4d8] ss:$28 sps:$4 sm:$0xff]   ;;  %v8973_v50 = vld [vmem:[%s12352_s4 + $0x120] ss:$28 sps:$4 sm:$0xff]   ;;  %v8984_v61 = vld [vmem:[%s12352_s4 + $0x46c] ss:$28 sps:$4 sm:$0xff]  }
 0x1ea   :  { %v2991_v2 = vpop.f32.mrf.mxu1  ;;  %5896 = vmatprep.subr.bf16.mxu1 %v8926_v0  ;;  %v8978_v0 = vld [vmem:[%s12352_s4 + $0x4a4] ss:$28 sps:$4 sm:$0xff]   ;;  %v9012_v30 = vld [vmem:[%s12352_s4 + $0x6d0] ss:$28 sps:$4 sm:$0xff]  }
 0x1eb   :  { %v8976_v56 = vld [vmem:[%s12352_s4 + $0x4a0] ss:$28 sps:$4 sm:$0xff]   ;;  %v8979_v1 = vld [vmem:[%s12352_s4 + $0xe8] ss:$28 sps:$4 sm:$0xff]  }
 0x1ec   :  { %5922 = vmatpush1.bf16.msra.mxu0 %v8927_v62  ;;  %v8982_v2 = vld [vmem:[%s12352_s4 + $0x468] ss:$28 sps:$4 sm:$0xff]  }
 0x1ed   :  { %5897 = vmatpush2.bf16.msra.mxu1 %v8924_v54  ;;  %5923 = vmatprep.subr.bf16.mxu0 %v8935_v59  ;;  %v8990_v59 = vld [vmem:[%s12352_s4 + $0x434] ss:$28 sps:$4 sm:$0xff]  }
 0x1ee   :  { %5898 = vmatprep.subr.bf16.mxu1 %v8932_v4  ;;  %v8987_v4 = vld [vmem:[%s12352_s4 + $0xb4] ss:$28 sps:$4 sm:$0xff]  }
 0x1f0   :  { %5924 = vmatpush1.bf16.msra.mxu0 %v8933_v8  ;;  %v8988_v8 = vld [vmem:[%s12352_s4 + $0x430] ss:$28 sps:$4 sm:$0xff]  }
 0x1f1   :  { %5899 = vmatpush2.bf16.msra.mxu1 %v8930_v6  ;;  %5925 = vmatprep.subr.bf16.mxu0 %v8941_v10  ;;  %v8985_v6 = vld [vmem:[%s12352_s4 + $0xb0] ss:$28 sps:$4 sm:$0xff]   ;;  %v8996_v10 = vld [vmem:[%s12352_s4 + $0x3fc] ss:$28 sps:$4 sm:$0xff]  }
 0x1f2   :  { %5900 = vmatprep.subr.bf16.mxu1 %v8938_v9  ;;  %v8993_v9 = vld [vmem:[%s12352_s4 + $0x7c] ss:$28 sps:$4 sm:$0xff]  }
 0x1f4   :  { %5926 = vmatpush1.bf16.msra.mxu0 %v8939_v15  ;;  %v8994_v15 = vld [vmem:[%s12352_s4 + $0x3f8] ss:$28 sps:$4 sm:$0xff]  }
 0x1f5   :  { %5901 = vmatpush2.bf16.msra.mxu1 %v8936_v13  ;;  %5927 = vmatprep.subr.bf16.mxu0 %v8947_v19  ;;  %v8991_v13 = vld [vmem:[%s12352_s4 + $0x78] ss:$28 sps:$4 sm:$0xff]   ;;  %v9002_v19 = vld [vmem:[%s12352_s4 + $0x3c4] ss:$28 sps:$4 sm:$0xff]  }
 0x1f6   :  { %5902 = vmatprep.subr.bf16.mxu1 %v8944_v17  ;;  %v8999_v17 = vld [vmem:[%s12352_s4 + $0x44] ss:$28 sps:$4 sm:$0xff]  }
 0x1f8   :  { %5928 = vmatpush1.bf16.msra.mxu0 %v8945_v21  ;;  %v9000_v21 = vld [vmem:[%s12352_s4 + $0x3c0] ss:$28 sps:$4 sm:$0xff]  }
 0x1f9   :  { %5903 = vmatpush2.bf16.msra.mxu1 %v8942_v20  ;;  %5929 = vmatprep.subr.bf16.mxu0 %v8953_v35  ;;  %v8997_v20 = vld [vmem:[%s12352_s4 + $0x40] ss:$28 sps:$4 sm:$0xff]   ;;  %v9008_v35 = vld [vmem:[%s12352_s4 + $0x38c] ss:$28 sps:$4 sm:$0xff]  }
 0x1fa   :  { %5904 = vmatprep.subr.bf16.mxu1 %v8950_v18  ;;  %v9005_v18 = vld [vmem:[%s12352_s4 + $0xc] ss:$28 sps:$4 sm:$0xff]  }
 0x1fc   :  { %5930 = vmatpush1.bf16.msra.mxu0 %v8951_v26  ;;  %v9011_v26 = vld [vmem:[%s12352_s4 + $0x354] ss:$28 sps:$4 sm:$0xff]  }
 0x1fd   :  { %5905 = vmatpush2.bf16.msra.mxu1 %v8948_v24  ;;  %5931 = vmatprep.subr.bf16.mxu0 %v8959_v16  ;;  %v9006_v24 = vld [vmem:[%s12352_s4 + $0x388] ss:$28 sps:$4 sm:$0xff]   ;;  %v9009_v16 = vld [vmem:[%s12352_s4 + $0x350] ss:$28 sps:$4 sm:$0xff]  }
 0x1fe   :  { %5906 = vmatprep.subr.bf16.mxu1 %v8956_v29  ;;  %v9014_v29 = vld [vmem:[%s12352_s4 + $0x6d4] ss:$28 sps:$4 sm:$0xff]  }
 0x200   :  { %5932 = vmatpush1.bf16.msra.mxu0 %v8957_v34  ;;  %v9020_v34 = vld [vmem:[%s12352_s4 + $0x69c] ss:$28 sps:$4 sm:$0xff]  }
 0x201   :  { %5907 = vmatpush2.bf16.msra.mxu1 %v8954_v33  ;;  %5958 = vmatprep.subr.bf16.mxu0 %v8963_v37  ;;  %v9017_v33 = vld [vmem:[%s12352_s4 + $0x31c] ss:$28 sps:$4 sm:$0xff]  }
 0x202   :  { %5999 = vmatprep.subr.bf16.mxu1 %v8966_v49  ;;  %v9015_v37 = vld [vmem:[%s12352_s4 + $0x318] ss:$28 sps:$4 sm:$0xff]  }
 0x203   :  { %5950 = vmatmul.mubr.bf16.vlgmr.msra.gmra.mxu0 %v11205_v25  ;;  %v9018_v49 = vld [vmem:[%s12352_s4 + $0x698] ss:$28 sps:$4 sm:$0xff]  }
 0x204   :  { %5909 = vmatmul.mubr.bf16.vlgmr.msra.gmra.mxu1 %v11203_v39  ;;  %v11218_v3 = vpop.f32.mrf.mxu1  ;;  %5959 = vmatpush1.bf16.msra.mxu0 %v8961_v38 }
 0x205   :  { %6000 = vmatpush1.bf16.msra.mxu1 %v8964_v32  ;;  %5960 = vmatprep.subr.bf16.mxu0 %v8969_v41 }
 0x206   :  { %v11223_v46 = vpop.f32.mrf.mxu1  ;;  %6001 = vmatprep.subr.bf16.mxu1 %v8972_v42  ;;  %5990 = vmatprep.mubr.bf16.mxu0 %v10771_v12 }
 0x207   :  { %6031 = vmatprep.mubr.bf16.mxu1 %v10875_v55 }
 0x208   :  { %v3072_v54 = vpop.f32.mrf.mxu1  ;;  %5961 = vmatpush1.bf16.msra.mxu0 %v8967_v44 }
 0x209   :  { %6002 = vmatpush1.bf16.msra.mxu1 %v8970_v45  ;;  %5962 = vmatprep.subr.bf16.mxu0 %v8975_v14  ;;  %v9023_v45 = vld [vmem:[%s12352_s4 + $0x2e4] ss:$28 sps:$4 sm:$0xff]  }
 0x20a   :  { %v3073_v62 = vpop.f32.mrf.mxu1  ;;  %6003 = vmatprep.subr.bf16.mxu1 %v8978_v0  ;;  %v9026_v14 = vld [vmem:[%s12352_s4 + $0x664] ss:$28 sps:$4 sm:$0xff]  }
 0x20c   :  { %5963 = vmatpush1.bf16.msra.mxu0 %v8973_v50 }
 0x20d   :  { %6004 = vmatpush1.bf16.msra.mxu1 %v8976_v56  ;;  %5964 = vmatprep.subr.bf16.mxu0 %v8981_v60  ;;  %v9021_v56 = vld [vmem:[%s12352_s4 + $0x2e0] ss:$28 sps:$4 sm:$0xff]  }
 0x20e   :  { %6005 = vmatprep.subr.bf16.mxu1 %v8984_v61 }
 0x210   :  { %5965 = vmatpush1.bf16.msra.mxu0 %v8979_v1 }
 0x211   :  { %6006 = vmatpush1.bf16.msra.mxu1 %v8982_v2  ;;  %5966 = vmatprep.subr.bf16.mxu0 %v8987_v4  ;;  %v9032_v2 = vld [vmem:[%s12352_s4 + $0x62c] ss:$28 sps:$4 sm:$0xff]  }
 0x212   :  { %6007 = vmatprep.subr.bf16.mxu1 %v8990_v59  ;;  %v9030_v4 = vld [vmem:[%s12352_s4 + $0x628] ss:$28 sps:$4 sm:$0xff]   ;;  %v9035_v59 = vld [vmem:[%s12352_s4 + $0x274] ss:$28 sps:$4 sm:$0xff]  }
 0x214   :  { %5967 = vmatpush1.bf16.msra.mxu0 %v8985_v6  ;;  %v9038_v6 = vld [vmem:[%s12352_s4 + $0x5f4] ss:$28 sps:$4 sm:$0xff]  }
 0x215   :  { %6008 = vmatpush1.bf16.msra.mxu1 %v8988_v8  ;;  %5968 = vmatprep.subr.bf16.mxu0 %v8993_v9  ;;  %v9033_v8 = vld [vmem:[%s12352_s4 + $0x270] ss:$28 sps:$4 sm:$0xff]  }
 0x216   :  { %6009 = vmatprep.subr.bf16.mxu1 %v8996_v10  ;;  %v9036_v9 = vld [vmem:[%s12352_s4 + $0x5f0] ss:$28 sps:$4 sm:$0xff]   ;;  %v9041_v10 = vld [vmem:[%s12352_s4 + $0x23c] ss:$28 sps:$4 sm:$0xff]  }
 0x218   :  { %5969 = vmatpush1.bf16.msra.mxu0 %v8991_v13  ;;  %v9044_v13 = vld [vmem:[%s12352_s4 + $0x5bc] ss:$28 sps:$4 sm:$0xff]  }
 0x219   :  { %6010 = vmatpush1.bf16.msra.mxu1 %v8994_v15  ;;  %5970 = vmatprep.subr.bf16.mxu0 %v8999_v17  ;;  %v9039_v15 = vld [vmem:[%s12352_s4 + $0x238] ss:$28 sps:$4 sm:$0xff]  }
 0x21a   :  { %6011 = vmatprep.subr.bf16.mxu1 %v9002_v19  ;;  %v9042_v17 = vld [vmem:[%s12352_s4 + $0x5b8] ss:$28 sps:$4 sm:$0xff]   ;;  %v9047_v19 = vld [vmem:[%s12352_s4 + $0x204] ss:$28 sps:$4 sm:$0xff]  }
 0x21c   :  { %5971 = vmatpush1.bf16.msra.mxu0 %v8997_v20  ;;  %v9050_v20 = vld [vmem:[%s12352_s4 + $0x584] ss:$28 sps:$4 sm:$0xff]  }
 0x21d   :  { %6012 = vmatpush1.bf16.msra.mxu1 %v9000_v21  ;;  %5972 = vmatprep.subr.bf16.mxu0 %v9005_v18  ;;  %v9045_v21 = vld [vmem:[%s12352_s4 + $0x200] ss:$28 sps:$4 sm:$0xff]  }
 0x21e   :  { %6013 = vmatprep.subr.bf16.mxu1 %v9008_v35  ;;  %v9048_v18 = vld [vmem:[%s12352_s4 + $0x580] ss:$28 sps:$4 sm:$0xff]  }
 0x220   :  { %5973 = vmatpush1.bf16.msra.mxu0 %v9003_v23 }
 0x221   :  { %6014 = vmatpush1.bf16.msra.mxu1 %v9006_v24  ;;  %5974 = vmatprep.subr.bf16.mxu0 %v9011_v26 }
 0x222   :  { %6015 = vmatprep.subr.bf16.mxu1 %v9014_v29 }
 0x223   :  { %v3027_v38 = vpop.f32.mrf.mxu0 }
 0x224   :  { %v7955_v32 = vpop.f32.mrf.mxu1  ;;  %v3028_v41 = vadd.f32 %v3027_v38, %v11115_v51  ;;  %5975 = vmatpush2.bf16.msra.mxu0 %v9009_v16 }
 0x225   :  { %6016 = vmatpush2.bf16.msra.mxu1 %v9012_v30  ;;  %v3029_v42 = vpop.f32.mrf.mxu0  ;;  %5976 = vmatprep.subr.bf16.mxu0 %v9017_v33 }
 0x226   :  { %v7956_v44 = vpop.f32.mrf.mxu1  ;;  %6017 = vmatprep.subr.bf16.mxu1 %v9020_v34  ;;  %v11331_v0 = vadd.f32 %v11218_v3, %v3028_v41  ;;  %v3030_v50 = vadd.f32 %v3029_v42, %v11124_v63  ;;  %v9024_v3 = vld [vmem:[%s12352_s4 + $0x660] ss:$28 sps:$4 sm:$0xff]   ;;  %v9029_v63 = vld [vmem:[%s12352_s4 + $0x2ac] ss:$28 sps:$4 sm:$0xff]  }
 0x227   :  { %v11334_v51 = vadd.f32 %v7956_v44, %v7955_v32  ;;  %v3031_v54 = vpop.f32.mrf.mxu0 }
 0x228   :  { %v7958_v62 = vpop.f32.mrf.mxu1  ;;  %v11340_v60 = vadd.f32 %v11223_v46, %v3030_v50  ;;  %5977 = vmatpush2.bf16.msra.mxu0 %v9015_v37  ;;  %v9027_v46 = vld [vmem:[%s12352_s4 + $0x2a8] ss:$28 sps:$4 sm:$0xff]  }
 0x229   :  { %6018 = vmatpush2.bf16.msra.mxu1 %v9018_v49  ;;  %v3032_v61 = vpop.f32.mrf.mxu0  ;;  %5978 = vmatprep.subr.bf16.mxu0 %v9023_v45 }
 0x22a   :  { %v7959_v1 = vpop.f32.mrf.mxu1  ;;  %6019 = vmatprep.subr.bf16.mxu1 %v9026_v14 }
 0x22c   :  { %5979 = vmatpush2.bf16.msra.mxu0 %v9021_v56 }
 0x22d   :  { %6020 = vmatpush2.bf16.msra.mxu1 %v9024_v3  ;;  %5980 = vmatprep.subr.bf16.mxu0 %v9029_v63 }
 0x22e   :  { %6021 = vmatprep.subr.bf16.mxu1 %v9032_v2 }
 0x230   :  { %5981 = vmatpush2.bf16.msra.mxu0 %v9027_v46 }
 0x231   :  { %6022 = vmatpush2.bf16.msra.mxu1 %v9030_v4  ;;  %5982 = vmatprep.subr.bf16.mxu0 %v9035_v59 }
 0x232   :  { %6023 = vmatprep.subr.bf16.mxu1 %v9038_v6 }
 0x234   :  { %5983 = vmatpush2.bf16.msra.mxu0 %v9033_v8 }
 0x235   :  { %6024 = vmatpush2.bf16.msra.mxu1 %v9036_v9  ;;  %5984 = vmatprep.subr.bf16.mxu0 %v9041_v10 }
 0x236   :  { %6025 = vmatprep.subr.bf16.mxu1 %v9044_v13 }
 0x238   :  { %5985 = vmatpush2.bf16.msra.mxu0 %v9039_v15 }
 0x239   :  { %6026 = vmatpush2.bf16.msra.mxu1 %v9042_v17 }
 0x23a   :  { %13 = vsyncpa [#allocation3], 0  ;;  %5986 = vmatprep.subr.bf16.mxu0 %v9047_v19  ;;  %6027 = vmatprep.subr.bf16.mxu1 %v9050_v20  ;;  %v9053_v35 = vld [vmem:[%s12352_s4 + $0x1cc] ss:$28 sps:$4 sm:$0xff]   ;;  %v9059_v29 = vld [vmem:[%s12352_s4 + $0x894] ss:$28 sps:$4 sm:$0xff]  }
 0x23b   :  { %v9056_v23 = vld [vmem:[%s12352_s4 + $0x54c] ss:$28 sps:$4 sm:$0xff]   ;;  %v9062_v16 = vld [vmem:[%s12352_s4 + $0xc14] ss:$28 sps:$4 sm:$0xff]   ;;  %v558_v30 = vsub.s32 6, %v9600_v43  ;;  %v9410_v38 = vld [vmem:[%s12351_s3] sm:$0xff] }
 0x23c   :  { %5987 = vmatpush2.bf16.msra.mxu0 %v9045_v21  ;;  %v9051_v24 = vld [vmem:[%s12352_s4 + $0x1c8] ss:$28 sps:$4 sm:$0xff]   ;;  %v9057_v33 = vld [vmem:[%s12352_s4 + $0x890] ss:$28 sps:$4 sm:$0xff]   ;;  %v9065_v37 = vld [vmem:[%s12352_s4 + $0x85c] ss:$28 sps:$4 sm:$0xff]  }
 0x23d   :  { %6028 = vmatpush2.bf16.msra.mxu1 %v9048_v18  ;;  %v9054_v26 = vld [vmem:[%s12352_s4 + $0x548] ss:$28 sps:$4 sm:$0xff]   ;;  %5988 = vmatprep.subr.bf16.mxu0 %v9053_v35  ;;  %v9060_v34 = vld [vmem:[%s12352_s4 + $0xc10] ss:$28 sps:$4 sm:$0xff]   ;;  %v9068_v49 = vld [vmem:[%s12352_s4 + $0xbdc] ss:$28 sps:$4 sm:$0xff]   ;;  %v559_v32 = vrot.slane %v9410_v38, %v558_v30 }
 0x23e   :  { %6029 = vmatprep.subr.bf16.mxu1 %v9056_v23  ;;  %v9063_v44 = vld [vmem:[%s12352_s4 + $0x858] ss:$28 sps:$4 sm:$0xff]   ;;  %v9071_v56 = vld [vmem:[%s12352_s4 + $0x824] ss:$28 sps:$4 sm:$0xff]   ;;  %v9077_v6 = vld [vmem:[%s12352_s4 + $0x7ec] ss:$28 sps:$4 sm:$0xff]  }
 0x23f   :  { %v9066_v45 = vld [vmem:[%s12352_s4 + $0xbd8] ss:$28 sps:$4 sm:$0xff]   ;;  %v9074_v54 = vld [vmem:[%s12352_s4 + $0xba4] ss:$28 sps:$4 sm:$0xff]   ;;  %v3110_v62 = vadd.f32 %v11334_v51, %v559_v32  ;;  %v9080_v8 = vld [vmem:[%s12352_s4 + $0xb6c] ss:$28 sps:$4 sm:$0xff]  }
 0x240   :  { %5989 = vmatpush2.bf16.msra.mxu0 %v9051_v24  ;;  %v9069_v46 = vld [vmem:[%s12352_s4 + $0x820] ss:$28 sps:$4 sm:$0xff]   ;;  %v9075_v10 = vld [vmem:[%s12352_s4 + $0x7e8] ss:$28 sps:$4 sm:$0xff]   ;;  %v9083_v15 = vld [vmem:[%s12352_s4 + $0x7b4] ss:$28 sps:$4 sm:$0xff]  }
 0x241   :  { %6030 = vmatpush2.bf16.msra.mxu1 %v9054_v26  ;;  %6040 = vmatprep.subr.bf16.mxu0 %v9059_v29  ;;  %v9072_v4 = vld [vmem:[%s12352_s4 + $0xba0] ss:$28 sps:$4 sm:$0xff]   ;;  %v9078_v13 = vld [vmem:[%s12352_s4 + $0xb68] ss:$28 sps:$4 sm:$0xff]   ;;  %v9086_v17 = vld [vmem:[%s12352_s4 + $0xb34] ss:$28 sps:$4 sm:$0xff]  }
 0x242   :  { %6081 = vmatprep.subr.bf16.mxu1 %v9062_v16  ;;  %v9081_v19 = vld [vmem:[%s12352_s4 + $0x7b0] ss:$28 sps:$4 sm:$0xff]   ;;  %v9089_v21 = vld [vmem:[%s12352_s4 + $0x77c] ss:$28 sps:$4 sm:$0xff]   ;;  %v9095_v24 = vld [vmem:[%s12352_s4 + $0x744] ss:$28 sps:$4 sm:$0xff]  }
 0x243   :  { %v7977_v41 = vpop.f32.mrf.mxu0  ;;  %5991 = vmatmul.mubr.bf16.vlgmr.msra.gmra.mxu0 %v10982_v47  ;;  %v9084_v20 = vld [vmem:[%s12352_s4 + $0xb30] ss:$28 sps:$4 sm:$0xff]   ;;  %v9092_v18 = vld [vmem:[%s12352_s4 + $0xafc] ss:$28 sps:$4 sm:$0xff]   ;;  %v9098_v26 = vld [vmem:[%s12352_s4 + $0xac4] ss:$28 sps:$4 sm:$0xff]  }
 0x244   :  { %v7999_v42 = vpop.f32.mrf.mxu1  ;;  %6032 = vmatmul.mubr.bf16.vlgmr.msra.gmra.mxu1 %v11088_v36  ;;  %6041 = vmatpush1.bf16.msra.mxu0 %v9057_v33  ;;  %v9087_v35 = vld [vmem:[%s12352_s4 + $0x778] ss:$28 sps:$4 sm:$0xff]   ;;  %v9093_v29 = vld [vmem:[%s12352_s4 + $0x740] ss:$28 sps:$4 sm:$0xff]   ;;  %v9101_v33 = vld [vmem:[%s12352_s4 + $0x70c] ss:$28 sps:$4 sm:$0xff]  }
 0x245   :  { %6082 = vmatpush1.bf16.msra.mxu1 %v9060_v34  ;;  %v7978_v14 = vpop.f32.mrf.mxu0  ;;  %6042 = vmatprep.subr.bf16.mxu0 %v9065_v37  ;;  %v9090_v23 = vld [vmem:[%s12352_s4 + $0xaf8] ss:$28 sps:$4 sm:$0xff]   ;;  %v9096_v16 = vld [vmem:[%s12352_s4 + $0xac0] ss:$28 sps:$4 sm:$0xff]   ;;  %v9104_v34 = vld [vmem:[%s12352_s4 + $0xa8c] ss:$28 sps:$4 sm:$0xff]  }
 0x246   :  { %v8000_v50 = vpop.f32.mrf.mxu1  ;;  %6083 = vmatprep.subr.bf16.mxu1 %v9068_v49  ;;  %v7979_v3 = vadd.f32 %v7978_v14, %v7977_v41  ;;  %6113 = vmatprep.mubr.bf16.mxu1 %v9434_v28  ;;  %v9099_v37 = vld [vmem:[%s12352_s4 + $0x708] ss:$28 sps:$4 sm:$0xff]   ;;  %v9107_v38 = vld [vmem:[%s12352_s4 + $0xa54] ss:$28 sps:$4 sm:$0xff]   ;;  %v9110_v32 = vld [vmem:[%s12352_s4 + $0x19c] ss:$28 sps:$4 sm:$0xff]  }
 0x247   :  { %v8001_v61 = vadd.f32 %v8000_v50, %v7999_v42  ;;  %6072 = vmatprep.mubr.bf16.mxu0 %v10996_v53  ;;  %v7980_v1 = vpop.f32.mrf.mxu0  ;;  %v9102_v49 = vld [vmem:[%s12352_s4 + $0xa88] ss:$28 sps:$4 sm:$0xff]   ;;  %v9105_v41 = vld [vmem:[%s12352_s4 + $0xa50] ss:$28 sps:$4 sm:$0xff]   ;;  %v9108_v42 = vld [vmem:[%s12352_s4 + $0x198] ss:$28 sps:$4 sm:$0xff]  }
 0x248   :  { %v8002_v63 = vpop.f32.mrf.mxu1  ;;  %v3150_v2 = vadd.f32 %v7979_v3, %v3110_v62  ;;  %6043 = vmatpush1.bf16.msra.mxu0 %v9063_v44  ;;  %v9113_v44 = vld [vmem:[%s12352_s4 + $0xa1c] ss:$28 sps:$4 sm:$0xff]   ;;  %v9119_v3 = vld [vmem:[%s12352_s4 + $0x9e4] ss:$28 sps:$4 sm:$0xff]   ;;  %s9437_s19 = smov [#allocation2]   ;;  %vm7082_vm1 = vcmask 9216  }
 0x249   :  { %6084 = vmatpush1.bf16.msra.mxu1 %v9066_v45  ;;  %v7981_v51 = vpop.f32.mrf.mxu0  ;;  %6044 = vmatprep.subr.bf16.mxu0 %v9071_v56  ;;  %v9116_v45 = vld [vmem:[%s12352_s4 + $0x164] ss:$28 sps:$4 sm:$0xff]   ;;  %v9111_v56 = vld [vmem:[%s12352_s4 + $0xa18] ss:$28 sps:$4 sm:$0xff]   ;;  %s7090_s20 = sshll.u32 %s9437_s19, 4  ;;  %s7091_s20 = int_to_ptr.vmem [resolvable:$true] %s7090_s20 }
 0x24a   :  { %v8003_v59 = vpop.f32.mrf.mxu1  ;;  %6085 = vmatprep.subr.bf16.mxu1 %v9074_v54  ;;  %v3190_v9 = vadd.f32 %v8001_v61, %v3150_v2  ;;  %v9114_v54 = vld [vmem:[%s12352_s4 + $0x160] ss:$28 sps:$4 sm:$0xff]   ;;  %v9122_v61 = vld [vmem:[%s12352_s4 + $0x12c] ss:$28 sps:$4 sm:$0xff]   ;;  %v9128_v51 = vld [vmem:[%s12352_s4 + $0xf4] ss:$28 sps:$4 sm:$0xff]   ;;  %p9416_p1 = scmp.lt.s32.totalorder %s7091_s20, %s7091_s20 }
 0x24b   :  { %v9117_v63 = vld [vmem:[%s12352_s4 + $0x9e0] ss:$28 sps:$4 sm:$0xff]   ;;  %v9120_v2 = vld [vmem:[%s12352_s4 + $0x128] ss:$28 sps:$4 sm:$0xff]  }
 0x24c   :  { %6045 = vmatpush1.bf16.msra.mxu0 %v9069_v46  ;;  %v9123_v59 = vld [vmem:[%s12352_s4 + $0x9a8] ss:$28 sps:$4 sm:$0xff]  }
 0x24d   :  { %6086 = vmatpush1.bf16.msra.mxu1 %v9072_v4  ;;  %6046 = vmatprep.subr.bf16.mxu0 %v9077_v6  ;;  %v9125_v4 = vld [vmem:[%s12352_s4 + $0x9ac] ss:$28 sps:$4 sm:$0xff]  }
 0x24e   :  { %6087 = vmatprep.subr.bf16.mxu1 %v9080_v8  ;;  %v9126_v6 = vld [vmem:[%s12352_s4 + $0xf0] ss:$28 sps:$4 sm:$0xff]  }
 0x24f   :  { %v9131_v8 = vld [vmem:[%s12352_s4 + $0x974] ss:$28 sps:$4 sm:$0xff]  }
 0x250   :  { %6047 = vmatpush1.bf16.msra.mxu0 %v9075_v10  ;;  %v9129_v10 = vld [vmem:[%s12352_s4 + $0x970] ss:$28 sps:$4 sm:$0xff]  }
 0x251   :  { %6088 = vmatpush1.bf16.msra.mxu1 %v9078_v13  ;;  %6048 = vmatprep.subr.bf16.mxu0 %v9083_v15  ;;  %v9132_v13 = vld [vmem:[%s12352_s4 + $0xb8] ss:$28 sps:$4 sm:$0xff]  }
 0x252   :  { %6089 = vmatprep.subr.bf16.mxu1 %v9086_v17  ;;  %v9137_v15 = vld [vmem:[%s12352_s4 + $0x93c] ss:$28 sps:$4 sm:$0xff]   ;;  %v9140_v17 = vld [vmem:[%s12352_s4 + $0x84] ss:$28 sps:$4 sm:$0xff]  }
 0x254   :  { %6049 = vmatpush1.bf16.msra.mxu0 %v9081_v19  ;;  %v9135_v19 = vld [vmem:[%s12352_s4 + $0x938] ss:$28 sps:$4 sm:$0xff]  }
 0x255   :  { %6090 = vmatpush1.bf16.msra.mxu1 %v9084_v20  ;;  %6050 = vmatprep.subr.bf16.mxu0 %v9089_v21  ;;  %v9138_v20 = vld [vmem:[%s12352_s4 + $0x80] ss:$28 sps:$4 sm:$0xff]  }
 0x256   :  { %6091 = vmatprep.subr.bf16.mxu1 %v9092_v18  ;;  %v9143_v21 = vld [vmem:[%s12352_s4 + $0x904] ss:$28 sps:$4 sm:$0xff]   ;;  %v9146_v18 = vld [vmem:[%s12352_s4 + $0x4c] ss:$28 sps:$4 sm:$0xff]  }
 0x258   :  { %6051 = vmatpush1.bf16.msra.mxu0 %v9087_v35  ;;  %v9141_v35 = vld [vmem:[%s12352_s4 + $0x900] ss:$28 sps:$4 sm:$0xff]  }
 0x259   :  { %6092 = vmatpush1.bf16.msra.mxu1 %v9090_v23  ;;  %6052 = vmatprep.subr.bf16.mxu0 %v9095_v24  ;;  %v9144_v23 = vld [vmem:[%s12352_s4 + $0x48] ss:$28 sps:$4 sm:$0xff]  }
 0x25a   :  { %6093 = vmatprep.subr.bf16.mxu1 %v9098_v26  ;;  %v9149_v24 = vld [vmem:[%s12352_s4 + $0x8cc] ss:$28 sps:$4 sm:$0xff]   ;;  %v9152_v26 = vld [vmem:[%s12352_s4 + $0x14] ss:$28 sps:$4 sm:$0xff]  }
 0x25c   :  { %6053 = vmatpush1.bf16.msra.mxu0 %v9093_v29  ;;  %v9147_v29 = vld [vmem:[%s12352_s4 + $0x8c8] ss:$28 sps:$4 sm:$0xff]  }
 0x25d   :  { %6094 = vmatpush1.bf16.msra.mxu1 %v9096_v16  ;;  %6054 = vmatprep.subr.bf16.mxu0 %v9101_v33  ;;  %v9150_v16 = vld [vmem:[%s12352_s4 + $0x10] ss:$28 sps:$4 sm:$0xff]   ;;  %v9155_v33 = vld [vmem:[%s12352_s4 + $0x35c] ss:$28 sps:$4 sm:$0xff]  }
 0x25e   :  { %6095 = vmatprep.subr.bf16.mxu1 %v9104_v34  ;;  %v9158_v34 = vld [vmem:[%s12352_s4 + $0x51c] ss:$28 sps:$4 sm:$0xff]  }
 0x260   :  { %6055 = vmatpush1.bf16.msra.mxu0 %v9099_v37  ;;  %v9153_v37 = vld [vmem:[%s12352_s4 + $0x358] ss:$28 sps:$4 sm:$0xff]  }
 0x261   :  { %6096 = vmatpush1.bf16.msra.mxu1 %v9102_v49  ;;  %6056 = vmatprep.subr.bf16.mxu0 %v9107_v38  ;;  %v9156_v49 = vld [vmem:[%s12352_s4 + $0x518] ss:$28 sps:$4 sm:$0xff]   ;;  %v9161_v38 = vld [vmem:[%s12352_s4 + $0x324] ss:$28 sps:$4 sm:$0xff]  }
 0x262   :  { %6122 = vmatprep.subr.bf16.mxu1 %v9110_v32  ;;  %v9164_v32 = vld [vmem:[%s12352_s4 + $0x4e4] ss:$28 sps:$4 sm:$0xff]  }
 0x263   :  { %v3229_v14 = vpop.f32.mrf.mxu0 }
 0x264   :  { %6114 = vmatmul.mubr.bf16.vlgmr.msra.gmra.mxu1 %v11205_v25  ;;  %v11531_v50 = vadd.f32 %v3229_v14, %v3190_v9  ;;  %6057 = vmatpush2.bf16.msra.mxu0 %v9105_v41  ;;  %v9134_v9 = vld [vmem:[%s12352_s4 + $0xbc] ss:$28 sps:$4 sm:$0xff]   ;;  %v9167_v14 = vld [vmem:[%s12352_s4 + $0x2ec] ss:$28 sps:$4 sm:$0xff]  }
 0x265   :  { %6123 = vmatpush1.bf16.msra.mxu1 %v9108_v42  ;;  %v8182_v62 = vpop.f32.mrf.mxu0  ;;  %6058 = vmatprep.subr.bf16.mxu0 %v9113_v44  ;;  %v9159_v42 = vld [vmem:[%s12352_s4 + $0x320] ss:$28 sps:$4 sm:$0xff]  }
 0x266   :  { %6124 = vmatprep.subr.bf16.mxu1 %v9116_v45  ;;  %6154 = vmatprep.mubr.bf16.mxu1 %v10771_v12  ;;  %v9162_v44 = vld [vmem:[%s12352_s4 + $0x4e0] ss:$28 sps:$4 sm:$0xff]   ;;  %v9165_v62 = vld [vmem:[%s12352_s4 + $0x2e8] ss:$28 sps:$4 sm:$0xff]  }
 0x267   :  { %v3232_v1 = vpop.f32.mrf.mxu0 }
 0x268   :  { %6059 = vmatpush2.bf16.msra.mxu0 %v9111_v56  ;;  %v9170_v56 = vld [vmem:[%s12352_s4 + $0x4ac] ss:$28 sps:$4 sm:$0xff]   ;;  %v9173_v1 = vld [vmem:[%s12352_s4 + $0x2b4] ss:$28 sps:$4 sm:$0xff]  }
 0x269   :  { %6125 = vmatpush1.bf16.msra.mxu1 %v9114_v54  ;;  %v8183_v46 = vpop.f32.mrf.mxu0  ;;  %6060 = vmatprep.subr.bf16.mxu0 %v9119_v3  ;;  %v9168_v3 = vld [vmem:[%s12352_s4 + $0x4a8] ss:$28 sps:$4 sm:$0xff]  }
 0x26a   :  { %6126 = vmatprep.subr.bf16.mxu1 %v9122_v61  ;;  %v9174_v46 = vld [vmem:[%s12352_s4 + $0x470] ss:$28 sps:$4 sm:$0xff]  }
 0x26c   :  { %6061 = vmatpush2.bf16.msra.mxu0 %v9117_v63  ;;  %v9176_v63 = vld [vmem:[%s12352_s4 + $0x474] ss:$28 sps:$4 sm:$0xff]  }
 0x26d   :  { %6127 = vmatpush1.bf16.msra.mxu1 %v9120_v2  ;;  %6062 = vmatprep.subr.bf16.mxu0 %v9125_v4  ;;  %v9171_v2 = vld [vmem:[%s12352_s4 + $0x2b0] ss:$28 sps:$4 sm:$0xff]   ;;  %v9179_v4 = vld [vmem:[%s12352_s4 + $0x27c] ss:$28 sps:$4 sm:$0xff]  }
 0x26e   :  { %6128 = vmatprep.subr.bf16.mxu1 %v9128_v51  ;;  %v9182_v51 = vld [vmem:[%s12352_s4 + $0x43c] ss:$28 sps:$4 sm:$0xff]  }
 0x270   :  { %6063 = vmatpush2.bf16.msra.mxu0 %v9123_v59  ;;  %v9177_v59 = vld [vmem:[%s12352_s4 + $0x278] ss:$28 sps:$4 sm:$0xff]  }
 0x271   :  { %6129 = vmatpush1.bf16.msra.mxu1 %v9126_v6  ;;  %6064 = vmatprep.subr.bf16.mxu0 %v9131_v8  ;;  %v9180_v6 = vld [vmem:[%s12352_s4 + $0x438] ss:$28 sps:$4 sm:$0xff]   ;;  %v9185_v8 = vld [vmem:[%s12352_s4 + $0x244] ss:$28 sps:$4 sm:$0xff]  }
 0x272   :  { %6130 = vmatprep.subr.bf16.mxu1 %v9134_v9  ;;  %v9188_v9 = vld [vmem:[%s12352_s4 + $0x404] ss:$28 sps:$4 sm:$0xff]  }
 0x274   :  { %6065 = vmatpush2.bf16.msra.mxu0 %v9129_v10  ;;  %v9183_v10 = vld [vmem:[%s12352_s4 + $0x240] ss:$28 sps:$4 sm:$0xff]  }
 0x275   :  { %6131 = vmatpush1.bf16.msra.mxu1 %v9132_v13  ;;  %6066 = vmatprep.subr.bf16.mxu0 %v9137_v15  ;;  %v9186_v13 = vld [vmem:[%s12352_s4 + $0x400] ss:$28 sps:$4 sm:$0xff]   ;;  %v9191_v15 = vld [vmem:[%s12352_s4 + $0x20c] ss:$28 sps:$4 sm:$0xff]  }
 0x276   :  { %6132 = vmatprep.subr.bf16.mxu1 %v9140_v17  ;;  %v9194_v17 = vld [vmem:[%s12352_s4 + $0x3cc] ss:$28 sps:$4 sm:$0xff]  }
 0x278   :  { %6067 = vmatpush2.bf16.msra.mxu0 %v9135_v19  ;;  %v9189_v19 = vld [vmem:[%s12352_s4 + $0x208] ss:$28 sps:$4 sm:$0xff]  }
 0x279   :  { %6133 = vmatpush1.bf16.msra.mxu1 %v9138_v20  ;;  %6068 = vmatprep.subr.bf16.mxu0 %v9143_v21  ;;  %v9192_v20 = vld [vmem:[%s12352_s4 + $0x3c8] ss:$28 sps:$4 sm:$0xff]   ;;  %v9197_v21 = vld [vmem:[%s12352_s4 + $0x1d4] ss:$28 sps:$4 sm:$0xff]  }
 0x27a   :  { %6134 = vmatprep.subr.bf16.mxu1 %v9146_v18  ;;  %v9200_v18 = vld [vmem:[%s12352_s4 + $0x394] ss:$28 sps:$4 sm:$0xff]  }
 0x27c   :  { %6069 = vmatpush2.bf16.msra.mxu0 %v9141_v35  ;;  %v11711_v35 = vld [vmem:[%s12353_s5] sm:$0xff] }
 0x27d   :  { %6135 = vmatpush1.bf16.msra.mxu1 %v9144_v23  ;;  %6070 = vmatprep.subr.bf16.mxu0 %v9149_v24  ;;  %v9195_v23 = vld [vmem:[%s12352_s4 + $0x1d0] ss:$28 sps:$4 sm:$0xff]  }
 0x27e   :  { %6136 = vmatprep.subr.bf16.mxu1 %v9152_v26  ;;  %v9198_v24 = vld [vmem:[%s12352_s4 + $0x390] ss:$28 sps:$4 sm:$0xff]   ;;  %v9203_v26 = vld [vmem:[%s12352_s4 + $0x6dc] ss:$28 sps:$4 sm:$0xff]  }
 0x280   :  { %6071 = vmatpush2.bf16.msra.mxu0 %v9147_v29  ;;  %v9206_v29 = vld [vmem:[%s12352_s4 + $0x89c] ss:$28 sps:$4 sm:$0xff]  }
 0x281   :  { %6137 = vmatpush1.bf16.msra.mxu1 %v9150_v16  ;;  %6163 = vmatprep.subr.bf16.mxu0 %v9158_v34  ;;  %v3746_v16 = vrot.slane %v11711_v35, %v534_v40  ;;  %v9201_v34 = vld [vmem:[%s12352_s4 + $0x6d8] ss:$28 sps:$4 sm:$0xff]   ;;  %v9209_v40 = vld [vmem:[%s12352_s4 + $0x6a4] ss:$28 sps:$4 sm:$0xff]  }
 0x282   :  { %6138 = vmatprep.subr.bf16.mxu1 %v9155_v33  ;;  %v3750_v33 = vrot.slane %v11711_v35, %v538_v57  ;;  %v9212_v57 = vld [vmem:[%s12352_s4 + $0x864] ss:$28 sps:$4 sm:$0xff]  }
 0x283   :  { %6073 = vmatmul.mubr.bf16.vlgmr.msra.gmra.mxu0 %v11203_v39 }
 0x284   :  { %v11631_v41 = vpop.f32.mrf.mxu1  ;;  %6164 = vmatpush1.bf16.msra.mxu0 %v9156_v49  ;;  %6195 = vmatprep.mubr.bf16.mxu0 %v10875_v55 }
 0x285   :  { %6139 = vmatpush2.bf16.msra.mxu1 %v9153_v37  ;;  %6165 = vmatprep.subr.bf16.mxu0 %v9164_v32  ;;  %v9204_v37 = vld [vmem:[%s12352_s4 + $0x898] ss:$28 sps:$4 sm:$0xff]   ;;  %v5829_v49 = vadd.f32 %v11631_v41, %v3746_v16  ;;  %v9215_v41 = vld [vmem:[%s12352_s4 + $0x66c] ss:$28 sps:$4 sm:$0xff]  }
 0x286   :  { %v11639_v45 = vpop.f32.mrf.mxu1  ;;  %6140 = vmatprep.subr.bf16.mxu1 %v9161_v38  ;;  %v9254_v16 = vld [vmem:[%s12352_s4 + $0xc1c] ss:$28 sps:$4 sm:$0xff]  }
 0x287   :  { %v5831_v32 = vadd.f32 %v11639_v45, %v3750_v33  ;;  %v9218_v45 = vld [vmem:[%s12352_s4 + $0x82c] ss:$28 sps:$4 sm:$0xff]   ;;  %v9249_v33 = vld [vmem:[%s12352_s4 + $0xa58] ss:$28 sps:$4 sm:$0xff]  }
 0x288   :  { %v5832_v54 = vpop.f32.mrf.mxu1  ;;  %6166 = vmatpush1.bf16.msra.mxu0 %v9162_v44  ;;  %v9207_v44 = vld [vmem:[%s12352_s4 + $0x6a0] ss:$28 sps:$4 sm:$0xff]  }
 0x289   :  { %6141 = vmatpush2.bf16.msra.mxu1 %v9159_v42  ;;  %6167 = vmatprep.subr.bf16.mxu0 %v9170_v56 }
 0x28a   :  { %v5833_v61 = vpop.f32.mrf.mxu1  ;;  %6142 = vmatprep.subr.bf16.mxu1 %v9167_v14  ;;  %v9210_v14 = vld [vmem:[%s12352_s4 + $0x860] ss:$28 sps:$4 sm:$0xff]  }
 0x28b   :  { %v9216_v61 = vld [vmem:[%s12352_s4 + $0x828] ss:$28 sps:$4 sm:$0xff]  }
 0x28c   :  { %6168 = vmatpush1.bf16.msra.mxu0 %v9168_v3  ;;  %v9213_v3 = vld [vmem:[%s12352_s4 + $0x668] ss:$28 sps:$4 sm:$0xff]  }
 0x28d   :  { %6143 = vmatpush2.bf16.msra.mxu1 %v9165_v62  ;;  %6169 = vmatprep.subr.bf16.mxu0 %v9176_v63  ;;  %v9221_v63 = vld [vmem:[%s12352_s4 + $0x634] ss:$28 sps:$4 sm:$0xff]  }
 0x28e   :  { %6144 = vmatprep.subr.bf16.mxu1 %v9173_v1 }
 0x290   :  { %6170 = vmatpush1.bf16.msra.mxu0 %v9174_v46  ;;  %v9219_v46 = vld [vmem:[%s12352_s4 + $0x630] ss:$28 sps:$4 sm:$0xff]  }
 0x291   :  { %6145 = vmatpush2.bf16.msra.mxu1 %v9171_v2  ;;  %6171 = vmatprep.subr.bf16.mxu0 %v9182_v51  ;;  %v9224_v2 = vld [vmem:[%s12352_s4 + $0x7f4] ss:$28 sps:$4 sm:$0xff]   ;;  %v9227_v51 = vld [vmem:[%s12352_s4 + $0x5fc] ss:$28 sps:$4 sm:$0xff]  }
 0x292   :  { %6146 = vmatprep.subr.bf16.mxu1 %v9179_v4  ;;  %v9222_v4 = vld [vmem:[%s12352_s4 + $0x7f0] ss:$28 sps:$4 sm:$0xff]  }
 0x294   :  { %6172 = vmatpush1.bf16.msra.mxu0 %v9180_v6  ;;  %v9225_v6 = vld [vmem:[%s12352_s4 + $0x5f8] ss:$28 sps:$4 sm:$0xff]  }
 0x295   :  { %6147 = vmatpush2.bf16.msra.mxu1 %v9177_v59  ;;  %6173 = vmatprep.subr.bf16.mxu0 %v9188_v9  ;;  %v9230_v59 = vld [vmem:[%s12352_s4 + $0x7bc] ss:$28 sps:$4 sm:$0xff]   ;;  %v9233_v9 = vld [vmem:[%s12352_s4 + $0x5c4] ss:$28 sps:$4 sm:$0xff]  }
 0x296   :  { %6148 = vmatprep.subr.bf16.mxu1 %v9185_v8  ;;  %v9228_v8 = vld [vmem:[%s12352_s4 + $0x7b8] ss:$28 sps:$4 sm:$0xff]  }
 0x298   :  { %6174 = vmatpush1.bf16.msra.mxu0 %v9186_v13  ;;  %v9231_v13 = vld [vmem:[%s12352_s4 + $0x5c0] ss:$28 sps:$4 sm:$0xff]  }
 0x299   :  { %6149 = vmatpush2.bf16.msra.mxu1 %v9183_v10  ;;  %6175 = vmatprep.subr.bf16.mxu0 %v9194_v17  ;;  %v9236_v10 = vld [vmem:[%s12352_s4 + $0x784] ss:$28 sps:$4 sm:$0xff]   ;;  %v9239_v17 = vld [vmem:[%s12352_s4 + $0x58c] ss:$28 sps:$4 sm:$0xff]  }
 0x29a   :  { %6150 = vmatprep.subr.bf16.mxu1 %v9191_v15  ;;  %v9234_v15 = vld [vmem:[%s12352_s4 + $0x780] ss:$28 sps:$4 sm:$0xff]  }
 0x29c   :  { %6176 = vmatpush1.bf16.msra.mxu0 %v9192_v20  ;;  %v9237_v20 = vld [vmem:[%s12352_s4 + $0x588] ss:$28 sps:$4 sm:$0xff]  }
 0x29d   :  { %6151 = vmatpush2.bf16.msra.mxu1 %v9189_v19  ;;  %6177 = vmatprep.subr.bf16.mxu0 %v9200_v18  ;;  %v9242_v19 = vld [vmem:[%s12352_s4 + $0x74c] ss:$28 sps:$4 sm:$0xff]   ;;  %v9245_v18 = vld [vmem:[%s12352_s4 + $0x554] ss:$28 sps:$4 sm:$0xff]  }
 0x29e   :  { %6152 = vmatprep.subr.bf16.mxu1 %v9197_v21  ;;  %v9240_v21 = vld [vmem:[%s12352_s4 + $0x748] ss:$28 sps:$4 sm:$0xff]  }
 0x2a0   :  { %6178 = vmatpush1.bf16.msra.mxu0 %v9198_v24  ;;  %v9243_v24 = vld [vmem:[%s12352_s4 + $0x550] ss:$28 sps:$4 sm:$0xff]  }
 0x2a1   :  { %6153 = vmatpush2.bf16.msra.mxu1 %v9195_v23  ;;  %6179 = vmatprep.subr.bf16.mxu0 %v9203_v26  ;;  %v9248_v23 = vld [vmem:[%s12352_s4 + $0x714] ss:$28 sps:$4 sm:$0xff]  }
 0x2a2   :  { %6204 = vmatprep.subr.bf16.mxu1 %v9206_v29  ;;  %v9246_v26 = vld [vmem:[%s12352_s4 + $0x710] ss:$28 sps:$4 sm:$0xff]   ;;  %v9251_v29 = vld [vmem:[%s12352_s4 + $0xa5c] ss:$28 sps:$4 sm:$0xff]  }
 0x2a3   :  { %v5869_v38 = vpop.f32.mrf.mxu0 }
 0x2a4   :  { %6155 = vmatmul.mubr.bf16.vlgmr.msra.gmra.mxu1 %v10982_v47  ;;  %v11746_v42 = vadd.f32 %v5869_v38, %v5829_v49  ;;  %6180 = vmatpush2.bf16.msra.mxu0 %v9201_v34  ;;  %v9252_v34 = vld [vmem:[%s12352_s4 + $0xc18] ss:$28 sps:$4 sm:$0xff]  }
 0x2a5   :  { %6205 = vmatpush1.bf16.msra.mxu1 %v9204_v37  ;;  %v5871_v56 = vpop.f32.mrf.mxu0  ;;  %6181 = vmatprep.subr.bf16.mxu0 %v9209_v40  ;;  %v9257_v37 = vld [vmem:[%s12352_s4 + $0xa24] ss:$28 sps:$4 sm:$0xff]  }
 0x2a6   :  { %6206 = vmatprep.subr.bf16.mxu1 %v9212_v57  ;;  %v11760_v54 = vadd.f32 %v5871_v56, %v5831_v32  ;;  %6236 = vmatprep.mubr.bf16.mxu1 %v10996_v53  ;;  %v9260_v40 = vld [vmem:[%s12352_s4 + $0xbe4] ss:$28 sps:$4 sm:$0xff]  }
 0x2a7   :  { %v5873_v62 = vpop.f32.mrf.mxu0  ;;  %v9255_v32 = vld [vmem:[%s12352_s4 + $0xa20] ss:$28 sps:$4 sm:$0xff]  }
 0x2a8   :  { %6182 = vmatpush2.bf16.msra.mxu0 %v9207_v44  ;;  %v9258_v44 = vld [vmem:[%s12352_s4 + $0xbe0] ss:$28 sps:$4 sm:$0xff]  }
 0x2a9   :  { %6207 = vmatpush1.bf16.msra.mxu1 %v9210_v14  ;;  %v5874_v1 = vpop.f32.mrf.mxu0  ;;  %6183 = vmatprep.subr.bf16.mxu0 %v9215_v41  ;;  %v9263_v41 = vld [vmem:[%s12352_s4 + $0x9ec] ss:$28 sps:$4 sm:$0xff]  }
 0x2aa   :  { %6208 = vmatprep.subr.bf16.mxu1 %v9218_v45  ;;  %v3235_v1 = vmax.f32 %v10550_v48, 0.0  ;;  %v9272_v48 = vld [vmem:[%s12352_s4 + $0xb74] ss:$28 sps:$4 sm:$0xff]  }
 0x2ac   :  { %6184 = vmatpush2.bf16.msra.mxu0 %v9213_v3 }
 0x2ad   :  { %6209 = vmatpush1.bf16.msra.mxu1 %v9216_v61  ;;  %6185 = vmatprep.subr.bf16.mxu0 %v9221_v63 }
 0x2ae   :  { %6210 = vmatprep.subr.bf16.mxu1 %v9224_v2 }
 0x2b0   :  { %6186 = vmatpush2.bf16.msra.mxu0 %v9219_v46  ;;  %v9261_v46 = vld [vmem:[%s12352_s4 + $0x9e8] ss:$28 sps:$4 sm:$0xff]  }
 0x2b1   :  { %6211 = vmatpush1.bf16.msra.mxu1 %v9222_v4  ;;  %6187 = vmatprep.subr.bf16.mxu0 %v9227_v51  ;;  %v9264_v4 = vld [vmem:[%s12352_s4 + $0xba8] ss:$28 sps:$4 sm:$0xff]  }
 0x2b2   :  { %6212 = vmatprep.subr.bf16.mxu1 %v9230_v59  ;;  %v3236_v59 = vmax.f32 %v10555_v52, 0.0  ;;  %v9275_v52 = vld [vmem:[%s12352_s4 + $0x97c] ss:$28 sps:$4 sm:$0xff]  }
 0x2b4   :  { %6188 = vmatpush2.bf16.msra.mxu0 %v9225_v6 }
 0x2b5   :  { %6213 = vmatpush1.bf16.msra.mxu1 %v9228_v8  ;;  %6189 = vmatprep.subr.bf16.mxu0 %v9233_v9 }
 0x2b6   :  { %6214 = vmatprep.subr.bf16.mxu1 %v9236_v10  ;;  %v9267_v10 = vld [vmem:[%s12352_s4 + $0x9b0] ss:$28 sps:$4 sm:$0xff]  }
 0x2b8   :  { %6190 = vmatpush2.bf16.msra.mxu0 %v9231_v13  ;;  %v9270_v13 = vld [vmem:[%s12352_s4 + $0xb70] ss:$28 sps:$4 sm:$0xff]  }
 0x2b9   :  { %6215 = vmatpush1.bf16.msra.mxu1 %v9234_v15  ;;  %6191 = vmatprep.subr.bf16.mxu0 %v9239_v17  ;;  %v9278_v15 = vld [vmem:[%s12352_s4 + $0xb3c] ss:$28 sps:$4 sm:$0xff]  }
 0x2ba   :  { %6216 = vmatprep.subr.bf16.mxu1 %v9242_v19  ;;  %v9273_v17 = vld [vmem:[%s12352_s4 + $0x978] ss:$28 sps:$4 sm:$0xff]  }
 0x2bb   :  { %v9276_v19 = vld [vmem:[%s12352_s4 + $0xb38] ss:$28 sps:$4 sm:$0xff]  }
 0x2bc   :  { %6192 = vmatpush2.bf16.msra.mxu0 %v9237_v20  ;;  %v9281_v20 = vld [vmem:[%s12352_s4 + $0x944] ss:$28 sps:$4 sm:$0xff]  }
 0x2bd   :  { %6217 = vmatpush1.bf16.msra.mxu1 %v9240_v21  ;;  %6193 = vmatprep.subr.bf16.mxu0 %v9245_v18  ;;  %v9284_v21 = vld [vmem:[%s12352_s4 + $0xb04] ss:$28 sps:$4 sm:$0xff]  }
 0x2be   :  { %6218 = vmatprep.subr.bf16.mxu1 %v9248_v23  ;;  %v9279_v18 = vld [vmem:[%s12352_s4 + $0x940] ss:$28 sps:$4 sm:$0xff]  }
 0x2bf   :  { %v9282_v23 = vld [vmem:[%s12352_s4 + $0xb00] ss:$28 sps:$4 sm:$0xff]  }
 0x2c0   :  { %6194 = vmatpush2.bf16.msra.mxu0 %v9243_v24  ;;  %v9287_v24 = vld [vmem:[%s12352_s4 + $0x90c] ss:$28 sps:$4 sm:$0xff]  }
 0x2c1   :  { %6219 = vmatpush1.bf16.msra.mxu1 %v9246_v26  ;;  %6245 = vmatprep.subr.bf16.mxu0 %v9254_v16  ;;  %v9290_v26 = vld [vmem:[%s12352_s4 + $0xacc] ss:$28 sps:$4 sm:$0xff]  }
 0x2c2   :  { %6220 = vmatprep.subr.bf16.mxu1 %v9251_v29  ;;  %v9285_v29 = vld [vmem:[%s12352_s4 + $0x908] ss:$28 sps:$4 sm:$0xff]  }
 0x2c3   :  { %v5951_v49 = vpop.f32.mrf.mxu0  ;;  %6196 = vmatmul.mubr.bf16.vlgmr.msra.gmra.mxu0 %v11088_v36  ;;  %v9288_v16 = vld [vmem:[%s12352_s4 + $0xac8] ss:$28 sps:$4 sm:$0xff]  }
 0x2c4   :  { %v5910_v57 = vpop.f32.mrf.mxu1  ;;  %6246 = vmatpush1.bf16.msra.mxu0 %v9252_v34  ;;  %6277 = vmatprep.mubr.bf16.mxu0 %v9434_v28  ;;  %v9269_v28 = vld [vmem:[%s12352_s4 + $0x9b4] ss:$28 sps:$4 sm:$0xff]  }
 0x2c5   :  { %v5911_v38 = vadd.f32 %v5910_v57, %v11746_v42  ;;  %6221 = vmatpush2.bf16.msra.mxu1 %v9249_v33  ;;  %v5953_v56 = vpop.f32.mrf.mxu0  ;;  %6247 = vmatprep.subr.bf16.mxu0 %v9260_v40  ;;  %v9266_v42 = vld [vmem:[%s12352_s4 + $0xbac] ss:$28 sps:$4 sm:$0xff]   ;;  %v9293_v33 = vld [vmem:[%s12352_s4 + $0x8d4] ss:$28 sps:$4 sm:$0xff]   ;;  %v9297_v57 = vld [vmem:[%s12352_s4 + $0x360] ss:$28 sps:$4 sm:$0xff]  }
 0x2c6   :  { %v5912_v14 = vpop.f32.mrf.mxu1  ;;  %6222 = vmatprep.subr.bf16.mxu1 %v9257_v37  ;;  %v9296_v34 = vld [vmem:[%s12352_s4 + $0xa94] ss:$28 sps:$4 sm:$0xff]  }
 0x2c7   :  { %v5952_v45 = vadd.f32 %v5951_v49, %v5911_v38  ;;  %v5913_v62 = vadd.f32 %v5912_v14, %v11760_v54  ;;  %v5955_v3 = vpop.f32.mrf.mxu0  ;;  %v9291_v37 = vld [vmem:[%s12352_s4 + $0x8d0] ss:$28 sps:$4 sm:$0xff]   ;;  %v9298_v49 = vld [vmem:[%s12352_s4 + $0x6e0] ss:$28 sps:$4 sm:$0xff]   ;;  %v9302_v14 = vld [vmem:[%s12352_s4 + $0x6a8] ss:$28 sps:$4 sm:$0xff]  }
 0x2c8   :  { %v5914_v61 = vpop.f32.mrf.mxu1  ;;  %6248 = vmatpush1.bf16.msra.mxu0 %v9258_v44  ;;  %v9294_v40 = vld [vmem:[%s12352_s4 + $0xa90] ss:$28 sps:$4 sm:$0xff]   ;;  %v9299_v38 = vld [vmem:[%s12352_s4 + $0x1a0] ss:$28 sps:$4 sm:$0xff]   ;;  %v9301_v44 = vld [vmem:[%s12352_s4 + $0x328] ss:$28 sps:$4 sm:$0xff]  }
 0x2c9   :  { %v6446_v63 = vmax.f32 %v5952_v45, 0.0  ;;  %v5954_v2 = vadd.f32 %v5953_v56, %v5913_v62  ;;  %6223 = vmatpush2.bf16.msra.mxu1 %v9255_v32  ;;  %v5956_v51 = vpop.f32.mrf.mxu0  ;;  %6249 = vmatprep.subr.bf16.mxu0 %v9266_v42  ;;  %v9300_v32 = vld [vmem:[%s12352_s4 + $0x520] ss:$28 sps:$4 sm:$0xff]   ;;  %v9303_v56 = vld [vmem:[%s12352_s4 + $0x168] ss:$28 sps:$4 sm:$0xff]  }
 0x2ca   :  { %v5915_v54 = vpop.f32.mrf.mxu1  ;;  %6224 = vmatprep.subr.bf16.mxu1 %v9263_v41  ;;  %v9304_v41 = vld [vmem:[%s12352_s4 + $0x4e8] ss:$28 sps:$4 sm:$0xff]   ;;  %v9305_v42 = vld [vmem:[%s12352_s4 + $0x2f0] ss:$28 sps:$4 sm:$0xff]   ;;  %v9309_v61 = vld [vmem:[%s12352_s4 + $0x2b8] ss:$28 sps:$4 sm:$0xff]  }
 0x2cb   :  { %v11877_v6 = vmul.f32 %v6446_v63, %v3235_v1  ;;  %v6447_v8 = vmax.f32 %v5954_v2, 0.0  ;;  %v9306_v45 = vld [vmem:[%s12352_s4 + $0x670] ss:$28 sps:$4 sm:$0xff]   ;;  %v9312_v1 = vld [vmem:[%s12352_s4 + $0x478] ss:$28 sps:$4 sm:$0xff]  }
 0x2cc   :  { %6250 = vmatpush1.bf16.msra.mxu0 %v9264_v4  ;;  %v9307_v62 = vld [vmem:[%s12352_s4 + $0x130] ss:$28 sps:$4 sm:$0xff]   ;;  %v9313_v63 = vld [vmem:[%s12352_s4 + $0x280] ss:$28 sps:$4 sm:$0xff]   ;;  %v9317_v51 = vld [vmem:[%s12352_s4 + $0x248] ss:$28 sps:$4 sm:$0xff]  }
 0x2cd   :  { %v11879_v9 = vmul.f32 %v6447_v8, %v3236_v59  ;;  %6225 = vmatpush2.bf16.msra.mxu1 %v9261_v46  ;;  %6251 = vmatprep.subr.bf16.mxu0 %v9272_v48  ;;  %v9308_v3 = vld [vmem:[%s12352_s4 + $0x4b0] ss:$28 sps:$4 sm:$0xff]   ;;  %v9314_v2 = vld [vmem:[%s12352_s4 + $0x600] ss:$28 sps:$4 sm:$0xff]   ;;  %v9318_v54 = vld [vmem:[%s12352_s4 + $0x5c8] ss:$28 sps:$4 sm:$0xff]  }
 0x2ce   :  { %6226 = vmatprep.subr.bf16.mxu1 %v9269_v28  ;;  %v9315_v46 = vld [vmem:[%s12352_s4 + $0xc0] ss:$28 sps:$4 sm:$0xff]   ;;  %v9319_v28 = vld [vmem:[%s12352_s4 + $0x88] ss:$28 sps:$4 sm:$0xff]   ;;  %v9321_v59 = vld [vmem:[%s12352_s4 + $0x210] ss:$28 sps:$4 sm:$0xff]  }
 0x2cf   :  { %v9316_v4 = vld [vmem:[%s12352_s4 + $0x440] ss:$28 sps:$4 sm:$0xff]   ;;  %v9320_v48 = vld [vmem:[%s12352_s4 + $0x408] ss:$28 sps:$4 sm:$0xff]   ;;  %v9322_v8 = vld [vmem:[%s12352_s4 + $0x590] ss:$28 sps:$4 sm:$0xff]  }
 0x2d0   :  { %6252 = vmatpush1.bf16.msra.mxu0 %v9270_v13  ;;  %v9324_v13 = vld [vmem:[%s12352_s4 + $0x3d0] ss:$28 sps:$4 sm:$0xff]  }
 0x2d1   :  { %6227 = vmatpush2.bf16.msra.mxu1 %v9267_v10  ;;  %6253 = vmatprep.subr.bf16.mxu0 %v9278_v15  ;;  %v9323_v10 = vld [vmem:[%s12352_s4 + $0x50] ss:$28 sps:$4 sm:$0xff]   ;;  %v9326_v15 = vld [vmem:[%s12352_s4 + $0x558] ss:$28 sps:$4 sm:$0xff]  }
 0x2d2   :  { %6228 = vmatprep.subr.bf16.mxu1 %v9275_v52  ;;  %v9325_v52 = vld [vmem:[%s12352_s4 + $0x1d8] ss:$28 sps:$4 sm:$0xff]  }
 0x2d4   :  { %6254 = vmatpush1.bf16.msra.mxu0 %v9276_v19  ;;  %v9328_v19 = vld [vmem:[%s12352_s4 + $0x398] ss:$28 sps:$4 sm:$0xff]  }
 0x2d5   :  { %6229 = vmatpush2.bf16.msra.mxu1 %v9273_v17  ;;  %6255 = vmatprep.subr.bf16.mxu0 %v9284_v21  ;;  %v9327_v17 = vld [vmem:[%s12352_s4 + $0x18] ss:$28 sps:$4 sm:$0xff]   ;;  %v9330_v21 = vld [vmem:[%s12352_s4 + $0x8a0] ss:$28 sps:$4 sm:$0xff]  }
 0x2d6   :  { %6230 = vmatprep.subr.bf16.mxu1 %v9281_v20  ;;  %v9329_v20 = vld [vmem:[%s12352_s4 + $0xa60] ss:$28 sps:$4 sm:$0xff]  }
 0x2d8   :  { %6256 = vmatpush1.bf16.msra.mxu0 %v9282_v23  ;;  %v9332_v23 = vld [vmem:[%s12352_s4 + $0xa28] ss:$28 sps:$4 sm:$0xff]  }
 0x2d9   :  { %6231 = vmatpush2.bf16.msra.mxu1 %v9279_v18  ;;  %6257 = vmatprep.subr.bf16.mxu0 %v9290_v26  ;;  %v9331_v18 = vld [vmem:[%s12352_s4 + $0xc20] ss:$28 sps:$4 sm:$0xff]  }
 0x2da   :  { %6232 = vmatprep.subr.bf16.mxu1 %v9287_v24 }
 0x2dc   :  { %6258 = vmatpush1.bf16.msra.mxu0 %v9288_v16  ;;  %v9334_v16 = vld [vmem:[%s12352_s4 + $0xbe8] ss:$28 sps:$4 sm:$0xff]  }
 0x2dd   :  { %6233 = vmatpush2.bf16.msra.mxu1 %v9285_v29  ;;  %6259 = vmatprep.subr.bf16.mxu0 %v9296_v34  ;;  %v9333_v29 = vld [vmem:[%s12352_s4 + $0x868] ss:$28 sps:$4 sm:$0xff]  }
 0x2de   :  { %6234 = vmatprep.subr.bf16.mxu1 %v9293_v33 }
 0x2e0   :  { %6260 = vmatpush1.bf16.msra.mxu0 %v9294_v40  ;;  %v9336_v40 = vld [vmem:[%s12352_s4 + $0x830] ss:$28 sps:$4 sm:$0xff]  }
 0x2e1   :  { %6235 = vmatpush2.bf16.msra.mxu1 %v9291_v37  ;;  %8014 = vmatprep.subr.bf16.mxu0 %v9297_v57  ;;  %v9337_v57 = vld [vmem:[%s12352_s4 + $0xbb0] ss:$28 sps:$4 sm:$0xff]  }
 0x2e2   :  { %8036 = vmatprep.subr.bf16.mxu1 %v9298_v49 }
 0x2e3   :  { %6278 = vmatmul.mubr.bf16.vlgmr.msra.gmra.mxu0 %v11205_v25 }
 0x2e4   :  { %6237 = vmatmul.mubr.bf16.vlgmr.msra.gmra.mxu1 %v11203_v39  ;;  %8015 = vmatpush3.bf16.msra.mxu0 %v9299_v38 }
 0x2e5   :  { %8037 = vmatpush3.bf16.msra.mxu1 %v9300_v32  ;;  %8016 = vmatprep.subr.bf16.mxu0 %v9301_v44  ;;  %v9339_v32 = vld [vmem:[%s12352_s4 + $0x7f8] ss:$28 sps:$4 sm:$0xff]  }
 0x2e6   :  { %8038 = vmatprep.subr.bf16.mxu1 %v9302_v14  ;;  %6318 = vmatprep.mubr.bf16.mxu0 %v10771_v12  ;;  %v9310_v12 = vld [vmem:[%s12352_s4 + $0x638] ss:$28 sps:$4 sm:$0xff]   ;;  %v9341_v14 = vld [vmem:[%s12352_s4 + $0x980] ss:$28 sps:$4 sm:$0xff]  }
 0x2e7   :  { %6358 = vmatprep.mubr.bf16.mxu1 %v10875_v55  ;;  %v9311_v55 = vld [vmem:[%s12352_s4 + $0xf8] ss:$28 sps:$4 sm:$0xff]  }
 0x2e8   :  { %8017 = vmatpush3.bf16.msra.mxu0 %v9303_v56  ;;  %v9340_v44 = vld [vmem:[%s12352_s4 + $0xb78] ss:$28 sps:$4 sm:$0xff]   ;;  %v9342_v56 = vld [vmem:[%s12352_s4 + $0x7c0] ss:$28 sps:$4 sm:$0xff]  }
 0x2e9   :  { %8039 = vmatpush3.bf16.msra.mxu1 %v9304_v41  ;;  %8018 = vmatprep.subr.bf16.mxu0 %v9305_v42  ;;  %v9343_v41 = vld [vmem:[%s12352_s4 + $0xb40] ss:$28 sps:$4 sm:$0xff]   ;;  %v9344_v42 = vld [vmem:[%s12352_s4 + $0x948] ss:$28 sps:$4 sm:$0xff]  }
 0x2ea   :  { %8040 = vmatprep.subr.bf16.mxu1 %v9306_v45  ;;  %v9345_v45 = vld [vmem:[%s12352_s4 + $0x788] ss:$28 sps:$4 sm:$0xff]  }
 0x2ec   :  { %8019 = vmatpush3.bf16.msra.mxu0 %v9307_v62  ;;  %v9346_v62 = vld [vmem:[%s12352_s4 + $0xb08] ss:$28 sps:$4 sm:$0xff]  }
 0x2ed   :  { %8041 = vmatpush3.bf16.msra.mxu1 %v9308_v3  ;;  %8020 = vmatprep.subr.bf16.mxu0 %v9309_v61  ;;  %v9347_v3 = vld [vmem:[%s12352_s4 + $0x910] ss:$28 sps:$4 sm:$0xff]  }
 0x2ee   :  { %8042 = vmatprep.subr.bf16.mxu1 %v9310_v12  ;;  %v9348_v61 = vld [vmem:[%s12352_s4 + $0x750] ss:$28 sps:$4 sm:$0xff]  }
 0x2ef   :  { %v9349_v12 = vld [vmem:[%s12352_s4 + $0xad0] ss:$28 sps:$4 sm:$0xff]  }
 0x2f0   :  { %8021 = vmatpush3.bf16.msra.mxu0 %v9311_v55  ;;  %v9350_v55 = vld [vmem:[%s12352_s4 + $0x8d8] ss:$28 sps:$4 sm:$0xff]  }
 0x2f1   :  { %8043 = vmatpush3.bf16.msra.mxu1 %v9312_v1  ;;  %8022 = vmatprep.subr.bf16.mxu0 %v9313_v63  ;;  %v9351_v1 = vld [vmem:[%s12352_s4 + $0x718] ss:$28 sps:$4 sm:$0xff]  }
 0x2f2   :  { %8044 = vmatprep.subr.bf16.mxu1 %v9314_v2  ;;  %v9352_v63 = vld [vmem:[%s12352_s4 + $0xa98] ss:$28 sps:$4 sm:$0xff]  }
 0x2f3   :  { %v9353_v2 = vld [vmem:[%s12354_s6 + $0x78] sm:$0xff]  }
 0x2f4   :  { %8023 = vmatpush3.bf16.msra.mxu0 %v9315_v46  ;;  %v9361_v46 = vld [vmem:[%s12354_s6 + $0xf8] sm:$0xff]  }
 0x2f5   :  { %8045 = vmatpush3.bf16.msra.mxu1 %v9316_v4  ;;  %8024 = vmatprep.subr.bf16.mxu0 %v9317_v51  ;;  %v9354_v4 = vld [vmem:[%s12354_s6 + $0x38] sm:$0xff]   ;;  %v9355_v51 = vld [vmem:[%s12354_s6 + $0x70] sm:$0xff]  }
 0x2f6   :  { %8046 = vmatprep.subr.bf16.mxu1 %v9318_v54  ;;  %v9362_v54 = vld [vmem:[%s12354_s6 + $0xb8] sm:$0xff]  }
 0x2f8   :  { %8025 = vmatpush3.bf16.msra.mxu0 %v9319_v28  ;;  %v6461_v28 = vpack.c.bf16 %v11879_v9, %v11879_v9  ;;  %v9357_v9 = vld [vmem:[%s12354_s6 + $0x68] sm:$0xff]  }
 0x2f9   :  { %8047 = vmatpush3.bf16.msra.mxu1 %v9320_v48  ;;  %8026 = vmatprep.subr.bf16.mxu0 %v9321_v59  ;;  %v9365_v48 = vld [vmem:[%s12354_s6 + $0xf0] sm:$0xff]  }
 0x2fa   :  { %8048 = vmatprep.subr.bf16.mxu1 %v9322_v8  ;;  %v9356_v8 = vld [vmem:[%s12354_s6 + $0x30] sm:$0xff]  }
 0x2fc   :  { %8027 = vmatpush3.bf16.msra.mxu0 %v9323_v10 }
 0x2fd   :  { %8049 = vmatpush3.bf16.msra.mxu1 %v9324_v13  ;;  %8028 = vmatprep.subr.bf16.mxu0 %v9325_v52  ;;  %v9358_v52 = vld [vmem:[%s12354_s6 + $0x28] sm:$0xff]  }
 0x2fe   :  { %8050 = vmatprep.subr.bf16.mxu1 %v9326_v15 }
 0x300   :  { %8029 = vmatpush3.bf16.msra.mxu0 %v9327_v17  ;;  %v9359_v17 = vld [vmem:[%s12354_s6 + $0x60] sm:$0xff]  }
 0x301   :  { %8051 = vmatpush3.bf16.msra.mxu1 %v9328_v19  ;;  %8058 = vmatprep.subr.bf16.mxu0 %v9329_v20  ;;  %v9370_v19 = vld [vmem:[%s12354_s6 + $0xa8] sm:$0xff]   ;;  %v9373_v20 = vld [vmem:[%s12354_s6 + $0xe0] sm:$0xff]  }
 0x302   :  { %8184 = vmatprep.subr.bf16.mxu1 %v9435_v7 }
 0x303   :  { %v12048_v24 = vpop.f32.mrf.mxu0  ;;  %6319 = vmatmul.mubr.bf16.vlgmr.msra.gmra.mxu0 %v10982_v47  ;;  %v9335_v47 = vld [vmem:[%s12352_s4 + $0x9f0] ss:$28 sps:$4 sm:$0xff]  }
 0x304   :  { %v12051_v26 = vpop.f32.mrf.mxu1  ;;  %6359 = vmatmul.mubr.bf16.vlgmr.msra.gmra.mxu1 %v11088_v36  ;;  %8059 = vmatpush3.bf16.msra.mxu0 %v9330_v21  ;;  %v9360_v21 = vld [vmem:[%s12354_s6 + $0x20] sm:$0xff]  }
 0x305   :  { %8185 = vmatpush3.bf16.msra.mxu1 %v9331_v18  ;;  %v12060_v33 = vpop.f32.mrf.mxu0  ;;  %8060 = vmatprep.subr.bf16.mxu0 %v9332_v23  ;;  %v9363_v18 = vld [vmem:[%s12354_s6 + $0x58] sm:$0xff]   ;;  %v9374_v23 = vld [vmem:[%s12354_s6 + $0xa0] sm:$0xff]  }
 0x306   :  { %v12062_v34 = vpop.f32.mrf.mxu1  ;;  %8186 = vmatprep.subr.bf16.mxu1 %v9435_v7  ;;  %6398 = vmatprep.mubr.bf16.mxu0 %v10996_v53  ;;  %v9338_v53 = vld [vmem:[%s12352_s4 + $0x9b8] ss:$28 sps:$4 sm:$0xff]  }
 0x307   :  { %8200 = vmatprep.mubr.msk.bf16.mxu1 %vm9436_vm0, %v9435_v7  ;;  %v5996_v36 = vpop.f32.mrf.mxu0 }
 0x308   :  { %v6037_v37 = vpop.f32.mrf.mxu1  ;;  %8061 = vmatpush3.bf16.msra.mxu0 %v9333_v29  ;;  %v9377_v29 = vld [vmem:[%s12354_s6 + $0xd8] sm:$0xff]  }
 0x309   :  { %8187 = vmatpush3.bf16.msra.mxu1 %v9334_v16  ;;  %v5997_v49 = vpop.f32.mrf.mxu0  ;;  %8062 = vmatprep.subr.bf16.mxu0 %v9335_v47  ;;  %v9364_v16 = vld [vmem:[%s12354_s6 + $0x18] sm:$0xff]   ;;  %v9367_v47 = vld [vmem:[%s12354_s6 + $0x50] sm:$0xff]  }
 0x30a   :  { %v6038_v38 = vpop.f32.mrf.mxu1  ;;  %8188 = vmatprep.subr.bf16.mxu1 %v9435_v7  ;;  %v9378_v36 = vld [vmem:[%s12354_s6 + $0x98] sm:$0xff]   ;;  %v9379_v37 = vld [vmem:[%s12354_s6 + $0xd0] sm:$0xff]  }
 0x30b   :  { %v9380_v49 = vld [vmem:[%s12354_s6 + $0x90] sm:$0xff]   ;;  %v9381_v38 = vld [vmem:[%s12354_s6 + $0xc8] sm:$0xff]  }
 0x30c   :  { %8063 = vmatpush3.bf16.msra.mxu0 %v9336_v40  ;;  %v9368_v40 = vld [vmem:[%s12354_s6 + $0x10] sm:$0xff]  }
 0x30d   :  { %8189 = vmatpush3.bf16.msra.mxu1 %v9337_v57  ;;  %8064 = vmatprep.subr.bf16.mxu0 %v9338_v53  ;;  %v9371_v57 = vld [vmem:[%s12354_s6 + $0x48] sm:$0xff]  }
 0x30e   :  { %8190 = vmatprep.subr.bf16.mxu1 %v9435_v7  ;;  %v9372_v53 = vld [vmem:[%s12354_s6 + $0x8] sm:$0xff]  }
 0x310   :  { %8065 = vmatpush3.bf16.msra.mxu0 %v9339_v32  ;;  %v9375_v32 = vld [vmem:[%s12354_s6 + $0x40] sm:$0xff]  }
 0x311   :  { %8191 = vmatpush3.bf16.msra.mxu1 %v9340_v44  ;;  %8066 = vmatprep.subr.bf16.mxu0 %v9341_v14  ;;  %v9382_v44 = vld [vmem:[%s12354_s6 + $0x88] sm:$0xff]   ;;  %v3754_v14 = vrot.slane %v11711_v35, %v542_v22  ;;  %v9384_v22 = vld [vmem:[%s12354_s6 + $0x80] sm:$0xff]  }
 0x312   :  { %8192 = vmatprep.subr.bf16.mxu1 %v9435_v7 }
 0x314   :  { %8067 = vmatpush3.bf16.msra.mxu0 %v9342_v56  ;;  %v9383_v56 = vld [vmem:[%s12354_s6 + $0xc0] sm:$0xff]  }
 0x315   :  { %8193 = vmatpush3.bf16.msra.mxu1 %v9343_v41  ;;  %8068 = vmatprep.subr.bf16.mxu0 %v9344_v42  ;;  %v3758_v41 = vrot.slane %v11711_v35, %v546_v58  ;;  %v9376_v42 = vld [vmem:[%s12354_s6] sm:$0xff]  }
 0x316   :  { %8194 = vmatprep.subr.bf16.mxu1 %v9435_v7 }
 0x317   :  { %v5995_v58 = vadd.f32 %v12060_v33, %v3758_v41 }
 0x318   :  { %8069 = vmatpush3.bf16.msra.mxu0 %v9345_v45  ;;  %v9385_v45 = vld [vmem:[%s12354_s6 + $0x178] sm:$0xff]  }
 0x319   :  { %8195 = vmatpush3.bf16.msra.mxu1 %v9346_v62  ;;  %8070 = vmatprep.subr.bf16.mxu0 %v9347_v3  ;;  %v5993_v62 = vadd.f32 %v12048_v24, %v3754_v14  ;;  %v9386_v3 = vld [vmem:[%s12354_s6 + $0x138] sm:$0xff]   ;;  %v6036_v33 = vadd.f32 %v12062_v34, %v5995_v58 }
 0x31a   :  { %8196 = vmatprep.subr.bf16.mxu1 %v9435_v7 }
 0x31c   :  { %8071 = vmatpush3.bf16.msra.mxu0 %v9348_v61  ;;  %v6460_v61 = vpack.c.bf16 %v11877_v6, %v11877_v6  ;;  %v9388_v6 = vld [vmem:[%s12354_s6 + $0x130] sm:$0xff]  }
 0x31d   :  { %8197 = vmatpush3.bf16.msra.mxu1 %v9349_v12  ;;  %8072 = vmatprep.subr.bf16.mxu0 %v9350_v55  ;;  %v9387_v12 = vld [vmem:[%s12354_s6 + $0x170] sm:$0xff]   ;;  %v6034_v55 = vadd.f32 %v12051_v26, %v5993_v62 }
 0x31e   :  { %8198 = vmatprep.subr.bf16.mxu1 %v9435_v7 }
 0x320   :  { %8073 = vmatpush3.bf16.msra.mxu0 %v9351_v1 }
 0x321   :  { %8199 = vmatpush3.bf16.msra.mxu1 %v9352_v63  ;;  %8089 = vmatprep.subr.bf16.mxu0 %v9353_v2  ;;  %v9389_v2 = vld [vmem:[%s12354_s6 + $0x168] sm:$0xff]  }
 0x322   :  { %8111 = vmatprep.subr.bf16.mxu1 %v9361_v46 }
 0x323   :  { %6399 = vmatmul.mubr.bf16.vlgmr.msra.gmra.mxu0 %v11203_v39  ;;  %v9366_v39 = vld [vmem:[%s12354_s6 + $0xb0] sm:$0xff]  }
 0x324   :  { %8201 = vmatmul.mubr.bf16.vlgmr.msra.gmra.mxu1 %v11205_v25  ;;  %v12150_v59 = vpop.f32.mrf.mxu1  ;;  %8090 = vmatpush3.bf16.msra.mxu0 %v9354_v4  ;;  %v9369_v25 = vld [vmem:[%s12354_s6 + $0xe8] sm:$0xff]  }
 0x325   :  { %6954 = vmatprep.mubr.bf16.mxu0 %v6461_v28  ;;  %8091 = vmatprep.subr.bf16.mxu0 %v9355_v51  ;;  %v3237_v51 = vmax.f32 %v10885_v5, 0.0  ;;  %v9390_v28 = vld [vmem:[%s12354_s6 + $0x128] sm:$0xff]   ;;  %v9392_v5 = vld [vmem:[%s12354_s6 + $0x120] sm:$0xff]  }
 0x326   :  { %v12155_v10 = vpop.f32.mrf.mxu1  ;;  %8112 = vmatpush3.bf16.msra.mxu1 %v9362_v54 }
 0x327   :  { %8113 = vmatprep.subr.bf16.mxu1 %v9365_v48 }
 0x328   :  { %v6119_v13 = vpop.f32.mrf.mxu1  ;;  %8092 = vmatpush3.bf16.msra.mxu0 %v9356_v8  ;;  %v9391_v8 = vld [vmem:[%s12354_s6 + $0x160] sm:$0xff]  }
 0x329   :  { %8093 = vmatprep.subr.bf16.mxu0 %v9357_v9 }
 0x32a   :  { %v6120_v15 = vpop.f32.mrf.mxu1  ;;  %8114 = vmatpush3.bf16.msra.mxu1 %v9366_v39 }
 0x32b   :  { %8115 = vmatprep.subr.bf16.mxu1 %v9369_v25 }
 0x32c   :  { %8094 = vmatpush3.bf16.msra.mxu0 %v9358_v52  ;;  %v9401_v52 = vld [vmem:[%s12354_s6 + $0x1b8] sm:$0xff]  }
 0x32d   :  { %8095 = vmatprep.subr.bf16.mxu0 %v9359_v17  ;;  %v9395_v17 = vld [vmem:[%s12354_s6 + $0x150] sm:$0xff]  }
 0x32e   :  { %8116 = vmatpush3.bf16.msra.mxu1 %v9370_v19  ;;  %v9402_v19 = vld [vmem:[%s12354_s6 + $0x1b0] sm:$0xff]  }
 0x32f   :  { %8117 = vmatprep.subr.bf16.mxu1 %v9373_v20  ;;  %v9396_v20 = vld [vmem:[%s12354_s6 + $0x110] sm:$0xff]  }
 0x330   :  { %8096 = vmatpush3.bf16.msra.mxu0 %v9360_v21  ;;  %v9397_v21 = vld [vmem:[%s12354_s6 + $0x148] sm:$0xff]  }
 0x331   :  { %8097 = vmatprep.subr.bf16.mxu0 %v9363_v18  ;;  %v9403_v18 = vld [vmem:[%s12354_s6 + $0x1a8] sm:$0xff]  }
 0x332   :  { %8118 = vmatpush3.bf16.msra.mxu1 %v9374_v23  ;;  %v9398_v23 = vld [vmem:[%s12354_s6 + $0x108] sm:$0xff]  }
 0x333   :  { %8119 = vmatprep.subr.bf16.mxu1 %v9377_v29  ;;  %v9399_v29 = vld [vmem:[%s12354_s6 + $0x140] sm:$0xff]  }
 0x334   :  { %8098 = vmatpush3.bf16.msra.mxu0 %v9364_v16  ;;  %v9404_v16 = vld [vmem:[%s12354_s6 + $0x1a0] sm:$0xff]  }
 0x335   :  { %8099 = vmatprep.subr.bf16.mxu0 %v9367_v47  ;;  %v9400_v47 = vld [vmem:[%s12354_s6 + $0x100] sm:$0xff]  }
 0x336   :  { %8120 = vmatpush3.bf16.msra.mxu1 %v9378_v36  ;;  %v9405_v36 = vld [vmem:[%s12354_s6 + $0x198] sm:$0xff]  }
 0x337   :  { %8121 = vmatprep.subr.bf16.mxu1 %v9379_v37 }
 0x338   :  { %8100 = vmatpush3.bf16.msra.mxu0 %v9368_v40 }
 0x339   :  { %8101 = vmatprep.subr.bf16.mxu0 %v9371_v57  ;;  %v9406_v57 = vld [vmem:[%s12354_s6 + $0x190] sm:$0xff]  }
 0x33a   :  { %8122 = vmatpush3.bf16.msra.mxu1 %v9380_v49 }
 0x33b   :  { %8123 = vmatprep.subr.bf16.mxu1 %v9381_v38 }
 0x33c   :  { %8102 = vmatpush3.bf16.msra.mxu0 %v9372_v53  ;;  %v9407_v53 = vld [vmem:[%s12354_s6 + $0x188] sm:$0xff]  }
 0x33d   :  { %8103 = vmatprep.subr.bf16.mxu0 %v9375_v32  ;;  %v9408_v32 = vld [vmem:[%s12354_s6 + $0x180] sm:$0xff]  }
 0x33e   :  { %8124 = vmatpush3.bf16.msra.mxu1 %v9382_v44 }
 0x33f   :  { %8125 = vmatprep.subr.bf16.mxu1 %v9383_v56 }
 0x340   :  { %8104 = vmatpush3.bf16.msra.mxu0 %v9376_v42  ;;  %v3762_v42 = vrot.slane %v11711_v35, %v550_v27  ;;  %v3239_v27 = vmax.f32 %v11331_v0, 0.0  ;;  %v3770_v0 = vrot.slane %v11711_v35, %v558_v30 }
 0x341   :  { %8133 = vmatprep.subr.bf16.mxu0 %v9385_v45 }
 0x342   :  { %8126 = vmatpush3.bf16.msra.mxu1 %v9384_v22  ;;  %v3766_v22 = vrot.slane %v11711_v35, %v554_v31  ;;  %v3240_v31 = vmax.f32 %v11340_v60, 0.0 }
 0x343   :  { %8204 = vmatprep.subr.bf16.mxu1 %v9435_v7  ;;  %v6074_v24 = vpop.f32.mrf.mxu0  ;;  %6955 = vmatmul.mubr.bf16.vlgmr.msra.gmra.mxu0 %v6460_v61 }
 0x344   :  { %v6075_v1 = vadd.f32 %v6074_v24, %v6034_v55  ;;  %8134 = vmatpush3.bf16.msra.mxu0 %v9386_v3 }
 0x345   :  { %v6076_v63 = vpop.f32.mrf.mxu0  ;;  %8135 = vmatprep.subr.bf16.mxu0 %v9387_v12 }
 0x346   :  { %v6116_v26 = vadd.f32 %v12150_v59, %v6075_v1  ;;  %v6077_v46 = vadd.f32 %v6076_v63, %v6036_v33  ;;  %v3238_v59 = vmax.f32 %v10895_v11, 0.0  ;;  %v9394_v11 = vld [vmem:[%s12354_s6 + $0x118] sm:$0xff]  }
 0x347   :  { %v6078_v4 = vpop.f32.mrf.mxu0 }
 0x348   :  { %v6448_v54 = vmax.f32 %v6116_v26, 0.0  ;;  %v6118_v34 = vadd.f32 %v12155_v10, %v6077_v46  ;;  %8136 = vmatpush3.bf16.msra.mxu0 %v9388_v6  ;;  %v9393_v10 = vld [vmem:[%s12354_s6 + $0x158] sm:$0xff]  }
 0x349   :  { %v6079_v48 = vpop.f32.mrf.mxu0  ;;  %8137 = vmatprep.subr.bf16.mxu0 %v9389_v2 }
 0x34a   :  { %v6455_v9 = vmul.f32 %v6448_v54, %v3237_v51  ;;  %v6449_v39 = vmax.f32 %v6118_v34, 0.0 }
 0x34c   :  { %v6456_v25 = vmul.f32 %v6449_v39, %v3238_v59  ;;  %8138 = vmatpush3.bf16.msra.mxu0 %v9390_v28  ;;  %v6462_v15 = vpack.c.bf16 %v6455_v9, %v6455_v9 }
 0x34d   :  { %8139 = vmatprep.subr.bf16.mxu0 %v9391_v8 }
 0x34e   :  { %v6463_v13 = vpack.c.bf16 %v6456_v25, %v6456_v25 }
 0x350   :  { %6994 = vmatprep.mubr.bf16.mxu1 %v6463_v13  ;;  %8140 = vmatpush3.bf16.msra.mxu0 %v9392_v5 }
 0x351   :  { %6995 = vmatmul.mubr.bf16.vlgmr.msra.gmra.mxu1 %v6462_v15  ;;  %8141 = vmatprep.subr.bf16.mxu0 %v9393_v10 }
 0x352   :  { %8205 = vmatpush3.bf16.msra.mxu1 %v9401_v52  ;;  %8220 = vmatprep.mubr.msk.bf16.mxu1 %vm9436_vm0, %v9435_v7 }
 0x353   :  { %8206 = vmatprep.subr.bf16.mxu1 %v9435_v7 }
 0x354   :  { %8142 = vmatpush3.bf16.msra.mxu0 %v9394_v11 }
 0x355   :  { %8143 = vmatprep.subr.bf16.mxu0 %v9395_v17 }
 0x356   :  { %8207 = vmatpush3.bf16.msra.mxu1 %v9402_v19 }
 0x357   :  { %8208 = vmatprep.subr.bf16.mxu1 %v9435_v7 }
 0x358   :  { %8144 = vmatpush3.bf16.msra.mxu0 %v9396_v20 }
 0x359   :  { %8145 = vmatprep.subr.bf16.mxu0 %v9397_v21 }
 0x35a   :  { %8209 = vmatpush3.bf16.msra.mxu1 %v9403_v18 }
 0x35b   :  { %8210 = vmatprep.subr.bf16.mxu1 %v9435_v7 }
 0x35c   :  { %8146 = vmatpush3.bf16.msra.mxu0 %v9398_v23 }
 0x35d   :  { %8147 = vmatprep.subr.bf16.mxu0 %v9399_v29 }
 0x35e   :  { %8211 = vmatpush3.bf16.msra.mxu1 %v9404_v16 }
 0x35f   :  { %8212 = vmatprep.subr.bf16.mxu1 %v9435_v7 }
 0x360   :  { %8148 = vmatpush3.bf16.msra.mxu0 %v9400_v47 }
 0x362   :  { %8213 = vmatpush3.bf16.msra.mxu1 %v9405_v36 }
 0x363   :  { %8214 = vmatprep.subr.bf16.mxu1 %v9435_v7 }
 0x364   :  { %v6156_v37 = vpop.f32.mrf.mxu1 }
 0x365   :  { %v6157_v45 = vadd.f32 %v6156_v37, %v3762_v42 }
 0x366   :  { %v6158_v40 = vpop.f32.mrf.mxu1  ;;  %8215 = vmatpush3.bf16.msra.mxu1 %v9406_v57 }
 0x367   :  { %8216 = vmatprep.subr.bf16.mxu1 %v9435_v7  ;;  %v6159_v62 = vadd.f32 %v6158_v40, %v3766_v22  ;;  %v3241_v40 = vmax.f32 %v11531_v50, 0.0 }
 0x368   :  { %v6160_v49 = vpop.f32.mrf.mxu1 }
 0x36a   :  { %v6161_v38 = vpop.f32.mrf.mxu1  ;;  %8217 = vmatpush3.bf16.msra.mxu1 %v9407_v53 }
 0x36b   :  { %8218 = vmatprep.subr.bf16.mxu1 %v9435_v7 }
 0x36e   :  { %8219 = vmatpush3.bf16.msra.mxu1 %v9408_v32 }
 0x383   :  { %v6197_v44 = vpop.f32.mrf.mxu0 }
 0x384   :  { %v6198_v7 = vadd.f32 %v6197_v44, %v6157_v45  ;;  %v7882_v44 = vld [vmem:[%s12355_s7] ss:$0 sm:$0xff]  ;;  %s9411_s7 = scalar_lea.vmem %s7091_s20, 32 }
 0x385   :  { %v6199_v14 = vpop.f32.mrf.mxu0  ;;  %p9412_p0 = scmp.ne.s32.totalorder %s7091_s20, %s9411_s7  ;;  %p9417_p2 = scmp.lt.s32.totalorder %s9411_s7, %s9411_s7 }
 0x386   :  { %v6200_v61 = vadd.f32 %v6199_v14, %v6159_v62 }
 0x387   :  { %v6201_v56 = vpop.f32.mrf.mxu0  ;;  %p9418_p3 = por %p9417_p2, %p9416_p1 }
 0x389   :  { %v6202_v41 = vpop.f32.mrf.mxu0  ;;  %p9419_p4 = pnand %p9418_p3, %p9412_p0 }
 0x3a3   :  { %v6279_v3 = vpop.f32.mrf.mxu0 }
 0x3a4   :  { %v6238_v58 = vpop.f32.mrf.mxu1 }
 0x3a5   :  { %v6239_v12 = vadd.f32 %v6238_v58, %v6198_v7  ;;  %v6281_v24 = vpop.f32.mrf.mxu0 }
 0x3a6   :  { %v6240_v55 = vpop.f32.mrf.mxu1 }
 0x3a7   :  { %v6280_v33 = vadd.f32 %v6279_v3, %v6239_v12  ;;  %v6241_v1 = vadd.f32 %v6240_v55, %v6200_v61  ;;  %v6283_v6 = vpop.f32.mrf.mxu0 }
 0x3a8   :  { %v6242_v63 = vpop.f32.mrf.mxu1 }
 0x3a9   :  { %v6450_v2 = vmax.f32 %v6280_v33, 0.0  ;;  %v6282_v26 = vadd.f32 %v6281_v24, %v6241_v1  ;;  %v6284_v46 = vpop.f32.mrf.mxu0 }
 0x3aa   :  { %v6243_v4 = vpop.f32.mrf.mxu1 }
 0x3ab   :  { %v6451_v51 = vmax.f32 %v6282_v26, 0.0  ;;  %v6457_v54 = vmul.f32 %v6450_v2, %v3239_v27 }
 0x3ad   :  { %v6458_v34 = vmul.f32 %v6451_v51, %v3240_v31  ;;  %v6464_v48 = vpack.c.bf16 %v6457_v54, %v6457_v54 }
 0x3af   :  { %v6465_v28 = vpack.c.bf16 %v6458_v34, %v6458_v34 }
 0x3b1   :  { %7034 = vmatprep.mubr.bf16.mxu0 %v6465_v28 }
 0x3b2   :  { %7035 = vmatmul.mubr.bf16.vlgmr.msra.gmra.mxu0 %v6464_v48 }
 0x3c3   :  { %v8030_v8 = vpop.f32.mrf.mxu0 }
 0x3c4   :  { %v8052_v59 = vpop.f32.mrf.mxu1 }
 0x3c5   :  { %v8031_v9 = vpop.f32.mrf.mxu0 }
 0x3c6   :  { %v8053_v39 = vpop.f32.mrf.mxu1  ;;  %v8032_v60 = vadd.f32 %v8031_v9, %v8030_v8 }
 0x3c7   :  { %v8033_v25 = vpop.f32.mrf.mxu0  ;;  %v8054_v15 = vadd.f32 %v8053_v39, %v8052_v59 }
 0x3c8   :  { %v8055_v5 = vpop.f32.mrf.mxu1  ;;  %v6321_v52 = vadd.f32 %v8032_v60, %v3770_v0 }
 0x3c9   :  { %v8034_v10 = vpop.f32.mrf.mxu0 }
 0x3ca   :  { %v8056_v13 = vpop.f32.mrf.mxu1  ;;  %v6361_v21 = vadd.f32 %v8054_v15, %v6321_v52 }
 0x3e3   :  { %v8074_v11 = vpop.f32.mrf.mxu0 }
 0x3e4   :  { %v6440_v17 = vpop.f32.mrf.mxu1 }
 0x3e5   :  { %v8075_v19 = vpop.f32.mrf.mxu0 }
 0x3e6   :  { %v8202_v20 = vpop.f32.mrf.mxu1  ;;  %v8076_v18 = vadd.f32 %v8075_v19, %v8074_v11 }
 0x3e7   :  { %v8077_v23 = vpop.f32.mrf.mxu0 }
 0x3e8   :  { %v6443_v29 = vpop.f32.mrf.mxu1  ;;  %v6401_v16 = vadd.f32 %v8076_v18, %v6361_v21 }
 0x3e9   :  { %v8078_v47 = vpop.f32.mrf.mxu0 }
 0x3ea   :  { %v8203_v36 = vpop.f32.mrf.mxu1  ;;  %v6441_v37 = vadd.f32 %v6440_v17, %v6401_v16 }
 0x3ec   :  { %v6452_v43 = vmax.f32 %v6441_v37, 0.0 }
 0x3ee   :  { %v6459_v57 = vmul.f32 %v6452_v43, %v3241_v40 }
 0x3f0   :  { %v6466_v30 = vpack.c.bf16 %v6459_v57, %v6459_v57 }
 0x3f2   :  { %8221 = vmatmul.mubr.bf16.vlgmr.msra.gmra.mxu1 %v6466_v30 }
 0x403   :  { %v8105_v35 = vpop.f32.mrf.mxu0 }
 0x405   :  { %v8106_v49 = vpop.f32.mrf.mxu0 }
 0x406   :  { %v8107_v38 = vadd.f32 %v8106_v49, %v8105_v35 }
 0x407   :  { %v8108_v53 = vpop.f32.mrf.mxu0 }
 0x408   :  { %v6957_v41 = vadd.f32 %v8107_v38, %v7882_v44 }
 0x409   :  { %v8109_v32 = vpop.f32.mrf.mxu0 }
 0x411   :  { %v8127_v14 = vpop.f32.mrf.mxu1 }
 0x413   :  { %v8128_v56 = vpop.f32.mrf.mxu1 }
 0x414   :  { %v8129_v42 = vadd.f32 %v8128_v56, %v8127_v14 }
 0x415   :  { %v8130_v22 = vpop.f32.mrf.mxu1 }
 0x416   :  { %v6997_v45 = vadd.f32 %v8129_v42, %v6957_v41 }
 0x417   :  { %v8131_v50 = vpop.f32.mrf.mxu1 }
 0x472   :  { %v8149_v62 = vpop.f32.mrf.mxu0 }
 0x474   :  { %v8150_v7 = vpop.f32.mrf.mxu0 }
 0x475   :  { %v8151_v61 = vadd.f32 %v8150_v7, %v8149_v62 }
 0x476   :  { %v8152_v58 = vpop.f32.mrf.mxu0 }
 0x477   :  { %v7037_v12 = vadd.f32 %v8151_v61, %v6997_v45 }
 0x478   :  { %v8153_v3 = vpop.f32.mrf.mxu0 }
 0x4b2   :  { %v7076_v55 = vpop.f32.mrf.mxu1 }
 0x4b3   :  { %v7077_v24 = vadd.f32 %v7076_v55, %v7037_v12 }
 0x4b4   :  { %v8222_v33 = vpop.f32.mrf.mxu1 }
 0x4b5   :  { %7083 = vst.msk [vmem:[#allocation2] sm:$0x3] %vm7082_vm1, %v7077_v24 }
 0x4b6   :  { %v7079_v1 = vpop.f32.mrf.mxu1 }
 0x4b7   :  { %9422 = shalt.err (!%p9419_p4)
}
 0x4b8   :  { %7093 = dma.vmem_to_hbm [thread:$0]  %s7091_s20, 32, %s12356_s8, [#allocation3]   ;;  %v8223_v6 = vpop.f32.mrf.mxu1 }
 0x4b9   :  { %9431 = dma.done.wait [#allocation3], 32  }
 0x4ba   :  { %9432 = vsyncadd [#allocation3], 4294967264 }
 0x4bb   :  { %7097 = vsyncpa [#allocation3], 1 }

</bundles_post_ra>
